<compile_context>
chip_gen: v7x
topology: tpu7x:2x2x1
jax: 0.10.0
libtpu: 0.0.40
codegen_flags: <defaults>
</compile_context>

<pallas_src>
import functools

import numpy as np
import jax
import jax.numpy as jnp
from jax.experimental import pallas as pl
from jax.experimental.pallas import tpu as pltpu

EPS = 1e-5


def _upconvblock2_kernel(xh_ref, xv_ref, ph_ref, upw_ref, upb_ref, hup_ref,
                         w1_ref, b1_ref, w2_ref, b2_ref, g_ref, bt_ref, fold_ref,
                         out_ref, pad_ref, *, N, D, H, W, C1, C2):
    """Whole UpConvBlock2 forward, fully VMEM-resident (small shapes).

    xh_ref  : (N*D*H, W*Cs)            f32   skip connection, rows=(n,d,h), lanes=(w,c)
    xv_ref  : (N*D*Hv, Wv*Cv)          f32   low-res input
    ph_ref  : (W*Cs, W*C1)             f32   0/1 placement of xh into concat lanes
    upw_ref : (Wv*Cv, W*C1)            f32   fused 1x1x1-conv x W-upsample (xv lanes)
    upb_ref : (1, W*C1)                f32   1x1x1 conv bias (xv lanes only)
    hup_ref : (N*D*H, N*D*Hv)          f32   block-diagonal H-upsample matrix
    w1_ref  : (9, (W+2)*C1, W*C2)      bf16  banded conv1 weights, one per (kd,kh)
    w2_ref  : (9, (W+2)*C2, W*C2)      bf16  banded conv2 weights
    b1/b2/g/bt_ref : (1, W*C2)         f32   biases / BN gamma,beta tiled over w
    fold_ref: (W*C2, W*C2)             f32   kron(ones(W,W), eye(C2)) for BN stats
    out_ref : (N*D*H, W*C2)            f32   lane-dense output
    pad_ref : (N, D+2, H+2, (W+2)*C1)  bf16  shared padded scratch (reused by conv2)
    """
    R = N * D * H  # rows

    # ---------- Stage 1: UpConv2x2 + channel concat (all MXU matmuls) ----------
    s1 = jnp.dot(xv_ref[...], upw_ref[...], preferred_element_type=jnp.float32)
    xv_up = jnp.dot(hup_ref[...], s1, preferred_element_type=jnp.float32) + upb_ref[...]
    xh_put = jnp.dot(xh_ref[...], ph_ref[...], preferred_element_type=jnp.float32)
    x1 = xh_put + xv_up                                      # (R, W*C1) concat result

    # ---------- Stage 2: shared padded scratch (zero once; halos stay zero) ----------
    pad_ref[...] = jnp.zeros(pad_ref.shape, pad_ref.dtype)
    pad_ref[:, 1:D + 1, 1:H + 1, C1:(W + 1) * C1] = (
        x1.astype(pad_ref.dtype).reshape(N, D, H, W * C1))

    def conv3x3x3(w_ref, b_row, cin):
        # 3x3x3 "same" conv as 9 accumulated matmuls; kw taps + cin are folded into
        # the contraction (K = (W+2)*cin) by the banded weight matrices.
        lanes = (W + 2) * cin
        acc = jnp.zeros((R, W * C2), jnp.float32)
        for kd in range(3):
            for kh in range(3):
                lhs = pad_ref[:, kd:kd + D, kh:kh + H, 0:lanes].reshape(R, lanes)
                acc = acc + jnp.dot(lhs, w_ref[3 * kd + kh],
                                    preferred_element_type=jnp.float32)
        return acc + b_row

    def bn_relu(y):
        # Training-mode BatchNorm3d (batch stats, biased variance) + ReLU.
        # One-pass stats: per-lane sum / sum-of-squares, then a single dot with the
        # fold matrix both reduces over the W lane-replicas of each channel and
        # broadcasts the per-channel statistic back to every lane.
        m = float(R * W)
        s = jnp.sum(y, axis=0, keepdims=True)                # (1, W*C2)
        s2 = jnp.sum(y * y, axis=0, keepdims=True)
        mean = jnp.dot(s, fold_ref[...], preferred_element_type=jnp.float32) / m
        ex2 = jnp.dot(s2, fold_ref[...], preferred_element_type=jnp.float32) / m
        var = ex2 - mean * mean
        scale = g_ref[...] * jax.lax.rsqrt(var + EPS)
        shift = bt_ref[...] - mean * scale
        return jnp.maximum(y * scale + shift, 0.0)

    # conv1 -> BN -> ReLU
    h1 = bn_relu(conv3x3x3(w1_ref, b1_ref[...], C1))          # (R, W*C2) f32

    # Reuse the padded scratch for conv2: overwrite the interior with h1 and clear
    # the single stale halo strip (w = W+1 group held conv1 data); every other halo
    # is still zero from the one zero-fill above.
    pad_ref[:, 1:D + 1, 1:H + 1, C2:(W + 1) * C2] = (
        h1.astype(pad_ref.dtype).reshape(N, D, H, W * C2))
    pad_ref[:, 1:D + 1, 1:H + 1, (W + 1) * C2:(W + 2) * C2] = jnp.zeros(
        (N, D, H, C2), pad_ref.dtype)

    # conv2 -> BN -> ReLU (same norm instance => same gamma/beta)
    out_ref[...] = bn_relu(conv3x3x3(w2_ref, b2_ref[...], C2))


# ------------------------------ wrapper-side glue ------------------------------
def _up_matrix(l_in):
    """Half-pixel-centers (align_corners=False) 2x linear upsample matrix (2L, L)."""
    u = np.zeros((2 * l_in, l_in), np.float32)
    for o in range(2 * l_in):
        src = max((o + 0.5) / 2.0 - 0.5, 0.0)
        lo = int(np.floor(src))
        hi = min(lo + 1, l_in - 1)
        f = src - lo
        u[o, lo] += 1.0 - f
        u[o, hi] += f
    return u


def _banded_conv_weights(w, cin, cout, W):
    """PyTorch (cout, cin, 3, 3, 3) -> (9, (W+2)*cin, W*cout) banded matrices.

    Band matrix for (kd, kh): rows index the padded (w', cin) lane axis of the
    activation, cols index the output (w, cout) lane axis; the 3 kw taps live
    inside the band, so one matmul covers kw and cin at once.
    """
    P = np.zeros((3, W, W + 2), np.float32)
    for kw in range(3):
        for wo in range(W):
            P[kw, wo, wo + kw] = 1.0
    wt = jnp.transpose(w, (2, 3, 4, 1, 0))                    # (kd, kh, kw, cin, cout)
    wb = jnp.einsum('kwp,dhkio->dhpiwo', jnp.asarray(P), wt)
    return wb.reshape(9, (W + 2) * cin, W * cout)


def upconvblock2_pallas(xh, xv, wc, bc, w1, b1, w2, b2, gamma, beta):
    """xh: (N, Cs, D, H, W) skip; xv: (N, Cv, D, H//2, W//2); weights in PyTorch layout."""
    N, Cs, D, H, W = xh.shape
    _, Cv, _, Hv, Wv = xv.shape
    Ch = wc.shape[0]                   # = Cv // 2 (UpConv2x2 output channels)
    C1 = Cs + Ch                       # ConvBlock3 input channels
    Co = w1.shape[0]                   # block out_channels
    assert (H, W) == (2 * Hv, 2 * Wv) and w1.shape[1] == C1 and w2.shape[1] == Co

    f32 = jnp.float32
    # layout glue: NCDHW -> rows=(n,d,h), lanes=(w,c)
    xh_rows = jnp.transpose(xh, (0, 2, 3, 4, 1)).reshape(N * D * H, W * Cs).astype(f32)
    xv_rows = jnp.transpose(xv, (0, 2, 3, 4, 1)).reshape(N * D * Hv, Wv * Cv).astype(f32)

    # constant matrices: upsample, 1x1x1 conv and concat placement
    uw = _up_matrix(Wv)                                       # (W, Wv)
    uh = _up_matrix(Hv)                                       # (H, Hv)
    upw = jnp.einsum('wv,oc->vcwo', jnp.asarray(uw), wc.reshape(Ch, Cv).astype(f32))
    upw = jnp.pad(upw, ((0, 0), (0, 0), (0, 0), (Cs, 0))).reshape(Wv * Cv, W * C1)
    upb = jnp.tile(jnp.pad(bc.astype(f32), (Cs, 0)), W).reshape(1, W * C1)
    hup = jnp.asarray(np.kron(np.eye(N * D, dtype=np.float32), uh))      # (N*D*H, N*D*Hv)
    ph = jnp.asarray(np.kron(
        np.eye(W, dtype=np.float32),
        np.concatenate([np.eye(Cs, dtype=np.float32),
                        np.zeros((Cs, C1 - Cs), np.float32)], axis=1)))  # (W*Cs, W*C1)

    # banded 3x3x3 conv weights (bf16 for the MXU); biases / BN params tiled over w
    w1b = _banded_conv_weights(w1, C1, Co, W).astype(jnp.bfloat16)
    w2b = _banded_conv_weights(w2, Co, Co, W).astype(jnp.bfloat16)
    b1r = jnp.tile(b1.astype(f32), W).reshape(1, W * Co)
    b2r = jnp.tile(b2.astype(f32), W).reshape(1, W * Co)
    g_r = jnp.tile(gamma.astype(f32), W).reshape(1, W * Co)
    bt_r = jnp.tile(beta.astype(f32), W).reshape(1, W * Co)
    fold = jnp.asarray(np.kron(np.ones((W, W), np.float32),
                               np.eye(Co, dtype=np.float32)))            # (W*Co, W*Co)

    kernel = functools.partial(_upconvblock2_kernel,
                               N=N, D=D, H=H, W=W, C1=C1, C2=Co)
    vmem = pl.BlockSpec(memory_space=pltpu.MemorySpace.VMEM)

    # TODO(synk): for non-toy shapes, grid over D-slabs (halo rows in the BlockSpec)
    # with dimension_semantics=("parallel",) and a two-pass BatchNorm (stats pass,
    # then normalize pass) so both v7x TensorCores contribute and the padded scratch
    # tiles; at these sizes a single VMEM-resident invocation is fastest.
    out_rows = pl.pallas_call(
        kernel,
        out_shape=jax.ShapeDtypeStruct((N * D * H, W * Co), f32),
        in_specs=[vmem] * 13,
        out_specs=vmem,
        scratch_shapes=[
            pltpu.VMEM((N, D + 2, H + 2, (W + 2) * C1), jnp.bfloat16),
        ],
    )(xh_rows, xv_rows, ph, upw, upb, hup, w1b, b1r, w2b, b2r, g_r, bt_r, fold)

    out = out_rows.reshape(N, D, H, W, Co)
    return jnp.transpose(out, (0, 4, 1, 2, 3))                # back to NCDHW


# ----------------------------- reference (plain JAX) -----------------------------
def upconvblock2_ref(xh, xv, wc, bc, w1, b1, w2, b2, gamma, beta):
    def up2x(a, axis):
        L = a.shape[axis]
        src = jnp.clip((jnp.arange(2 * L) + 0.5) / 2.0 - 0.5, 0.0, L - 1.0)
        lo = jnp.floor(src).astype(jnp.int32)
        hi = jnp.minimum(lo + 1, L - 1)
        shape = [1] * a.ndim
        shape[axis] = 2 * L
        f = (src - lo.astype(jnp.float32)).reshape(shape)
        return jnp.take(a, lo, axis=axis) * (1.0 - f) + jnp.take(a, hi, axis=axis) * f

    def conv3d(x, w, b, pad):
        y = jax.lax.conv_general_dilated(
            x, w, window_strides=(1, 1, 1), padding=pad,
            dimension_numbers=("NCDHW", "OIDHW", "NCDHW"))
        return y + b[None, :, None, None, None]

    def bn_relu(y):
        mean = jnp.mean(y, axis=(0, 2, 3, 4), keepdims=True)
        var = jnp.mean((y - mean) ** 2, axis=(0, 2, 3, 4), keepdims=True)
        yhat = (y - mean) * jax.lax.rsqrt(var + EPS)
        yhat = yhat * gamma[None, :, None, None, None] + beta[None, :, None, None, None]
        return jnp.maximum(yhat, 0.0)

    xv_up = conv3d(up2x(up2x(xv, 3), 4), wc, bc, ((0, 0), (0, 0), (0, 0)))
    x = jnp.concatenate([xh, xv_up], axis=1)
    y = bn_relu(conv3d(x, w1, b1, ((1, 1), (1, 1), (1, 1))))
    return bn_relu(conv3d(y, w2, b2, ((1, 1), (1, 1), (1, 1))))


# ----------------------------------- main -----------------------------------
if __name__ == "__main__":
    # UpConvBlock2(in_channels=8, out_channels=8):
    #   xv: (N, 8, D, H/2, W/2) low-res features, xh: (N, 8, D, H, W) skip connection.
    N, in_ch, out_ch = 2, 8, 8
    D, Hv, Wv = 4, 8, 8
    H, W = 2 * Hv, 2 * Wv
    Ch = in_ch // 2
    C1 = out_ch + Ch                   # ConvBlock3 input channels = 12

    key = jax.random.PRNGKey(0)
    ks = jax.random.split(key, 8)
    xh = jax.random.normal(ks[0], (N, out_ch, D, H, W), jnp.float32)
    xv = jax.random.normal(ks[1], (N, in_ch, D, Hv, Wv), jnp.float32)

    def uinit(k, shape, fan_in):
        b = 1.0 / float(np.sqrt(fan_in))
        return jax.random.uniform(k, shape, jnp.float32, -b, b)

    # PyTorch-style deterministic init: U(-1/sqrt(fan_in), 1/sqrt(fan_in)).
    wc = uinit(ks[2], (Ch, in_ch, 1, 1, 1), in_ch)
    bc = uinit(ks[3], (Ch,), in_ch)
    w1 = uinit(ks[4], (out_ch, C1, 3, 3, 3), C1 * 27)
    b1 = uinit(ks[5], (out_ch,), C1 * 27)
    w2 = uinit(ks[6], (out_ch, out_ch, 3, 3, 3), out_ch * 27)
    b2 = uinit(ks[7], (out_ch,), out_ch * 27)
    gamma = jnp.ones((out_ch,), jnp.float32)   # BatchNorm3d default affine
    beta = jnp.zeros((out_ch,), jnp.float32)

    out = upconvblock2_pallas(xh, xv, wc, bc, w1, b1, w2, b2, gamma, beta)
    out = jax.block_until_ready(out)

    ref = upconvblock2_ref(xh, xv, wc, bc, w1, b1, w2, b2, gamma, beta)
    assert out.shape == (N, out_ch, D, H, W)
    err = float(jnp.max(jnp.abs(out - ref)))
    assert err < 5e-2, f"max abs err {err}"    # bf16 matmul inputs, f32 accumulation
    print("KERNEL_OK")
</pallas_src>

<mosaic_0001>
module attributes {stable_mosaic.version = 11 : i64} {
  func.func @_upconvblock2_kernel(%arg0: memref<128x128xf32, #tpu.memory_space<vmem>>, %arg1: memref<64x64xf32, #tpu.memory_space<vmem>>, %arg2: memref<128x192xf32, #tpu.memory_space<vmem>>, %arg3: memref<64x192xf32, #tpu.memory_space<vmem>>, %arg4: memref<1x192xf32, #tpu.memory_space<vmem>>, %arg5: memref<128x64xf32, #tpu.memory_space<vmem>>, %arg6: memref<9x216x128xbf16, #tpu.memory_space<vmem>>, %arg7: memref<1x128xf32, #tpu.memory_space<vmem>>, %arg8: memref<9x144x128xbf16, #tpu.memory_space<vmem>>, %arg9: memref<1x128xf32, #tpu.memory_space<vmem>>, %arg10: memref<1x128xf32, #tpu.memory_space<vmem>>, %arg11: memref<1x128xf32, #tpu.memory_space<vmem>>, %arg12: memref<128x128xf32, #tpu.memory_space<vmem>>, %arg13: memref<128x128xf32, #tpu.memory_space<vmem>>, %arg14: memref<2x6x18x216xbf16, #tpu.memory_space<vmem>>) attributes {dimension_semantics = [], scalar_prefetch = 0 : i64, scratch_operands = 1 : i64, tpu.core_type = #tpu.core_type<tc>} {
    %c0 = arith.constant 0 : index
    %c0_0 = arith.constant 0 : index
    %0 = vector.load %arg1[%c0, %c0_0] : memref<64x64xf32, #tpu.memory_space<vmem>>, vector<64x64xf32>
    %c0_1 = arith.constant 0 : index
    %c0_2 = arith.constant 0 : index
    %1 = vector.load %arg3[%c0_1, %c0_2] : memref<64x192xf32, #tpu.memory_space<vmem>>, vector<64x192xf32>
    %cst = arith.constant dense<0.000000e+00> : vector<64x192xf32>
    %2 = tpu.matmul %0, %1, %cst {dimension_numbers = #tpu.dot_dimension_numbers<[1], [0], [0], [1], [0, 0, 1, 1], [], []>} : vector<64x64xf32>, vector<64x192xf32>, vector<64x192xf32> -> vector<64x192xf32>
    %c0_3 = arith.constant 0 : index
    %c0_4 = arith.constant 0 : index
    %3 = vector.load %arg5[%c0_3, %c0_4] : memref<128x64xf32, #tpu.memory_space<vmem>>, vector<128x64xf32>
    %cst_5 = arith.constant dense<0.000000e+00> : vector<128x192xf32>
    %4 = tpu.matmul %3, %2, %cst_5 {dimension_numbers = #tpu.dot_dimension_numbers<[1], [0], [0], [1], [0, 0, 1, 1], [], []>} : vector<128x64xf32>, vector<64x192xf32>, vector<128x192xf32> -> vector<128x192xf32>
    %c0_6 = arith.constant 0 : index
    %c0_7 = arith.constant 0 : index
    %5 = vector.load %arg4[%c0_6, %c0_7] : memref<1x192xf32, #tpu.memory_space<vmem>>, vector<1x192xf32>
    %6 = vector.broadcast %5 : vector<1x192xf32> to vector<128x192xf32>
    %7 = arith.addf %4, %6 : vector<128x192xf32>
    %c0_8 = arith.constant 0 : index
    %c0_9 = arith.constant 0 : index
    %8 = vector.load %arg0[%c0_8, %c0_9] : memref<128x128xf32, #tpu.memory_space<vmem>>, vector<128x128xf32>
    %c0_10 = arith.constant 0 : index
    %c0_11 = arith.constant 0 : index
    %9 = vector.load %arg2[%c0_10, %c0_11] : memref<128x192xf32, #tpu.memory_space<vmem>>, vector<128x192xf32>
    %cst_12 = arith.constant dense<0.000000e+00> : vector<128x192xf32>
    %10 = tpu.matmul %8, %9, %cst_12 {dimension_numbers = #tpu.dot_dimension_numbers<[1], [0], [0], [1], [0, 0, 1, 1], [], []>} : vector<128x128xf32>, vector<128x192xf32>, vector<128x192xf32> -> vector<128x192xf32>
    %11 = arith.addf %10, %7 : vector<128x192xf32>
    %cst_13 = arith.constant 0.000000e+00 : bf16
    %12 = vector.broadcast %cst_13 : bf16 to vector<2x6x18x216xbf16>
    %c0_14 = arith.constant 0 : index
    %c0_15 = arith.constant 0 : index
    %c0_16 = arith.constant 0 : index
    %c0_17 = arith.constant 0 : index
    %13 = vector.load %arg14[%c0_14, %c0_15, %c0_16, %c0_17] : memref<2x6x18x216xbf16, #tpu.memory_space<vmem>>, vector<2x6x18x216xbf16>
    tpu.vector_store %arg14[%c0_14, %c0_15, %c0_16, %c0_17], %12 {strides = array<i32>} : memref<2x6x18x216xbf16, #tpu.memory_space<vmem>>, vector<2x6x18x216xbf16>,
    %14 = arith.truncf %11 : vector<128x192xf32> to vector<128x192xbf16>
    %15 = vector.shape_cast %14 : vector<128x192xbf16> to vector<2x4x16x192xbf16>
    %c0_18 = arith.constant 0 : index
    %c1 = arith.constant 1 : index
    %c1_19 = arith.constant 1 : index
    %c12 = arith.constant 12 : index
    %16 = vector.load %arg14[%c0_18, %c1, %c1_19, %c12] : memref<2x6x18x216xbf16, #tpu.memory_space<vmem>>, vector<2x4x16x192xbf16>
    tpu.vector_store %arg14[%c0_18, %c1, %c1_19, %c12], %15 {strides = array<i32>} : memref<2x6x18x216xbf16, #tpu.memory_space<vmem>>, vector<2x4x16x192xbf16>,
    %c0_20 = arith.constant 0 : index
    %c0_21 = arith.constant 0 : index
    %17 = vector.load %arg7[%c0_20, %c0_21] : memref<1x128xf32, #tpu.memory_space<vmem>>, vector<1x128xf32>
    %cst_22 = arith.constant 0.000000e+00 : f32
    %18 = vector.broadcast %cst_22 : f32 to vector<128x128xf32>
    %c0_23 = arith.constant 0 : index
    %c0_24 = arith.constant 0 : index
    %c0_25 = arith.constant 0 : index
    %c0_26 = arith.constant 0 : index
    %19 = vector.load %arg14[%c0_23, %c0_24, %c0_25, %c0_26] : memref<2x6x18x216xbf16, #tpu.memory_space<vmem>>, vector<2x4x16x216xbf16>
    %20 = vector.shape_cast %19 : vector<2x4x16x216xbf16> to vector<128x216xbf16>
    %c0_27 = arith.constant 0 : index
    %c0_28 = arith.constant 0 : index
    %c0_29 = arith.constant 0 : index
    %21 = vector.load %arg6[%c0_27, %c0_28, %c0_29] : memref<9x216x128xbf16, #tpu.memory_space<vmem>>, vector<1x216x128xbf16>
    %22 = vector.shape_cast %21 : vector<1x216x128xbf16> to vector<216x128xbf16>
    %cst_30 = arith.constant dense<0.000000e+00> : vector<128x128xf32>
    %23 = tpu.matmul %20, %22, %cst_30 {dimension_numbers = #tpu.dot_dimension_numbers<[1], [0], [0], [1], [0, 0, 1, 1], [], []>} : vector<128x216xbf16>, vector<216x128xbf16>, vector<128x128xf32> -> vector<128x128xf32>
    %24 = arith.addf %18, %23 : vector<128x128xf32>
    %c0_31 = arith.constant 0 : index
    %c0_32 = arith.constant 0 : index
    %c1_33 = arith.constant 1 : index
    %c0_34 = arith.constant 0 : index
    %25 = vector.load %arg14[%c0_31, %c0_32, %c1_33, %c0_34] : memref<2x6x18x216xbf16, #tpu.memory_space<vmem>>, vector<2x4x16x216xbf16>
    %26 = vector.shape_cast %25 : vector<2x4x16x216xbf16> to vector<128x216xbf16>
    %c1_35 = arith.constant 1 : index
    %c0_36 = arith.constant 0 : index
    %c0_37 = arith.constant 0 : index
    %27 = vector.load %arg6[%c1_35, %c0_36, %c0_37] : memref<9x216x128xbf16, #tpu.memory_space<vmem>>, vector<1x216x128xbf16>
    %28 = vector.shape_cast %27 : vector<1x216x128xbf16> to vector<216x128xbf16>
    %cst_38 = arith.constant dense<0.000000e+00> : vector<128x128xf32>
    %29 = tpu.matmul %26, %28, %cst_38 {dimension_numbers = #tpu.dot_dimension_numbers<[1], [0], [0], [1], [0, 0, 1, 1], [], []>} : vector<128x216xbf16>, vector<216x128xbf16>, vector<128x128xf32> -> vector<128x128xf32>
    %30 = arith.addf %24, %29 : vector<128x128xf32>
    %c0_39 = arith.constant 0 : index
    %c0_40 = arith.constant 0 : index
    %c2 = arith.constant 2 : index
    %c0_41 = arith.constant 0 : index
    %31 = vector.load %arg14[%c0_39, %c0_40, %c2, %c0_41] : memref<2x6x18x216xbf16, #tpu.memory_space<vmem>>, vector<2x4x16x216xbf16>
    %32 = vector.shape_cast %31 : vector<2x4x16x216xbf16> to vector<128x216xbf16>
    %c2_42 = arith.constant 2 : index
    %c0_43 = arith.constant 0 : index
    %c0_44 = arith.constant 0 : index
    %33 = vector.load %arg6[%c2_42, %c0_43, %c0_44] : memref<9x216x128xbf16, #tpu.memory_space<vmem>>, vector<1x216x128xbf16>
    %34 = vector.shape_cast %33 : vector<1x216x128xbf16> to vector<216x128xbf16>
    %cst_45 = arith.constant dense<0.000000e+00> : vector<128x128xf32>
    %35 = tpu.matmul %32, %34, %cst_45 {dimension_numbers = #tpu.dot_dimension_numbers<[1], [0], [0], [1], [0, 0, 1, 1], [], []>} : vector<128x216xbf16>, vector<216x128xbf16>, vector<128x128xf32> -> vector<128x128xf32>
    %36 = arith.addf %30, %35 : vector<128x128xf32>
    %c0_46 = arith.constant 0 : index
    %c1_47 = arith.constant 1 : index
    %c0_48 = arith.constant 0 : index
    %c0_49 = arith.constant 0 : index
    %37 = vector.load %arg14[%c0_46, %c1_47, %c0_48, %c0_49] : memref<2x6x18x216xbf16, #tpu.memory_space<vmem>>, vector<2x4x16x216xbf16>
    %38 = vector.shape_cast %37 : vector<2x4x16x216xbf16> to vector<128x216xbf16>
    %c3 = arith.constant 3 : index
    %c0_50 = arith.constant 0 : index
    %c0_51 = arith.constant 0 : index
    %39 = vector.load %arg6[%c3, %c0_50, %c0_51] : memref<9x216x128xbf16, #tpu.memory_space<vmem>>, vector<1x216x128xbf16>
    %40 = vector.shape_cast %39 : vector<1x216x128xbf16> to vector<216x128xbf16>
    %cst_52 = arith.constant dense<0.000000e+00> : vector<128x128xf32>
    %41 = tpu.matmul %38, %40, %cst_52 {dimension_numbers = #tpu.dot_dimension_numbers<[1], [0], [0], [1], [0, 0, 1, 1], [], []>} : vector<128x216xbf16>, vector<216x128xbf16>, vector<128x128xf32> -> vector<128x128xf32>
    %42 = arith.addf %36, %41 : vector<128x128xf32>
    %c0_53 = arith.constant 0 : index
    %c1_54 = arith.constant 1 : index
    %c1_55 = arith.constant 1 : index
    %c0_56 = arith.constant 0 : index
    %43 = vector.load %arg14[%c0_53, %c1_54, %c1_55, %c0_56] : memref<2x6x18x216xbf16, #tpu.memory_space<vmem>>, vector<2x4x16x216xbf16>
    %44 = vector.shape_cast %43 : vector<2x4x16x216xbf16> to vector<128x216xbf16>
    %c4 = arith.constant 4 : index
    %c0_57 = arith.constant 0 : index
    %c0_58 = arith.constant 0 : index
    %45 = vector.load %arg6[%c4, %c0_57, %c0_58] : memref<9x216x128xbf16, #tpu.memory_space<vmem>>, vector<1x216x128xbf16>
    %46 = vector.shape_cast %45 : vector<1x216x128xbf16> to vector<216x128xbf16>
    %cst_59 = arith.constant dense<0.000000e+00> : vector<128x128xf32>
    %47 = tpu.matmul %44, %46, %cst_59 {dimension_numbers = #tpu.dot_dimension_numbers<[1], [0], [0], [1], [0, 0, 1, 1], [], []>} : vector<128x216xbf16>, vector<216x128xbf16>, vector<128x128xf32> -> vector<128x128xf32>
    %48 = arith.addf %42, %47 : vector<128x128xf32>
    %c0_60 = arith.constant 0 : index
    %c1_61 = arith.constant 1 : index
    %c2_62 = arith.constant 2 : index
    %c0_63 = arith.constant 0 : index
    %49 = vector.load %arg14[%c0_60, %c1_61, %c2_62, %c0_63] : memref<2x6x18x216xbf16, #tpu.memory_space<vmem>>, vector<2x4x16x216xbf16>
    %50 = vector.shape_cast %49 : vector<2x4x16x216xbf16> to vector<128x216xbf16>
    %c5 = arith.constant 5 : index
    %c0_64 = arith.constant 0 : index
    %c0_65 = arith.constant 0 : index
    %51 = vector.load %arg6[%c5, %c0_64, %c0_65] : memref<9x216x128xbf16, #tpu.memory_space<vmem>>, vector<1x216x128xbf16>
    %52 = vector.shape_cast %51 : vector<1x216x128xbf16> to vector<216x128xbf16>
    %cst_66 = arith.constant dense<0.000000e+00> : vector<128x128xf32>
    %53 = tpu.matmul %50, %52, %cst_66 {dimension_numbers = #tpu.dot_dimension_numbers<[1], [0], [0], [1], [0, 0, 1, 1], [], []>} : vector<128x216xbf16>, vector<216x128xbf16>, vector<128x128xf32> -> vector<128x128xf32>
    %54 = arith.addf %48, %53 : vector<128x128xf32>
    %c0_67 = arith.constant 0 : index
    %c2_68 = arith.constant 2 : index
    %c0_69 = arith.constant 0 : index
    %c0_70 = arith.constant 0 : index
    %55 = vector.load %arg14[%c0_67, %c2_68, %c0_69, %c0_70] : memref<2x6x18x216xbf16, #tpu.memory_space<vmem>>, vector<2x4x16x216xbf16>
    %56 = vector.shape_cast %55 : vector<2x4x16x216xbf16> to vector<128x216xbf16>
    %c6 = arith.constant 6 : index
    %c0_71 = arith.constant 0 : index
    %c0_72 = arith.constant 0 : index
    %57 = vector.load %arg6[%c6, %c0_71, %c0_72] : memref<9x216x128xbf16, #tpu.memory_space<vmem>>, vector<1x216x128xbf16>
    %58 = vector.shape_cast %57 : vector<1x216x128xbf16> to vector<216x128xbf16>
    %cst_73 = arith.constant dense<0.000000e+00> : vector<128x128xf32>
    %59 = tpu.matmul %56, %58, %cst_73 {dimension_numbers = #tpu.dot_dimension_numbers<[1], [0], [0], [1], [0, 0, 1, 1], [], []>} : vector<128x216xbf16>, vector<216x128xbf16>, vector<128x128xf32> -> vector<128x128xf32>
    %60 = arith.addf %54, %59 : vector<128x128xf32>
    %c0_74 = arith.constant 0 : index
    %c2_75 = arith.constant 2 : index
    %c1_76 = arith.constant 1 : index
    %c0_77 = arith.constant 0 : index
    %61 = vector.load %arg14[%c0_74, %c2_75, %c1_76, %c0_77] : memref<2x6x18x216xbf16, #tpu.memory_space<vmem>>, vector<2x4x16x216xbf16>
    %62 = vector.shape_cast %61 : vector<2x4x16x216xbf16> to vector<128x216xbf16>
    %c7 = arith.constant 7 : index
    %c0_78 = arith.constant 0 : index
    %c0_79 = arith.constant 0 : index
    %63 = vector.load %arg6[%c7, %c0_78, %c0_79] : memref<9x216x128xbf16, #tpu.memory_space<vmem>>, vector<1x216x128xbf16>
    %64 = vector.shape_cast %63 : vector<1x216x128xbf16> to vector<216x128xbf16>
    %cst_80 = arith.constant dense<0.000000e+00> : vector<128x128xf32>
    %65 = tpu.matmul %62, %64, %cst_80 {dimension_numbers = #tpu.dot_dimension_numbers<[1], [0], [0], [1], [0, 0, 1, 1], [], []>} : vector<128x216xbf16>, vector<216x128xbf16>, vector<128x128xf32> -> vector<128x128xf32>
    %66 = arith.addf %60, %65 : vector<128x128xf32>
    %c0_81 = arith.constant 0 : index
    %c2_82 = arith.constant 2 : index
    %c2_83 = arith.constant 2 : index
    %c0_84 = arith.constant 0 : index
    %67 = vector.load %arg14[%c0_81, %c2_82, %c2_83, %c0_84] : memref<2x6x18x216xbf16, #tpu.memory_space<vmem>>, vector<2x4x16x216xbf16>
    %68 = vector.shape_cast %67 : vector<2x4x16x216xbf16> to vector<128x216xbf16>
    %c8 = arith.constant 8 : index
    %c0_85 = arith.constant 0 : index
    %c0_86 = arith.constant 0 : index
    %69 = vector.load %arg6[%c8, %c0_85, %c0_86] : memref<9x216x128xbf16, #tpu.memory_space<vmem>>, vector<1x216x128xbf16>
    %70 = vector.shape_cast %69 : vector<1x216x128xbf16> to vector<216x128xbf16>
    %cst_87 = arith.constant dense<0.000000e+00> : vector<128x128xf32>
    %71 = tpu.matmul %68, %70, %cst_87 {dimension_numbers = #tpu.dot_dimension_numbers<[1], [0], [0], [1], [0, 0, 1, 1], [], []>} : vector<128x216xbf16>, vector<216x128xbf16>, vector<128x128xf32> -> vector<128x128xf32>
    %72 = arith.addf %66, %71 : vector<128x128xf32>
    %73 = vector.broadcast %17 : vector<1x128xf32> to vector<128x128xf32>
    %74 = arith.addf %72, %73 : vector<128x128xf32>
    %cst_88 = arith.constant dense<0.000000e+00> : vector<128xf32>
    %75 = vector.multi_reduction <add>, %74, %cst_88 [0] : vector<128x128xf32> to vector<128xf32>
    %76 = vector.shape_cast %75 : vector<128xf32> to vector<1x128xf32>
    %77 = arith.mulf %74, %74 : vector<128x128xf32>
    %cst_89 = arith.constant dense<0.000000e+00> : vector<128xf32>
    %78 = vector.multi_reduction <add>, %77, %cst_89 [0] : vector<128x128xf32> to vector<128xf32>
    %79 = vector.shape_cast %78 : vector<128xf32> to vector<1x128xf32>
    %c0_90 = arith.constant 0 : index
    %c0_91 = arith.constant 0 : index
    %80 = vector.load %arg12[%c0_90, %c0_91] : memref<128x128xf32, #tpu.memory_space<vmem>>, vector<128x128xf32>
    %cst_92 = arith.constant dense<0.000000e+00> : vector<1x128xf32>
    %81 = tpu.matmul %76, %80, %cst_92 {dimension_numbers = #tpu.dot_dimension_numbers<[1], [0], [0], [1], [0, 0, 1, 1], [], []>} : vector<1x128xf32>, vector<128x128xf32>, vector<1x128xf32> -> vector<1x128xf32>
    %cst_93 = arith.constant 2.048000e+03 : f32
    %82 = vector.broadcast %cst_93 : f32 to vector<1x128xf32>
    %83 = arith.divf %81, %82 : vector<1x128xf32>
    %c0_94 = arith.constant 0 : index
    %c0_95 = arith.constant 0 : index
    %84 = vector.load %arg12[%c0_94, %c0_95] : memref<128x128xf32, #tpu.memory_space<vmem>>, vector<128x128xf32>
    %cst_96 = arith.constant dense<0.000000e+00> : vector<1x128xf32>
    %85 = tpu.matmul %79, %84, %cst_96 {dimension_numbers = #tpu.dot_dimension_numbers<[1], [0], [0], [1], [0, 0, 1, 1], [], []>} : vector<1x128xf32>, vector<128x128xf32>, vector<1x128xf32> -> vector<1x128xf32>
    %cst_97 = arith.constant 2.048000e+03 : f32
    %86 = vector.broadcast %cst_97 : f32 to vector<1x128xf32>
    %87 = arith.divf %85, %86 : vector<1x128xf32>
    %88 = arith.mulf %83, %83 : vector<1x128xf32>
    %89 = arith.subf %87, %88 : vector<1x128xf32>
    %c0_98 = arith.constant 0 : index
    %c0_99 = arith.constant 0 : index
    %90 = vector.load %arg10[%c0_98, %c0_99] : memref<1x128xf32, #tpu.memory_space<vmem>>, vector<1x128xf32>
    %cst_100 = arith.constant 9.99999974E-6 : f32
    %91 = vector.broadcast %cst_100 : f32 to vector<1x128xf32>
    %92 = arith.addf %89, %91 : vector<1x128xf32>
    %93 = math.rsqrt %92 : vector<1x128xf32>
    %94 = arith.mulf %90, %93 : vector<1x128xf32>
    %c0_101 = arith.constant 0 : index
    %c0_102 = arith.constant 0 : index
    %95 = vector.load %arg11[%c0_101, %c0_102] : memref<1x128xf32, #tpu.memory_space<vmem>>, vector<1x128xf32>
    %96 = arith.mulf %83, %94 : vector<1x128xf32>
    %97 = arith.subf %95, %96 : vector<1x128xf32>
    %98 = vector.broadcast %94 : vector<1x128xf32> to vector<128x128xf32>
    %99 = arith.mulf %74, %98 : vector<128x128xf32>
    %100 = vector.broadcast %97 : vector<1x128xf32> to vector<128x128xf32>
    %101 = arith.addf %99, %100 : vector<128x128xf32>
    %cst_103 = arith.constant 0.000000e+00 : f32
    %102 = vector.broadcast %cst_103 : f32 to vector<128x128xf32>
    %103 = arith.maximumf %101, %102 : vector<128x128xf32>
    %104 = arith.truncf %103 : vector<128x128xf32> to vector<128x128xbf16>
    %105 = vector.shape_cast %104 : vector<128x128xbf16> to vector<2x4x16x128xbf16>
    %c0_104 = arith.constant 0 : index
    %c1_105 = arith.constant 1 : index
    %c1_106 = arith.constant 1 : index
    %c8_107 = arith.constant 8 : index
    %106 = vector.load %arg14[%c0_104, %c1_105, %c1_106, %c8_107] : memref<2x6x18x216xbf16, #tpu.memory_space<vmem>>, vector<2x4x16x128xbf16>
    tpu.vector_store %arg14[%c0_104, %c1_105, %c1_106, %c8_107], %105 {strides = array<i32>} : memref<2x6x18x216xbf16, #tpu.memory_space<vmem>>, vector<2x4x16x128xbf16>,
    %cst_108 = arith.constant 0.000000e+00 : bf16
    %107 = vector.broadcast %cst_108 : bf16 to vector<2x4x16x8xbf16>
    %c0_109 = arith.constant 0 : index
    %c1_110 = arith.constant 1 : index
    %c1_111 = arith.constant 1 : index
    %c136 = arith.constant 136 : index
    %108 = vector.load %arg14[%c0_109, %c1_110, %c1_111, %c136] : memref<2x6x18x216xbf16, #tpu.memory_space<vmem>>, vector<2x4x16x8xbf16>
    tpu.vector_store %arg14[%c0_109, %c1_110, %c1_111, %c136], %107 {strides = array<i32>} : memref<2x6x18x216xbf16, #tpu.memory_space<vmem>>, vector<2x4x16x8xbf16>,
    %c0_112 = arith.constant 0 : index
    %c0_113 = arith.constant 0 : index
    %109 = vector.load %arg9[%c0_112, %c0_113] : memref<1x128xf32, #tpu.memory_space<vmem>>, vector<1x128xf32>
    %cst_114 = arith.constant 0.000000e+00 : f32
    %110 = vector.broadcast %cst_114 : f32 to vector<128x128xf32>
    %c0_115 = arith.constant 0 : index
    %c0_116 = arith.constant 0 : index
    %c0_117 = arith.constant 0 : index
    %c0_118 = arith.constant 0 : index
    %111 = vector.load %arg14[%c0_115, %c0_116, %c0_117, %c0_118] : memref<2x6x18x216xbf16, #tpu.memory_space<vmem>>, vector<2x4x16x144xbf16>
    %112 = vector.shape_cast %111 : vector<2x4x16x144xbf16> to vector<128x144xbf16>
    %c0_119 = arith.constant 0 : index
    %c0_120 = arith.constant 0 : index
    %c0_121 = arith.constant 0 : index
    %113 = vector.load %arg8[%c0_119, %c0_120, %c0_121] : memref<9x144x128xbf16, #tpu.memory_space<vmem>>, vector<1x144x128xbf16>
    %114 = vector.shape_cast %113 : vector<1x144x128xbf16> to vector<144x128xbf16>
    %cst_122 = arith.constant dense<0.000000e+00> : vector<128x128xf32>
    %115 = tpu.matmul %112, %114, %cst_122 {dimension_numbers = #tpu.dot_dimension_numbers<[1], [0], [0], [1], [0, 0, 1, 1], [], []>} : vector<128x144xbf16>, vector<144x128xbf16>, vector<128x128xf32> -> vector<128x128xf32>
    %116 = arith.addf %110, %115 : vector<128x128xf32>
    %c0_123 = arith.constant 0 : index
    %c0_124 = arith.constant 0 : index
    %c1_125 = arith.constant 1 : index
    %c0_126 = arith.constant 0 : index
    %117 = vector.load %arg14[%c0_123, %c0_124, %c1_125, %c0_126] : memref<2x6x18x216xbf16, #tpu.memory_space<vmem>>, vector<2x4x16x144xbf16>
    %118 = vector.shape_cast %117 : vector<2x4x16x144xbf16> to vector<128x144xbf16>
    %c1_127 = arith.constant 1 : index
    %c0_128 = arith.constant 0 : index
    %c0_129 = arith.constant 0 : index
    %119 = vector.load %arg8[%c1_127, %c0_128, %c0_129] : memref<9x144x128xbf16, #tpu.memory_space<vmem>>, vector<1x144x128xbf16>
    %120 = vector.shape_cast %119 : vector<1x144x128xbf16> to vector<144x128xbf16>
    %cst_130 = arith.constant dense<0.000000e+00> : vector<128x128xf32>
    %121 = tpu.matmul %118, %120, %cst_130 {dimension_numbers = #tpu.dot_dimension_numbers<[1], [0], [0], [1], [0, 0, 1, 1], [], []>} : vector<128x144xbf16>, vector<144x128xbf16>, vector<128x128xf32> -> vector<128x128xf32>
    %122 = arith.addf %116, %121 : vector<128x128xf32>
    %c0_131 = arith.constant 0 : index
    %c0_132 = arith.constant 0 : index
    %c2_133 = arith.constant 2 : index
    %c0_134 = arith.constant 0 : index
    %123 = vector.load %arg14[%c0_131, %c0_132, %c2_133, %c0_134] : memref<2x6x18x216xbf16, #tpu.memory_space<vmem>>, vector<2x4x16x144xbf16>
    %124 = vector.shape_cast %123 : vector<2x4x16x144xbf16> to vector<128x144xbf16>
    %c2_135 = arith.constant 2 : index
    %c0_136 = arith.constant 0 : index
    %c0_137 = arith.constant 0 : index
    %125 = vector.load %arg8[%c2_135, %c0_136, %c0_137] : memref<9x144x128xbf16, #tpu.memory_space<vmem>>, vector<1x144x128xbf16>
    %126 = vector.shape_cast %125 : vector<1x144x128xbf16> to vector<144x128xbf16>
    %cst_138 = arith.constant dense<0.000000e+00> : vector<128x128xf32>
    %127 = tpu.matmul %124, %126, %cst_138 {dimension_numbers = #tpu.dot_dimension_numbers<[1], [0], [0], [1], [0, 0, 1, 1], [], []>} : vector<128x144xbf16>, vector<144x128xbf16>, vector<128x128xf32> -> vector<128x128xf32>
    %128 = arith.addf %122, %127 : vector<128x128xf32>
    %c0_139 = arith.constant 0 : index
    %c1_140 = arith.constant 1 : index
    %c0_141 = arith.constant 0 : index
    %c0_142 = arith.constant 0 : index
    %129 = vector.load %arg14[%c0_139, %c1_140, %c0_141, %c0_142] : memref<2x6x18x216xbf16, #tpu.memory_space<vmem>>, vector<2x4x16x144xbf16>
    %130 = vector.shape_cast %129 : vector<2x4x16x144xbf16> to vector<128x144xbf16>
    %c3_143 = arith.constant 3 : index
    %c0_144 = arith.constant 0 : index
    %c0_145 = arith.constant 0 : index
    %131 = vector.load %arg8[%c3_143, %c0_144, %c0_145] : memref<9x144x128xbf16, #tpu.memory_space<vmem>>, vector<1x144x128xbf16>
    %132 = vector.shape_cast %131 : vector<1x144x128xbf16> to vector<144x128xbf16>
    %cst_146 = arith.constant dense<0.000000e+00> : vector<128x128xf32>
    %133 = tpu.matmul %130, %132, %cst_146 {dimension_numbers = #tpu.dot_dimension_numbers<[1], [0], [0], [1], [0, 0, 1, 1], [], []>} : vector<128x144xbf16>, vector<144x128xbf16>, vector<128x128xf32> -> vector<128x128xf32>
    %134 = arith.addf %128, %133 : vector<128x128xf32>
    %c0_147 = arith.constant 0 : index
    %c1_148 = arith.constant 1 : index
    %c1_149 = arith.constant 1 : index
    %c0_150 = arith.constant 0 : index
    %135 = vector.load %arg14[%c0_147, %c1_148, %c1_149, %c0_150] : memref<2x6x18x216xbf16, #tpu.memory_space<vmem>>, vector<2x4x16x144xbf16>
    %136 = vector.shape_cast %135 : vector<2x4x16x144xbf16> to vector<128x144xbf16>
    %c4_151 = arith.constant 4 : index
    %c0_152 = arith.constant 0 : index
    %c0_153 = arith.constant 0 : index
    %137 = vector.load %arg8[%c4_151, %c0_152, %c0_153] : memref<9x144x128xbf16, #tpu.memory_space<vmem>>, vector<1x144x128xbf16>
    %138 = vector.shape_cast %137 : vector<1x144x128xbf16> to vector<144x128xbf16>
    %cst_154 = arith.constant dense<0.000000e+00> : vector<128x128xf32>
    %139 = tpu.matmul %136, %138, %cst_154 {dimension_numbers = #tpu.dot_dimension_numbers<[1], [0], [0], [1], [0, 0, 1, 1], [], []>} : vector<128x144xbf16>, vector<144x128xbf16>, vector<128x128xf32> -> vector<128x128xf32>
    %140 = arith.addf %134, %139 : vector<128x128xf32>
    %c0_155 = arith.constant 0 : index
    %c1_156 = arith.constant 1 : index
    %c2_157 = arith.constant 2 : index
    %c0_158 = arith.constant 0 : index
    %141 = vector.load %arg14[%c0_155, %c1_156, %c2_157, %c0_158] : memref<2x6x18x216xbf16, #tpu.memory_space<vmem>>, vector<2x4x16x144xbf16>
    %142 = vector.shape_cast %141 : vector<2x4x16x144xbf16> to vector<128x144xbf16>
    %c5_159 = arith.constant 5 : index
    %c0_160 = arith.constant 0 : index
    %c0_161 = arith.constant 0 : index
    %143 = vector.load %arg8[%c5_159, %c0_160, %c0_161] : memref<9x144x128xbf16, #tpu.memory_space<vmem>>, vector<1x144x128xbf16>
    %144 = vector.shape_cast %143 : vector<1x144x128xbf16> to vector<144x128xbf16>
    %cst_162 = arith.constant dense<0.000000e+00> : vector<128x128xf32>
    %145 = tpu.matmul %142, %144, %cst_162 {dimension_numbers = #tpu.dot_dimension_numbers<[1], [0], [0], [1], [0, 0, 1, 1], [], []>} : vector<128x144xbf16>, vector<144x128xbf16>, vector<128x128xf32> -> vector<128x128xf32>
    %146 = arith.addf %140, %145 : vector<128x128xf32>
    %c0_163 = arith.constant 0 : index
    %c2_164 = arith.constant 2 : index
    %c0_165 = arith.constant 0 : index
    %c0_166 = arith.constant 0 : index
    %147 = vector.load %arg14[%c0_163, %c2_164, %c0_165, %c0_166] : memref<2x6x18x216xbf16, #tpu.memory_space<vmem>>, vector<2x4x16x144xbf16>
    %148 = vector.shape_cast %147 : vector<2x4x16x144xbf16> to vector<128x144xbf16>
    %c6_167 = arith.constant 6 : index
    %c0_168 = arith.constant 0 : index
    %c0_169 = arith.constant 0 : index
    %149 = vector.load %arg8[%c6_167, %c0_168, %c0_169] : memref<9x144x128xbf16, #tpu.memory_space<vmem>>, vector<1x144x128xbf16>
    %150 = vector.shape_cast %149 : vector<1x144x128xbf16> to vector<144x128xbf16>
    %cst_170 = arith.constant dense<0.000000e+00> : vector<128x128xf32>
    %151 = tpu.matmul %148, %150, %cst_170 {dimension_numbers = #tpu.dot_dimension_numbers<[1], [0], [0], [1], [0, 0, 1, 1], [], []>} : vector<128x144xbf16>, vector<144x128xbf16>, vector<128x128xf32> -> vector<128x128xf32>
    %152 = arith.addf %146, %151 : vector<128x128xf32>
    %c0_171 = arith.constant 0 : index
    %c2_172 = arith.constant 2 : index
    %c1_173 = arith.constant 1 : index
    %c0_174 = arith.constant 0 : index
    %153 = vector.load %arg14[%c0_171, %c2_172, %c1_173, %c0_174] : memref<2x6x18x216xbf16, #tpu.memory_space<vmem>>, vector<2x4x16x144xbf16>
    %154 = vector.shape_cast %153 : vector<2x4x16x144xbf16> to vector<128x144xbf16>
    %c7_175 = arith.constant 7 : index
    %c0_176 = arith.constant 0 : index
    %c0_177 = arith.constant 0 : index
    %155 = vector.load %arg8[%c7_175, %c0_176, %c0_177] : memref<9x144x128xbf16, #tpu.memory_space<vmem>>, vector<1x144x128xbf16>
    %156 = vector.shape_cast %155 : vector<1x144x128xbf16> to vector<144x128xbf16>
    %cst_178 = arith.constant dense<0.000000e+00> : vector<128x128xf32>
    %157 = tpu.matmul %154, %156, %cst_178 {dimension_numbers = #tpu.dot_dimension_numbers<[1], [0], [0], [1], [0, 0, 1, 1], [], []>} : vector<128x144xbf16>, vector<144x128xbf16>, vector<128x128xf32> -> vector<128x128xf32>
    %158 = arith.addf %152, %157 : vector<128x128xf32>
    %c0_179 = arith.constant 0 : index
    %c2_180 = arith.constant 2 : index
    %c2_181 = arith.constant 2 : index
    %c0_182 = arith.constant 0 : index
    %159 = vector.load %arg14[%c0_179, %c2_180, %c2_181, %c0_182] : memref<2x6x18x216xbf16, #tpu.memory_space<vmem>>, vector<2x4x16x144xbf16>
    %160 = vector.shape_cast %159 : vector<2x4x16x144xbf16> to vector<128x144xbf16>
    %c8_183 = arith.constant 8 : index
    %c0_184 = arith.constant 0 : index
    %c0_185 = arith.constant 0 : index
    %161 = vector.load %arg8[%c8_183, %c0_184, %c0_185] : memref<9x144x128xbf16, #tpu.memory_space<vmem>>, vector<1x144x128xbf16>
    %162 = vector.shape_cast %161 : vector<1x144x128xbf16> to vector<144x128xbf16>
    %cst_186 = arith.constant dense<0.000000e+00> : vector<128x128xf32>
    %163 = tpu.matmul %160, %162, %cst_186 {dimension_numbers = #tpu.dot_dimension_numbers<[1], [0], [0], [1], [0, 0, 1, 1], [], []>} : vector<128x144xbf16>, vector<144x128xbf16>, vector<128x128xf32> -> vector<128x128xf32>
    %164 = arith.addf %158, %163 : vector<128x128xf32>
    %165 = vector.broadcast %109 : vector<1x128xf32> to vector<128x128xf32>
    %166 = arith.addf %164, %165 : vector<128x128xf32>
    %cst_187 = arith.constant dense<0.000000e+00> : vector<128xf32>
    %167 = vector.multi_reduction <add>, %166, %cst_187 [0] : vector<128x128xf32> to vector<128xf32>
    %168 = vector.shape_cast %167 : vector<128xf32> to vector<1x128xf32>
    %169 = arith.mulf %166, %166 : vector<128x128xf32>
    %cst_188 = arith.constant dense<0.000000e+00> : vector<128xf32>
    %170 = vector.multi_reduction <add>, %169, %cst_188 [0] : vector<128x128xf32> to vector<128xf32>
    %171 = vector.shape_cast %170 : vector<128xf32> to vector<1x128xf32>
    %c0_189 = arith.constant 0 : index
    %c0_190 = arith.constant 0 : index
    %172 = vector.load %arg12[%c0_189, %c0_190] : memref<128x128xf32, #tpu.memory_space<vmem>>, vector<128x128xf32>
    %cst_191 = arith.constant dense<0.000000e+00> : vector<1x128xf32>
    %173 = tpu.matmul %168, %172, %cst_191 {dimension_numbers = #tpu.dot_dimension_numbers<[1], [0], [0], [1], [0, 0, 1, 1], [], []>} : vector<1x128xf32>, vector<128x128xf32>, vector<1x128xf32> -> vector<1x128xf32>
    %cst_192 = arith.constant 2.048000e+03 : f32
    %174 = vector.broadcast %cst_192 : f32 to vector<1x128xf32>
    %175 = arith.divf %173, %174 : vector<1x128xf32>
    %c0_193 = arith.constant 0 : index
    %c0_194 = arith.constant 0 : index
    %176 = vector.load %arg12[%c0_193, %c0_194] : memref<128x128xf32, #tpu.memory_space<vmem>>, vector<128x128xf32>
    %cst_195 = arith.constant dense<0.000000e+00> : vector<1x128xf32>
    %177 = tpu.matmul %171, %176, %cst_195 {dimension_numbers = #tpu.dot_dimension_numbers<[1], [0], [0], [1], [0, 0, 1, 1], [], []>} : vector<1x128xf32>, vector<128x128xf32>, vector<1x128xf32> -> vector<1x128xf32>
    %cst_196 = arith.constant 2.048000e+03 : f32
    %178 = vector.broadcast %cst_196 : f32 to vector<1x128xf32>
    %179 = arith.divf %177, %178 : vector<1x128xf32>
    %180 = arith.mulf %175, %175 : vector<1x128xf32>
    %181 = arith.subf %179, %180 : vector<1x128xf32>
    %c0_197 = arith.constant 0 : index
    %c0_198 = arith.constant 0 : index
    %182 = vector.load %arg10[%c0_197, %c0_198] : memref<1x128xf32, #tpu.memory_space<vmem>>, vector<1x128xf32>
    %cst_199 = arith.constant 9.99999974E-6 : f32
    %183 = vector.broadcast %cst_199 : f32 to vector<1x128xf32>
    %184 = arith.addf %181, %183 : vector<1x128xf32>
    %185 = math.rsqrt %184 : vector<1x128xf32>
    %186 = arith.mulf %182, %185 : vector<1x128xf32>
    %c0_200 = arith.constant 0 : index
    %c0_201 = arith.constant 0 : index
    %187 = vector.load %arg11[%c0_200, %c0_201] : memref<1x128xf32, #tpu.memory_space<vmem>>, vector<1x128xf32>
    %188 = arith.mulf %175, %186 : vector<1x128xf32>
    %189 = arith.subf %187, %188 : vector<1x128xf32>
    %190 = vector.broadcast %186 : vector<1x128xf32> to vector<128x128xf32>
    %191 = arith.mulf %166, %190 : vector<128x128xf32>
    %192 = vector.broadcast %189 : vector<1x128xf32> to vector<128x128xf32>
    %193 = arith.addf %191, %192 : vector<128x128xf32>
    %cst_202 = arith.constant 0.000000e+00 : f32
    %194 = vector.broadcast %cst_202 : f32 to vector<128x128xf32>
    %195 = arith.maximumf %193, %194 : vector<128x128xf32>
    %c0_203 = arith.constant 0 : index
    %c0_204 = arith.constant 0 : index
    %196 = vector.load %arg13[%c0_203, %c0_204] : memref<128x128xf32, #tpu.memory_space<vmem>>, vector<128x128xf32>
    tpu.vector_store %arg13[%c0_203, %c0_204], %195 {strides = array<i32>} : memref<128x128xf32, #tpu.memory_space<vmem>>, vector<128x128xf32>,
    return
  }
}

</mosaic_0001>

<bundles_post_ra>
// kernel: tpu_custom_call.1
= control target key start
LH: loop header
LB: loop body
LE: loop exit
PB: predicated region body
PF: predicated region fallthrough
CT: control target
= control target key end

     0   :  { %18 = vsyncpa [#allocation4], 0  ;;  %s15049_s0 = inlined_call_operand.hbm [shape: f32[128,128], index: 0, kind: input, shape index: {}]   ;;  %s15050_s1 = inlined_call_operand.hbm [shape: f32[64,64], index: 1, kind: input, shape index: {}]   ;;  %s15051_s2 = inlined_call_operand.vmem [shape: f32[128,192], index: 2, kind: input, shape index: {}]   ;;  %s15052_s3 = inlined_call_operand.hbm [shape: f32[64,192], index: 3, kind: input, shape index: {}]   ;;  %s15053_s4 = inlined_call_operand.vmem [shape: f32[1,192], index: 4, kind: input, shape index: {}]   ;;  %s15054_s5 = inlined_call_operand.vmem [shape: f32[128,64], index: 5, kind: input, shape index: {}]   ;;  %s15055_s6 = inlined_call_operand.hbm [shape: bf16[9,216,128], index: 6, kind: input, shape index: {}]   ;;  %s15056_s7 = inlined_call_operand.vmem [shape: f32[1,128], index: 7, kind: input, shape index: {}]   ;;  %s15057_s8 = inlined_call_operand.vmem [shape: bf16[9,144,128], index: 8, kind: input, shape index: {}]   ;;  %s15058_s9 = inlined_call_operand.vmem [shape: f32[1,128], index: 9, kind: input, shape index: {}]   ;;  %s15059_s10 = inlined_call_operand.vmem [shape: f32[1,128], index: 10, kind: input, shape index: {}]   ;;  %s15060_s11 = inlined_call_operand.vmem [shape: f32[1,128], index: 11, kind: input, shape index: {}]   ;;  %s15061_s12 = inlined_call_operand.hbm [shape: f32[128,128], index: 12, kind: input, shape index: {}]   ;;  %s15062_s13 = inlined_call_operand.hbm [shape: f32[128,128], index: 13, kind: output, shape index: {}]  }
   0x1   :  { %19 = vsyncpa [#allocation7], 0 }
   0x2   :  { %20 = vsyncpa [#allocation10], 0 }
   0x3   :  { %21 = vsyncpa [#allocation5], 0  ;;  %s11102_s25 = smov [#allocation6]   ;;  %s11103_s27 = smov [#allocation9]  }
   0x4   :  { %s39_s26 = sshll.u32 %s11102_s25, 4  ;;  %s69_s28 = sshll.u32 %s11103_s27, 4  ;;  %s40_s26 = int_to_ptr.vmem [resolvable:$true] %s39_s26  ;;  %s11189_s28 = int_to_ptr.vmem [resolvable:$true] %s69_s28 }
   0x5   :  { %s10962_s14 = scalar_lea.hbm %s15050_s1, 1024 }
   0x6   :  { %p10963_p0 = scmp.ne.s32.totalorder %s15050_s1, %s10962_s14  ;;  %p10966_p1 = scmp.lt.u32.totalorder %s10962_s14, %s15050_s1 }
   0x8   :  { %p10968_p2 = pnand %p10966_p1, %p10963_p0 }
   0xa   :  { %10971 = shalt.err (!%p10968_p2)
}
   0xb   :  { %s10972_s19 = scalar_lea.vmem %s40_s26, 1024  ;;  %p10977_p4 = scmp.lt.s32.totalorder %s40_s26, %s40_s26 }
   0xc   :  { %p10973_p3 = scmp.ne.s32.totalorder %s40_s26, %s10972_s19  ;;  %p10978_p5 = scmp.lt.s32.totalorder %s10972_s19, %s10972_s19 }
   0xe   :  { %p10979_p6 = por %p10978_p5, %p10977_p4 }
  0x10   :  { %p10980_p7 = pnand %p10979_p6, %p10973_p3 }
  0x12   :  { %10983 = shalt.err (!%p10980_p7)
}
  0x13   :  { %s11104_s20 = smov 128   ;;  %s11105_s21 = smov 8  }
  0x14   :  { %45 = dma.hbm_to_vmem [thread:$0]  %s15050_s1, 1024, %s40_s26, [#allocation7], %s11104_s20, %s11104_s20, %s11105_s21  }
  0x15   :  { %s10984_s27 = scalar_lea.hbm %s15055_s6, 15552 }
  0x16   :  { %p10985_p8 = scmp.ne.s32.totalorder %s15055_s6, %s10984_s27  ;;  %p10988_p9 = scmp.lt.u32.totalorder %s10984_s27, %s15055_s6 }
  0x18   :  { %p10990_p10 = pnand %p10988_p9, %p10985_p8 }
  0x1a   :  { %10993 = shalt.err (!%p10990_p10)
}
  0x1b   :  { %s10994_s16 = scalar_lea.vmem %s11189_s28, 15552  ;;  %p10999_p12 = scmp.lt.s32.totalorder %s11189_s28, %s11189_s28 }
  0x1c   :  { %p10995_p11 = scmp.ne.s32.totalorder %s11189_s28, %s10994_s16  ;;  %p11000_p13 = scmp.lt.s32.totalorder %s10994_s16, %s10994_s16 }
  0x1e   :  { %p11001_p0 = por %p11000_p13, %p10999_p12 }
  0x20   :  { %p11002_p1 = pnand %p11001_p0, %p10995_p11 }
  0x22   :  { %11005 = shalt.err (!%p11002_p1)
}
  0x23   :  { %s11106_s1 = smov 64   ;;  %s11107_s26 = smov 4  }
  0x24   :  { %75 = dma.hbm_to_vmem [thread:$0]  %s15055_s6, 15552, %s11189_s28, [#allocation10], %s11106_s1, %s11106_s1, %s11107_s26  }
  0x25   :  { %s11108_s19 = smov [#allocation3]   ;;  %s11109_s23 = smov [#allocation8]  }
  0x26   :  { %s27_s22 = sshll.u32 %s11108_s19, 4  ;;  %s53_s24 = sshll.u32 %s11109_s23, 4  ;;  %s28_s22 = int_to_ptr.vmem [resolvable:$true] %s27_s22  ;;  %s11223_s24 = int_to_ptr.vmem [resolvable:$true] %s53_s24 }
  0x27   :  { %s11006_s29 = scalar_lea.hbm %s15049_s0, 2048 }
  0x28   :  { %p11007_p2 = scmp.ne.s32.totalorder %s15049_s0, %s11006_s29  ;;  %p11010_p3 = scmp.lt.u32.totalorder %s11006_s29, %s15049_s0 }
  0x2a   :  { %p11012_p4 = pnand %p11010_p3, %p11007_p2 }
  0x2c   :  { %11015 = shalt.err (!%p11012_p4)
}
  0x2d   :  { %s11016_s6 = scalar_lea.vmem %s28_s22, 2048  ;;  %p11021_p6 = scmp.lt.s32.totalorder %s28_s22, %s28_s22 }
  0x2e   :  { %p11017_p5 = scmp.ne.s32.totalorder %s28_s22, %s11016_s6  ;;  %p11022_p7 = scmp.lt.s32.totalorder %s11016_s6, %s11016_s6 }
  0x30   :  { %p11023_p8 = por %p11022_p7, %p11021_p6 }
  0x32   :  { %p11024_p9 = pnand %p11023_p8, %p11017_p5 }
  0x34   :  { %11027 = shalt.err (!%p11024_p9)
}
  0x35   :  { %33 = dma.hbm_to_vmem [thread:$0]  %s15049_s0, 2048, %s28_s22, [#allocation4], %s11104_s20, %s11104_s20, %s11105_s21  }
  0x36   :  { %s11028_s18 = scalar_lea.hbm %s15052_s3, 2048 }
  0x37   :  { %p11029_p10 = scmp.ne.s32.totalorder %s15052_s3, %s11028_s18  ;;  %p11032_p11 = scmp.lt.u32.totalorder %s11028_s18, %s15052_s3 }
  0x39   :  { %p11034_p12 = pnand %p11032_p11, %p11029_p10 }
  0x3b   :  { %11037 = shalt.err (!%p11034_p12)
}
  0x3c   :  { %s11038_s29 = scalar_lea.vmem %s11223_s24, 2048  ;;  %p11043_p0 = scmp.lt.s32.totalorder %s11223_s24, %s11223_s24 }
  0x3d   :  { %p11039_p13 = scmp.ne.s32.totalorder %s11223_s24, %s11038_s29  ;;  %p11044_p1 = scmp.lt.s32.totalorder %s11038_s29, %s11038_s29 }
  0x3f   :  { %p11045_p2 = por %p11044_p1, %p11043_p0 }
  0x41   :  { %p11046_p3 = pnand %p11045_p2, %p11039_p13 }
  0x43   :  { %11049 = shalt.err (!%p11046_p3)
}
  0x44   :  { %s11110_s0 = smov 256   ;;  %s11111_s22 = smov 16  }
  0x45   :  { %59 = dma.hbm_to_vmem [thread:$0]  %s15052_s3, 2048, %s11223_s24, [#allocation7], %s11110_s0, %s11110_s0, %s11111_s22  }
  0x46   :  { %s11112_s15 = smov [#allocation11]   ;;  %s11050_s1 = scalar_lea.hbm %s15061_s12, 2048 }
  0x47   :  { %s91_s16 = sshll.u32 %s11112_s15, 4  ;;  %p11051_p4 = scmp.ne.s32.totalorder %s15061_s12, %s11050_s1  ;;  %s92_s16 = int_to_ptr.vmem [resolvable:$true] %s91_s16 }
  0x48   :  { %p11054_p5 = scmp.lt.u32.totalorder %s11050_s1, %s15061_s12 }
  0x4a   :  { %p11056_p6 = pnand %p11054_p5, %p11051_p4 }
  0x4c   :  { %11059 = shalt.err (!%p11056_p6)
}
  0x4d   :  { %s11060_s23 = scalar_lea.vmem %s92_s16, 2048  ;;  %p11065_p8 = scmp.lt.s32.totalorder %s92_s16, %s92_s16 }
  0x4e   :  { %p11061_p7 = scmp.ne.s32.totalorder %s92_s16, %s11060_s23  ;;  %p11066_p9 = scmp.lt.s32.totalorder %s11060_s23, %s11060_s23 }
  0x50   :  { %p11067_p10 = por %p11066_p9, %p11065_p8 }
  0x52   :  { %p11068_p11 = pnand %p11067_p10, %p11061_p7 }
  0x54   :  { %11071 = shalt.err (!%p11068_p11)
}
  0x55   :  { %97 = dma.hbm_to_vmem [thread:$0]  %s15061_s12, 2048, %s92_s16, [#allocation10], %s11104_s20, %s11104_s20, %s11105_s21  }
  0x56   :  { %11094 = dma.done.wait [#allocation4], 2048  }
  0x57   :  { %11095 = vsyncadd [#allocation4], 4294965248 }
  0x58   :  { %11096 = dma.done.wait [#allocation7], 3072  }
  0x59   :  { %11097 = vsyncadd [#allocation7], 4294964224 }
  0x5a   :  { %11098 = dma.done.wait [#allocation10], 17600  }
  0x5b   :  { %11099 = vsyncadd [#allocation10], 4294949696  ;;  %v15066_v0 = vmov 0.0   ;;  %v123_v1 = vld [vmem:[#allocation8 + $0x8] sm:$0xff]  ;;  %v125_v2 = vld [vmem:[#allocation8 + $0x18] sm:$0xff]  ;;  %vm138_vm0 = vcmask 523264  }
  0x5c   :  { %227 = vmatprep.mubr.f32.mxu0 %v15066_v0  ;;  %416 = vmatprep.mubr.f32.mxu1 %v15066_v0  ;;  %v122_v3 = vld [vmem:[#allocation8] sm:$0xff]  ;;  %v10442_v4 = vpack.c.bf16 %v125_v2, %v123_v1  ;;  %v124_v5 = vld [vmem:[#allocation8 + $0x10] sm:$0xff]  ;;  %v127_v6 = vld [vmem:[#allocation8 + $0x28] sm:$0xff]  ;;  %vm15063_vm1 = vcmask 1043456   ;;  %vm723_vm2 = vcmask 719876   ;;  %vm727_vm4 = vcmask 1040384  }
  0x5d   :  { %v129_v7 = vld [vmem:[#allocation8 + $0x38] sm:$0xff]  ;;  %v10444_v8 = vpack.c.bf16 %v124_v5, %v122_v3  ;;  %v126_v10 = vld [vmem:[#allocation8 + $0x20] sm:$0xff]  ;;  %v128_v11 = vld [vmem:[#allocation8 + $0x30] sm:$0xff]  ;;  %vm728_vm5 = vcmask 716804   ;;  %vm844_vm7 = vsmask.f32 256 }
  0x5e   :  { %v10446_v9 = vpack.c.bf16 %v129_v7, %v127_v6  ;;  %v131_v12 = vld [vmem:[#allocation8 + $0x48] sm:$0xff]  ;;  %10443 = vmatprep.subr.bf16.mxu0 %v10442_v4  ;;  %v133_v13 = vld [vmem:[#allocation8 + $0x58] sm:$0xff]  ;;  %v10448_v14 = vpack.c.bf16 %v128_v11, %v126_v10  ;;  %v130_v16 = vld [vmem:[#allocation8 + $0x40] sm:$0xff]  ;;  %vm845_vm8 = vsmask.f32 4368  ;;  %vm2015_vm9 = vcmask 1042432  }
  0x5f   :  { %10445 = vmatpush1.bf16.msra.mxu0 %v10444_v8  ;;  %v10450_v15 = vpack.c.bf16 %v133_v13, %v131_v12  ;;  %v132_v17 = vld [vmem:[#allocation8 + $0x50] sm:$0xff]  ;;  %v135_v18 = vld [vmem:[#allocation8 + $0x68] sm:$0xff]  ;;  %v137_v19 = vld [vmem:[#allocation8 + $0x78] sm:$0xff]  ;;  %vm2016_vm11 = vcmask 1046532   ;;  %vm1229_vm13 = vsmask.f32 3328 }
  0x60   :  { %10447 = vmatprep.subr.bf16.mxu0 %v10446_v9  ;;  %v134_v20 = vld [vmem:[#allocation8 + $0x60] sm:$0xff]  ;;  %v136_v21 = vld [vmem:[#allocation8 + $0x70] sm:$0xff]  ;;  %v10452_v22 = vpack.c.bf16 %v132_v17, %v130_v16  ;;  %v10454_v23 = vpack.c.bf16 %v137_v19, %v135_v18  ;;  %v115_v26 = vld [vmem:[#allocation6 + $0x8] sm:$0xff]  ;;  %vm1230_vm14 = vsmask.f32 7440  ;;  %vm15064_vm15 = vcmask 719872  }
  0x61   :  { %v10456_v24 = vpack.c.bf16 %v136_v21, %v134_v20  ;;  %v114_v25 = vld [vmem:[#allocation6] sm:$0xff]  ;;  %v116_v27 = vld [vmem:[#allocation6 + $0x10] sm:$0xff]  ;;  %v117_v28 = vld [vmem:[#allocation6 + $0x18] sm:$0xff] }
  0x62   :  { %v118_v29 = vld [vmem:[#allocation6 + $0x20] sm:$0xff]  ;;  %v119_v30 = vld [vmem:[#allocation6 + $0x28] sm:$0xff]  ;;  %v120_v31 = vld [vmem:[#allocation6 + $0x30] sm:$0xff] }
  0x63   :  { %10449 = vmatpush1.bf16.msra.mxu0 %v10448_v14  ;;  %v121_v32 = vld [vmem:[#allocation6 + $0x38] sm:$0xff]  ;;  %v530_v53 = vld [vmem:[%s15051_s2 + $0x8] sm:$0xff]  ;;  %v529_v60 = vld [vmem:[%s15051_s2] sm:$0xff] }
  0x64   :  { %10451 = vmatprep.subr.bf16.mxu0 %v10450_v15  ;;  %v532_v54 = vld [vmem:[%s15051_s2 + $0x18] sm:$0xff]  ;;  %v531_v61 = vld [vmem:[%s15051_s2 + $0x10] sm:$0xff]  ;;  %v534_v62 = vld [vmem:[%s15051_s2 + $0x28] sm:$0xff] }
  0x65   :  { %v10474_v59 = vpack.c.bf16 %v532_v54, %v530_v53  ;;  %v536_v63 = vld [vmem:[%s15051_s2 + $0x38] sm:$0xff]  ;;  %v276_v1 = vld [vmem:[%s15054_s5] sm:$0xff]  ;;  %v10476_v2 = vpack.c.bf16 %v531_v61, %v529_v60  ;;  %v535_v5 = vld [vmem:[%s15051_s2 + $0x30] sm:$0xff] }
  0x66   :  { %v10478_v3 = vpack.c.bf16 %v536_v63, %v534_v62  ;;  %v533_v4 = vld [vmem:[%s15051_s2 + $0x20] sm:$0xff]  ;;  %v538_v6 = vld [vmem:[%s15051_s2 + $0x48] sm:$0xff]  ;;  %v540_v7 = vld [vmem:[%s15051_s2 + $0x58] sm:$0xff] }
  0x67   :  { %10453 = vmatpush1.bf16.msra.mxu0 %v10452_v22  ;;  %v277_v8 = vld [vmem:[%s15054_s5 + $0x8] sm:$0xff]  ;;  %v10480_v9 = vpack.c.bf16 %v535_v5, %v533_v4  ;;  %v10482_v10 = vpack.c.bf16 %v540_v7, %v538_v6  ;;  %v537_v11 = vld [vmem:[%s15051_s2 + $0x40] sm:$0xff]  ;;  %v539_v12 = vld [vmem:[%s15051_s2 + $0x50] sm:$0xff] }
  0x68   :  { %10455 = vmatprep.subr.bf16.mxu0 %v10454_v23  ;;  %v542_v13 = vld [vmem:[%s15051_s2 + $0x68] sm:$0xff]  ;;  %v544_v14 = vld [vmem:[%s15051_s2 + $0x78] sm:$0xff]  ;;  %v278_v15 = vld [vmem:[%s15054_s5 + $0x10] sm:$0xff]  ;;  %v10484_v16 = vpack.c.bf16 %v539_v12, %v537_v11 }
  0x69   :  { %v10486_v17 = vpack.c.bf16 %v544_v14, %v542_v13  ;;  %v541_v18 = vld [vmem:[%s15051_s2 + $0x60] sm:$0xff]  ;;  %v543_v19 = vld [vmem:[%s15051_s2 + $0x70] sm:$0xff]  ;;  %v546_v20 = vld [vmem:[%s15051_s2 + $0x88] sm:$0xff]  ;;  %v15068_v13 = vmov 0  }
  0x6a   :  { %v548_v21 = vld [vmem:[%s15051_s2 + $0x98] sm:$0xff]  ;;  %v10488_v23 = vpack.c.bf16 %v543_v19, %v541_v18  ;;  %v288_v54 = vld [vmem:[%s15054_s5 + $0x60] sm:$0xff]  ;;  %v515_v60 = vld [vmem:[#allocation3 + $0x10] sm:$0xff] }
  0x6b   :  { %10457 = vmatpush1.bf16.msra.mxu0 %v10456_v24  ;;  %v279_v22 = vld [vmem:[%s15054_s5 + $0x18] sm:$0xff]  ;;  %v10490_v24 = vpack.c.bf16 %v548_v21, %v546_v20  ;;  %v517_v62 = vld [vmem:[#allocation3 + $0x20] sm:$0xff]  ;;  %v518_v63 = vld [vmem:[#allocation3 + $0x28] sm:$0xff] }
  0x6c   :  { %v287_v53 = vld [vmem:[%s15054_s5 + $0x58] sm:$0xff]  ;;  %v522_v4 = vld [vmem:[#allocation3 + $0x48] sm:$0xff]  ;;  %v523_v5 = vld [vmem:[#allocation3 + $0x50] sm:$0xff]  ;;  %1617 = vmatprep.subr.bf16.mxu0 %v15068_v13 }
  0x6d   :  { %v516_v61 = vld [vmem:[#allocation3 + $0x18] sm:$0xff]  ;;  %v525_v7 = vld [vmem:[#allocation3 + $0x60] sm:$0xff]  ;;  %v10684_v12 = vld [vmem:[#allocation9 + $0x6c] sm:$0xff]  }
  0x6e   :  { %9313 = vmatmul.mubr.msk.f32.vlgmr.msra.gmra.mrb[0].mxu0 %vm138_vm0, %v114_v25  ;;  %v545_v25 = vld [vmem:[%s15051_s2 + $0x80] sm:$0xff]  ;;  %v524_v6 = vld [vmem:[#allocation3 + $0x58] sm:$0xff]  ;;  %vm11485_vm3 = vmor %vm723_vm2, %vm15063_vm1  ;;  %vm1105_vm2 = vcmask 1043552  }
  0x6f   :  { %233 = vmatprep.mubr.f32.mxu0 %v15066_v0  ;;  %v10683_v11 = vld [vmem:[#allocation9 + $0xd8] sm:$0xff]   ;;  %1618 = vmatpush1.bf16.msra.mxu0 %v10684_v12  ;;  %v10685_v14 = vld [vmem:[#allocation9 + $0xe0] sm:$0xff]   ;;  %731 = vst.msk [vmem:[#allocation2 + $0x18] sm:$0xff] %vm11485_vm3, %v15068_v13  ;;  %725 = vst.msk [vmem:[#allocation2] sm:$0xff] %vm11485_vm3, %v15068_v13 }
  0x70   :  { %1619 = vmatprep.subr.bf16.mxu0 %v15068_v13  ;;  %726 = vst.msk [vmem:[#allocation2 + $0x8] sm:$0xff] %vm11485_vm3, %v15068_v13  ;;  %732 = vst.msk [vmem:[#allocation2 + $0x20] sm:$0xff] %vm11485_vm3, %v15068_v13  ;;  %v10689_v19 = vld [vmem:[#allocation9 + $0xf0] sm:$0xff]   ;;  %v10690_v20 = vld [vmem:[#allocation9 + $0x84] sm:$0xff]  }
  0x71   :  { %734 = vst.msk [vmem:[#allocation2 + $0x30] sm:$0xff] %vm11485_vm3, %v15068_v13  ;;  %735 = vst.msk [vmem:[#allocation2 + $0x38] sm:$0xff] %vm11485_vm3, %v15068_v13  ;;  %v10691_v21 = vld [vmem:[#allocation9 + $0xf8] sm:$0xff]  }
  0x72   :  { %9314 = vmatmul.mubr.msk.f32.gmra.mrb[2].mxu0 %vm138_vm0, %v115_v26  ;;  %v547_v26 = vld [vmem:[%s15051_s2 + $0x90] sm:$0xff]  ;;  %737 = vst.msk [vmem:[#allocation2 + $0x48] sm:$0xff] %vm11485_vm3, %v15068_v13  ;;  %738 = vst.msk [vmem:[#allocation2 + $0x50] sm:$0xff] %vm11485_vm3, %v15068_v13 }
  0x73   :  { %239 = vmatprep.mubr.f32.mxu0 %v15066_v0  ;;  %740 = vst.msk [vmem:[#allocation2 + $0x60] sm:$0xff] %vm11485_vm3, %v15068_v13  ;;  %741 = vst.msk [vmem:[#allocation2 + $0x68] sm:$0xff] %vm11485_vm3, %v15068_v13 }
  0x74   :  { %743 = vst.msk [vmem:[#allocation2 + $0x78] sm:$0xff] %vm11485_vm3, %v15068_v13  ;;  %744 = vst.msk [vmem:[#allocation2 + $0x80] sm:$0xff] %vm11485_vm3, %v15068_v13 }
  0x75   :  { %746 = vst.msk [vmem:[#allocation2 + $0x90] sm:$0xff] %vm11485_vm3, %v15068_v13  ;;  %747 = vst.msk [vmem:[#allocation2 + $0x98] sm:$0xff] %vm11485_vm3, %v15068_v13 }
  0x76   :  { %9315 = vmatmul.mubr.msk.f32.gmra.mrb[4].mxu0 %vm138_vm0, %v116_v27  ;;  %v550_v27 = vld [vmem:[%s15051_s2 + $0xa8] sm:$0xff]  ;;  %749 = vst.msk [vmem:[#allocation2 + $0xa8] sm:$0xff] %vm11485_vm3, %v15068_v13  ;;  %750 = vst.msk [vmem:[#allocation2 + $0xb0] sm:$0xff] %vm11485_vm3, %v15068_v13  ;;  %v1991_v12 = vld [vmem:[#allocation2] sm:$0xee] }
  0x77   :  { %245 = vmatprep.mubr.f32.mxu0 %v15066_v0  ;;  %752 = vst.msk [vmem:[#allocation2 + $0xc0] sm:$0xff] %vm11485_vm3, %v15068_v13  ;;  %753 = vst.msk [vmem:[#allocation2 + $0xc8] sm:$0xff] %vm11485_vm3, %v15068_v13 }
  0x78   :  { %755 = vst.msk [vmem:[#allocation2 + $0xd8] sm:$0xff] %vm11485_vm3, %v15068_v13  ;;  %756 = vst.msk [vmem:[#allocation2 + $0xe0] sm:$0xff] %vm11485_vm3, %v15068_v13 }
  0x79   :  { %758 = vst.msk [vmem:[#allocation2 + $0xf0] sm:$0xff] %vm11485_vm3, %v15068_v13  ;;  %759 = vst.msk [vmem:[#allocation2 + $0xf8] sm:$0xff] %vm11485_vm3, %v15068_v13 }
  0x7a   :  { %9316 = vmatmul.mubr.msk.f32.gmra.mrb[6].mxu0 %vm138_vm0, %v117_v28  ;;  %v552_v28 = vld [vmem:[%s15051_s2 + $0xb8] sm:$0xff]  ;;  %761 = vst.msk [vmem:[#allocation2 + $0x108] sm:$0xff] %vm11485_vm3, %v15068_v13  ;;  %762 = vst.msk [vmem:[#allocation2 + $0x110] sm:$0xff] %vm11485_vm3, %v15068_v13  ;;  %vm15065_vm3 = vsmask.f32 7938 }
  0x7b   :  { %251 = vmatprep.mubr.f32.mxu0 %v15066_v0  ;;  %vm729_vm6 = vmor %vm728_vm5, %vm727_vm4  ;;  %vm1108_vm4 = vcmask 621572   ;;  %vm1109_vm5 = vsmask.f32 7954 }
  0x7c   :  { %733 = vst.msk [vmem:[#allocation2 + $0x28] sm:$0x11] %vm729_vm6, %v15068_v13  ;;  %730 = vst.msk [vmem:[#allocation2 + $0x10] sm:$0x11] %vm729_vm6, %v15068_v13 }
  0x7d   :  { %736 = vst.msk [vmem:[#allocation2 + $0x40] sm:$0x11] %vm729_vm6, %v15068_v13  ;;  %739 = vst.msk [vmem:[#allocation2 + $0x58] sm:$0x11] %vm729_vm6, %v15068_v13 }
  0x7e   :  { %9317 = vmatmul.mubr.msk.f32.gmra.mrb[8].mxu0 %vm138_vm0, %v118_v29  ;;  %v280_v29 = vld [vmem:[%s15054_s5 + $0x20] sm:$0xff]  ;;  %742 = vst.msk [vmem:[#allocation2 + $0x70] sm:$0x11] %vm729_vm6, %v15068_v13  ;;  %745 = vst.msk [vmem:[#allocation2 + $0x88] sm:$0x11] %vm729_vm6, %v15068_v13 }
  0x7f   :  { %257 = vmatprep.mubr.f32.mxu0 %v15066_v0  ;;  %748 = vst.msk [vmem:[#allocation2 + $0xa0] sm:$0x11] %vm729_vm6, %v15068_v13  ;;  %751 = vst.msk [vmem:[#allocation2 + $0xb8] sm:$0x11] %vm729_vm6, %v15068_v13 }
  0x80   :  { %754 = vst.msk [vmem:[#allocation2 + $0xd0] sm:$0x11] %vm729_vm6, %v15068_v13  ;;  %757 = vst.msk [vmem:[#allocation2 + $0xe8] sm:$0x11] %vm729_vm6, %v15068_v13 }
  0x81   :  { %760 = vst.msk [vmem:[#allocation2 + $0x100] sm:$0x11] %vm729_vm6, %v15068_v13  ;;  %763 = vst.msk [vmem:[#allocation2 + $0x118] sm:$0x11] %vm729_vm6, %v15068_v13 }
  0x82   :  { %9318 = vmatmul.mubr.msk.f32.gmra.mrb[10].mxu0 %vm138_vm0, %v119_v30  ;;  %v10492_v30 = vpack.c.bf16 %v547_v26, %v545_v25  ;;  %v10695_v25 = vld [vmem:[#allocation9 + $0x108] sm:$0xff]   ;;  %v10696_v26 = vld [vmem:[#allocation9 + $0x9c] sm:$0xff]   ;;  %vm11625_vm10 = vmor %vm844_vm7, %vm845_vm8 }
  0x83   :  { %263 = vmatprep.mubr.f32.mxu0 %v15066_v0  ;;  %vm11633_vm12 = vmor %vm2015_vm9, %vm2016_vm11  ;;  %vm1119_vm9 = vcmask 1040480   ;;  %vm1121_vm11 = vcmask 618500  }
  0x84   :  { %vm1107_vm6 = vmand %vm1105_vm2, %vm15065_vm3 }
  0x85   :  { %vm1110_vm8 = vmand %vm1108_vm4, %vm1109_vm5 }
  0x86   :  { %9319 = vmatmul.mubr.msk.f32.gmra.mrb[12].mxu0 %vm138_vm0, %v120_v31  ;;  %v10494_v31 = vpack.c.bf16 %v552_v28, %v550_v27  ;;  %v10697_v27 = vld [vmem:[#allocation9 + $0x110] sm:$0xff]   ;;  %v10698_v28 = vld [vmem:[#allocation9 + $0xa4] sm:$0xff]  }
  0x87   :  { %269 = vmatprep.mubr.f32.mxu0 %v15066_v0 }
  0x8a   :  { %9320 = vmatmul.mubr.msk.f32.gmra.mrb[14].mxu0 %vm138_vm0, %v121_v32  ;;  %v549_v32 = vld [vmem:[%s15051_s2 + $0xa0] sm:$0xff] }
 0x141   :  { %v229_v33 = vpop.f32.mrb[0].mxu0 }
 0x142   :  { %v231_v34 = vpop.f32.mrb[1].mxu0 }
 0x145   :  { %v235_v35 = vpop.f32.mrb[2].mxu0 }
 0x146   :  { %v237_v36 = vpop.f32.mrb[3].mxu0  ;;  %v10460_v37 = vpack.c.bf16 %v235_v35, %v229_v33  ;;  %v551_v33 = vld [vmem:[%s15051_s2 + $0xb0] sm:$0xff]  ;;  %v556_v35 = vld [vmem:[%s15051_s2 + $0xd8] sm:$0xff] }
 0x147   :  { %v10458_v38 = vpack.c.bf16 %v237_v36, %v231_v34  ;;  %v554_v34 = vld [vmem:[%s15051_s2 + $0xc8] sm:$0xff] }
 0x148   :  { %v281_v36 = vld [vmem:[%s15054_s5 + $0x28] sm:$0xff] }
 0x149   :  { %v241_v39 = vpop.f32.mrb[4].mxu0  ;;  %10459 = vmatprep.subr.bf16.mxu1 %v10458_v38  ;;  %v10498_v38 = vpack.c.bf16 %v556_v35, %v554_v34 }
 0x14a   :  { %v243_v40 = vpop.f32.mrb[5].mxu0  ;;  %10461 = vmatpush1.bf16.msra.mxu1 %v10460_v37  ;;  %v10496_v37 = vpack.c.bf16 %v551_v33, %v549_v32  ;;  %v10702_v32 = vld [vmem:[#allocation9 + $0xb4] sm:$0xff]   ;;  %v294_v33 = vlaneseq }
 0x14c   :  { %v295_v34 = vshrl.u32 %v294_v33, 7 }
 0x14d   :  { %v247_v41 = vpop.f32.mrb[6].mxu0 }
 0x14e   :  { %v10464_v42 = vpack.c.bf16 %v247_v41, %v241_v39  ;;  %v249_v43 = vpop.f32.mrb[7].mxu0  ;;  %v553_v39 = vld [vmem:[%s15051_s2 + $0xc0] sm:$0xff]  ;;  %v558_v41 = vld [vmem:[%s15051_s2 + $0xe8] sm:$0xff]  ;;  %v11579_v35 = vsub.s32 0, %v295_v34 }
 0x14f   :  { %v10462_v44 = vpack.c.bf16 %v249_v43, %v243_v40  ;;  %v555_v40 = vld [vmem:[%s15051_s2 + $0xd0] sm:$0xff] }
 0x150   :  { %v282_v43 = vld [vmem:[%s15054_s5 + $0x30] sm:$0xff]  ;;  %15098 = vst [vmem:[#allocation17_spill] sm:$0xff] %v11579_v35 }
 0x151   :  { %v253_v45 = vpop.f32.mrb[8].mxu0  ;;  %10463 = vmatprep.subr.bf16.mxu1 %v10462_v44  ;;  %v10500_v44 = vpack.c.bf16 %v555_v40, %v553_v39  ;;  %v10703_v40 = vld [vmem:[#allocation9 + $0x128] sm:$0xff]  }
 0x152   :  { %v255_v46 = vpop.f32.mrb[9].mxu0  ;;  %10465 = vmatpush1.bf16.msra.mxu1 %v10464_v42  ;;  %v560_v42 = vld [vmem:[%s15051_s2 + $0xf8] sm:$0xff] }
 0x155   :  { %v259_v47 = vpop.f32.mrb[10].mxu0 }
 0x156   :  { %v10468_v48 = vpack.c.bf16 %v259_v47, %v253_v45  ;;  %v261_v49 = vpop.f32.mrb[11].mxu0  ;;  %v10502_v45 = vpack.c.bf16 %v560_v42, %v558_v41  ;;  %v559_v47 = vld [vmem:[%s15051_s2 + $0xf0] sm:$0xff]  ;;  %v10704_v42 = vld [vmem:[#allocation9 + $0xbc] sm:$0xff]  }
 0x157   :  { %v10466_v50 = vpack.c.bf16 %v261_v49, %v255_v46  ;;  %v557_v46 = vld [vmem:[%s15051_s2 + $0xe0] sm:$0xff] }
 0x158   :  { %v10504_v49 = vpack.c.bf16 %v559_v47, %v557_v46  ;;  %v10705_v46 = vld [vmem:[#allocation9 + $0x130] sm:$0xff]  }
 0x159   :  { %v265_v51 = vpop.f32.mrb[12].mxu0  ;;  %10467 = vmatprep.subr.bf16.mxu1 %v10466_v50  ;;  %v284_v50 = vld [vmem:[%s15054_s5 + $0x40] sm:$0xff] }
 0x15a   :  { %v267_v52 = vpop.f32.mrb[13].mxu0  ;;  %10469 = vmatpush1.bf16.msra.mxu1 %v10468_v48  ;;  %v283_v48 = vld [vmem:[%s15054_s5 + $0x38] sm:$0xff] }
 0x15d   :  { %v271_v55 = vpop.f32.mrb[14].mxu0 }
 0x15e   :  { %v10472_v56 = vpack.c.bf16 %v271_v55, %v265_v51  ;;  %v273_v57 = vpop.f32.mrb[15].mxu0  ;;  %v285_v51 = vld [vmem:[%s15054_s5 + $0x48] sm:$0xff] }
 0x15f   :  { %v10470_v58 = vpack.c.bf16 %v273_v57, %v267_v52  ;;  %v286_v52 = vld [vmem:[%s15054_s5 + $0x50] sm:$0xff]  ;;  %v289_v55 = vld [vmem:[%s15054_s5 + $0x68] sm:$0xff]  ;;  %v291_v57 = vld [vmem:[%s15054_s5 + $0x78] sm:$0xff] }
 0x161   :  { %10471 = vmatprep.subr.bf16.mxu1 %v10470_v58  ;;  %v513_v58 = vld [vmem:[#allocation3] sm:$0xff] }
 0x162   :  { %10473 = vmatpush1.bf16.msra.mxu1 %v10472_v56  ;;  %v290_v56 = vld [vmem:[%s15054_s5 + $0x70] sm:$0xff] }
 0x163   :  { %10475 = vmatprep.subr.bf16.mxu1 %v10474_v59  ;;  %v514_v59 = vld [vmem:[#allocation3 + $0x8] sm:$0xff] }
 0x165   :  { %9321 = vmatmul.mubr.msk.f32.vlgmr.msra.gmra.mrb[0].mxu1 %vm138_vm0, %v276_v1  ;;  %v519_v1 = vld [vmem:[#allocation3 + $0x30] sm:$0xff] }
 0x166   :  { %10477 = vmatpush1.bf16.msra.mxu1 %v10476_v2  ;;  %422 = vmatprep.mubr.f32.mxu1 %v15066_v0  ;;  %v520_v2 = vld [vmem:[#allocation3 + $0x38] sm:$0xff] }
 0x167   :  { %10479 = vmatprep.subr.bf16.mxu1 %v10478_v3  ;;  %v521_v3 = vld [vmem:[#allocation3 + $0x40] sm:$0xff] }
 0x169   :  { %9322 = vmatmul.mubr.msk.f32.gmra.mrb[2].mxu1 %vm138_vm0, %v277_v8  ;;  %v526_v8 = vld [vmem:[#allocation3 + $0x68] sm:$0xff] }
 0x16a   :  { %428 = vmatprep.mubr.f32.mxu1 %v15066_v0  ;;  %10481 = vmatpush1.bf16.msra.mxu1 %v10480_v9  ;;  %v527_v9 = vld [vmem:[#allocation3 + $0x70] sm:$0xff] }
 0x16b   :  { %10483 = vmatprep.subr.bf16.mxu1 %v10482_v10  ;;  %v528_v10 = vld [vmem:[#allocation3 + $0x78] sm:$0xff] }
 0x16d   :  { %9323 = vmatmul.mubr.msk.f32.gmra.mrb[4].mxu1 %vm138_vm0, %v278_v15  ;;  %v10686_v15 = vld [vmem:[#allocation9 + $0x74] sm:$0xff]  }
 0x16e   :  { %434 = vmatprep.mubr.f32.mxu1 %v15066_v0  ;;  %10485 = vmatpush1.bf16.msra.mxu1 %v10484_v16  ;;  %v10687_v16 = vld [vmem:[#allocation9 + $0xe8] sm:$0xff]  }
 0x16f   :  { %10487 = vmatprep.subr.bf16.mxu1 %v10486_v17  ;;  %1620 = vmatpush1.bf16.msra.mxu0 %v10686_v15  ;;  %v10688_v17 = vld [vmem:[#allocation9 + $0x7c] sm:$0xff]  }
 0x170   :  { %1621 = vmatprep.subr.bf16.mxu0 %v15068_v13 }
 0x171   :  { %9324 = vmatmul.mubr.msk.f32.gmra.mrb[6].mxu1 %vm138_vm0, %v279_v22  ;;  %v10692_v22 = vld [vmem:[#allocation9 + $0x8c] sm:$0xff]  }
 0x172   :  { %440 = vmatprep.mubr.f32.mxu1 %v15066_v0  ;;  %10489 = vmatpush1.bf16.msra.mxu1 %v10488_v23  ;;  %v10693_v23 = vld [vmem:[#allocation9 + $0x100] sm:$0xff]  }
 0x173   :  { %10491 = vmatprep.subr.bf16.mxu1 %v10490_v24  ;;  %1622 = vmatpush1.bf16.msra.mxu0 %v10688_v17  ;;  %v10694_v24 = vld [vmem:[#allocation9 + $0x94] sm:$0xff]  }
 0x174   :  { %1623 = vmatprep.subr.bf16.mxu0 %v15068_v13  ;;  %v10710_v17 = vld [vmem:[#allocation9 + $0xd4] ss:$0 sps:$4 sm:$0xff]  }
 0x175   :  { %9325 = vmatmul.mubr.msk.f32.gmra.mrb[8].mxu1 %vm138_vm0, %v280_v29  ;;  %v10699_v29 = vld [vmem:[#allocation9 + $0x118] sm:$0xff]  }
 0x176   :  { %446 = vmatprep.mubr.f32.mxu1 %v15066_v0  ;;  %10493 = vmatpush1.bf16.msra.mxu1 %v10492_v30  ;;  %v10700_v30 = vld [vmem:[#allocation9 + $0xac] sm:$0xff]  }
 0x177   :  { %10495 = vmatprep.subr.bf16.mxu1 %v10494_v31  ;;  %1624 = vmatpush1.bf16.msra.mxu0 %v10690_v20  ;;  %v10701_v31 = vld [vmem:[#allocation9 + $0x120] sm:$0xff]  }
 0x178   :  { %1625 = vmatprep.subr.bf16.mxu0 %v15068_v13 }
 0x179   :  { %9326 = vmatmul.mubr.msk.f32.gmra.mrb[10].mxu1 %vm138_vm0, %v281_v36  ;;  %v292_v36 = vld [vmem:[%s15053_s4] sm:$0x3]  ;;  %s11115_s4 = smov 12  }
 0x17a   :  { %452 = vmatprep.mubr.f32.mxu1 %v15066_v0  ;;  %10497 = vmatpush1.bf16.msra.mxu1 %v10496_v37  ;;  %v300_v37 = vsub.s32 1, %v295_v34 }
 0x17b   :  { %10499 = vmatprep.subr.bf16.mxu1 %v10498_v38  ;;  %1626 = vmatpush1.bf16.msra.mxu0 %v10692_v22  ;;  %v11585_v38 = vrot.slane %v292_v36, %v11579_v35  ;;  %v15099_v22 = vmov 0 }
 0x17c   :  { %1627 = vmatprep.subr.bf16.mxu0 %v15068_v13  ;;  %v11587_v39 = vrot.slane %v292_v36, %v300_v37  ;;  %v15100_v22 = vsel %vm11625_vm10, 4294967295, %v15099_v22 }
 0x17d   :  { %9327 = vmatmul.mubr.msk.f32.gmra.mrb[12].mxu1 %vm138_vm0, %v282_v43  ;;  %15101 = vst [vmem:[#allocation18_spill] sm:$0xff] %v15100_v22 }
 0x17e   :  { %458 = vmatprep.mubr.f32.mxu1 %v15066_v0  ;;  %10501 = vmatpush1.bf16.msra.mxu1 %v10500_v44 }
 0x17f   :  { %10503 = vmatprep.subr.bf16.mxu1 %v10502_v45  ;;  %1628 = vmatpush1.bf16.msra.mxu0 %v10694_v24  ;;  %v1221_v24 = vld [vmem:[#allocation2 + $0x10] sm:$0x11] }
 0x180   :  { %1629 = vmatprep.subr.bf16.mxu0 %v15068_v13  ;;  %v2023_v37 = vrot.slane %v1221_v24, 5 }
 0x181   :  { %9328 = vmatmul.mubr.msk.f32.gmra.mrb[14].mxu1 %vm138_vm0, %v283_v48 }
 0x182   :  { %464 = vmatprep.mubr.f32.mxu1 %v15066_v0  ;;  %10505 = vmatpush1.bf16.msra.mxu1 %v10504_v49  ;;  %v10706_v49 = vld [vmem:[#allocation9 + $0xc4] sm:$0xff]  }
 0x183   :  { %2266 = vmatprep.subr.bf16.mxu1 %v15068_v13  ;;  %1630 = vmatpush1.bf16.msra.mxu0 %v10696_v26 }
 0x184   :  { %1631 = vmatprep.subr.bf16.mxu0 %v15068_v13 }
 0x185   :  { %9329 = vmatmul.mubr.msk.f32.gmra.mrb[16].mxu1 %vm138_vm0, %v284_v50  ;;  %v11605_v50 = vld [vmem:[#allocation2 + $0x8] sm:$0xff] }
 0x186   :  { %470 = vmatprep.mubr.f32.mxu1 %v15066_v0 }
 0x187   :  { %1632 = vmatpush1.bf16.msra.mxu0 %v10698_v28  ;;  %v15102_v28 = vmov 0 }
 0x188   :  { %1633 = vmatprep.subr.bf16.mxu0 %v15068_v13  ;;  %v15103_v28 = vsel %vm11633_vm12, 4294967295, %v15102_v28 }
 0x189   :  { %9330 = vmatmul.mubr.msk.f32.gmra.mrb[18].mxu1 %vm138_vm0, %v285_v51  ;;  %15104 = vst [vmem:[#allocation19_spill] sm:$0xff] %v15103_v28 }
 0x18a   :  { %476 = vmatprep.mubr.f32.mxu1 %v15066_v0 }
 0x18b   :  { %1634 = vmatpush1.bf16.msra.mxu0 %v10700_v30 }
 0x18c   :  { %1635 = vmatprep.subr.bf16.mxu0 %v15068_v13 }
 0x18d   :  { %9331 = vmatmul.mubr.msk.f32.gmra.mrb[20].mxu1 %vm138_vm0, %v286_v52 }
 0x18e   :  { %482 = vmatprep.mubr.f32.mxu1 %v15066_v0 }
 0x18f   :  { %1636 = vmatpush1.bf16.msra.mxu0 %v10702_v32 }
 0x190   :  { %1637 = vmatprep.subr.bf16.mxu0 %v15068_v13 }
 0x191   :  { %9332 = vmatmul.mubr.msk.f32.gmra.mrb[22].mxu1 %vm138_vm0, %v287_v53  ;;  %v1178_v53 = vld [vmem:[#allocation2] sm:$0xff] }
 0x192   :  { %488 = vmatprep.mubr.f32.mxu1 %v15066_v0 }
 0x193   :  { %1638 = vmatpush1.bf16.msra.mxu0 %v10704_v42 }
 0x194   :  { %1639 = vmatprep.subr.bf16.mxu0 %v15068_v13 }
 0x195   :  { %9333 = vmatmul.mubr.msk.f32.gmra.mrb[24].mxu1 %vm138_vm0, %v288_v54  ;;  %v1242_v54 = vshll.u32 %v11605_v50, 16 }
 0x196   :  { %494 = vmatprep.mubr.f32.mxu1 %v15066_v0 }
 0x197   :  { %1640 = vmatpush1.bf16.msra.mxu0 %v10706_v49 }
 0x198   :  { %1641 = vmatprep.subr.bf16.mxu0 %v15068_v13 }
 0x199   :  { %9334 = vmatmul.mubr.msk.f32.gmra.mrb[26].mxu1 %vm138_vm0, %v289_v55  ;;  %v1246_v55 = vshrl.u32 %v11605_v50, 16 }
 0x19a   :  { %500 = vmatprep.mubr.f32.mxu1 %v15066_v0 }
 0x19d   :  { %9335 = vmatmul.mubr.msk.f32.gmra.mrb[28].mxu1 %vm138_vm0, %v290_v56 }
 0x19e   :  { %506 = vmatprep.mubr.f32.mxu1 %v15066_v0 }
 0x1a1   :  { %9336 = vmatmul.mubr.msk.f32.gmra.mrb[30].mxu1 %vm138_vm0, %v291_v57  ;;  %vm11653_vm0 = vmor %vm1229_vm13, %vm1230_vm14  ;;  %vm1122_vm13 = vsmask.f32 4352  ;;  %vm1055_vm14 = vcmask 97280  }
 0x1a2   :  { %625 = vmatprep.mubr.f32.mxu1 %v15066_v0  ;;  %vm1123_vm3 = vmand %vm1121_vm11, %vm1122_vm13 }
 0x1a5   :  { %626 = vmatmul.mubr.f32.vlgmr.msra.gmra.mrb[0].mxu1 %v513_v58  ;;  %v1233_v58 = vshrl.u32 %v1178_v53, 16 }
 0x1a6   :  { %631 = vmatprep.mubr.f32.mxu1 %v15066_v0  ;;  %2267 = vmatpush1.bf16.msra.mxu1 %v10683_v11  ;;  %v10709_v11 = vld [vmem:[#allocation9 + $0x140] ss:$0 sps:$4 sm:$0xff]  }
 0x1a7   :  { %2268 = vmatprep.subr.bf16.mxu1 %v15068_v13 }
 0x1a9   :  { %632 = vmatmul.mubr.f32.gmra.mrb[2].mxu1 %v514_v59  ;;  %v10707_v59 = vld [vmem:[#allocation9 + $0x138] sm:$0xff]  }
 0x1aa   :  { %637 = vmatprep.mubr.f32.mxu1 %v15066_v0  ;;  %2269 = vmatpush1.bf16.msra.mxu1 %v10685_v14  ;;  %v1235_v14 = vrot.slane %v1233_v58, 4 }
 0x1ab   :  { %2270 = vmatprep.subr.bf16.mxu1 %v15068_v13 }
 0x1ad   :  { %638 = vmatmul.mubr.f32.gmra.mrb[4].mxu1 %v515_v60  ;;  %v1236_v60 = vshll.u32 %v1178_v53, 16 }
 0x1ae   :  { %643 = vmatprep.mubr.f32.mxu1 %v15066_v0  ;;  %2271 = vmatpush1.bf16.msra.mxu1 %v10687_v16 }
 0x1af   :  { %2272 = vmatprep.subr.bf16.mxu1 %v15068_v13  ;;  %v1238_v18 = vrot.slane %v1236_v60, 5 }
 0x1b1   :  { %644 = vmatmul.mubr.f32.gmra.mrb[6].mxu1 %v516_v61 }
 0x1b2   :  { %649 = vmatprep.mubr.f32.mxu1 %v15066_v0  ;;  %2273 = vmatpush1.bf16.msra.mxu1 %v10689_v19 }
 0x1b3   :  { %2274 = vmatprep.subr.bf16.mxu1 %v15068_v13 }
 0x1b5   :  { %650 = vmatmul.mubr.f32.gmra.mrb[8].mxu1 %v517_v62 }
 0x1b6   :  { %655 = vmatprep.mubr.f32.mxu1 %v15066_v0  ;;  %2275 = vmatpush1.bf16.msra.mxu1 %v10691_v21 }
 0x1b7   :  { %2276 = vmatprep.subr.bf16.mxu1 %v15068_v13 }
 0x1b9   :  { %656 = vmatmul.mubr.f32.gmra.mrb[10].mxu1 %v518_v63 }
 0x1ba   :  { %661 = vmatprep.mubr.f32.mxu1 %v15066_v0  ;;  %2277 = vmatpush1.bf16.msra.mxu1 %v10693_v23  ;;  %v2264_v23 = vsel %vm15063_vm1, %v10709_v11, 0 }
 0x1bb   :  { %2278 = vmatprep.subr.bf16.mxu1 %v15068_v13 }
 0x1bd   :  { %662 = vmatmul.mubr.f32.gmra.mrb[12].mxu1 %v519_v1 }
 0x1be   :  { %667 = vmatprep.mubr.f32.mxu1 %v15066_v0  ;;  %2279 = vmatpush1.bf16.msra.mxu1 %v10695_v25 }
 0x1bf   :  { %2280 = vmatprep.subr.bf16.mxu1 %v15068_v13 }
 0x1c1   :  { %668 = vmatmul.mubr.f32.gmra.mrb[14].mxu1 %v520_v2  ;;  %v10708_v2 = vld [vmem:[#allocation9 + $0xcc] sm:$0xff]  }
 0x1c2   :  { %673 = vmatprep.mubr.f32.mxu1 %v15066_v0  ;;  %2281 = vmatpush1.bf16.msra.mxu1 %v10697_v27  ;;  %v1615_v27 = vsel %vm15063_vm1, %v10710_v17, 0 }
 0x1c3   :  { %2282 = vmatprep.subr.bf16.mxu1 %v15068_v13  ;;  %1642 = vmatpush1.bf16.msra.mxu0 %v10708_v2 }
 0x1c4   :  { %1643 = vmatprep.subr.bf16.mxu0 %v15068_v13 }
 0x1c5   :  { %674 = vmatmul.mubr.f32.gmra.mrb[16].mxu1 %v521_v3 }
 0x1c6   :  { %679 = vmatprep.mubr.f32.mxu1 %v15066_v0  ;;  %2283 = vmatpush1.bf16.msra.mxu1 %v10699_v29  ;;  %v9429_v29 = vrot.slane %v1991_v12, 9 }
 0x1c7   :  { %2284 = vmatprep.subr.bf16.mxu1 %v15068_v13  ;;  %1644 = vmatpush1.bf16.msra.mxu0 %v1615_v27 }
 0x1c8   :  { %1894 = vmatprep.subr.bf16.mxu0 %v15068_v13 }
 0x1c9   :  { %680 = vmatmul.mubr.f32.gmra.mrb[18].mxu1 %v522_v4 }
 0x1ca   :  { %685 = vmatprep.mubr.f32.mxu1 %v15066_v0  ;;  %2285 = vmatpush1.bf16.msra.mxu1 %v10701_v31 }
 0x1cb   :  { %2286 = vmatprep.subr.bf16.mxu1 %v15068_v13 }
 0x1cd   :  { %686 = vmatmul.mubr.f32.gmra.mrb[20].mxu1 %v523_v5  ;;  %v2020_v5 = vrot.slane %v11605_v50, 5 }
 0x1ce   :  { %691 = vmatprep.mubr.f32.mxu1 %v15066_v0  ;;  %2287 = vmatpush1.bf16.msra.mxu1 %v10703_v40  ;;  %v1239_v40 = vor.u32 %v1238_v18, %v1235_v14 }
 0x1cf   :  { %2288 = vmatprep.subr.bf16.mxu1 %v15068_v13  ;;  %v2022_v30 = vrot.slane %v2020_v5, 4 }
 0x1d1   :  { %692 = vmatmul.mubr.f32.gmra.mrb[22].mxu1 %v524_v6  ;;  %v11615_v6 = vrot.slane %v1242_v54, 5  ;;  %v2024_v49 = vsel %vm11633_vm12, %v2022_v30, %v2023_v37 }
 0x1d2   :  { %697 = vmatprep.mubr.f32.mxu1 %v15066_v0  ;;  %2289 = vmatpush1.bf16.msra.mxu1 %v10705_v46  ;;  %v2021_v46 = vsel %vm11633_vm12, %v9429_v29, %v2020_v5 }
 0x1d3   :  { %2290 = vmatprep.subr.bf16.mxu1 %v15068_v13  ;;  %v9437_v53 = vcombine.low %v2021_v46, %v2024_v49  ;;  %v9438_v54 = vcombine.high %v2021_v46, %v2024_v49  ;;  %v10716_v46 = vld [vmem:[#allocation9 + $0x1c0] sm:$0xff]  }
 0x1d5   :  { %698 = vmatmul.mubr.f32.gmra.mrb[24].mxu1 %v525_v7  ;;  %v11617_v7 = vrot.slane %v1246_v55, 4  ;;  %v1240_v55 = vrot.slane %v1239_v40, 4 }
 0x1d6   :  { %703 = vmatprep.mubr.f32.mxu1 %v15066_v0  ;;  %2291 = vmatpush1.bf16.msra.mxu1 %v10707_v59 }
 0x1d7   :  { %2292 = vmatprep.subr.bf16.mxu1 %v15068_v13 }
 0x1d9   :  { %704 = vmatmul.mubr.f32.gmra.mrb[26].mxu1 %v526_v8 }
 0x1da   :  { %709 = vmatprep.mubr.f32.mxu1 %v15066_v0  ;;  %2293 = vmatpush1.bf16.msra.mxu1 %v2264_v23 }
 0x1db   :  { %3124 = vmatprep.subr.bf16.mxu1 %v15068_v13 }
 0x1dd   :  { %710 = vmatmul.mubr.f32.gmra.mrb[28].mxu1 %v527_v9 }
 0x1de   :  { %715 = vmatprep.mubr.f32.mxu1 %v15066_v0 }
 0x1e1   :  { %716 = vmatmul.mubr.f32.gmra.mrb[30].mxu1 %v528_v10 }
 0x1e2   :  { %9467 = vmatprep.mubr.msk.bf16.mxu1 %vm15064_vm15, %v9438_v54 }
 0x1e5   :  { %2299 = vmatmul.mubr.bf16.vlgmr.msra.gmra.mrb[32].mxu1 %v9437_v53 }
 0x278   :  { %v627_v41 = vpop.f32.mrb[0].mxu1 }
 0x279   :  { %v10602_v43 = vadd.f32 %v627_v41, %v11585_v38  ;;  %v629_v44 = vpop.f32.mrb[1].mxu1  ;;  %v1249_v41 = vor.u32 %v11617_v7, %v11615_v6 }
 0x27a   :  { %v10603_v45 = vadd.f32 %v629_v44, %v11587_v39 }
 0x27b   :  { %v1250_v2 = vrot.slane %v1249_v41, 4 }
 0x27c   :  { %v633_v47 = vpop.f32.mrb[2].mxu1  ;;  %v10202_v48 = vpack.c.bf16 %v10603_v45, %v10602_v43 }
 0x27d   :  { %v10604_v51 = vadd.f32 %v633_v47, %v11585_v38  ;;  %v635_v52 = vpop.f32.mrb[3].mxu1 }
 0x27e   :  { %v10605_v56 = vadd.f32 %v635_v52, %v11587_v39  ;;  %v848_v57 = vshrl.u32 %v10202_v48, 16  ;;  %v851_v1 = vshll.u32 %v10202_v48, 16 }
 0x280   :  { %v10203_v61 = vpack.c.bf16 %v10605_v56, %v10604_v51  ;;  %v639_v62 = vpop.f32.mrb[4].mxu1  ;;  %v850_v63 = vrot.slane %v848_v57, 7 }
 0x281   :  { %v10606_v3 = vadd.f32 %v639_v62, %v11585_v38  ;;  %v641_v4 = vpop.f32.mrb[5].mxu1 }
 0x282   :  { %v10607_v8 = vadd.f32 %v641_v4, %v11587_v39  ;;  %v853_v9 = vor.u32 %v851_v1, %v850_v63  ;;  %v856_v10 = vshrl.u32 %v10203_v61, 16  ;;  %v854_v15 = vrot.slane %v850_v63, 4 }
 0x283   :  { %v859_v16 = vshll.u32 %v10203_v61, 16  ;;  %v1252_v61 = vshll.u32 %v1221_v24, 16 }
 0x284   :  { %v10204_v19 = vpack.c.bf16 %v10607_v8, %v10606_v3  ;;  %v645_v20 = vpop.f32.mrb[6].mxu1  ;;  %983 = vrot.lane.b32.xlu0 %v853_v9, %s11115_s4  ;;  %v858_v21 = vrot.slane %v856_v10, 7  ;;  %v1245_v8 = vsel %vm11653_vm0, %v1240_v55, %v11615_v6  ;;  %v10712_v10 = vld [vmem:[#allocation9 + $0x1b0] sm:$0xff]  }
 0x285   :  { %v10608_v25 = vadd.f32 %v645_v20, %v11585_v38  ;;  %v647_v26 = vpop.f32.mrb[7].mxu1  ;;  %v1254_v9 = vrot.slane %v1252_v61, 5  ;;  %3125 = vmatpush1.bf16.msra.mxu1 %v10712_v10 }
 0x286   :  { %v10609_v31 = vadd.f32 %v647_v26, %v11587_v39  ;;  %v863_v32 = vrot.slane %v858_v21, 4  ;;  %v861_v33 = vor.u32 %v859_v16, %v858_v21  ;;  %v865_v34 = vshrl.u32 %v10204_v19, 16  ;;  %3126 = vmatprep.subr.bf16.mxu1 %v15068_v13  ;;  %v10714_v26 = vld [vmem:[#allocation9 + $0x1b8] sm:$0xff]  }
 0x287   :  { %v868_v36 = vshll.u32 %v10204_v19, 16  ;;  %v1255_v19 = vsel %vm11653_vm0, %v1250_v2, %v1254_v9  ;;  %v10717_v2 = vld [vmem:[#allocation9 + $0x18] sm:$0xff]   ;;  %v10720_v9 = vld [vmem:[#allocation9 + $0x1d0] sm:$0xff]  }
 0x288   :  { %v10205_v42 = vpack.c.bf16 %v10609_v31, %v10608_v25  ;;  %v651_v43 = vpop.f32.mrb[8].mxu1  ;;  %987 = vrot.lane.b32.xlu1 %v863_v32, %s11115_s4  ;;  %v862_v44 = vsel %vm11625_vm10, %v854_v15, %v861_v33  ;;  %v867_v45 = vrot.slane %v865_v34, 7  ;;  %v9353_v23 = vcombine.low %v1245_v8, %v1255_v19  ;;  %v10711_v25 = vld [vmem:[#allocation9] sm:$0xff]  }
 0x289   :  { %v10610_v47 = vadd.f32 %v651_v43, %v11585_v38  ;;  %v653_v48 = vpop.f32.mrb[9].mxu1  ;;  %985 = vrot.lane.b32.xlu0 %v862_v44, %s11115_s4  ;;  %v9354_v24 = vcombine.high %v1245_v8, %v1255_v19  ;;  %3127 = vmatpush1.bf16.msra.mxu1 %v10714_v26 }
 0x28a   :  { %v10611_v50 = vadd.f32 %v653_v48, %v11587_v39  ;;  %v870_v51 = vor.u32 %v868_v36, %v867_v45  ;;  %v873_v52 = vshrl.u32 %v10205_v42, 16  ;;  %v876_v56 = vshll.u32 %v10205_v42, 16  ;;  %v10713_v42 = vld [vmem:[#allocation9 + $0x8] sm:$0xff]   ;;  %3128 = vmatprep.subr.bf16.mxu1 %v15068_v13 }
 0x28b   :  { %v871_v1 = vrot.slane %v867_v45, 4  ;;  %9383 = vmatprep.mubr.msk.bf16.mxu0 %vm15064_vm15, %v9354_v24  ;;  %vm1120_vm15 = vmand %vm1119_vm9, %vm844_vm7 }
 0x28c   :  { %v10206_v57 = vpack.c.bf16 %v10611_v50, %v10610_v47  ;;  %v657_v58 = vpop.f32.mrb[10].mxu1  ;;  %989 = vrot.lane.b32.xlu1 %v870_v51, %s11115_s4  ;;  %v875_v59 = vrot.slane %v873_v52, 7  ;;  %1650 = vmatmul.mubr.bf16.vlgmr.msra.gmra.mrb[16].mxu0 %v9353_v23  ;;  %v10715_v52 = vld [vmem:[#allocation9 + $0x10] sm:$0xff]  }
 0x28d   :  { %v10612_v62 = vadd.f32 %v657_v58, %v11585_v38  ;;  %v659_v63 = vpop.f32.mrb[11].mxu1  ;;  %1895 = vmatpush1.bf16.msra.mxu0 %v10711_v25  ;;  %3129 = vmatpush1.bf16.msra.mxu1 %v10716_v46 }
 0x28e   :  { %v10613_v3 = vadd.f32 %v659_v63, %v11587_v39  ;;  %v880_v4 = vrot.slane %v875_v59, 4  ;;  %v878_v5 = vor.u32 %v876_v56, %v875_v59  ;;  %v882_v7 = vshrl.u32 %v10206_v57, 16  ;;  %1896 = vmatprep.subr.bf16.mxu0 %v15068_v13  ;;  %3130 = vmatprep.subr.bf16.mxu1 %v15068_v13 }
 0x28f   :  { %v885_v16 = vshll.u32 %v10206_v57, 16  ;;  %v10718_v57 = vld [vmem:[#allocation9 + $0x1c8] sm:$0xff]  }
 0x290   :  { %v10207_v11 = vpack.c.bf16 %v10613_v3, %v10612_v62  ;;  %v663_v12 = vpop.f32.mrb[12].mxu1  ;;  %993 = vrot.lane.b32.xlu1 %v880_v4, %s11115_s4  ;;  %v879_v14 = vsel %vm11625_vm10, %v871_v1, %v878_v5  ;;  %v884_v15 = vrot.slane %v882_v7, 7 }
 0x291   :  { %v10614_v17 = vadd.f32 %v663_v12, %v11585_v38  ;;  %v665_v18 = vpop.f32.mrb[13].mxu1  ;;  %991 = vrot.lane.b32.xlu0 %v879_v14, %s11115_s4  ;;  %1897 = vmatpush1.bf16.msra.mxu0 %v10713_v42 }
 0x292   :  { %v890_v6 = vshrl.u32 %v10207_v11, 16  ;;  %v10615_v20 = vadd.f32 %v665_v18, %v11587_v39  ;;  %v887_v21 = vor.u32 %v885_v16, %v884_v15  ;;  %v893_v29 = vshll.u32 %v10207_v11, 16  ;;  %1898 = vmatprep.subr.bf16.mxu0 %v15068_v13  ;;  %3131 = vmatpush1.bf16.msra.mxu1 %v10718_v57  ;;  %v10719_v16 = vld [vmem:[#allocation9 + $0x20] sm:$0xff]  }
 0x293   :  { %v888_v34 = vrot.slane %v884_v15, 4  ;;  %3132 = vmatprep.subr.bf16.mxu1 %v15068_v13 }
 0x294   :  { %v892_v27 = vrot.slane %v890_v6, 7  ;;  %v11672_v30 = vpack.c.bf16 %v10615_v20, %v10614_v17  ;;  %v669_v31 = vpop.f32.mrb[14].mxu1 }
 0x295   :  { %v10616_v32 = vadd.f32 %v669_v31, %v11585_v38  ;;  %v671_v33 = vpop.f32.mrb[15].mxu1  ;;  %995 = vrot.lane.b32.xlu0 %v887_v21, %s11115_s4  ;;  %1899 = vmatpush1.bf16.msra.mxu0 %v10715_v52  ;;  %v10722_v31 = vld [vmem:[#allocation9 + $0x1d8] sm:$0xff]  }
 0x296   :  { %v899_v36 = vshrl.u32 %v11672_v30, 16  ;;  %v10617_v37 = vadd.f32 %v671_v33, %v11587_v39  ;;  %v895_v40 = vor.u32 %v893_v29, %v892_v27  ;;  %v897_v41 = vrot.slane %v892_v27, 4  ;;  %1900 = vmatprep.subr.bf16.mxu0 %v15068_v13  ;;  %3133 = vmatpush1.bf16.msra.mxu1 %v10720_v9  ;;  %v10721_v29 = vld [vmem:[#allocation9 + $0x28] sm:$0xff]  }
 0x297   :  { %3134 = vmatprep.subr.bf16.mxu1 %v15068_v13 }
 0x298   :  { %v10209_v43 = vpack.c.bf16 %v10617_v37, %v10616_v32  ;;  %v675_v44 = vpop.f32.mrb[16].mxu1  ;;  %v896_v45 = vsel %vm11625_vm10, %v888_v34, %v895_v40  ;;  %v11686_v49 = vrot.slane %v899_v36, 7 }
 0x299   :  { %v10618_v47 = vadd.f32 %v675_v44, %v11585_v38  ;;  %v677_v48 = vpop.f32.mrb[17].mxu1  ;;  %997 = vrot.lane.b32.xlu1 %v896_v45, %s11115_s4  ;;  %999 = vrot.lane.b32.xlu0 %v897_v41, %s11115_s4  ;;  %v10724_v45 = vld [vmem:[#allocation9 + $0x1e0] sm:$0xff]  }
 0x29a   :  { %v907_v50 = vshrl.u32 %v10209_v43, 16  ;;  %v10619_v51 = vadd.f32 %v677_v48, %v11587_v39  ;;  %v910_v54 = vshll.u32 %v10209_v43, 16  ;;  %v905_v63 = vrot.slane %v11686_v49, 4  ;;  %1901 = vmatpush1.bf16.msra.mxu0 %v10717_v2  ;;  %3135 = vmatpush1.bf16.msra.mxu1 %v10722_v31 }
 0x29b   :  { %1902 = vmatprep.subr.bf16.mxu0 %v15068_v13  ;;  %3136 = vmatprep.subr.bf16.mxu1 %v15068_v13 }
 0x29c   :  { %v11690_v53 = vrot.slane %v907_v50, 7  ;;  %v10210_v55 = vpack.c.bf16 %v10619_v51, %v10618_v47  ;;  %v681_v56 = vpop.f32.mrb[18].mxu1  ;;  %v10723_v51 = vld [vmem:[#allocation9 + $0x30] sm:$0xff]  }
 0x29d   :  { %v10620_v58 = vadd.f32 %v681_v56, %v11585_v38  ;;  %v683_v59 = vpop.f32.mrb[19].mxu1 }
 0x29e   :  { %v10621_v61 = vadd.f32 %v683_v59, %v11587_v39  ;;  %v916_v62 = vshrl.u32 %v10210_v55, 16  ;;  %v912_v1 = vor.u32 %v910_v54, %v11690_v53  ;;  %v919_v7 = vshll.u32 %v10210_v55, 16  ;;  %1903 = vmatpush1.bf16.msra.mxu0 %v10719_v16  ;;  %3137 = vmatpush1.bf16.msra.mxu1 %v10724_v45 }
 0x29f   :  { %1904 = vmatprep.subr.bf16.mxu0 %v15068_v13  ;;  %3138 = vmatprep.subr.bf16.mxu1 %v15068_v13 }
 0x2a0   :  { %v10211_v3 = vpack.c.bf16 %v10621_v61, %v10620_v58  ;;  %v687_v4 = vpop.f32.mrb[20].mxu1  ;;  %v918_v5 = vrot.slane %v916_v62, 7  ;;  %v11700_v8 = vsel %vm11625_vm10, %v905_v63, %v912_v1  ;;  %v10726_v61 = vld [vmem:[#allocation9 + $0x1e8] sm:$0xff]  }
 0x2a1   :  { %v10622_v10 = vadd.f32 %v687_v4, %v11585_v38  ;;  %v689_v11 = vpop.f32.mrb[21].mxu1  ;;  %v10725_v4 = vld [vmem:[#allocation9 + $0x38] sm:$0xff]  }
 0x2a2   :  { %v10623_v12 = vadd.f32 %v689_v11, %v11587_v39  ;;  %v921_v14 = vor.u32 %v919_v7, %v918_v5  ;;  %v924_v15 = vshrl.u32 %v10211_v3, 16  ;;  %v927_v17 = vshll.u32 %v10211_v3, 16  ;;  %1905 = vmatpush1.bf16.msra.mxu0 %v10721_v29  ;;  %3139 = vmatpush1.bf16.msra.mxu1 %v10726_v61 }
 0x2a3   :  { %v922_v23 = vrot.slane %v918_v5, 4  ;;  %1906 = vmatprep.subr.bf16.mxu0 %v15068_v13  ;;  %3140 = vmatprep.subr.bf16.mxu1 %v15068_v13 }
 0x2a4   :  { %v10212_v18 = vpack.c.bf16 %v10623_v12, %v10622_v10  ;;  %v693_v19 = vpop.f32.mrb[22].mxu1  ;;  %1007 = vrot.lane.b32.xlu1 %v921_v14, %s11115_s4  ;;  %v926_v6 = vrot.slane %v924_v15, 7  ;;  %v10727_v12 = vld [vmem:[#allocation9 + $0x1f0] sm:$0xff]  }
 0x2a5   :  { %v10624_v20 = vadd.f32 %v693_v19, %v11585_v38  ;;  %v695_v21 = vpop.f32.mrb[23].mxu1 }
 0x2a6   :  { %v10625_v24 = vadd.f32 %v695_v21, %v11587_v39  ;;  %v931_v25 = vrot.slane %v926_v6, 4  ;;  %v929_v26 = vor.u32 %v927_v17, %v926_v6  ;;  %v933_v27 = vshrl.u32 %v10212_v18, 16  ;;  %1907 = vmatpush1.bf16.msra.mxu0 %v10723_v51  ;;  %3141 = vmatpush1.bf16.msra.mxu1 %v10727_v12  ;;  %v10738_v51 = vld [vmem:[#allocation9 + $0x68] ss:$0 sps:$4 sm:$0xff]   ;;  %v1995_v12 = vld [vmem:[#allocation2 + $0x90] sm:$0xee] }
 0x2a7   :  { %v936_v37 = vshll.u32 %v10212_v18, 16  ;;  %1908 = vmatprep.subr.bf16.mxu0 %v15068_v13  ;;  %v10728_v18 = vld [vmem:[#allocation9 + $0x40] sm:$0xff]   ;;  %3142 = vmatprep.subr.bf16.mxu1 %v15068_v13 }
 0x2a8   :  { %v10213_v32 = vpack.c.bf16 %v10625_v24, %v10624_v20  ;;  %v699_v33 = vpop.f32.mrb[24].mxu1  ;;  %1011 = vrot.lane.b32.xlu1 %v931_v25, %s11115_s4  ;;  %v930_v34 = vsel %vm11625_vm10, %v922_v23, %v929_v26  ;;  %v935_v36 = vrot.slane %v933_v27, 7  ;;  %v10729_v26 = vld [vmem:[#allocation9 + $0x1f8] sm:$0xff]  }
 0x2a9   :  { %v10626_v40 = vadd.f32 %v699_v33, %v11585_v38  ;;  %v701_v41 = vpop.f32.mrb[25].mxu1  ;;  %1009 = vrot.lane.b32.xlu0 %v930_v34, %s11115_s4  ;;  %v10731_v34 = vld [vmem:[#allocation9 + $0x200] sm:$0xff]  }
 0x2aa   :  { %v941_v42 = vshrl.u32 %v10213_v32, 16  ;;  %v10627_v43 = vadd.f32 %v701_v41, %v11587_v39  ;;  %v938_v44 = vor.u32 %v936_v37, %v935_v36  ;;  %v944_v47 = vshll.u32 %v10213_v32, 16  ;;  %1909 = vmatpush1.bf16.msra.mxu0 %v10725_v4  ;;  %3143 = vmatpush1.bf16.msra.mxu1 %v10729_v26  ;;  %v1125_v4 = vld [vmem:[#allocation2 + $0x28] sm:$0x11] }
 0x2ab   :  { %v939_v55 = vrot.slane %v935_v36, 4  ;;  %1910 = vmatprep.subr.bf16.mxu0 %v15068_v13  ;;  %3144 = vmatprep.subr.bf16.mxu1 %v15068_v13 }
 0x2ac   :  { %v943_v46 = vrot.slane %v941_v42, 7  ;;  %v10214_v48 = vpack.c.bf16 %v10627_v43, %v10626_v40  ;;  %v705_v50 = vpop.f32.mrb[26].mxu1  ;;  %v10732_v40 = vld [vmem:[#allocation9 + $0x50] sm:$0xff]   ;;  %v10733_v43 = vld [vmem:[#allocation9 + $0x208] sm:$0xff]  }
 0x2ad   :  { %v10628_v52 = vadd.f32 %v705_v50, %v11585_v38  ;;  %v707_v54 = vpop.f32.mrb[27].mxu1  ;;  %1013 = vrot.lane.b32.xlu0 %v938_v44, %s11115_s4  ;;  %v914_v44 = vrot.slane %v11690_v53, 4  ;;  %v10736_v53 = vld [vmem:[#allocation9 + $0x60] sm:$0xff]  }
 0x2ae   :  { %v10629_v56 = vadd.f32 %v707_v54, %v11587_v39  ;;  %v946_v57 = vor.u32 %v944_v47, %v943_v46  ;;  %v948_v58 = vrot.slane %v943_v46, 4  ;;  %v950_v59 = vshrl.u32 %v10214_v48, 16  ;;  %1911 = vmatpush1.bf16.msra.mxu0 %v10728_v18  ;;  %3145 = vmatpush1.bf16.msra.mxu1 %v10731_v34  ;;  %v10734_v46 = vld [vmem:[#allocation9 + $0x58] sm:$0xff]   ;;  %v1132_v34 = vld [vmem:[#allocation2 + $0x40] sm:$0x11] }
 0x2af   :  { %v953_v3 = vshll.u32 %v10214_v48, 16  ;;  %1912 = vmatprep.subr.bf16.mxu0 %v15068_v13  ;;  %3146 = vmatprep.subr.bf16.mxu1 %v15068_v13  ;;  %v10737_v48 = vld [vmem:[#allocation9 + $0x218] ss:$0 sps:$4 sm:$0xff]  }
 0x2b0   :  { %v10215_v62 = vpack.c.bf16 %v10629_v56, %v10628_v52  ;;  %v711_v63 = vpop.f32.mrb[28].mxu1  ;;  %v947_v1 = vsel %vm11625_vm10, %v939_v55, %v946_v57  ;;  %v952_v2 = vrot.slane %v950_v59, 7  ;;  %v3122_v50 = vsel %vm15063_vm1, %v10737_v48, 0  ;;  %v11773_v56 = vld [vmem:[#allocation2 + $0x90] sm:$0xff]  ;;  %v1112_v57 = vld [vmem:[#allocation2 + $0x18] sm:$0xff] }
 0x2b1   :  { %v10630_v5 = vadd.f32 %v711_v63, %v11585_v38  ;;  %v713_v7 = vpop.f32.mrb[29].mxu1  ;;  %1015 = vrot.lane.b32.xlu1 %v947_v1, %s11115_s4  ;;  %1017 = vrot.lane.b32.xlu0 %v948_v58, %s11115_s4  ;;  %v1892_v52 = vsel %vm15063_vm1, %v10738_v51, 0  ;;  %vm11769_vm1 = vmor %vm1110_vm8, %vm1107_vm6  ;;  %v1329_v61 = vshrl.u32 %v11773_v56, 16 }
 0x2b2   :  { %v10631_v9 = vadd.f32 %v713_v7, %v11587_v39  ;;  %v955_v10 = vor.u32 %v953_v3, %v952_v2  ;;  %v958_v11 = vshrl.u32 %v10215_v62, 16  ;;  %v961_v14 = vshll.u32 %v10215_v62, 16  ;;  %3147 = vmatpush1.bf16.msra.mxu1 %v10733_v43  ;;  %vm11787_vm6 = vmor %vm1123_vm3, %vm1120_vm15 }
 0x2b3   :  { %v956_v20 = vrot.slane %v952_v2, 4  ;;  %3148 = vmatprep.subr.bf16.mxu1 %v15068_v13  ;;  %v1332_v62 = vshll.u32 %v11773_v56, 16  ;;  %v11784_v2 = vld [vmem:[#allocation2 + $0x98] sm:$0xff]  ;;  %vm11793_vm8 = vmor %vm1108_vm4, %vm1105_vm2  ;;  %vm15113_vm15 = vcmask 719872  }
 0x2b4   :  { %v10216_v15 = vpack.c.bf16 %v10631_v9, %v10630_v5  ;;  %v717_v16 = vpop.f32.mrb[30].mxu1  ;;  %v960_v17 = vrot.slane %v958_v11, 7  ;;  %v1342_v51 = vshrl.u32 %v11784_v2, 16  ;;  %vm15114_vm2 = vmmov %vm15113_vm15 }
 0x2b5   :  { %v10632_v19 = vadd.f32 %v717_v16, %v11585_v38  ;;  %v719_v6 = vpop.f32.mrb[31].mxu1  ;;  %1019 = vrot.lane.b32.xlu1 %v955_v10, %s11115_s4  ;;  %v10730_v38 = vld [vmem:[#allocation9 + $0x48] sm:$0xff]   ;;  %v1334_v16 = vrot.slane %v1332_v62, 5  ;;  %vm15115_vm3 = vmmov %vm15114_vm2 }
 0x2b6   :  { %v10633_v21 = vadd.f32 %v719_v6, %v11587_v39  ;;  %v965_v23 = vrot.slane %v960_v17, 4  ;;  %v963_v24 = vor.u32 %v961_v14, %v960_v17  ;;  %v967_v25 = vshrl.u32 %v10216_v15, 16  ;;  %1913 = vmatpush1.bf16.msra.mxu0 %v10730_v38  ;;  %vm15116_vm4 = vmmov %vm15114_vm2 }
 0x2b7   :  { %v902_v39 = vshll.u32 %v11672_v30, 16  ;;  %1914 = vmatprep.subr.bf16.mxu0 %v15068_v13  ;;  %v970_v30 = vshll.u32 %v10216_v15, 16  ;;  %v2048_v14 = vrot.slane %v11784_v2, 5  ;;  %v1331_v15 = vrot.slane %v1329_v61, 4  ;;  %v1135_v61 = vld [vmem:[#allocation2 + $0x48] sm:$0xff]  ;;  %vm15117_vm9 = vmmov %vm15114_vm2 }
 0x2b8   :  { %v10217_v27 = vpack.c.bf16 %v10633_v21, %v10632_v19  ;;  %v964_v29 = vsel %vm11625_vm10, %v956_v20, %v963_v24  ;;  %v969_v31 = vrot.slane %v967_v25, 7  ;;  %v11804_v21 = vld [vmem:[#allocation2 + $0xa0] sm:$0x11]  ;;  %v9433_v25 = vrot.slane %v1995_v12, 9  ;;  %vm15118_vm11 = vmmov %vm15114_vm2 }
 0x2b9   :  { %1023 = vrot.lane.b32.xlu1 %v965_v23, %s11115_s4  ;;  %1021 = vrot.lane.b32.xlu0 %v964_v29, %s11115_s4  ;;  %v904_v33 = vor.u32 %v902_v39, %v11686_v49  ;;  %v1128_v23 = vld [vmem:[#allocation2 + $0x30] sm:$0xff]  ;;  %v2051_v29 = vrot.slane %v11804_v21, 5  ;;  %v1335_v38 = vor.u32 %v1334_v16, %v1331_v15 }
 0x2ba   :  { %v975_v32 = vshrl.u32 %v10217_v27, 16  ;;  %v978_v36 = vshll.u32 %v10217_v27, 16  ;;  %v973_v41 = vrot.slane %v969_v31, 4  ;;  %v972_v49 = vor.u32 %v970_v30, %v969_v31  ;;  %1915 = vmatpush1.bf16.msra.mxu0 %v10732_v40 }
 0x2bb   :  { %1916 = vmatprep.subr.bf16.mxu0 %v15068_v13  ;;  %v2050_v27 = vrot.slane %v2048_v14, 4  ;;  %v11819_v43 = vsel %vm11633_vm12, %v9433_v25, %v2048_v14 }
 0x2bc   :  { %v977_v37 = vrot.slane %v975_v32, 7 }
 0x2bd   :  { %1003 = vrot.lane.b32.xlu1 %v11700_v8, %s11115_s4  ;;  %1001 = vrot.lane.b32.xlu0 %v904_v33, %s11115_s4  ;;  %v10735_v8 = vld [vmem:[#allocation9 + $0x210] sm:$0xff]  }
 0x2be   :  { %v980_v42 = vor.u32 %v978_v36, %v977_v37  ;;  %v982_v47 = vrot.slane %v977_v37, 4  ;;  %1917 = vmatpush1.bf16.msra.mxu0 %v10734_v46  ;;  %3149 = vmatpush1.bf16.msra.mxu1 %v10735_v8  ;;  %v1338_v46 = vshll.u32 %v11784_v2, 16 }
 0x2bf   :  { %1918 = vmatprep.subr.bf16.mxu0 %v15068_v13  ;;  %3150 = vmatprep.subr.bf16.mxu1 %v15068_v13 }
 0x2c0   :  { %v981_v45 = vsel %vm11625_vm10, %v973_v41, %v980_v42  ;;  %v1340_v16 = vrot.slane %v1338_v46, 5 }
 0x2c1   :  { %1025 = vrot.lane.b32.xlu1 %v972_v49, %s11115_s4  ;;  %1005 = vrot.lane.b32.xlu0 %v914_v44, %s11115_s4  ;;  %v11824_v44 = vsel %vm11633_vm12, %v2050_v27, %v2051_v29 }
 0x2c2   :  { %1919 = vmatpush1.bf16.msra.mxu0 %v10736_v53  ;;  %3151 = vmatpush1.bf16.msra.mxu1 %v3122_v50 }
 0x2c3   :  { %1920 = vmatprep.subr.bf16.mxu0 %v15068_v13  ;;  %3855 = vmatprep.subr.bf16.mxu1 %v15068_v13 }
 0x2c5   :  { %1029 = vrot.lane.b32.xlu1 %v982_v47, %s11115_s4  ;;  %1027 = vrot.lane.b32.xlu0 %v981_v45, %s11115_s4  ;;  %v11826_v45 = vrot.slane %v1335_v38, 4 }
 0x2c6   :  { %1921 = vmatpush1.bf16.msra.mxu0 %v1892_v52 }
 0x2c7   :  { %2603 = vmatprep.subr.bf16.mxu0 %v15068_v13 }
 0x2f6   :  { %v984_v55 = vpop.permute.xlu0 %983 }
 0x2f7   :  { %v1031_v58 = vrot.slane %v984_v55, 4 }
 0x2f9   :  { %v1056_v59 = vsel %vm1055_vm14, %v1031_v58, %v984_v55 }
 0x2fa   :  { %v11782_v63 = vsel %vm11769_vm1, %v1056_v59, %v1112_v57  ;;  %v988_v1 = vpop.permute.xlu1 %987 }
 0x2fb   :  { %1114 = vst [vmem:[#allocation2 + $0x18] sm:$0xff] %v11782_v63  ;;  %v1033_v5 = vrot.slane %v988_v1, 4  ;;  %v986_v7 = vpop.permute.xlu0 %985  ;;  %v1257_v6 = vshrl.u32 %v11782_v63, 16  ;;  %v1260_v20 = vshll.u32 %v11782_v63, 16 }
 0x2fc   :  { %v1032_v10 = vrot.slane %v986_v7, 4 }
 0x2fd   :  { %v1058_v11 = vsel %vm1055_vm14, %v1033_v5, %v988_v1  ;;  %v1259_v32 = vrot.slane %v1257_v6, 4  ;;  %v1262_v33 = vrot.slane %v1260_v20, 5 }
 0x2fe   :  { %v1126_v17 = vsel %vm11787_vm6, %v1058_v11, %v1125_v4  ;;  %v1057_v18 = vsel %vm1055_vm14, %v1032_v10, %v986_v7  ;;  %v990_v19 = vpop.permute.xlu1 %989 }
 0x2ff   :  { %1127 = vst [vmem:[#allocation2 + $0x28] sm:$0x11] %v1126_v17  ;;  %1118 = vst.msk [vmem:[#allocation2 + $0x20] sm:$0xff] %vm11793_vm8, %v1057_v18  ;;  %v1034_v24 = vrot.slane %v990_v19, 4  ;;  %v1263_v50 = vor.u32 %v1262_v33, %v1259_v32  ;;  %v1344_v17 = vrot.slane %v1342_v51, 4 }
 0x301   :  { %v1059_v26 = vsel %vm1055_vm14, %v1034_v24, %v990_v19  ;;  %v1264_v15 = vrot.slane %v1263_v50, 4 }
 0x302   :  { %v11812_v39 = vsel %vm11769_vm1, %v1059_v26, %v1128_v23  ;;  %v994_v31 = vpop.permute.xlu1 %993  ;;  %v1992_v30 = vld [vmem:[#allocation2 + $0x18] sm:$0xee]  ;;  %v1139_v26 = vld [vmem:[#allocation2 + $0x58] sm:$0x11] }
 0x303   :  { %1130 = vst [vmem:[#allocation2 + $0x30] sm:$0xff] %v11812_v39  ;;  %v1036_v36 = vrot.slane %v994_v31, 4  ;;  %v992_v37 = vpop.permute.xlu0 %991  ;;  %v1281_v41 = vshrl.u32 %v11812_v39, 16  ;;  %v1284_v42 = vshll.u32 %v11812_v39, 16  ;;  %v9430_v55 = vrot.slane %v1992_v30, 9 }
 0x304   :  { %v1035_v40 = vrot.slane %v992_v37, 4 }
 0x305   :  { %v1061_v49 = vsel %vm1055_vm14, %v1036_v36, %v994_v31  ;;  %v1283_v4 = vrot.slane %v1281_v41, 4  ;;  %v1286_v5 = vrot.slane %v1284_v42, 5 }
 0x306   :  { %v1133_v8 = vsel %vm11787_vm6, %v1061_v49, %v1132_v34  ;;  %v1060_v47 = vsel %vm1055_vm14, %v1035_v40, %v992_v37  ;;  %v11832_v53 = vld [vmem:[#allocation2 + $0x20] sm:$0xff]  ;;  %v1222_v48 = vld [vmem:[#allocation2 + $0x28] sm:$0x11]  ;;  %v1348_v34 = vshll.u32 %v11804_v21, 16 }
 0x307   :  { %1134 = vst [vmem:[#allocation2 + $0x40] sm:$0x11] %v1133_v8  ;;  %1131 = vst.msk [vmem:[#allocation2 + $0x38] sm:$0xff] %vm11793_vm8, %v1060_v47  ;;  %v996_v52 = vpop.permute.xlu0 %995  ;;  %v2027_v57 = vrot.slane %v11832_v53, 5  ;;  %v1266_v58 = vshll.u32 %v11832_v53, 16  ;;  %v1270_v59 = vshrl.u32 %v11832_v53, 16  ;;  %v1287_v33 = vor.u32 %v1286_v5, %v1283_v4 }
 0x308   :  { %v1037_v62 = vrot.slane %v996_v52, 4  ;;  %v2030_v1 = vrot.slane %v1222_v48, 5  ;;  %v1276_v12 = vshll.u32 %v1222_v48, 16  ;;  %v9446_v4 = vcombine.high %v11819_v43, %v11824_v44  ;;  %v11881_v5 = vld [vmem:[#allocation2 + $0x18] sm:$0xff] }
 0x309   :  { %v2029_v7 = vrot.slane %v2027_v57, 4  ;;  %v11840_v10 = vrot.slane %v1266_v58, 5  ;;  %v1272_v11 = vrot.slane %v1270_v59, 4  ;;  %v2028_v20 = vsel %vm11633_vm12, %v9430_v55, %v2027_v57 }
 0x30a   :  { %v1062_v14 = vsel %vm1055_vm14, %v1037_v62, %v996_v52  ;;  %v1278_v32 = vrot.slane %v1276_v12, 5  ;;  %v1993_v42 = vld [vmem:[#allocation2 + $0x30] sm:$0xee]  ;;  %v1345_v59 = vor.u32 %v1344_v17, %v1340_v16  ;;  %v1288_v12 = vrot.slane %v1287_v33, 4 }
 0x30b   :  { %v11845_v18 = vsel %vm11769_vm1, %v1062_v14, %v1135_v61  ;;  %v998_v19 = vpop.permute.xlu1 %997  ;;  %v1000_v6 = vpop.permute.xlu0 %999  ;;  %v2031_v23 = vsel %vm11633_vm12, %v2029_v7, %v2030_v1  ;;  %v1273_v24 = vor.u32 %v1272_v11, %v11840_v10  ;;  %v1269_v40 = vsel %vm11653_vm0, %v1264_v15, %v11840_v10 }
 0x30c   :  { %1137 = vst [vmem:[#allocation2 + $0x48] sm:$0xff] %v11845_v18  ;;  %v1038_v25 = vrot.slane %v998_v19, 4  ;;  %v1039_v27 = vrot.slane %v1000_v6, 4  ;;  %v9440_v29 = vcombine.high %v2028_v20, %v2031_v23  ;;  %v9439_v38 = vcombine.low %v2028_v20, %v2031_v23 }
 0x30d   :  { %v11853_v31 = vrot.slane %v1273_v24, 4  ;;  %v1305_v49 = vshrl.u32 %v11845_v18, 16  ;;  %v1308_v47 = vshll.u32 %v11845_v18, 16  ;;  %v9431_v55 = vrot.slane %v1993_v42, 9 }
 0x30e   :  { %v1063_v36 = vsel %vm1055_vm14, %v1038_v25, %v998_v19  ;;  %v1064_v37 = vsel %vm1055_vm14, %v1039_v27, %v1000_v6  ;;  %9468 = vmatprep.mubr.msk.bf16.mxu1 %vm15113_vm15, %v9440_v29  ;;  %v11862_v30 = vld [vmem:[#allocation2 + $0x38] sm:$0xff]  ;;  %v1223_v41 = vld [vmem:[#allocation2 + $0x40] sm:$0x11]  ;;  %v11891_v23 = vsel %vm11653_vm0, %v11826_v45, %v1340_v16  ;;  %v1346_v24 = vrot.slane %v1345_v59, 4  ;;  %v1149_v27 = vld [vmem:[#allocation2 + $0xa8] sm:$0xff] }
 0x30f   :  { %1138 = vst.msk [vmem:[#allocation2 + $0x50] sm:$0xff] %vm11793_vm8, %v1063_v36  ;;  %v1140_v21 = vsel %vm11787_vm6, %v1064_v37, %v1139_v26  ;;  %2307 = vmatmul.mubr.bf16.gmra.mrb[36].mxu1 %v9439_v38  ;;  %v1279_v46 = vsel %vm11653_vm0, %v11853_v31, %v1278_v32  ;;  %v2034_v8 = vrot.slane %v11862_v30, 5  ;;  %v1290_v51 = vshll.u32 %v11862_v30, 16  ;;  %v1153_v59 = vld [vmem:[#allocation2 + $0xb8] sm:$0x11]  ;;  %vm15119_vm15 = vmmov %vm15114_vm2 }
 0x310   :  { %1141 = vst [vmem:[#allocation2 + $0x58] sm:$0x11] %v1140_v21  ;;  %v9356_v48 = vcombine.high %v1269_v40, %v1279_v46  ;;  %v9355_v50 = vcombine.low %v1269_v40, %v1279_v46  ;;  %v1294_v52 = vshrl.u32 %v11862_v30, 16  ;;  %v2037_v58 = vrot.slane %v1223_v41, 5 }
 0x311   :  { %v2036_v57 = vrot.slane %v2034_v8, 4  ;;  %v11877_v61 = vrot.slane %v1290_v51, 5  ;;  %v1300_v1 = vshll.u32 %v1223_v41, 16  ;;  %v2035_v7 = vsel %vm11633_vm12, %v9431_v55, %v2034_v8 }
 0x312   :  { %9384 = vmatprep.mubr.msk.bf16.mxu0 %vm15114_vm2, %v9356_v48  ;;  %v1296_v62 = vrot.slane %v1294_v52, 4  ;;  %v1307_v14 = vrot.slane %v1305_v49, 4  ;;  %v1310_v20 = vrot.slane %v1308_v47, 5  ;;  %v1350_v25 = vrot.slane %v1348_v34, 5 }
 0x313   :  { %1658 = vmatmul.mubr.bf16.gmra.mrb[20].mxu0 %v9355_v50  ;;  %v2038_v11 = vsel %vm11633_vm12, %v2036_v57, %v2037_v58  ;;  %v1994_v6 = vld [vmem:[#allocation2 + $0x48] sm:$0xee]  ;;  %v2741_v26 = vshrl.u32 %v11881_v5, 16  ;;  %v1293_v38 = vsel %vm11653_vm0, %v1288_v12, %v11877_v61  ;;  %v1302_v33 = vrot.slane %v1300_v1, 5 }
 0x314   :  { %v9442_v15 = vcombine.high %v2035_v7, %v2038_v11  ;;  %v9441_v17 = vcombine.low %v2035_v7, %v2038_v11  ;;  %v1297_v19 = vor.u32 %v1296_v62, %v11877_v61  ;;  %v2744_v45 = vshll.u32 %v11881_v5, 16 }
 0x315   :  { %v9432_v37 = vrot.slane %v1994_v6, 9  ;;  %v1311_v21 = vor.u32 %v1310_v20, %v1307_v14  ;;  %v11920_v7 = vsel %vm11653_vm0, %v1346_v24, %v1350_v25  ;;  %v2743_v11 = vrot.slane %v2741_v26, 4 }
 0x316   :  { %v1008_v29 = vpop.permute.xlu1 %1007  ;;  %9469 = vmatprep.mubr.msk.bf16.mxu1 %vm15115_vm3, %v9442_v15  ;;  %v11898_v32 = vrot.slane %v1297_v19, 4  ;;  %v11900_v36 = vld [vmem:[#allocation2 + $0x50] sm:$0xff]  ;;  %v2746_v12 = vrot.slane %v2744_v45, 5  ;;  %vm15120_vm3 = vmmov %vm15114_vm2 }
 0x317   :  { %v1043_v16 = vrot.slane %v1008_v29, 4  ;;  %2315 = vmatmul.mubr.bf16.gmra.mrb[40].mxu1 %v9441_v17  ;;  %v1224_v34 = vld [vmem:[#allocation2 + $0x58] sm:$0x11]  ;;  %v2041_v40 = vrot.slane %v11900_v36, 5  ;;  %v1314_v41 = vshll.u32 %v11900_v36, 16  ;;  %v1318_v46 = vshrl.u32 %v11900_v36, 16 }
 0x318   :  { %v1303_v42 = vsel %vm11653_vm0, %v11898_v32, %v1302_v33  ;;  %v2044_v49 = vrot.slane %v1224_v34, 5  ;;  %v1324_v50 = vshll.u32 %v1224_v34, 16  ;;  %v1156_v34 = vld [vmem:[#allocation2 + $0xc0] sm:$0xff] }
 0x319   :  { %v1068_v8 = vsel %vm1055_vm14, %v1043_v16, %v1008_v29  ;;  %v9358_v47 = vcombine.high %v1293_v38, %v1303_v42  ;;  %v9357_v48 = vcombine.low %v1293_v38, %v1303_v42  ;;  %v2043_v55 = vrot.slane %v2041_v40, 4 }
 0x31a   :  { %v11912_v51 = vsel %vm11769_vm1, %v1068_v8, %v1149_v27  ;;  %v1012_v52 = vpop.permute.xlu1 %1011  ;;  %v11914_v57 = vrot.slane %v1314_v41, 5  ;;  %v1320_v58 = vrot.slane %v1318_v46, 4  ;;  %v2042_v15 = vsel %vm11633_vm12, %v9432_v37, %v2041_v40 }
 0x31b   :  { %1151 = vst [vmem:[#allocation2 + $0xa8] sm:$0xff] %v11912_v51  ;;  %v1045_v62 = vrot.slane %v1012_v52, 4  ;;  %9385 = vmatprep.mubr.msk.bf16.mxu0 %vm15116_vm4, %v9358_v47  ;;  %v1010_v1 = vpop.permute.xlu0 %1009  ;;  %v2045_v17 = vsel %vm11633_vm12, %v2043_v55, %v2044_v49  ;;  %v1312_v29 = vrot.slane %v1311_v21, 4  ;;  %v1326_v38 = vrot.slane %v1324_v50, 5  ;;  %v2718_v47 = vld [vmem:[#allocation2 + $0x28] sm:$0x11]  ;;  %vm15121_vm4 = vmmov %vm15114_vm2 }
 0x31c   :  { %1666 = vmatmul.mubr.bf16.gmra.mrb[24].mxu0 %v9357_v48  ;;  %v1044_v14 = vrot.slane %v1010_v1, 4  ;;  %v1321_v19 = vor.u32 %v1320_v58, %v11914_v57  ;;  %v9444_v20 = vcombine.high %v2042_v15, %v2045_v17  ;;  %v9443_v27 = vcombine.low %v2042_v15, %v2045_v17 }
 0x31d   :  { %v1070_v6 = vsel %vm1055_vm14, %v1045_v62, %v1012_v52  ;;  %v1353_v45 = vshrl.u32 %v11912_v51, 16  ;;  %v1356_v16 = vshll.u32 %v11912_v51, 16  ;;  %v1317_v40 = vsel %vm11653_vm0, %v1312_v29, %v11914_v57  ;;  %v1160_v62 = vld [vmem:[#allocation2 + $0xd0] sm:$0x11] }
 0x31e   :  { %v1154_v24 = vsel %vm11787_vm6, %v1070_v6, %v1153_v59  ;;  %v1069_v25 = vsel %vm1055_vm14, %v1044_v14, %v1010_v1  ;;  %v11931_v26 = vrot.slane %v1321_v19, 4  ;;  %9470 = vmatprep.mubr.msk.bf16.mxu1 %vm15117_vm9, %v9444_v20  ;;  %v9362_v21 = vcombine.high %v11891_v23, %v11920_v7  ;;  %vm15122_vm9 = vmmov %vm15114_vm2 }
 0x31f   :  { %1155 = vst [vmem:[#allocation2 + $0xb8] sm:$0x11] %v1154_v24  ;;  %1152 = vst.msk [vmem:[#allocation2 + $0xb0] sm:$0xff] %vm11793_vm8, %v1069_v25  ;;  %v1014_v33 = vpop.permute.xlu0 %1013  ;;  %2323 = vmatmul.mubr.bf16.gmra.mrb[44].mxu1 %v9443_v27  ;;  %v2747_v46 = vor.u32 %v2746_v12, %v2743_v11  ;;  %v9445_v55 = vcombine.low %v11819_v43, %v11824_v44  ;;  %v1355_v58 = vrot.slane %v1353_v45, 4  ;;  %v2760_v43 = vshll.u32 %v2718_v47, 16  ;;  %v1163_v45 = vld [vmem:[#allocation2 + $0xd8] sm:$0xff] }
 0x320   :  { %v1046_v37 = vrot.slane %v1014_v33, 4  ;;  %v1327_v41 = vsel %vm11653_vm0, %v11931_v26, %v1326_v38  ;;  %9471 = vmatprep.mubr.msk.bf16.mxu1 %vm15118_vm11, %v9446_v4  ;;  %v1358_v4 = vrot.slane %v1356_v16, 5  ;;  %v9361_v14 = vcombine.low %v11891_v23, %v11920_v7 }
 0x321   :  { %v9360_v42 = vcombine.high %v1317_v40, %v1327_v41  ;;  %v9359_v49 = vcombine.low %v1317_v40, %v1327_v41  ;;  %v11964_v17 = vrot.slane %v2747_v46, 4  ;;  %v11982_v47 = vrot.slane %v2760_v43, 5 }
 0x322   :  { %v1071_v8 = vsel %vm1055_vm14, %v1046_v37, %v1014_v33  ;;  %v1996_v15 = vld [vmem:[#allocation2 + $0xa8] sm:$0xee]  ;;  %v1359_v25 = vor.u32 %v1358_v4, %v1355_v58  ;;  %v11976_v33 = vld [vmem:[#allocation2 + $0x30] sm:$0xff] }
 0x323   :  { %v11953_v48 = vsel %vm11769_vm1, %v1071_v8, %v1156_v34  ;;  %9386 = vmatprep.mubr.msk.bf16.mxu0 %vm15119_vm15, %v9360_v42  ;;  %v1016_v50 = vpop.permute.xlu1 %1015  ;;  %v1018_v52 = vpop.permute.xlu0 %1017  ;;  %v9434_v34 = vrot.slane %v1996_v15, 9 }
 0x324   :  { %1158 = vst [vmem:[#allocation2 + $0xc0] sm:$0xff] %v11953_v48  ;;  %v1047_v59 = vrot.slane %v1016_v50, 4  ;;  %1674 = vmatmul.mubr.bf16.gmra.mrb[28].mxu0 %v9359_v49  ;;  %v1048_v1 = vrot.slane %v1018_v52, 4  ;;  %v1377_v11 = vshrl.u32 %v11953_v48, 16  ;;  %v1380_v12 = vshll.u32 %v11953_v48, 16 }
 0x325   :  { %9387 = vmatprep.mubr.msk.bf16.mxu0 %vm15114_vm2, %v9362_v21 }
 0x326   :  { %v1072_v44 = vsel %vm1055_vm14, %v1047_v59, %v1016_v50  ;;  %v1073_v19 = vsel %vm1055_vm14, %v1048_v1, %v1018_v52  ;;  %v11968_v6 = vld [vmem:[#allocation2 + $0xb0] sm:$0xff]  ;;  %v1226_v20 = vld [vmem:[#allocation2 + $0xb8] sm:$0x11]  ;;  %v1379_v27 = vrot.slane %v1377_v11, 4  ;;  %v1382_v29 = vrot.slane %v1380_v12, 5 }
 0x327   :  { %1159 = vst.msk [vmem:[#allocation2 + $0xc8] sm:$0xff] %vm11793_vm8, %v1072_v44  ;;  %v1161_v24 = vsel %vm11787_vm6, %v1073_v19, %v1160_v62  ;;  %v1020_v23 = vpop.permute.xlu1 %1019  ;;  %v2055_v7 = vrot.slane %v11968_v6, 5  ;;  %v1362_v38 = vshll.u32 %v11968_v6, 16  ;;  %2331 = vmatmul.mubr.bf16.gmra.mrb[48].mxu1 %v9445_v55  ;;  %v2058_v37 = vrot.slane %v1226_v20, 5  ;;  %v1167_v11 = vld [vmem:[#allocation2 + $0xe8] sm:$0x11] }
 0x328   :  { %1162 = vst [vmem:[#allocation2 + $0xd0] sm:$0x11] %v1161_v24  ;;  %v1049_v16 = vrot.slane %v1020_v23, 4  ;;  %v1366_v40 = vshrl.u32 %v11968_v6, 16  ;;  %v1372_v49 = vshll.u32 %v1226_v20, 16  ;;  %v1383_v21 = vor.u32 %v1382_v29, %v1379_v27 }
 0x329   :  { %v2057_v41 = vrot.slane %v2055_v7, 4  ;;  %v11979_v42 = vrot.slane %v1362_v38, 5  ;;  %v2765_v50 = vshrl.u32 %v11976_v33, 16  ;;  %v2056_v4 = vsel %vm11633_vm12, %v9434_v34, %v2055_v7 }
 0x32a   :  { %v1074_v46 = vsel %vm1055_vm14, %v1049_v16, %v1020_v23  ;;  %v1368_v8 = vrot.slane %v1366_v40, 4  ;;  %v1360_v62 = vrot.slane %v1359_v25, 4  ;;  %v1374_v27 = vrot.slane %v1372_v49, 5 }
 0x32b   :  { %v11987_v52 = vsel %vm11769_vm1, %v1074_v46, %v1163_v45  ;;  %v1024_v55 = vpop.permute.xlu1 %1023  ;;  %v1022_v58 = vpop.permute.xlu0 %1021  ;;  %v2059_v59 = vsel %vm11633_vm12, %v2057_v41, %v2058_v37  ;;  %v1997_v1 = vld [vmem:[#allocation2 + $0xc0] sm:$0xee]  ;;  %v1384_v29 = vrot.slane %v1383_v21, 4 }
 0x32c   :  { %1165 = vst [vmem:[#allocation2 + $0xd8] sm:$0xff] %v11987_v52  ;;  %v1051_v12 = vrot.slane %v1024_v55, 4  ;;  %1682 = vmatmul.mubr.bf16.gmra.mrb[32].mxu0 %v9361_v14  ;;  %v1050_v15 = vrot.slane %v1022_v58, 4  ;;  %v9448_v43 = vcombine.high %v2056_v4, %v2059_v59  ;;  %v9447_v44 = vcombine.low %v2056_v4, %v2059_v59  ;;  %v1142_v21 = vld [vmem:[#allocation2 + $0x60] sm:$0xff] }
 0x32d   :  { %v1365_v19 = vsel %vm11653_vm0, %v1360_v62, %v11979_v42  ;;  %v1369_v20 = vor.u32 %v1368_v8, %v11979_v42  ;;  %v9435_v14 = vrot.slane %v1997_v1, 9  ;;  %v1401_v25 = vshrl.u32 %v11987_v52, 16 }
 0x32e   :  { %v1076_v24 = vsel %vm1055_vm14, %v1051_v12, %v1024_v55  ;;  %v1075_v23 = vsel %vm1055_vm14, %v1050_v15, %v1022_v58  ;;  %9472 = vmatprep.mubr.msk.bf16.mxu1 %vm15120_vm3, %v9448_v43  ;;  %v12001_v7 = vld [vmem:[#allocation2 + $0xc8] sm:$0xff]  ;;  %v1404_v62 = vshll.u32 %v11987_v52, 16 }
 0x32f   :  { %v1168_v38 = vsel %vm11787_vm6, %v1076_v24, %v1167_v11  ;;  %1166 = vst.msk [vmem:[#allocation2 + $0xe0] sm:$0xff] %vm11793_vm8, %v1075_v23  ;;  %v1004_v45 = vpop.permute.xlu1 %1003  ;;  %v1002_v16 = vpop.permute.xlu0 %1001  ;;  %v12008_v34 = vrot.slane %v1369_v20, 4  ;;  %v1227_v37 = vld [vmem:[#allocation2 + $0xd0] sm:$0x11]  ;;  %v2062_v40 = vrot.slane %v12001_v7, 5  ;;  %v1386_v41 = vshll.u32 %v12001_v7, 16  ;;  %2339 = vmatmul.mubr.bf16.gmra.mrb[52].mxu1 %v9447_v44 }
 0x330   :  { %1169 = vst [vmem:[#allocation2 + $0xe8] sm:$0x11] %v1168_v38  ;;  %v1041_v49 = vrot.slane %v1004_v45, 4  ;;  %v1040_v46 = vrot.slane %v1002_v16, 4  ;;  %v2065_v8 = vrot.slane %v1227_v37, 5  ;;  %v1390_v55 = vshrl.u32 %v12001_v7, 16 }
 0x331   :  { %v1375_v58 = vsel %vm11653_vm0, %v12008_v34, %v1374_v27  ;;  %v2064_v4 = vrot.slane %v2062_v40, 4  ;;  %v1388_v59 = vrot.slane %v1386_v41, 5  ;;  %v2063_v27 = vsel %vm11633_vm12, %v9435_v14, %v2062_v40 }
 0x332   :  { %v1066_v1 = vsel %vm1055_vm14, %v1041_v49, %v1004_v45  ;;  %v1065_v11 = vsel %vm1055_vm14, %v1040_v46, %v1002_v16  ;;  %v9364_v12 = vcombine.high %v1365_v19, %v1375_v58  ;;  %v9363_v15 = vcombine.low %v1365_v19, %v1375_v58  ;;  %v1170_v19 = vld [vmem:[#allocation2 + $0xf0] sm:$0xff] }
 0x333   :  { %1145 = vst.msk [vmem:[#allocation2 + $0x68] sm:$0xff] %vm11793_vm8, %v1066_v1  ;;  %v12023_v43 = vsel %vm11769_vm1, %v1065_v11, %v1142_v21  ;;  %v1026_v44 = vpop.permute.xlu1 %1025  ;;  %v1006_v20 = vpop.permute.xlu0 %1005  ;;  %v2066_v24 = vsel %vm11633_vm12, %v2064_v4, %v2065_v8  ;;  %v1392_v23 = vrot.slane %v1390_v55, 4  ;;  %v1146_v45 = vld [vmem:[#allocation2 + $0x70] sm:$0x11]  ;;  %v1396_v46 = vshll.u32 %v1227_v37, 16 }
 0x334   :  { %1144 = vst [vmem:[#allocation2 + $0x60] sm:$0xff] %v12023_v43  ;;  %9388 = vmatprep.mubr.msk.bf16.mxu0 %vm15121_vm4, %v9364_v12  ;;  %v1052_v38 = vrot.slane %v1026_v44, 4  ;;  %v1042_v16 = vrot.slane %v1006_v20, 4  ;;  %v9450_v41 = vcombine.high %v2063_v27, %v2066_v24  ;;  %v9449_v49 = vcombine.low %v2063_v27, %v2066_v24  ;;  %v1174_v11 = vld [vmem:[#allocation2 + $0x100] sm:$0x11] }
 0x335   :  { %1690 = vmatmul.mubr.bf16.gmra.mrb[36].mxu0 %v9363_v15  ;;  %v1393_v21 = vor.u32 %v1392_v23, %v1388_v59  ;;  %v12033_v14 = vrot.slane %v2765_v50, 4  ;;  %v2768_v40 = vshll.u32 %v11976_v33, 16  ;;  %v12041_v58 = vsel %vm11653_vm0, %v1384_v29, %v1388_v59  ;;  %v1998_v59 = vld [vmem:[#allocation2 + $0xd8] sm:$0xee] }
 0x336   :  { %v1077_v8 = vsel %vm1055_vm14, %v1052_v38, %v1026_v44  ;;  %v1067_v55 = vsel %vm1055_vm14, %v1042_v16, %v1006_v20  ;;  %9473 = vmatprep.mubr.msk.bf16.mxu1 %vm15122_vm9, %v9450_v41  ;;  %v12043_v4 = vld [vmem:[#allocation2 + $0xe0] sm:$0xff]  ;;  %v1403_v1 = vrot.slane %v1401_v25, 4  ;;  %v1398_v20 = vrot.slane %v1396_v46, 5 }
 0x337   :  { %v12047_v37 = vsel %vm11769_vm1, %v1077_v8, %v1170_v19  ;;  %v1147_v50 = vsel %vm11787_vm6, %v1067_v55, %v1146_v45  ;;  %v1030_v12 = vpop.permute.xlu1 %1029  ;;  %v1028_v15 = vpop.permute.xlu0 %1027  ;;  %v12051_v44 = vrot.slane %v1393_v21, 4  ;;  %v1228_v27 = vld [vmem:[#allocation2 + $0xe8] sm:$0x11]  ;;  %2347 = vmatmul.mubr.bf16.gmra.mrb[56].mxu1 %v9449_v49  ;;  %v2069_v54 = vrot.slane %v12043_v4, 5  ;;  %v12064_v46 = vld [vmem:[#allocation2 + $0x40] sm:$0x11]  ;;  %vm15123_vm1 = vmmov %vm15114_vm2 }
 0x338   :  { %1172 = vst [vmem:[#allocation2 + $0xf0] sm:$0xff] %v12047_v37  ;;  %1148 = vst [vmem:[#allocation2 + $0x70] sm:$0x11] %v1147_v50  ;;  %v1054_v29 = vrot.slane %v1030_v12, 4  ;;  %v1053_v25 = vrot.slane %v1028_v15, 4  ;;  %v1406_v24 = vrot.slane %v1404_v62, 5 }
 0x339   :  { %v1399_v23 = vsel %vm11653_vm0, %v12051_v44, %v1398_v20  ;;  %v2072_v19 = vrot.slane %v1228_v27, 5  ;;  %v1410_v38 = vshll.u32 %v12043_v4, 16  ;;  %v1414_v45 = vshrl.u32 %v12043_v4, 16  ;;  %v12070_v20 = vld [vmem:[#allocation2 + $0x48] sm:$0xff]  ;;  %vm15127_vm11 = vmmov %vm15123_vm1 }
 0x33a   :  { %v1079_v16 = vsel %vm1055_vm14, %v1054_v29, %v1030_v12  ;;  %v1078_v41 = vsel %vm1055_vm14, %v1053_v25, %v1028_v15  ;;  %v9366_v49 = vcombine.high %v12041_v58, %v1399_v23  ;;  %v9365_v21 = vcombine.low %v12041_v58, %v1399_v23  ;;  %vm15124_vm14 = vmmov %vm15123_vm1 }
 0x33b   :  { %v1175_v62 = vsel %vm11787_vm6, %v1079_v16, %v1174_v11  ;;  %1173 = vst.msk [vmem:[#allocation2 + $0xf8] sm:$0xff] %vm11793_vm8, %v1078_v41  ;;  %v9436_v8 = vrot.slane %v1998_v59, 9  ;;  %v2071_v55 = vrot.slane %v2069_v54, 4  ;;  %v2770_v50 = vrot.slane %v2768_v40, 5  ;;  %v10947_v16 = vld [vmem:[#allocation2 + $0x8] sm:$0xff]  ;;  %v10948_v41 = vld [vmem:[#allocation2] sm:$0xff]  ;;  %vm15125_vm6 = vmmov %vm15123_vm1 }
 0x33c   :  { %1176 = vst [vmem:[#allocation2 + $0x100] sm:$0x11] %v1175_v62  ;;  %9389 = vmatprep.mubr.msk.bf16.mxu0 %vm15123_vm1, %v9366_v49  ;;  %v1407_v12 = vor.u32 %v1406_v24, %v1403_v1  ;;  %v1412_v15 = vrot.slane %v1410_v38, 5  ;;  %v1416_v29 = vrot.slane %v1414_v45, 4  ;;  %v1420_v25 = vshll.u32 %v1228_v27, 16  ;;  %v12100_v62 = vld [vmem:[#allocation2 + $0x68] sm:$0xff]  ;;  %vm15126_vm8 = vmmov %vm15123_vm1 }
 0x33d   :  { %1698 = vmatmul.mubr.bf16.gmra.mrb[40].mxu0 %v9365_v21  ;;  %v2070_v3 = vsel %vm11633_vm12, %v9436_v8, %v2069_v54  ;;  %v2073_v9 = vsel %vm11633_vm12, %v2071_v55, %v2072_v19  ;;  %v2763_v40 = vsel %vm11653_vm0, %v11853_v31, %v11982_v47  ;;  %v2784_v11 = vshll.u32 %v12064_v46, 16  ;;  %vm15128_vm15 = vmmov %vm15123_vm1 }
 0x33e   :  { %v9452_v59 = vcombine.high %v2070_v3, %v2073_v9  ;;  %v9451_v23 = vcombine.low %v2070_v3, %v2073_v9  ;;  %v1417_v1 = vor.u32 %v1416_v29, %v1412_v15  ;;  %v2789_v24 = vshrl.u32 %v12070_v20, 16  ;;  %vm15129_vm2 = vmmov %vm15123_vm1 }
 0x33f   :  { %v2753_v27 = vsel %vm11653_vm0, %v11964_v17, %v11840_v10  ;;  %v2771_v54 = vor.u32 %v2770_v50, %v12033_v14  ;;  %v2792_v19 = vshll.u32 %v12070_v20, 16  ;;  %v1408_v31 = vrot.slane %v1407_v12, 4  ;;  %v12104_v12 = vld [vmem:[#allocation2 + $0x58] sm:$0x11]  ;;  %vm15130_vm3 = vmmov %vm15123_vm1 }
 0x340   :  { %9474 = vmatprep.mubr.msk.bf16.mxu1 %vm15124_vm14, %v9452_v59  ;;  %v9514_v38 = vcombine.high %v2753_v27, %v2763_v40  ;;  %v12090_v47 = vrot.slane %v1417_v1, 4  ;;  %v1422_v45 = vrot.slane %v1420_v25, 5  ;;  %v9392_v49 = vcombine.high %v10948_v41, %v10947_v16  ;;  %vm15131_vm4 = vmmov %vm15123_vm1 }
 0x341   :  { %2355 = vmatmul.mubr.bf16.gmra.mrb[60].mxu1 %v9451_v23  ;;  %v12095_v10 = vsel %vm11653_vm0, %v1408_v31, %v1412_v15  ;;  %v2786_v14 = vrot.slane %v2784_v11, 5  ;;  %v2791_v21 = vrot.slane %v2789_v24, 4  ;;  %v2772_v50 = vrot.slane %v2771_v54, 4  ;;  %v10740_v11 = vld [vmem:[#allocation9 + $0x288] sm:$0xff]   ;;  %vm15132_vm9 = vmmov %vm15123_vm1 }
 0x342   :  { %9543 = vmatprep.mubr.msk.bf16.mxu1 %vm15125_vm6, %v9514_v38  ;;  %v1423_v17 = vsel %vm11653_vm0, %v12090_v47, %v1422_v45  ;;  %v2794_v29 = vrot.slane %v2792_v19, 5  ;;  %v2822_v25 = vshll.u32 %v12100_v62, 16  ;;  %v2826_v3 = vshrl.u32 %v12100_v62, 16  ;;  %vm15133_vm14 = vmmov %vm15123_vm1 }
 0x343   :  { %v9368_v8 = vcombine.high %v12095_v10, %v1423_v17  ;;  %v9367_v55 = vcombine.low %v12095_v10, %v1423_v17  ;;  %v2787_v15 = vsel %vm11653_vm0, %v11898_v32, %v2786_v14  ;;  %v2808_v9 = vshll.u32 %v12104_v12, 16  ;;  %v12128_v14 = vld [vmem:[#allocation2 + $0xa8] sm:$0xff]  ;;  %vm15134_vm6 = vmmov %vm15123_vm1 }
 0x344   :  { %v9513_v59 = vcombine.low %v2753_v27, %v2763_v40  ;;  %v2777_v23 = vsel %vm11653_vm0, %v2772_v50, %v11877_v61  ;;  %v2795_v1 = vor.u32 %v2794_v29, %v2791_v21  ;;  %v2813_v32 = vshrl.u32 %v12023_v43, 16  ;;  %v10742_v40 = vld [vmem:[#allocation9 + $0x290] sm:$0xff]   ;;  %v10739_v61 = vld [vmem:[#allocation9 + $0x144] sm:$0xff]  }
 0x345   :  { %9390 = vmatprep.mubr.msk.bf16.mxu0 %vm15126_vm8, %v9368_v8  ;;  %v9516_v24 = vcombine.high %v2777_v23, %v2787_v15  ;;  %v2816_v54 = vshll.u32 %v12023_v43, 16  ;;  %v2824_v19 = vrot.slane %v2822_v25, 5  ;;  %v2828_v38 = vrot.slane %v2826_v3, 4  ;;  %v12120_v27 = vld [vmem:[#allocation2 + $0x70] sm:$0x11]  ;;  %vm15135_vm8 = vmmov %vm15123_vm1 }
 0x346   :  { %1706 = vmatmul.mubr.bf16.gmra.mrb[44].mxu0 %v9367_v55  ;;  %v9391_v31 = vcombine.low %v10948_v41, %v10947_v16  ;;  %v2810_v45 = vrot.slane %v2808_v9, 5  ;;  %v2796_v17 = vrot.slane %v2795_v1, 4  ;;  %v2815_v21 = vrot.slane %v2813_v32, 4  ;;  %v10744_v55 = vld [vmem:[#allocation9 + $0x298] sm:$0xff]   ;;  %v10741_v25 = vld [vmem:[#allocation9 + $0x14c] sm:$0xff]  }
 0x347   :  { %9421 = vmatprep.mubr.msk.bf16.mxu0 %vm15127_vm11, %v9392_v49  ;;  %v9394_v49 = vcombine.high %v11782_v63, %v11832_v53  ;;  %v2818_v16 = vrot.slane %v2816_v54, 5  ;;  %v2829_v41 = vor.u32 %v2828_v38, %v2824_v19  ;;  %v2832_v8 = vshll.u32 %v12120_v27, 16  ;;  %v12144_v54 = vld [vmem:[#allocation2 + $0xb8] sm:$0x11]  ;;  %vm15136_vm11 = vmmov %vm15123_vm1 }
 0x348   :  { %v2811_v43 = vsel %vm11653_vm0, %v11931_v26, %v2810_v45  ;;  %v9515_v50 = vcombine.low %v2777_v23, %v2787_v15  ;;  %v2801_v29 = vsel %vm11653_vm0, %v2796_v17, %v11914_v57  ;;  %v2837_v26 = vshrl.u32 %v12128_v14, 16  ;;  %v10746_v15 = vld [vmem:[#allocation9 + $0x2a0] sm:$0xff]   ;;  %v10743_v57 = vld [vmem:[#allocation9 + $0x154] sm:$0xff]  }
 0x349   :  { %3157 = vmatmul.mubr.bf16.vlgmr.msra.gmra.mrb[64].mxu1 %v9513_v59  ;;  %v2840_v3 = vshll.u32 %v12128_v14, 16  ;;  %v9518_v9 = vcombine.high %v2801_v29, %v2811_v43  ;;  %v2830_v59 = vrot.slane %v2829_v41, 4  ;;  %v2834_v1 = vrot.slane %v2832_v8, 5  ;;  %v10747_v41 = vld [vmem:[#allocation9 + $0x164] sm:$0xff]  }
 0x34a   :  { %9544 = vmatprep.mubr.msk.bf16.mxu1 %vm15128_vm15, %v9516_v24  ;;  %3856 = vmatpush1.bf16.msra.mxu1 %v10740_v11  ;;  %v2819_v11 = vor.u32 %v2818_v16, %v2815_v21  ;;  %v2839_v23 = vrot.slane %v2837_v26, 4  ;;  %v9393_v32 = vcombine.low %v11782_v63, %v11832_v53  ;;  %v9396_v38 = vcombine.high %v11812_v39, %v11862_v30  ;;  %v10745_v53 = vld [vmem:[#allocation9 + $0x15c] sm:$0xff]   ;;  %v10750_v16 = vld [vmem:[#allocation9 + $0x2b0] sm:$0xff]   ;;  %vm15137_vm15 = vmmov %vm15123_vm1 }
 0x34b   :  { %3857 = vmatprep.subr.bf16.mxu1 %v15068_v13  ;;  %v2842_v24 = vrot.slane %v2840_v3, 5  ;;  %v2835_v45 = vsel %vm11653_vm0, %v2830_v59, %v2834_v1  ;;  %v12178_v59 = vld [vmem:[#allocation2 + $0xf8] sm:$0xff] }
 0x34d   :  { %v2843_v17 = vor.u32 %v2842_v24, %v2839_v23  ;;  %v9397_v24 = vcombine.low %v11845_v18, %v11900_v36 }
 0x34e   :  { %1927 = vmatmul.mubr.bf16.vlgmr.msra.gmra.mrb[48].mxu0 %v9391_v31  ;;  %3858 = vmatpush1.bf16.msra.mxu1 %v10742_v40  ;;  %v2820_v31 = vrot.slane %v2819_v11, 4  ;;  %v10748_v40 = vld [vmem:[#allocation9 + $0x2a8] sm:$0xff]   ;;  %v10754_v11 = vld [vmem:[#allocation9 + $0x2c0] sm:$0xff]  }
 0x34f   :  { %9422 = vmatprep.mubr.msk.bf16.mxu0 %vm15129_vm2, %v9394_v49  ;;  %2604 = vmatpush1.bf16.msra.mxu0 %v10739_v61  ;;  %v9517_v61 = vcombine.low %v2801_v29, %v2811_v43  ;;  %v2856_v49 = vshll.u32 %v12144_v54, 16  ;;  %v2844_v43 = vrot.slane %v2843_v17, 4  ;;  %vm15138_vm2 = vmmov %vm15123_vm1 }
 0x350   :  { %2605 = vmatprep.subr.bf16.mxu0 %v15068_v13  ;;  %3859 = vmatprep.subr.bf16.mxu1 %v15068_v13  ;;  %v2825_v63 = vsel %vm11653_vm0, %v2820_v31, %v2824_v19  ;;  %v9395_v19 = vcombine.low %v11812_v39, %v11862_v30  ;;  %v10749_v30 = vld [vmem:[#allocation9 + $0x16c] sm:$0xff]  }
 0x351   :  { %3165 = vmatmul.mubr.bf16.gmra.mrb[68].mxu1 %v9515_v50  ;;  %v9520_v21 = vcombine.high %v2825_v63, %v2835_v45  ;;  %v2858_v8 = vrot.slane %v2856_v49, 5  ;;  %v9398_v50 = vcombine.high %v11845_v18, %v11900_v36  ;;  %v9519_v26 = vcombine.low %v2825_v63, %v2835_v45  ;;  %v10753_v18 = vld [vmem:[#allocation9 + $0x17c] sm:$0xff]  }
 0x352   :  { %9545 = vmatprep.mubr.msk.bf16.mxu1 %vm15130_vm3, %v9518_v9  ;;  %3860 = vmatpush1.bf16.msra.mxu1 %v10744_v55  ;;  %v12161_v55 = vld [vmem:[#allocation2 + $0xd0] sm:$0x11]  ;;  %v2849_v39 = vsel %vm11653_vm0, %v2844_v43, %v11979_v42  ;;  %v2918_v45 = vshll.u32 %v12178_v59, 16  ;;  %v2912_v63 = vshll.u32 %v12047_v37, 16  ;;  %vm15139_vm3 = vmmov %vm15123_vm1 }
 0x353   :  { %2606 = vmatpush1.bf16.msra.mxu0 %v10741_v25  ;;  %3861 = vmatprep.subr.bf16.mxu1 %v15068_v13  ;;  %v2859_v29 = vsel %vm11653_vm0, %v12008_v34, %v2858_v8  ;;  %v10752_v25 = vld [vmem:[#allocation9 + $0x2b8] sm:$0xff]   ;;  %v2880_v3 = vshll.u32 %v12161_v55, 16  ;;  %v12175_v34 = vpop.f32.mrb[32].mxu1  ;;  %v10757_v43 = vld [vmem:[#allocation9 + $0x2d0] sm:$0xff]  }
 0x354   :  { %2607 = vmatprep.subr.bf16.mxu0 %v15068_v13  ;;  %v9522_v9 = vcombine.high %v2849_v39, %v2859_v29  ;;  %v2302_v1 = vpop.f32.mrb[33].mxu1  ;;  %v10751_v42 = vld [vmem:[#allocation9 + $0x174] sm:$0xff]  }
 0x355   :  { %v12183_v23 = vpop.f32.mrb[34].mxu1 }
 0x356   :  { %1935 = vmatmul.mubr.bf16.gmra.mrb[52].mxu0 %v9393_v32  ;;  %3862 = vmatpush1.bf16.msra.mxu1 %v10746_v15  ;;  %v2882_v15 = vrot.slane %v2880_v3, 5  ;;  %v12188_v32 = vld [vmem:[#allocation2 + $0xe8] sm:$0x11]  ;;  %v2914_v3 = vrot.slane %v2912_v63, 5 }
 0x357   :  { %9423 = vmatprep.mubr.msk.bf16.mxu0 %vm15131_vm4, %v9396_v38  ;;  %2608 = vmatpush1.bf16.msra.mxu0 %v10743_v57  ;;  %v9400_v57 = vcombine.high %v11773_v56, %v11784_v2  ;;  %v2305_v38 = vpop.f32.mrb[35].mxu1  ;;  %v2922_v56 = vshrl.u32 %v12178_v59, 16  ;;  %v10755_v2 = vld [vmem:[#allocation9 + $0x2c8] sm:$0xff]   ;;  %v2904_v36 = vshll.u32 %v12188_v32, 16  ;;  %vm15140_vm4 = vcmask 1043456  }
 0x358   :  { %2609 = vmatprep.subr.bf16.mxu0 %v15068_v13  ;;  %3863 = vmatprep.subr.bf16.mxu1 %v15068_v13  ;;  %v2883_v31 = vsel %vm11653_vm0, %v12051_v44, %v2882_v15  ;;  %v2909_v44 = vshrl.u32 %v12047_v37, 16  ;;  %v9402_v37 = vcombine.high %v11912_v51, %v11968_v6  ;;  %v10761_v38 = vld [vmem:[#allocation9 + $0x2e0] sm:$0xff]  }
 0x359   :  { %3173 = vmatmul.mubr.bf16.gmra.mrb[72].mxu1 %v9517_v61  ;;  %v9524_v61 = vcombine.high %v12041_v58, %v2883_v31  ;;  %v2924_v17 = vrot.slane %v2922_v56, 4  ;;  %v9523_v1 = vcombine.low %v12041_v58, %v2883_v31  ;;  %v10760_v58 = vld [vmem:[#allocation9 + $0x194] sm:$0xff]   ;;  %v9401_v31 = vcombine.low %v11912_v51, %v11968_v6  ;;  %v10762_v51 = vld [vmem:[#allocation9 + $0x19c] sm:$0xff]   ;;  %v10767_v6 = vld [vmem:[#allocation9 + $0x2f0] ss:$0 sps:$4 sm:$0xff]  }
 0x35a   :  { %9546 = vmatprep.mubr.msk.bf16.mxu1 %vm15132_vm9, %v9520_v21  ;;  %3864 = vmatpush1.bf16.msra.mxu1 %v10748_v40  ;;  %v9521_v40 = vcombine.low %v2849_v39, %v2859_v29  ;;  %v10949_v21 = vld [vmem:[#allocation2 + $0x90] sm:$0xff]  ;;  %v9404_v56 = vcombine.high %v11953_v48, %v12001_v7  ;;  %v10765_v63 = vld [vmem:[#allocation9 + $0x1a4] sm:$0xff]   ;;  %vm15141_vm9 = vmmov %vm15123_vm1 }
 0x35b   :  { %2610 = vmatpush1.bf16.msra.mxu0 %v10745_v53  ;;  %3865 = vmatprep.subr.bf16.mxu1 %v15068_v13  ;;  %v2920_v53 = vrot.slane %v2918_v45, 5 }
 0x35c   :  { %2611 = vmatprep.subr.bf16.mxu0 %v15068_v13 }
 0x35e   :  { %1943 = vmatmul.mubr.bf16.gmra.mrb[56].mxu0 %v9395_v19  ;;  %3866 = vmatpush1.bf16.msra.mxu1 %v10750_v16  ;;  %v10950_v16 = vld [vmem:[#allocation2 + $0x98] sm:$0xff]  ;;  %v2906_v19 = vrot.slane %v2904_v36, 5 }
 0x35f   :  { %9424 = vmatprep.mubr.msk.bf16.mxu0 %vm15123_vm1, %v9398_v50  ;;  %2612 = vmatpush1.bf16.msra.mxu0 %v10747_v41  ;;  %v12202_v49 = vpop.f32.mrb[16].mxu0  ;;  %v9399_v41 = vcombine.low %v10949_v21, %v10950_v16  ;;  %v10756_v50 = vld [vmem:[#allocation9 + $0x184] sm:$0xff]   ;;  %v9406_v21 = vcombine.high %v11987_v52, %v12043_v4  ;;  %v12245_v16 = vld [vmem:[#allocation2 + $0x38] sm:$0xff]  ;;  %vm15142_vm1 = vmmov %vm15140_vm4 }
 0x360   :  { %2613 = vmatprep.subr.bf16.mxu0 %v15068_v13  ;;  %3867 = vmatprep.subr.bf16.mxu1 %v15068_v13  ;;  %v1653_v8 = vpop.f32.mrb[17].mxu0  ;;  %v2907_v39 = vsel %vm11653_vm0, %v12090_v47, %v2906_v19 }
 0x361   :  { %3181 = vmatmul.mubr.bf16.gmra.mrb[76].mxu1 %v9519_v26  ;;  %v12206_v29 = vpop.f32.mrb[18].mxu0  ;;  %v9525_v36 = vcombine.low %v12095_v10, %v2907_v39  ;;  %v9405_v8 = vcombine.low %v11987_v52, %v12043_v4  ;;  %v10777_v52 = vld [vmem:[#allocation9 + $0x368] sm:$0xff]   ;;  %v10772_v4 = vld [vmem:[#allocation9 + $0x21c] sm:$0xff]  }
 0x362   :  { %9547 = vmatprep.mubr.msk.bf16.mxu1 %vm15133_vm14, %v9522_v9  ;;  %3868 = vmatpush1.bf16.msra.mxu1 %v10752_v25  ;;  %v12211_v25 = vld [vmem:[#allocation2 + $0x100] sm:$0x11]  ;;  %v1656_v26 = vpop.f32.mrb[19].mxu0  ;;  %v2925_v9 = vor.u32 %v2924_v17, %v2920_v53  ;;  %v10769_v17 = vld [vmem:[#allocation9 + $0x1ac] ss:$0 sps:$4 sm:$0xff]   ;;  %vm15143_vm14 = vmmov %vm15138_vm2 }
 0x363   :  { %2614 = vmatpush1.bf16.msra.mxu0 %v10749_v30  ;;  %3869 = vmatprep.subr.bf16.mxu1 %v15068_v13  ;;  %v2911_v30 = vrot.slane %v2909_v44, 4  ;;  %v2928_v15 = vshll.u32 %v12211_v25, 16  ;;  %v9597_v26 = vcombine.low %v11976_v33, %v12245_v16 }
 0x364   :  { %2615 = vmatprep.subr.bf16.mxu0 %v15068_v13 }
 0x365   :  { %v2915_v47 = vor.u32 %v2914_v3, %v2911_v30  ;;  %v2930_v45 = vrot.slane %v2928_v15, 5  ;;  %v3635_v3 = vld [vmem:[#allocation2 + $0x60] sm:$0xff]  ;;  %v3637_v15 = vld [vmem:[#allocation2 + $0x78] sm:$0xff] }
 0x366   :  { %1951 = vmatmul.mubr.bf16.gmra.mrb[60].mxu0 %v9397_v24  ;;  %3870 = vmatpush1.bf16.msra.mxu1 %v10754_v11  ;;  %v10759_v11 = vld [vmem:[#allocation9 + $0x2d8] sm:$0xff]   ;;  %v2926_v24 = vrot.slane %v2925_v9, 4  ;;  %v10780_v9 = vld [vmem:[#allocation9 + $0x370] sm:$0xff]  }
 0x367   :  { %2616 = vmatpush1.bf16.msra.mxu0 %v10751_v42  ;;  %9425 = vmatprep.mubr.msk.bf16.mxu0 %vm15134_vm6, %v9400_v57  ;;  %v10758_v42 = vld [vmem:[#allocation9 + $0x18c] sm:$0xff]   ;;  %v9526_v57 = vcombine.high %v12095_v10, %v2907_v39  ;;  %v3853_v10 = vsel %vm15140_vm4, %v10767_v6, 0  ;;  %vm15144_vm6 = vmmov %vm15138_vm2 }
 0x368   :  { %2617 = vmatprep.subr.bf16.mxu0 %v15068_v13  ;;  %3871 = vmatprep.subr.bf16.mxu1 %v15068_v13  ;;  %vm15149_vm4 = vmmov %vm15138_vm2  ;;  %v10792_v6 = vld [vmem:[#allocation9 + $0x24c] sm:$0xff]  }
 0x369   :  { %3189 = vmatmul.mubr.bf16.gmra.mrb[80].mxu1 %v9521_v40  ;;  %v2931_v40 = vsel %vm11653_vm0, %v2926_v24, %v2930_v45  ;;  %v9601_v24 = vcombine.low %v3635_v3, %v12100_v62  ;;  %v10790_v45 = vld [vmem:[#allocation9 + $0x388] sm:$0xff]  }
 0x36a   :  { %9548 = vmatprep.mubr.msk.bf16.mxu1 %vm15135_vm8, %v9524_v61  ;;  %3872 = vmatpush1.bf16.msra.mxu1 %v10755_v2  ;;  %v2916_v2 = vrot.slane %v2915_v47, 4  ;;  %vm15145_vm8 = vmmov %vm15138_vm2  ;;  %v10787_v47 = vld [vmem:[#allocation9 + $0x380] sm:$0xff]  }
 0x36b   :  { %2618 = vmatpush1.bf16.msra.mxu0 %v10753_v18  ;;  %3873 = vmatprep.subr.bf16.mxu1 %v15068_v13  ;;  %v10763_v18 = vld [vmem:[#allocation9 + $0x2e8] sm:$0xff]  }
 0x36c   :  { %2619 = vmatprep.subr.bf16.mxu0 %v15068_v13  ;;  %v2921_v61 = vsel %vm11653_vm0, %v2916_v2, %v2920_v53  ;;  %v9403_v53 = vcombine.low %v11953_v48, %v12001_v7  ;;  %v2601_v48 = vsel %vm15142_vm1, %v10769_v17, 0  ;;  %v2380_v7 = vld [vmem:[#allocation2 + $0x20] sm:$0xff]  ;;  %v10794_v2 = vld [vmem:[#allocation9 + $0x390] sm:$0xff]   ;;  %vm15151_vm1 = vmmov %vm15138_vm2 }
 0x36d   :  { %v9528_v44 = vcombine.high %v2921_v61, %v2931_v40  ;;  %v9476_v19 = vcombine.high %v11881_v5, %v2380_v7  ;;  %v9475_v30 = vcombine.low %v11881_v5, %v2380_v7  ;;  %v10782_v5 = vld [vmem:[#allocation9 + $0x378] sm:$0xff]  }
 0x36e   :  { %1959 = vmatmul.mubr.bf16.gmra.mrb[64].mxu0 %v9399_v41  ;;  %3874 = vmatpush1.bf16.msra.mxu1 %v10757_v43  ;;  %v9527_v41 = vcombine.low %v2921_v61, %v2931_v40  ;;  %v9598_v43 = vcombine.high %v11976_v33, %v12245_v16  ;;  %v3639_v40 = vld [vmem:[#allocation2 + $0xc0] sm:$0xff]  ;;  %v2388_v61 = vld [vmem:[#allocation2 + $0xb0] sm:$0xff]  ;;  %v3641_v17 = vld [vmem:[#allocation2 + $0xd8] sm:$0xff] }
 0x36f   :  { %9426 = vmatprep.mubr.msk.bf16.mxu0 %vm15136_vm11, %v9402_v37  ;;  %2620 = vmatpush1.bf16.msra.mxu0 %v10756_v50  ;;  %v12258_v50 = vld [vmem:[#allocation2 + $0x50] sm:$0xff]  ;;  %v10775_v37 = vld [vmem:[#allocation9 + $0x360] sm:$0xff]   ;;  %vm15146_vm11 = vmmov %vm15138_vm2  ;;  %v9483_v7 = vcombine.low %v12128_v14, %v2388_v61 }
 0x370   :  { %2621 = vmatprep.subr.bf16.mxu0 %v15068_v13  ;;  %3875 = vmatprep.subr.bf16.mxu1 %v15068_v13  ;;  %v9600_v39 = vcombine.high %v12070_v20, %v12258_v50  ;;  %v9599_v33 = vcombine.low %v12070_v20, %v12258_v50 }
 0x371   :  { %3197 = vmatmul.mubr.bf16.gmra.mrb[84].mxu1 %v9523_v1  ;;  %v9602_v1 = vcombine.high %v3635_v3, %v12100_v62  ;;  %v10812_v3 = vld [vmem:[#allocation9 + $0x3c0] sm:$0xff]  }
 0x372   :  { %9549 = vmatprep.mubr.msk.bf16.mxu1 %vm15137_vm15, %v9526_v57  ;;  %3876 = vmatpush1.bf16.msra.mxu1 %v10759_v11  ;;  %v10776_v11 = vld [vmem:[#allocation9 + $0x224] sm:$0xff]   ;;  %vm15147_vm15 = vmmov %vm15138_vm2 }
 0x373   :  { %2622 = vmatpush1.bf16.msra.mxu0 %v10758_v42  ;;  %3877 = vmatprep.subr.bf16.mxu1 %v15068_v13  ;;  %v10778_v42 = vld [vmem:[#allocation9 + $0x22c] sm:$0xff]   ;;  %v12276_v57 = vld [vmem:[#allocation2 + $0x80] sm:$0xff] }
 0x374   :  { %2623 = vmatprep.subr.bf16.mxu0 %v15068_v13  ;;  %v9604_v20 = vcombine.high %v3637_v15, %v12276_v57 }
 0x376   :  { %1967 = vmatmul.mubr.bf16.gmra.mrb[68].mxu0 %v9401_v31  ;;  %3878 = vmatpush1.bf16.msra.mxu1 %v10761_v38  ;;  %v10781_v38 = vld [vmem:[#allocation9 + $0x234] sm:$0xff]   ;;  %v9603_v31 = vcombine.low %v3637_v15, %v12276_v57 }
 0x377   :  { %9427 = vmatprep.mubr.msk.bf16.mxu0 %vm15138_vm2, %v9404_v56  ;;  %2624 = vmatpush1.bf16.msra.mxu0 %v10760_v58  ;;  %v10784_v58 = vld [vmem:[#allocation9 + $0x23c] sm:$0xff]   ;;  %v12288_v56 = vld [vmem:[#allocation2 + $0xc8] sm:$0xff] }
 0x378   :  { %2625 = vmatprep.subr.bf16.mxu0 %v15068_v13  ;;  %3879 = vmatprep.subr.bf16.mxu1 %v15068_v13 }
 0x379   :  { %3205 = vmatmul.mubr.bf16.gmra.mrb[88].mxu1 %v9525_v36  ;;  %v9606_v36 = vcombine.high %v3639_v40, %v12288_v56 }
 0x37a   :  { %9550 = vmatprep.mubr.msk.bf16.mxu1 %vm15139_vm3, %v9528_v44  ;;  %3880 = vmatpush1.bf16.msra.mxu1 %v10763_v18  ;;  %vm15148_vm3 = vmmov %vm15138_vm2  ;;  %v10788_v18 = vld [vmem:[#allocation9 + $0x244] sm:$0xff]   ;;  %v9484_v44 = vcombine.high %v12128_v14, %v2388_v61  ;;  %v10807_v14 = vld [vmem:[#allocation9 + $0x3b8] sm:$0xff]  }
 0x37b   :  { %2626 = vmatpush1.bf16.msra.mxu0 %v10762_v51  ;;  %3881 = vmatprep.subr.bf16.mxu1 %v15068_v13  ;;  %v10797_v51 = vld [vmem:[#allocation9 + $0x398] sm:$0xff]  }
 0x37c   :  { %2627 = vmatprep.subr.bf16.mxu0 %v15068_v13  ;;  %v3237_v61 = vld [vmem:[#allocation2 + $0x18] sm:$0xee] }
 0x37e   :  { %1975 = vmatmul.mubr.bf16.gmra.mrb[72].mxu0 %v9403_v53  ;;  %3882 = vmatpush1.bf16.msra.mxu1 %v3853_v10  ;;  %v10800_v10 = vld [vmem:[#allocation9 + $0x3a0] sm:$0xff]   ;;  %v9605_v53 = vcombine.low %v3639_v40, %v12288_v56 }
 0x37f   :  { %9428 = vmatprep.mubr.msk.bf16.mxu0 %vm15141_vm9, %v9406_v21  ;;  %2628 = vmatpush1.bf16.msra.mxu0 %v10765_v63  ;;  %vm15150_vm9 = vmmov %vm15138_vm2  ;;  %v12298_v63 = vld [vmem:[#allocation2 + $0xe0] sm:$0xff]  ;;  %v10796_v21 = vld [vmem:[#allocation9 + $0x254] sm:$0xff]  }
 0x380   :  { %2629 = vmatprep.subr.bf16.mxu0 %v15068_v13  ;;  %4769 = vmatprep.subr.bf16.mxu1 %v15068_v13 }
 0x381   :  { %3213 = vmatmul.mubr.bf16.gmra.mrb[92].mxu1 %v9527_v41  ;;  %v9608_v41 = vcombine.high %v3641_v17, %v12298_v63 }
 0x382   :  { %9627 = vmatprep.mubr.msk.bf16.mxu1 %vm15143_vm14, %v9598_v43  ;;  %vm15152_vm14 = vmmov %vm15151_vm1 }
 0x383   :  { %2630 = vmatpush1.bf16.msra.mxu0 %v2601_v48  ;;  %v10801_v48 = vld [vmem:[#allocation9 + $0x25c] sm:$0xff]  }
 0x384   :  { %3517 = vmatprep.subr.bf16.mxu0 %v15068_v13 }
 0x386   :  { %1983 = vmatmul.mubr.bf16.gmra.mrb[76].mxu0 %v9405_v8  ;;  %v10805_v8 = vld [vmem:[#allocation9 + $0x3b0] sm:$0xff]  }
 0x387   :  { %9505 = vmatprep.mubr.msk.bf16.mxu0 %vm15144_vm6, %v9476_v19  ;;  %vm15153_vm6 = vmmov %vm15151_vm1  ;;  %v9607_v19 = vcombine.low %v3641_v17, %v12298_v63 }
 0x389   :  { %3888 = vmatmul.mubr.bf16.vlgmr.msra.gmra.mrb[96].mxu1 %v9597_v26 }
 0x38a   :  { %9628 = vmatprep.mubr.msk.bf16.mxu1 %vm15145_vm8, %v9600_v39  ;;  %4770 = vmatpush1.bf16.msra.mxu1 %v10775_v37  ;;  %v3643_v37 = vld [vmem:[#allocation2 + $0xf0] sm:$0xff]  ;;  %vm15154_vm8 = vmmov %vm15151_vm1 }
 0x38b   :  { %4771 = vmatprep.subr.bf16.mxu1 %v15068_v13 }
 0x38e   :  { %2636 = vmatmul.mubr.bf16.vlgmr.msra.gmra.mrb[80].mxu0 %v9475_v30  ;;  %4772 = vmatpush1.bf16.msra.mxu1 %v10777_v52  ;;  %v10806_v52 = vld [vmem:[#allocation9 + $0x26c] sm:$0xff]  }
 0x38f   :  { %9506 = vmatprep.mubr.msk.bf16.mxu0 %vm15146_vm11, %v9598_v43  ;;  %3518 = vmatpush1.bf16.msra.mxu0 %v10772_v4  ;;  %v10802_v43 = vld [vmem:[#allocation9 + $0x3a8] sm:$0xff]   ;;  %v4523_v4 = vrot.slane %v12245_v16, 5  ;;  %vm15155_vm11 = vmmov %vm15151_vm1 }
 0x390   :  { %3519 = vmatprep.subr.bf16.mxu0 %v15068_v13  ;;  %4773 = vmatprep.subr.bf16.mxu1 %v15068_v13  ;;  %v10808_v30 = vld [vmem:[#allocation2 + $0x10c] ss:$8 sps:$4 sm:$0xff]  }
 0x391   :  { %3896 = vmatmul.mubr.bf16.gmra.mrb[100].mxu1 %v9599_v33 }
 0x392   :  { %9629 = vmatprep.mubr.msk.bf16.mxu1 %vm15147_vm15, %v9602_v1  ;;  %4774 = vmatpush1.bf16.msra.mxu1 %v10780_v9  ;;  %v9609_v9 = vcombine.low %v3643_v37, %v12178_v59  ;;  %vm15156_vm15 = vmmov %vm15151_vm1 }
 0x393   :  { %3520 = vmatpush1.bf16.msra.mxu0 %v10776_v11  ;;  %4775 = vmatprep.subr.bf16.mxu1 %v15068_v13  ;;  %v10814_v11 = vld [vmem:[#allocation9 + $0x3c8] ss:$0 sps:$4 sm:$0xff]  }
 0x394   :  { %3521 = vmatprep.subr.bf16.mxu0 %v15068_v13 }
 0x396   :  { %2644 = vmatmul.mubr.bf16.gmra.mrb[84].mxu0 %v9597_v26  ;;  %4776 = vmatpush1.bf16.msra.mxu1 %v10782_v5  ;;  %v10803_v26 = vld [vmem:[#allocation9 + $0x264] sm:$0xff]   ;;  %v4525_v5 = vrot.slane %v4523_v4, 4 }
 0x397   :  { %9507 = vmatprep.mubr.msk.bf16.mxu0 %vm15138_vm2, %v9600_v39  ;;  %3522 = vmatpush1.bf16.msra.mxu0 %v10778_v42  ;;  %v9610_v39 = vcombine.high %v3643_v37, %v12178_v59  ;;  %v10951_v42 = vld [vmem:[#allocation2 + $0x20] sm:$0xff]  ;;  %vm15157_vm2 = vcmask 1043456   ;;  %v12345_v37 = vld [vmem:[#allocation2 + $0x68] sm:$0xff] }
 0x398   :  { %3523 = vmatprep.subr.bf16.mxu0 %v15068_v13  ;;  %4777 = vmatprep.subr.bf16.mxu1 %v15068_v13  ;;  %v3271_v15 = vrot.slane %v10951_v42, 5 }
 0x399   :  { %3904 = vmatmul.mubr.bf16.gmra.mrb[104].mxu1 %v9601_v24 }
 0x39a   :  { %9630 = vmatprep.mubr.msk.bf16.mxu1 %vm15148_vm3, %v9604_v20  ;;  %4778 = vmatpush1.bf16.msra.mxu1 %v10787_v47  ;;  %v4489_v20 = vld [vmem:[#allocation2 + $0x30] sm:$0xee]  ;;  %vm15158_vm3 = vmmov %vm15151_vm1 }
 0x39b   :  { %3524 = vmatpush1.bf16.msra.mxu0 %v10781_v38  ;;  %4779 = vmatprep.subr.bf16.mxu1 %v15068_v13  ;;  %v4767_v38 = vsel %vm15157_vm2, %v10814_v11, 0 }
 0x39c   :  { %3525 = vmatprep.subr.bf16.mxu0 %v15068_v13 }
 0x39e   :  { %2652 = vmatmul.mubr.bf16.gmra.mrb[88].mxu0 %v9599_v33  ;;  %4780 = vmatpush1.bf16.msra.mxu1 %v10790_v45  ;;  %v10810_v33 = vld [vmem:[#allocation9 + $0x274] sm:$0xff]   ;;  %v10815_v45 = vld [vmem:[#allocation9 + $0x284] ss:$0 sps:$4 sm:$0xff]  }
 0x39f   :  { %9508 = vmatprep.mubr.msk.bf16.mxu0 %vm15149_vm4, %v9602_v1  ;;  %3526 = vmatpush1.bf16.msra.mxu0 %v10784_v58  ;;  %v12322_v1 = vld [vmem:[#allocation2 + $0x40] sm:$0x11]  ;;  %v4530_v58 = vrot.slane %v12258_v50, 5  ;;  %vm15159_vm4 = vmmov %vm15157_vm2 }
 0x3a0   :  { %3527 = vmatprep.subr.bf16.mxu0 %v15068_v13  ;;  %4781 = vmatprep.subr.bf16.mxu1 %v15068_v13  ;;  %v4526_v47 = vrot.slane %v12322_v1, 5  ;;  %vm15166_vm2 = vmmov %vm15151_vm1 }
 0x3a1   :  { %3912 = vmatmul.mubr.bf16.gmra.mrb[108].mxu1 %v9603_v31  ;;  %v10811_v31 = vld [vmem:[#allocation2 + $0x108] ss:$8 sps:$4 sm:$0xff]   ;;  %v4532_v17 = vrot.slane %v4530_v58, 4 }
 0x3a2   :  { %9631 = vmatprep.mubr.msk.bf16.mxu1 %vm15150_vm9, %v9606_v36  ;;  %4782 = vmatpush1.bf16.msra.mxu1 %v10794_v2  ;;  %v9673_v2 = vrot.slane %v4489_v20, 9  ;;  %v4527_v40 = vsel %vm11633_vm12, %v4525_v5, %v4526_v47  ;;  %vm15160_vm9 = vmmov %vm15151_vm1 }
 0x3a3   :  { %3528 = vmatpush1.bf16.msra.mxu0 %v10788_v18  ;;  %4783 = vmatprep.subr.bf16.mxu1 %v15068_v13  ;;  %v3273_v18 = vrot.slane %v3271_v15, 4 }
 0x3a4   :  { %3529 = vmatprep.subr.bf16.mxu0 %v15068_v13 }
 0x3a6   :  { %2660 = vmatmul.mubr.bf16.gmra.mrb[92].mxu0 %v9601_v24  ;;  %4784 = vmatpush1.bf16.msra.mxu1 %v10797_v51  ;;  %v10813_v24 = vld [vmem:[#allocation9 + $0x27c] sm:$0xff]   ;;  %v4524_v51 = vsel %vm11633_vm12, %v9673_v2, %v4523_v4  ;;  %v3989_v4 = vld [vmem:[#allocation2 + $0x108] sm:$0xff] }
 0x3a7   :  { %9509 = vmatprep.mubr.msk.bf16.mxu0 %vm15151_vm1, %v9484_v44  ;;  %3530 = vmatpush1.bf16.msra.mxu0 %v10792_v6  ;;  %v10952_v6 = vld [vmem:[#allocation2 + $0x28] sm:$0x11]  ;;  %v4161_v11 = vshrl.u32 %v3989_v4, 16  ;;  %v4164_v5 = vshll.u32 %v3989_v4, 16 }
 0x3a8   :  { %3531 = vmatprep.subr.bf16.mxu0 %v15068_v13  ;;  %4785 = vmatprep.subr.bf16.mxu1 %v15068_v13  ;;  %v3274_v44 = vrot.slane %v10952_v6, 5 }
 0x3a9   :  { %3920 = vmatmul.mubr.bf16.gmra.mrb[112].mxu1 %v9605_v53  ;;  %v4163_v2 = vrot.slane %v4161_v11, 4 }
 0x3aa   :  { %9632 = vmatprep.mubr.msk.bf16.mxu1 %vm15152_vm14, %v9608_v41  ;;  %4786 = vmatpush1.bf16.msra.mxu1 %v10800_v10  ;;  %v9682_v10 = vcombine.high %v4524_v51, %v4527_v40  ;;  %vm15161_vm14 = vmmov %vm15151_vm1 }
 0x3ab   :  { %3532 = vmatpush1.bf16.msra.mxu0 %v10796_v21  ;;  %4787 = vmatprep.subr.bf16.mxu1 %v15068_v13 }
 0x3ac   :  { %3533 = vmatprep.subr.bf16.mxu0 %v15068_v13 }
 0x3ae   :  { %2668 = vmatmul.mubr.bf16.gmra.mrb[96].mxu0 %v9483_v7  ;;  %4788 = vmatpush1.bf16.msra.mxu1 %v10802_v43  ;;  %v3275_v43 = vsel %vm11633_vm12, %v3273_v18, %v3274_v44  ;;  %v10953_v7 = vld [vmem:[#allocation2 + $0x38] sm:$0xff] }
 0x3af   :  { %9510 = vmatprep.mubr.msk.bf16.mxu0 %vm15153_vm6, %v9606_v36  ;;  %3534 = vmatpush1.bf16.msra.mxu0 %v10801_v48  ;;  %v12332_v36 = vld [vmem:[#allocation2 + $0x58] sm:$0x11]  ;;  %v4490_v48 = vld [vmem:[#allocation2 + $0x48] sm:$0xee]  ;;  %vm15162_vm6 = vmmov %vm15151_vm1 }
 0x3b0   :  { %3535 = vmatprep.subr.bf16.mxu0 %v15068_v13  ;;  %4789 = vmatprep.subr.bf16.mxu1 %v15068_v13  ;;  %v4533_v21 = vrot.slane %v12332_v36, 5 }
 0x3b1   :  { %3928 = vmatmul.mubr.bf16.gmra.mrb[116].mxu1 %v9607_v19 }
 0x3b2   :  { %9633 = vmatprep.mubr.msk.bf16.mxu1 %vm15154_vm8, %v9610_v39  ;;  %4790 = vmatpush1.bf16.msra.mxu1 %v10805_v8  ;;  %v3278_v8 = vrot.slane %v10953_v7, 5  ;;  %v10816_v7 = vld [vmem:[#allocation9 + $0x2f4] sm:$0xff]   ;;  %vm15163_vm8 = vmmov %vm15151_vm1 }
 0x3b3   :  { %3536 = vmatpush1.bf16.msra.mxu0 %v10803_v26  ;;  %4791 = vmatprep.subr.bf16.mxu1 %v15068_v13  ;;  %v9681_v26 = vcombine.low %v4524_v51, %v4527_v40  ;;  %v4166_v40 = vrot.slane %v4164_v5, 5 }
 0x3b4   :  { %3537 = vmatprep.subr.bf16.mxu0 %v15068_v13  ;;  %v3280_v47 = vrot.slane %v3278_v8, 4 }
 0x3b5   :  { %v4167_v6 = vor.u32 %v4166_v40, %v4163_v2  ;;  %v10817_v2 = vld [vmem:[#allocation9 + $0x2fc] sm:$0xff]   ;;  %v3239_v40 = vld [vmem:[#allocation2 + $0x48] sm:$0xee] }
 0x3b6   :  { %2676 = vmatmul.mubr.bf16.gmra.mrb[100].mxu0 %v9605_v53  ;;  %4792 = vmatpush1.bf16.msra.mxu1 %v10807_v14  ;;  %v3515_v53 = vsel %vm15159_vm4, %v10815_v45, 0  ;;  %v9674_v14 = vrot.slane %v4490_v48, 9  ;;  %vm15168_vm4 = vmmov %vm15151_vm1 }
 0x3b7   :  { %9511 = vmatprep.mubr.msk.bf16.mxu0 %vm15155_vm11, %v9608_v41  ;;  %3538 = vmatpush1.bf16.msra.mxu0 %v10806_v52  ;;  %v9551_v41 = vrot.slane %v3237_v61, 9  ;;  %v12349_v52 = vsel %vm11633_vm12, %v4532_v17, %v4533_v21  ;;  %vm15164_vm11 = vmmov %vm15151_vm1 }
 0x3b8   :  { %3539 = vmatprep.subr.bf16.mxu0 %v15068_v13  ;;  %4793 = vmatprep.subr.bf16.mxu1 %v15068_v13  ;;  %v4531_v20 = vsel %vm11633_vm12, %v9674_v14, %v4530_v58  ;;  %v4544_v14 = vrot.slane %v12276_v57, 5 }
 0x3b9   :  { %3936 = vmatmul.mubr.bf16.gmra.mrb[120].mxu1 %v9609_v9  ;;  %v9684_v51 = vcombine.high %v4531_v20, %v12349_v52  ;;  %v9683_v5 = vcombine.low %v4531_v20, %v12349_v52  ;;  %v3974_v52 = vld [vmem:[#allocation2 + $0x60] sm:$0xff] }
 0x3ba   :  { %9634 = vmatprep.mubr.msk.bf16.mxu1 %vm15156_vm15, %v10808_v30  ;;  %4794 = vmatpush1.bf16.msra.mxu1 %v10812_v3  ;;  %v12352_v30 = vld [vmem:[#allocation2 + $0x110] sm:$0xff]  ;;  %v12354_v3 = vld [vmem:[#allocation2 + $0x118] sm:$0x11]  ;;  %vm15165_vm15 = vmmov %vm15151_vm1 }
 0x3bb   :  { %3540 = vmatpush1.bf16.msra.mxu0 %v10810_v33  ;;  %4795 = vmatprep.subr.bf16.mxu1 %v15068_v13  ;;  %v3238_v33 = vld [vmem:[#allocation2 + $0x30] sm:$0xee]  ;;  %v4170_v42 = vshll.u32 %v12352_v30, 16  ;;  %v4180_v45 = vshll.u32 %v12354_v3, 16 }
 0x3bc   :  { %3541 = vmatprep.subr.bf16.mxu0 %v15068_v13 }
 0x3bd   :  { %v4172_v18 = vrot.slane %v4170_v42, 5  ;;  %v12375_v42 = vld [vmem:[#allocation2 + $0x88] sm:$0x11] }
 0x3be   :  { %2684 = vmatmul.mubr.bf16.gmra.mrb[104].mxu0 %v9607_v19  ;;  %4796 = vmatpush1.bf16.msra.mxu1 %v4767_v38  ;;  %v3272_v19 = vsel %vm11633_vm12, %v9551_v41, %v3271_v15  ;;  %v4174_v15 = vshrl.u32 %v12352_v30, 16  ;;  %v4537_v38 = vrot.slane %v12345_v37, 5  ;;  %v10954_v41 = vld [vmem:[#allocation2 + $0x50] sm:$0xff] }
 0x3bf   :  { %9512 = vmatprep.mubr.msk.bf16.mxu0 %vm15158_vm3, %v9610_v39  ;;  %3542 = vmatpush1.bf16.msra.mxu0 %v10813_v24  ;;  %v9560_v39 = vcombine.high %v3272_v19, %v3275_v43  ;;  %v12360_v24 = vld [vmem:[#allocation2 + $0x70] sm:$0x11]  ;;  %v3285_v48 = vrot.slane %v10954_v41, 5  ;;  %v9559_v4 = vcombine.low %v3272_v19, %v3275_v43  ;;  %vm15167_vm3 = vmmov %vm15151_vm1 }
 0x3c0   :  { %3543 = vmatprep.subr.bf16.mxu0 %v15068_v13  ;;  %v4176_v61 = vrot.slane %v4174_v15, 4  ;;  %v4540_v58 = vrot.slane %v12360_v24, 5 }
 0x3c1   :  { %3944 = vmatmul.mubr.bf16.gmra.mrb[124].mxu1 %v10811_v31  ;;  %v4491_v31 = vld [vmem:[#allocation2 + $0x60] sm:$0xee]  ;;  %v3287_v43 = vrot.slane %v3285_v48, 4 }
 0x3c2   :  { %9711 = vmatprep.mubr.msk.bf16.mxu1 %vm15160_vm9, %v9682_v10  ;;  %v4177_v44 = vor.u32 %v4176_v61, %v4172_v18  ;;  %v4182_v10 = vrot.slane %v4180_v45, 5  ;;  %v9675_v21 = vrot.slane %v4491_v31, 9  ;;  %v4546_v61 = vrot.slane %v4544_v14, 4  ;;  %vm15169_vm9 = vmmov %vm15151_vm1 }
 0x3c3   :  { %3544 = vmatpush1.bf16.msra.mxu0 %v3515_v53  ;;  %v9552_v53 = vrot.slane %v3238_v33, 9  ;;  %v4492_v33 = vld [vmem:[#allocation2 + $0x78] sm:$0xee] }
 0x3c4   :  { %4376 = vmatprep.subr.bf16.mxu0 %v15068_v13  ;;  %v4538_v20 = vsel %vm11633_vm12, %v9675_v21, %v4537_v38  ;;  %v3292_v21 = vrot.slane %v12100_v62, 5  ;;  %v4493_v62 = vld [vmem:[#allocation2 + $0xc0] sm:$0xee] }
 0x3c5   :  { %v3279_v11 = vsel %vm11633_vm12, %v9552_v53, %v3278_v8  ;;  %v3288_v8 = vrot.slane %v12104_v12, 5 }
 0x3c6   :  { %2692 = vmatmul.mubr.bf16.gmra.mrb[108].mxu0 %v9609_v9  ;;  %v3281_v9 = vrot.slane %v12064_v46, 5  ;;  %v4168_v46 = vrot.slane %v4167_v6, 4  ;;  %v10818_v6 = vld [vmem:[#allocation9 + $0x304] sm:$0xff]  }
 0x3c7   :  { %9589 = vmatprep.mubr.msk.bf16.mxu0 %vm15151_vm1, %v9560_v39  ;;  %v4539_v39 = vrot.slane %v4537_v38, 4 }
 0x3c8   :  { %v3282_v17 = vsel %vm11633_vm12, %v3280_v47, %v3281_v9  ;;  %v12381_v45 = vsel %vm11653_vm0, %v4168_v46, %v4172_v18  ;;  %v9676_v18 = vrot.slane %v4492_v33, 9  ;;  %v9553_v9 = vrot.slane %v3239_v40, 9 }
 0x3c9   :  { %4802 = vmatmul.mubr.bf16.vlgmr.msra.gmra.mrb[128].mxu1 %v9681_v26  ;;  %v4178_v26 = vrot.slane %v4177_v44, 4  ;;  %v9562_v15 = vcombine.high %v3279_v11, %v3282_v17  ;;  %v4541_v47 = vsel %vm11633_vm12, %v4539_v39, %v4540_v58  ;;  %v3289_v58 = vsel %vm11633_vm12, %v3287_v43, %v3288_v8  ;;  %v10820_v8 = vld [vmem:[#allocation9 + $0x314] sm:$0xff]  }
 0x3ca   :  { %9712 = vmatprep.mubr.msk.bf16.mxu1 %vm15161_vm14, %v9684_v51  ;;  %v4547_v51 = vrot.slane %v12375_v42, 5  ;;  %v9686_v12 = vcombine.high %v4538_v20, %v4541_v47  ;;  %v4545_v38 = vsel %vm11633_vm12, %v9676_v18, %v4544_v14  ;;  %v3286_v53 = vsel %vm11633_vm12, %v9553_v9, %v3285_v48  ;;  %v12410_v14 = vld [vmem:[#allocation2 + $0xd0] sm:$0x11]  ;;  %v12424_v9 = vld [vmem:[#allocation2 + $0xe8] sm:$0x11]  ;;  %vm15170_vm14 = vmmov %vm15151_vm1 }
 0x3cb   :  { %v12385_v31 = vsel %vm11653_vm0, %v4178_v26, %v4182_v10  ;;  %v9561_v10 = vcombine.low %v3279_v11, %v3282_v17  ;;  %v9564_v41 = vcombine.high %v3286_v53, %v3289_v58  ;;  %v4551_v39 = vrot.slane %v12288_v56, 5 }
 0x3cc   :  { %v4548_v44 = vsel %vm11633_vm12, %v4546_v61, %v4547_v51  ;;  %v3295_v46 = vrot.slane %v12120_v27, 5  ;;  %v9685_v17 = vcombine.low %v4538_v20, %v4541_v47  ;;  %v3294_v11 = vrot.slane %v3292_v21, 4 }
 0x3cd   :  { %v9688_v26 = vcombine.high %v4545_v38, %v4548_v44  ;;  %v4554_v33 = vrot.slane %v12410_v14, 5  ;;  %v9563_v47 = vcombine.low %v3286_v53, %v3289_v58  ;;  %v9687_v18 = vcombine.low %v4545_v38, %v4548_v44 }
 0x3ce   :  { %3550 = vmatmul.mubr.bf16.vlgmr.msra.gmra.mrb[112].mxu0 %v9559_v4  ;;  %v10819_v4 = vld [vmem:[#allocation9 + $0x30c] sm:$0xff]   ;;  %v3296_v27 = vsel %vm11633_vm12, %v3294_v11, %v3295_v46  ;;  %v4558_v51 = vrot.slane %v12298_v63, 5  ;;  %v3302_v38 = vrot.slane %v12144_v54, 5 }
 0x3cf   :  { %9590 = vmatprep.mubr.msk.bf16.mxu0 %vm15162_vm6, %v9562_v15  ;;  %4377 = vmatpush1.bf16.msra.mxu0 %v10816_v7  ;;  %v3240_v7 = vld [vmem:[#allocation2 + $0x60] sm:$0xee]  ;;  %v10955_v15 = vld [vmem:[#allocation2 + $0xb0] sm:$0xff]  ;;  %vm15171_vm6 = vmmov %vm15151_vm1 }
 0x3d0   :  { %4378 = vmatprep.subr.bf16.mxu0 %v15068_v13  ;;  %v9554_v48 = vrot.slane %v3240_v7, 9  ;;  %v3299_v43 = vrot.slane %v10955_v15, 5  ;;  %v4560_v44 = vrot.slane %v4558_v51, 4 }
 0x3d1   :  { %4810 = vmatmul.mubr.bf16.gmra.mrb[132].mxu1 %v9683_v5  ;;  %v4553_v5 = vrot.slane %v4551_v39, 4 }
 0x3d2   :  { %9713 = vmatprep.mubr.msk.bf16.mxu1 %vm15163_vm8, %v9686_v12  ;;  %v3293_v20 = vsel %vm11633_vm12, %v9554_v48, %v3292_v21  ;;  %v3301_v12 = vrot.slane %v3299_v43, 4  ;;  %v4561_v21 = vrot.slane %v12424_v9, 5  ;;  %v10822_v48 = vld [vmem:[#allocation9 + $0x324] sm:$0xff]   ;;  %vm15172_vm8 = vmmov %vm15151_vm1 }
 0x3d3   :  { %4379 = vmatpush1.bf16.msra.mxu0 %v10817_v2  ;;  %v9677_v2 = vrot.slane %v4493_v62, 9  ;;  %v9566_v40 = vcombine.high %v3293_v20, %v3296_v27  ;;  %v4555_v61 = vsel %vm11633_vm12, %v4553_v5, %v4554_v33  ;;  %v9565_v11 = vcombine.low %v3293_v20, %v3296_v27 }
 0x3d4   :  { %4380 = vmatprep.subr.bf16.mxu0 %v15068_v13  ;;  %v3303_v46 = vsel %vm11633_vm12, %v3301_v12, %v3302_v38  ;;  %v3309_v20 = vrot.slane %v12161_v55, 5 }
 0x3d5   :  { %v4552_v58 = vsel %vm11633_vm12, %v9677_v2, %v4551_v39  ;;  %v4494_v39 = vld [vmem:[#allocation2 + $0xd8] sm:$0xee] }
 0x3d6   :  { %3558 = vmatmul.mubr.bf16.gmra.mrb[116].mxu0 %v9561_v10  ;;  %v3241_v10 = vld [vmem:[#allocation2 + $0xa8] sm:$0xee]  ;;  %v9690_v53 = vcombine.high %v4552_v58, %v4555_v61  ;;  %v9678_v15 = vrot.slane %v4494_v39, 9 }
 0x3d7   :  { %9591 = vmatprep.mubr.msk.bf16.mxu0 %vm15164_vm11, %v9564_v41  ;;  %4381 = vmatpush1.bf16.msra.mxu0 %v10818_v6  ;;  %v10821_v6 = vld [vmem:[#allocation9 + $0x31c] sm:$0xff]   ;;  %v9555_v7 = vrot.slane %v3241_v10, 9  ;;  %v10823_v10 = vld [vmem:[#allocation9 + $0x32c] sm:$0xff]   ;;  %vm15173_vm11 = vmmov %vm15151_vm1 }
 0x3d8   :  { %4382 = vmatprep.subr.bf16.mxu0 %v15068_v13  ;;  %v4559_v12 = vsel %vm11633_vm12, %v9678_v15, %v4558_v51  ;;  %v4496_v15 = vld [vmem:[#allocation2 + $0x108] sm:$0xee] }
 0x3d9   :  { %4818 = vmatmul.mubr.bf16.gmra.mrb[136].mxu1 %v9685_v17  ;;  %v3300_v62 = vsel %vm11633_vm12, %v9555_v7, %v3299_v43  ;;  %v10957_v7 = vld [vmem:[#allocation2 + $0xe0] sm:$0xff] }
 0x3da   :  { %9714 = vmatprep.mubr.msk.bf16.mxu1 %vm15165_vm15, %v9688_v26  ;;  %v10956_v26 = vld [vmem:[#allocation2 + $0xc8] sm:$0xff]  ;;  %v9568_v5 = vcombine.high %v3300_v62, %v3303_v46  ;;  %v3313_v39 = vrot.slane %v10957_v7, 5  ;;  %vm15174_vm15 = vcmask 1043456  }
 0x3db   :  { %4383 = vmatpush1.bf16.msra.mxu0 %v10819_v4  ;;  %v3306_v17 = vrot.slane %v10956_v26, 5 }
 0x3dc   :  { %4384 = vmatprep.subr.bf16.mxu0 %v15068_v13 }
 0x3dd   :  { %v3308_v27 = vrot.slane %v3306_v17, 4 }
 0x3de   :  { %3566 = vmatmul.mubr.bf16.gmra.mrb[120].mxu0 %v9563_v47  ;;  %v12445_v47 = vrot.slane %v12178_v59, 5 }
 0x3df   :  { %9592 = vmatprep.mubr.msk.bf16.mxu0 %vm15166_vm2, %v9566_v40  ;;  %4385 = vmatpush1.bf16.msra.mxu0 %v10820_v8  ;;  %v4562_v8 = vsel %vm11633_vm12, %v4560_v44, %v4561_v21  ;;  %v12450_v40 = vld [vmem:[#allocation2 + $0x100] sm:$0x11]  ;;  %v3310_v51 = vsel %vm11633_vm12, %v3308_v27, %v3309_v20  ;;  %v4495_v21 = vld [vmem:[#allocation2 + $0xf0] sm:$0xee]  ;;  %vm15175_vm2 = vmmov %vm15151_vm1 }
 0x3e0   :  { %4386 = vmatprep.subr.bf16.mxu0 %v15068_v13  ;;  %v4567_v55 = vrot.slane %v12445_v47, 4  ;;  %v4568_v44 = vrot.slane %v12450_v40, 5  ;;  %v9679_v27 = vrot.slane %v4495_v21, 9 }
 0x3e1   :  { %4826 = vmatmul.mubr.bf16.gmra.mrb[140].mxu1 %v9687_v18  ;;  %v9689_v18 = vcombine.low %v4552_v58, %v4555_v61 }
 0x3e2   :  { %9715 = vmatprep.mubr.msk.bf16.mxu1 %vm15167_vm3, %v9690_v53  ;;  %v12433_v41 = vpop.f32.mrb[36].mxu1  ;;  %v9692_v53 = vcombine.high %v4559_v12, %v4562_v8  ;;  %v4569_v20 = vsel %vm11633_vm12, %v4567_v55, %v4568_v44  ;;  %v4575_v44 = vrot.slane %v12354_v3, 5  ;;  %vm15176_vm3 = vmmov %vm15151_vm1 }
 0x3e3   :  { %v2310_v4 = vpop.f32.mrb[37].mxu1  ;;  %4387 = vmatpush1.bf16.msra.mxu0 %v10821_v6  ;;  %v3242_v6 = vld [vmem:[#allocation2 + $0xc0] sm:$0xee] }
 0x3e4   :  { %v12437_v54 = vpop.f32.mrb[38].mxu1  ;;  %4388 = vmatprep.subr.bf16.mxu0 %v15068_v13  ;;  %v9556_v58 = vrot.slane %v3242_v6, 9  ;;  %v10824_v4 = vld [vmem:[#allocation9 + $0x334] sm:$0xff]   ;;  %v9691_v6 = vcombine.low %v4559_v12, %v4562_v8 }
 0x3e5   :  { %v2313_v33 = vpop.f32.mrb[39].mxu1  ;;  %v3968_v12 = vld [vmem:[#allocation2 + $0x30] sm:$0xff] }
 0x3e6   :  { %3574 = vmatmul.mubr.bf16.gmra.mrb[124].mxu0 %v9565_v11  ;;  %v12447_v2 = vpop.f32.mrb[20].mxu0  ;;  %v9567_v11 = vcombine.low %v3300_v62, %v3303_v46  ;;  %v3307_v33 = vsel %vm11633_vm12, %v9556_v58, %v3306_v17  ;;  %v3315_v46 = vrot.slane %v3313_v39, 4  ;;  %v3316_v62 = vrot.slane %v12188_v32, 5 }
 0x3e7   :  { %9593 = vmatprep.mubr.msk.bf16.mxu0 %vm15168_vm4, %v9568_v5  ;;  %v1661_v43 = vpop.f32.mrb[21].mxu0  ;;  %4389 = vmatpush1.bf16.msra.mxu0 %v10822_v48  ;;  %v4572_v48 = vrot.slane %v12352_v30, 5  ;;  %v3243_v30 = vld [vmem:[#allocation2 + $0xd8] sm:$0xee]  ;;  %vm15178_vm4 = vmmov %vm15151_vm1 }
 0x3e8   :  { %v12455_v59 = vpop.f32.mrb[22].mxu0  ;;  %4390 = vmatprep.subr.bf16.mxu0 %v15068_v13  ;;  %v9570_v43 = vcombine.high %v3307_v33, %v3310_v51 }
 0x3e9   :  { %4834 = vmatmul.mubr.bf16.gmra.mrb[144].mxu1 %v9689_v18  ;;  %v1664_v38 = vpop.f32.mrb[23].mxu0  ;;  %v4574_v58 = vrot.slane %v4572_v48, 4 }
 0x3ea   :  { %9716 = vmatprep.mubr.msk.bf16.mxu1 %vm15169_vm9, %v9692_v53  ;;  %v12461_v61 = vpop.f32.mrb[40].mxu1  ;;  %v10825_v53 = vld [vmem:[#allocation9 + $0x33c] sm:$0xff]   ;;  %v9680_v38 = vrot.slane %v4496_v15, 9  ;;  %v4006_v15 = vshrl.u32 %v12245_v16, 16  ;;  %vm15180_vm9 = vmmov %vm15151_vm1 }
 0x3eb   :  { %v2318_v26 = vpop.f32.mrb[41].mxu1  ;;  %4391 = vmatpush1.bf16.msra.mxu0 %v10823_v10  ;;  %v4566_v10 = vsel %vm11633_vm12, %v9679_v27, %v12445_v47  ;;  %v12499_v27 = vsel %vm11633_vm12, %v4574_v58, %v4575_v44  ;;  %v10827_v44 = vld [vmem:[#allocation9 + $0x34c] sm:$0xff]  }
 0x3ec   :  { %v12466_v5 = vpop.f32.mrb[42].mxu1  ;;  %4392 = vmatprep.subr.bf16.mxu0 %v15068_v13  ;;  %v9694_v8 = vcombine.high %v4566_v10, %v4569_v20  ;;  %v9557_v26 = vrot.slane %v3243_v30, 9  ;;  %v9569_v30 = vcombine.low %v3307_v33, %v3310_v51  ;;  %v4008_v58 = vrot.slane %v4006_v15, 4 }
 0x3ed   :  { %v2321_v18 = vpop.f32.mrb[43].mxu1  ;;  %v9693_v33 = vcombine.low %v4566_v10, %v4569_v20  ;;  %v4026_v10 = vshll.u32 %v12258_v50, 16 }
 0x3ee   :  { %3582 = vmatmul.mubr.bf16.gmra.mrb[128].mxu0 %v9567_v11  ;;  %v4002_v11 = vshll.u32 %v12245_v16, 16  ;;  %v12495_v18 = vsel %vm11633_vm12, %v9680_v38, %v4572_v48  ;;  %v3993_v16 = vshrl.u32 %v3968_v12, 16  ;;  %v3244_v48 = vld [vmem:[#allocation2 + $0xf0] sm:$0xee]  ;;  %v3323_v38 = vrot.slane %v12211_v25, 5 }
 0x3ef   :  { %9594 = vmatprep.mubr.msk.bf16.mxu0 %vm15151_vm1, %v9570_v43  ;;  %v12477_v17 = vpop.f32.mrb[24].mxu0  ;;  %4393 = vmatpush1.bf16.msra.mxu0 %v10824_v4  ;;  %v3317_v4 = vsel %vm11633_vm12, %v3315_v46, %v3316_v62  ;;  %v10826_v43 = vld [vmem:[#allocation9 + $0x344] sm:$0xff]   ;;  %v3314_v46 = vsel %vm11633_vm12, %v9557_v26, %v3313_v39  ;;  %v3996_v62 = vshll.u32 %v3968_v12, 16  ;;  %v9696_v51 = vcombine.high %v12495_v18, %v12499_v27 }
 0x3f0   :  { %v1669_v21 = vpop.f32.mrb[25].mxu0  ;;  %4394 = vmatprep.subr.bf16.mxu0 %v15068_v13  ;;  %v3995_v26 = vrot.slane %v3993_v16, 4 }
 0x3f1   :  { %4842 = vmatmul.mubr.bf16.gmra.mrb[148].mxu1 %v9691_v6  ;;  %v12484_v32 = vpop.f32.mrb[26].mxu0 }
 0x3f2   :  { %9717 = vmatprep.mubr.msk.bf16.mxu1 %vm15170_vm14, %v9694_v8  ;;  %v1672_v7 = vpop.f32.mrb[27].mxu0  ;;  %v12491_v3 = vpop.f32.mrb[44].mxu1  ;;  %vm15181_vm14 = vmmov %vm15151_vm1 }
 0x3f3   :  { %4395 = vmatpush1.bf16.msra.mxu0 %v10825_v53  ;;  %v2326_v6 = vpop.f32.mrb[45].mxu1  ;;  %v9572_v53 = vcombine.high %v3314_v46, %v3317_v4  ;;  %v12507_v7 = vrot.slane %v4002_v11, 5  ;;  %v9558_v11 = vrot.slane %v3244_v48, 9 }
 0x3f4   :  { %4396 = vmatprep.subr.bf16.mxu0 %v15068_v13  ;;  %v12504_v21 = vpop.f32.mrb[46].mxu1  ;;  %v3998_v6 = vrot.slane %v3996_v62, 5  ;;  %v10828_v62 = vld [vmem:[#allocation9 + $0x354] sm:$0xff]  }
 0x3f5   :  { %v2329_v8 = vpop.f32.mrb[47].mxu1  ;;  %v4009_v20 = vor.u32 %v4008_v58, %v12507_v7  ;;  %v4012_v58 = vshll.u32 %v12322_v1, 16 }
 0x3f6   :  { %3590 = vmatmul.mubr.bf16.gmra.mrb[132].mxu0 %v9569_v30  ;;  %v3971_v30 = vld [vmem:[#allocation2 + $0x48] sm:$0xff] }
 0x3f7   :  { %9595 = vmatprep.mubr.msk.bf16.mxu0 %vm15171_vm6, %v9572_v53  ;;  %v12512_v39 = vpop.f32.mrb[28].mxu0  ;;  %4397 = vmatpush1.bf16.msra.mxu0 %v10826_v43  ;;  %v3324_v53 = vsel %vm11633_vm12, %v4567_v55, %v3323_v38  ;;  %v4030_v43 = vshrl.u32 %v12258_v50, 16  ;;  %v4017_v8 = vshrl.u32 %v3971_v30, 16  ;;  %v4020_v48 = vshll.u32 %v3971_v30, 16  ;;  %v10829_v50 = vld [vmem:[#allocation9 + $0x35c] ss:$0 sps:$4 sm:$0xff]   ;;  %vm15182_vm6 = vmmov %vm15151_vm1 }
 0x3f8   :  { %v1677_v12 = vpop.f32.mrb[29].mxu0  ;;  %4398 = vmatprep.subr.bf16.mxu0 %v15068_v13  ;;  %v3999_v38 = vor.u32 %v3998_v6, %v3995_v26 }
 0x3f9   :  { %4850 = vmatmul.mubr.bf16.gmra.mrb[152].mxu1 %v9693_v33  ;;  %v12515_v25 = vpop.f32.mrb[30].mxu0  ;;  %v9571_v33 = vcombine.low %v3314_v46, %v3317_v4  ;;  %v3321_v12 = vsel %vm11633_vm12, %v9558_v11, %v12445_v47  ;;  %v4010_v4 = vrot.slane %v4009_v20, 4  ;;  %v4028_v46 = vrot.slane %v4026_v10, 5 }
 0x3fa   :  { %v1680_v15 = vpop.f32.mrb[31].mxu0  ;;  %9718 = vmatprep.mubr.msk.bf16.mxu1 %vm15172_vm8, %v9696_v51  ;;  %v12525_v16 = vpop.f32.mrb[48].mxu1  ;;  %v4032_v0 = vrot.slane %v4030_v43, 4  ;;  %v4019_v26 = vrot.slane %v4017_v8, 4  ;;  %v4022_v1 = vrot.slane %v4020_v48, 5  ;;  %v4000_v11 = vrot.slane %v3999_v38, 4  ;;  %vm15184_vm8 = vmmov %vm15151_vm1 }
 0x3fb   :  { %4399 = vmatpush1.bf16.msra.mxu0 %v10827_v44  ;;  %v2334_v55 = vpop.f32.mrb[49].mxu1  ;;  %v9574_v15 = vcombine.high %v3321_v12, %v3324_v53  ;;  %v9695_v44 = vcombine.low %v12495_v18, %v12499_v27  ;;  %v4374_v18 = vsel %vm15174_vm15, %v10829_v50, 0  ;;  %v4041_v20 = vshrl.u32 %v3974_v52, 16 }
 0x3fc   :  { %4400 = vmatprep.subr.bf16.mxu0 %v15068_v13  ;;  %v12532_v51 = vpop.f32.mrb[50].mxu1  ;;  %v4014_v55 = vrot.slane %v4012_v58, 5  ;;  %v4044_v10 = vshll.u32 %v3974_v52, 16  ;;  %v4054_v8 = vshrl.u32 %v12345_v37, 16  ;;  %v4023_v38 = vor.u32 %v4022_v1, %v4019_v26 }
 0x3fd   :  { %v2337_v30 = vpop.f32.mrb[51].mxu1  ;;  %v4036_v58 = vshll.u32 %v12332_v36, 16  ;;  %v4005_v52 = vsel %vm11653_vm0, %v4000_v11, %v12507_v7  ;;  %v4074_v7 = vshll.u32 %v12276_v57, 16  ;;  %v4078_v11 = vshrl.u32 %v12276_v57, 16 }
 0x3fe   :  { %3598 = vmatmul.mubr.bf16.gmra.mrb[136].mxu0 %v9571_v33  ;;  %v4015_v33 = vsel %vm11653_vm0, %v4010_v4, %v4014_v55  ;;  %v9573_v30 = vcombine.low %v3321_v12, %v3324_v53  ;;  %v4024_v36 = vrot.slane %v4023_v38, 4  ;;  %vm15078_vm15 = vcmask 130048  }
 0x3ff   :  { %9596 = vmatprep.mubr.msk.bf16.mxu0 %vm15173_vm11, %v9574_v15  ;;  %v12537_v47 = vpop.f32.mrb[32].mxu0  ;;  %4401 = vmatpush1.bf16.msra.mxu0 %v10828_v62  ;;  %v4033_v15 = vor.u32 %v4032_v0, %v4028_v46  ;;  %v4050_v62 = vshll.u32 %v12345_v37, 16  ;;  %v9636_v4 = vcombine.high %v4005_v52, %v4015_v33  ;;  %v4043_v0 = vrot.slane %v4041_v20, 4 }
 0x400   :  { %v1685_v6 = vpop.f32.mrb[33].mxu0  ;;  %4402 = vmatprep.subr.bf16.mxu0 %v15068_v13  ;;  %v4038_v26 = vrot.slane %v4036_v58, 5  ;;  %v9635_v38 = vcombine.low %v4005_v52, %v4015_v33  ;;  %v4080_v19 = vrot.slane %v4078_v11, 4  ;;  %v4098_v11 = vshll.u32 %v12288_v56, 16 }
 0x401   :  { %v12541_v27 = vpop.f32.mrb[34].mxu0  ;;  %4858 = vmatmul.mubr.bf16.gmra.mrb[156].mxu1 %v9695_v44  ;;  %v3977_v6 = vld [vmem:[#allocation2 + $0x78] sm:$0xff]  ;;  %v4034_v37 = vrot.slane %v4033_v15, 4  ;;  %v4052_v13 = vrot.slane %v4050_v62, 5  ;;  %vm15076_vm11 = vmmov 0  }
 0x402   :  { %v1688_v43 = vpop.f32.mrb[35].mxu0  ;;  %v12547_v48 = vpop.f32.mrb[52].mxu1  ;;  %v4065_v12 = vshrl.u32 %v3977_v6, 16  ;;  %v4068_v1 = vshll.u32 %v3977_v6, 16 }
 0x403   :  { %4403 = vmatpush1.bf16.msra.mxu0 %v4374_v18  ;;  %v2342_v50 = vpop.f32.mrb[53].mxu1  ;;  %v4046_v43 = vrot.slane %v4044_v10, 5  ;;  %v4056_v18 = vrot.slane %v4054_v8, 4  ;;  %v4039_v10 = vsel %vm11653_vm0, %v4034_v37, %v4038_v26  ;;  %v4060_v8 = vshll.u32 %v12360_v24, 16 }
 0x404   :  { %v12553_v44 = vpop.f32.mrb[54].mxu1  ;;  %v4070_v57 = vrot.slane %v4068_v1, 5 }
 0x405   :  { %v2345_v55 = vpop.f32.mrb[55].mxu1  ;;  %v4047_v15 = vor.u32 %v4046_v43, %v4043_v0  ;;  %v4057_v62 = vor.u32 %v4056_v18, %v4052_v13  ;;  %v4062_v24 = vrot.slane %v4060_v8, 5 }
 0x406   :  { %3606 = vmatmul.mubr.bf16.gmra.mrb[140].mxu0 %v9573_v30  ;;  %v4067_v55 = vrot.slane %v4065_v12, 4 }
 0x407   :  { %9665 = vmatprep.mubr.msk.bf16.mxu0 %vm15175_vm2, %v9636_v4  ;;  %v4029_v4 = vsel %vm11653_vm0, %v4024_v36, %v4028_v46  ;;  %v4048_v37 = vrot.slane %v4047_v15, 4  ;;  %v4058_v43 = vrot.slane %v4057_v62, 4  ;;  %v4084_v46 = vshll.u32 %v12375_v42, 16  ;;  %v3980_v36 = vld [vmem:[#allocation2 + $0xc0] sm:$0xff] }
 0x408   :  { %v12556_v53 = vpop.f32.mrb[36].mxu0  ;;  %v9638_v22 = vcombine.high %v4029_v4, %v4039_v10  ;;  %v4071_v52 = vor.u32 %v4070_v57, %v4067_v55  ;;  %v4089_v62 = vshrl.u32 %v3980_v36, 16  ;;  %v4092_v8 = vshll.u32 %v3980_v36, 16 }
 0x409   :  { %v1693_v20 = vpop.f32.mrb[37].mxu0  ;;  %v4053_v1 = vsel %vm11653_vm0, %v4048_v37, %v4052_v13  ;;  %v9637_v42 = vcombine.low %v4029_v4, %v4039_v10  ;;  %v3983_v4 = vld [vmem:[#allocation2 + $0xd8] sm:$0xff]  ;;  %vm5508_vm2 = vcmask 61444  }
 0x40a   :  { %v12560_v50 = vpop.f32.mrb[38].mxu0  ;;  %v12565_v30 = vpop.f32.mrb[56].mxu1  ;;  %v4076_v20 = vrot.slane %v4074_v7, 5  ;;  %v4063_v7 = vsel %vm11653_vm0, %v4058_v43, %v4062_v24  ;;  %v4094_v24 = vrot.slane %v4092_v8, 5  ;;  %v4113_v8 = vshrl.u32 %v3983_v4, 16 }
 0x40b   :  { %v1696_v58 = vpop.f32.mrb[39].mxu0  ;;  %v2350_v6 = vpop.f32.mrb[57].mxu1  ;;  %v9640_v57 = vcombine.high %v4053_v1, %v4063_v7 }
 0x40c   :  { %v12569_v28 = vpop.f32.mrb[58].mxu1  ;;  %v4081_v18 = vor.u32 %v4080_v19, %v4076_v20  ;;  %v4086_v6 = vrot.slane %v4084_v46, 5  ;;  %v4126_v46 = vshrl.u32 %v12298_v63, 16 }
 0x40d   :  { %v2353_v0 = vpop.f32.mrb[59].mxu1 }
 0x40e   :  { %4409 = vmatmul.mubr.bf16.vlgmr.msra.gmra.mrb[144].mxu0 %v9635_v38  ;;  %v4072_v38 = vrot.slane %v4071_v52, 4  ;;  %v4082_v58 = vrot.slane %v4081_v18, 4  ;;  %v4100_v0 = vrot.slane %v4098_v11, 5  ;;  %v4122_v18 = vshll.u32 %v12298_v63, 16 }
 0x40f   :  { %9666 = vmatprep.mubr.msk.bf16.mxu0 %vm15176_vm3, %v9638_v22  ;;  %v4102_v22 = vshrl.u32 %v12288_v56, 16  ;;  %v4091_v56 = vrot.slane %v4089_v62, 4  ;;  %vm5495_vm3 = vcmask 1043520  }
 0x410   :  { %v12572_v33 = vpop.f32.mrb[40].mxu0  ;;  %v4077_v36 = vsel %vm11653_vm0, %v4072_v38, %v4076_v20  ;;  %v4087_v10 = vsel %vm11653_vm0, %v4082_v58, %v4086_v6  ;;  %v9639_v38 = vcombine.low %v4053_v1, %v4063_v7  ;;  %v4108_v58 = vshll.u32 %v12410_v14, 16  ;;  %v10958_v1 = vld [vmem:[#allocation2 + $0xf8] sm:$0xff] }
 0x411   :  { %v1701_v26 = vpop.f32.mrb[41].mxu0  ;;  %v4104_v37 = vrot.slane %v4102_v22, 4  ;;  %v4095_v62 = vor.u32 %v4094_v24, %v4091_v56  ;;  %v4115_v56 = vrot.slane %v4113_v8, 4  ;;  %v4146_v7 = vshll.u32 %v10958_v1, 16 }
 0x412   :  { %v12575_v12 = vpop.f32.mrb[42].mxu0  ;;  %v4132_v8 = vshll.u32 %v12424_v9, 16 }
 0x413   :  { %v1704_v15 = vpop.f32.mrb[43].mxu0  ;;  %v4105_v11 = vor.u32 %v4104_v37, %v4100_v0 }
 0x414   :  { %v12583_v19 = vpop.f32.mrb[60].mxu1  ;;  %v9642_v15 = vcombine.high %v4077_v36, %v4087_v10 }
 0x415   :  { %v2358_v55 = vpop.f32.mrb[61].mxu1  ;;  %v4106_v63 = vrot.slane %v4105_v11, 4  ;;  %v4150_v11 = vshrl.u32 %v10958_v1, 16 }
 0x416   :  { %4417 = vmatmul.mubr.bf16.gmra.mrb[148].mxu0 %v9637_v42  ;;  %v12585_v13 = vpop.f32.mrb[62].mxu1  ;;  %v4116_v42 = vshll.u32 %v3983_v4, 16  ;;  %v4110_v4 = vrot.slane %v4108_v58, 5 }
 0x417   :  { %15177 = vst [vmem:[#allocation20_spill] sm:$0xff] %v12585_v13  ;;  %9667 = vmatprep.mubr.msk.bf16.mxu0 %vm15178_vm4, %v9640_v57  ;;  %v2361_v43 = vpop.f32.mrb[63].mxu1  ;;  %v4124_v57 = vrot.slane %v4122_v18, 5 }
 0x418   :  { %v4128_v43 = vrot.slane %v4126_v46, 4  ;;  %v4118_v24 = vrot.slane %v4116_v42, 5  ;;  %v9641_v46 = vcombine.low %v4077_v36, %v4087_v10 }
 0x419   :  { %v12592_v52 = vpop.f32.mrb[44].mxu0 }
 0x41a   :  { %v1709_v26 = vpop.f32.mrb[45].mxu0  ;;  %v4129_v13 = vor.u32 %v4128_v43, %v4124_v57 }
 0x41b   :  { %v12596_v22 = vpop.f32.mrb[46].mxu0  ;;  %v4096_v26 = vrot.slane %v4095_v62, 4  ;;  %v4119_v62 = vor.u32 %v4118_v24, %v4115_v56  ;;  %v4134_v24 = vrot.slane %v4132_v8, 5 }
 0x41c   :  { %v1712_v55 = vpop.f32.mrb[47].mxu0  ;;  %v12598_v20 = vpop.f32.mrb[64].mxu1 }
 0x41d   :  { %15179 = vst [vmem:[#allocation21_spill] sm:$0xff] %v12598_v20  ;;  %v3160_v6 = vpop.f32.mrb[65].mxu1  ;;  %v3986_v20 = vld [vmem:[#allocation2 + $0xf0] sm:$0xff]  ;;  %v4120_v56 = vrot.slane %v4119_v62, 4 }
 0x41e   :  { %4425 = vmatmul.mubr.bf16.gmra.mrb[152].mxu0 %v9639_v38  ;;  %v12601_v35 = vpop.f32.mrb[66].mxu1  ;;  %v4111_v38 = vsel %vm11653_vm0, %v4106_v63, %v4110_v4 }
 0x41f   :  { %v3163_v37 = vpop.f32.mrb[67].mxu1  ;;  %9668 = vmatprep.mubr.msk.bf16.mxu0 %vm15180_vm9, %v9642_v15  ;;  %v4101_v15 = vsel %vm11653_vm0, %v4096_v26, %v4100_v0  ;;  %v4148_v0 = vrot.slane %v4146_v7, 5  ;;  %v4152_v26 = vrot.slane %v4150_v11, 4  ;;  %vm5497_vm9 = vcmask 64516  }
 0x420   :  { %v4137_v37 = vshrl.u32 %v3986_v20, 16  ;;  %v9644_v63 = vcombine.high %v4101_v15, %v4111_v38  ;;  %v9643_v11 = vcombine.low %v4101_v15, %v4111_v38 }
 0x421   :  { %v1928_v55 = vpop.f32.mrb[48].mxu0 }
 0x422   :  { %v1929_v14 = vadd.f32 %v1928_v55, %v12202_v49  ;;  %v1930_v18 = vpop.f32.mrb[49].mxu0  ;;  %v4140_v49 = vshll.u32 %v3986_v20, 16  ;;  %v4130_v55 = vrot.slane %v4129_v13, 4  ;;  %v4139_v20 = vrot.slane %v4137_v37, 4 }
 0x423   :  { %v1931_v6 = vpop.f32.mrb[50].mxu0  ;;  %v4153_v13 = vor.u32 %v4152_v26, %v4148_v0 }
 0x424   :  { %v1932_v42 = vadd.f32 %v1931_v6, %v12206_v29  ;;  %v1933_v58 = vpop.f32.mrb[51].mxu0  ;;  %v12611_v43 = vpop.f32.mrb[68].mxu1  ;;  %v12614_v36 = vadd.f32 %v12175_v34, %v1929_v14  ;;  %v4142_v1 = vrot.slane %v4140_v49, 5 }
 0x425   :  { %v3168_v10 = vpop.f32.mrb[69].mxu1  ;;  %v4156_v58 = vshll.u32 %v12450_v40, 16  ;;  %v4154_v38 = vrot.slane %v4153_v13, 4 }
 0x426   :  { %4433 = vmatmul.mubr.bf16.gmra.mrb[156].mxu0 %v9641_v46  ;;  %v12616_v4 = vpop.f32.mrb[70].mxu1  ;;  %v12619_v9 = vadd.f32 %v12183_v23, %v1932_v42  ;;  %v4135_v46 = vsel %vm11653_vm0, %v4130_v55, %v4134_v24  ;;  %v4125_v23 = vsel %vm11653_vm0, %v4120_v56, %v4124_v57  ;;  %v4143_v8 = vor.u32 %v4142_v1, %v4139_v20 }
 0x427   :  { %9669 = vmatprep.mubr.msk.bf16.mxu0 %vm15151_vm1, %v9644_v63  ;;  %v3171_v29 = vpop.f32.mrb[71].mxu1  ;;  %v9646_v49 = vcombine.high %v4125_v23, %v4135_v46  ;;  %v4158_v63 = vrot.slane %v4156_v58, 5  ;;  %vm5509_vm1 = vmand %vm5508_vm2, %vm1122_vm13  ;;  %vm5563_vm13 = vcmask 126016   ;;  %vm5570_vm2 = vcmask 122944  }
 0x428   :  { %v4144_v57 = vrot.slane %v4143_v8, 4 }
 0x429   :  { %v1936_v34 = vpop.f32.mrb[52].mxu0 }
 0x42a   :  { %v1937_v14 = vadd.f32 %v1936_v34, %v12447_v2  ;;  %v1938_v18 = vpop.f32.mrb[53].mxu0  ;;  %v4149_v1 = vsel %vm11653_vm0, %v4144_v57, %v4148_v0 }
 0x42b   :  { %v1939_v7 = vpop.f32.mrb[54].mxu0 }
 0x42c   :  { %v1940_v6 = vadd.f32 %v1939_v7, %v12455_v59  ;;  %v1941_v42 = vpop.f32.mrb[55].mxu0  ;;  %v12628_v62 = vpop.f32.mrb[72].mxu1  ;;  %v12632_v2 = vadd.f32 %v12433_v41, %v1937_v14  ;;  %v4159_v41 = vsel %vm11653_vm0, %v4154_v38, %v4158_v63 }
 0x42d   :  { %v3176_v37 = vpop.f32.mrb[73].mxu1  ;;  %v9648_v18 = vcombine.high %v4149_v1, %v4159_v41  ;;  %v9647_v42 = vcombine.low %v4149_v1, %v4159_v41 }
 0x42e   :  { %4441 = vmatmul.mubr.bf16.gmra.mrb[160].mxu0 %v9643_v11  ;;  %v12634_v10 = vpop.f32.mrb[74].mxu1  ;;  %v12637_v15 = vadd.f32 %v12437_v54, %v1940_v6  ;;  %v9645_v54 = vcombine.low %v4125_v23, %v4135_v46 }
 0x42f   :  { %9670 = vmatprep.mubr.msk.bf16.mxu0 %vm15181_vm14, %v9646_v49  ;;  %v3179_v59 = vpop.f32.mrb[75].mxu1  ;;  %vm15193_vm14 = vsmask.f32 7938 }
 0x431   :  { %v1944_v55 = vpop.f32.mrb[56].mxu0 }
 0x432   :  { %v1945_v40 = vadd.f32 %v1944_v55, %v12477_v17  ;;  %v1946_v26 = vpop.f32.mrb[57].mxu0 }
 0x433   :  { %v1947_v29 = vpop.f32.mrb[58].mxu0  ;;  %v15185_v26 = vcombine.low %v12381_v45, %v12385_v31 }
 0x434   :  { %v1948_v56 = vadd.f32 %v1947_v29, %v12484_v32  ;;  %v1949_v24 = vpop.f32.mrb[59].mxu0  ;;  %v12644_v20 = vpop.f32.mrb[76].mxu1  ;;  %v12649_v34 = vadd.f32 %v12461_v61, %v1945_v40 }
 0x435   :  { %v3184_v14 = vpop.f32.mrb[77].mxu1 }
 0x436   :  { %4449 = vmatmul.mubr.bf16.gmra.mrb[164].mxu0 %v9645_v54  ;;  %v12651_v17 = vpop.f32.mrb[78].mxu1  ;;  %v12654_v13 = vadd.f32 %v12466_v5, %v1948_v56 }
 0x437   :  { %9671 = vmatprep.mubr.msk.bf16.mxu0 %vm15182_vm6, %v9648_v18  ;;  %v3187_v32 = vpop.f32.mrb[79].mxu1  ;;  %vm5496_vm6 = vmand %vm5495_vm3, %vm15193_vm14 }
 0x439   :  { %v1952_v7 = vpop.f32.mrb[60].mxu0 }
 0x43a   :  { %v1953_v46 = vadd.f32 %v1952_v7, %v12512_v39  ;;  %v1954_v11 = vpop.f32.mrb[61].mxu0  ;;  %v15183_v39 = vcombine.high %v12381_v45, %v12385_v31 }
 0x43b   :  { %v1955_v23 = vpop.f32.mrb[62].mxu0 }
 0x43c   :  { %v1956_v0 = vadd.f32 %v1955_v23, %v12515_v25  ;;  %v1957_v61 = vpop.f32.mrb[63].mxu0  ;;  %v12659_v6 = vpop.f32.mrb[80].mxu1  ;;  %v12662_v8 = vadd.f32 %v12491_v3, %v1953_v46 }
 0x43d   :  { %v3192_v58 = vpop.f32.mrb[81].mxu1 }
 0x43e   :  { %4457 = vmatmul.mubr.bf16.gmra.mrb[168].mxu0 %v9647_v42  ;;  %v12664_v5 = vpop.f32.mrb[82].mxu1  ;;  %v12667_v37 = vadd.f32 %v12504_v21, %v1956_v0 }
 0x43f   :  { %v3195_v49 = vpop.f32.mrb[83].mxu1  ;;  %9672 = vmatprep.mubr.msk.bf16.mxu0 %vm15184_vm8, %v15183_v39  ;;  %vm5498_vm8 = vmand %vm5497_vm9, %vm1109_vm5 }
 0x440   :  { %vm13441_vm5 = vmor %vm5497_vm9, %vm5495_vm3 }
 0x441   :  { %v1960_v25 = vpop.f32.mrb[64].mxu0  ;;  %vm15200_vm3 = vmmov %vm15193_vm14 }
 0x442   :  { %v1961_v38 = vadd.f32 %v1960_v25, %v12537_v47  ;;  %v1962_v59 = vpop.f32.mrb[65].mxu0  ;;  %vm13461_vm9 = vmand %vm5570_vm2, %vm844_vm7 }
 0x443   :  { %v1963_v57 = vpop.f32.mrb[66].mxu0 }
 0x444   :  { %v1964_v3 = vadd.f32 %v1963_v57, %v12541_v27  ;;  %v1965_v63 = vpop.f32.mrb[67].mxu0  ;;  %v12675_v55 = vpop.f32.mrb[84].mxu1  ;;  %v12678_v40 = vadd.f32 %v12525_v16, %v1961_v38 }
 0x445   :  { %v3200_v21 = vpop.f32.mrb[85].mxu1  ;;  %v15186_v63 = vld [vmem:[#allocation20_spill] sm:$0xff] }
 0x446   :  { %4465 = vmatmul.mubr.bf16.gmra.mrb[172].mxu0 %v15185_v26  ;;  %v12683_v41 = vpop.f32.mrb[86].mxu1  ;;  %v12686_v29 = vadd.f32 %v12532_v51, %v1964_v3 }
 0x447   :  { %v3203_v47 = vpop.f32.mrb[87].mxu1 }
 0x449   :  { %v1968_v56 = vpop.f32.mrb[68].mxu0 }
 0x44a   :  { %v1969_v27 = vadd.f32 %v1968_v56, %v12556_v53  ;;  %v1970_v24 = vpop.f32.mrb[69].mxu0 }
 0x44b   :  { %v1971_v54 = vpop.f32.mrb[70].mxu0 }
 0x44c   :  { %v1972_v1 = vadd.f32 %v1971_v54, %v12560_v50  ;;  %v1973_v16 = vpop.f32.mrb[71].mxu0  ;;  %v12690_v14 = vpop.f32.mrb[88].mxu1  ;;  %v12693_v18 = vadd.f32 %v12547_v48, %v1969_v27  ;;  %v15187_v54 = vld [vmem:[#allocation21_spill] sm:$0xff] }
 0x44d   :  { %v3208_v45 = vpop.f32.mrb[89].mxu1 }
 0x44e   :  { %v12695_v31 = vpop.f32.mrb[90].mxu1  ;;  %v12698_v51 = vadd.f32 %v12553_v44, %v1972_v1 }
 0x44f   :  { %v3211_v32 = vpop.f32.mrb[91].mxu1 }
 0x451   :  { %v1976_v7 = vpop.f32.mrb[72].mxu0 }
 0x452   :  { %v1977_v53 = vadd.f32 %v1976_v7, %v12572_v33  ;;  %v1978_v46 = vpop.f32.mrb[73].mxu0 }
 0x453   :  { %v1979_v11 = vpop.f32.mrb[74].mxu0 }
 0x454   :  { %v1980_v50 = vadd.f32 %v1979_v11, %v12575_v12  ;;  %v1981_v23 = vpop.f32.mrb[75].mxu0  ;;  %v12702_v0 = vpop.f32.mrb[92].mxu1  ;;  %v12705_v48 = vadd.f32 %v12565_v30, %v1977_v53 }
 0x455   :  { %v3216_v61 = vpop.f32.mrb[93].mxu1 }
 0x456   :  { %v12707_v42 = vpop.f32.mrb[94].mxu1  ;;  %v12710_v44 = vadd.f32 %v12569_v28, %v1980_v50 }
 0x457   :  { %v3219_v58 = vpop.f32.mrb[95].mxu1 }
 0x459   :  { %v1984_v49 = vpop.f32.mrb[76].mxu0 }
 0x45a   :  { %v1985_v33 = vadd.f32 %v1984_v49, %v12592_v52  ;;  %v1986_v39 = vpop.f32.mrb[77].mxu0 }
 0x45b   :  { %v1987_v25 = vpop.f32.mrb[78].mxu0 }
 0x45c   :  { %v1988_v12 = vadd.f32 %v1987_v25, %v12596_v22  ;;  %v1989_v38 = vpop.f32.mrb[79].mxu0  ;;  %v12714_v59 = vpop.f32.mrb[96].mxu1  ;;  %v12717_v30 = vadd.f32 %v12583_v19, %v1985_v33 }
 0x45d   :  { %v3891_v57 = vpop.f32.mrb[97].mxu1 }
 0x45e   :  { %v12719_v3 = vpop.f32.mrb[98].mxu1  ;;  %v12722_v28 = vadd.f32 %v15186_v63, %v1988_v12  ;;  %v15079_v63 = vmov 0.0|0.0  }
 0x45f   :  { %v3894_v21 = vpop.f32.mrb[99].mxu1  ;;  %10506 = vmatprep.subr.bf16.mxu0 %v15079_v63  ;;  %10530 = vmatprep.subr.bf16.mxu1 %v15079_v63 }
 0x461   :  { %v2637_v26 = vpop.f32.mrb[80].mxu0 }
 0x462   :  { %v2700_v52 = vadd.f32 %v2637_v26, %v12614_v36  ;;  %v2639_v47 = vpop.f32.mrb[81].mxu0 }
 0x463   :  { %v2640_v56 = vpop.f32.mrb[82].mxu0  ;;  %v4962_v47 = vld [vmem:[#allocation11] sm:$0xff] }
 0x464   :  { %v2701_v22 = vadd.f32 %v2640_v56, %v12619_v9  ;;  %v2642_v27 = vpop.f32.mrb[83].mxu0  ;;  %v12726_v24 = vpop.f32.mrb[100].mxu1  ;;  %v12729_v19 = vadd.f32 %v15187_v54, %v2700_v52  ;;  %v4963_v56 = vld [vmem:[#allocation11 + $0x8] sm:$0xff] }
 0x465   :  { %v3899_v1 = vpop.f32.mrb[101].mxu1 }
 0x466   :  { %v12731_v16 = vpop.f32.mrb[102].mxu1  ;;  %v12734_v45 = vadd.f32 %v12601_v35, %v2701_v22  ;;  %v10507_v22 = vpack.c.bf16 %v4963_v56, %v4962_v47 }
 0x467   :  { %v3902_v32 = vpop.f32.mrb[103].mxu1 }
 0x468   :  { %10508 = vmatpush3.bf16.msra.mxu0 %v10507_v22  ;;  %10532 = vmatpush3.bf16.msra.mxu1 %v10507_v22 }
 0x469   :  { %v2645_v7 = vpop.f32.mrb[84].mxu0  ;;  %10509 = vmatprep.subr.bf16.mxu0 %v15079_v63  ;;  %10533 = vmatprep.subr.bf16.mxu1 %v15079_v63 }
 0x46a   :  { %v2702_v36 = vadd.f32 %v2645_v7, %v12632_v2  ;;  %v2647_v53 = vpop.f32.mrb[85].mxu0 }
 0x46b   :  { %v2648_v46 = vpop.f32.mrb[86].mxu0 }
 0x46c   :  { %v2703_v9 = vadd.f32 %v2648_v46, %v12637_v15  ;;  %v2650_v11 = vpop.f32.mrb[87].mxu0  ;;  %v12738_v50 = vpop.f32.mrb[104].mxu1  ;;  %v12741_v23 = vadd.f32 %v12611_v43, %v2702_v36 }
 0x46d   :  { %v3907_v61 = vpop.f32.mrb[105].mxu1 }
 0x46e   :  { %v12743_v58 = vpop.f32.mrb[106].mxu1  ;;  %v12746_v35 = vadd.f32 %v12616_v4, %v2703_v9  ;;  %v4964_v9 = vld [vmem:[#allocation11 + $0x10] sm:$0xff] }
 0x46f   :  { %v3910_v49 = vpop.f32.mrb[107].mxu1 }
 0x471   :  { %v2653_v33 = vpop.f32.mrb[88].mxu0 }
 0x472   :  { %v2704_v2 = vadd.f32 %v2653_v33, %v12649_v34  ;;  %v2655_v39 = vpop.f32.mrb[89].mxu0 }
 0x473   :  { %v2656_v25 = vpop.f32.mrb[90].mxu0 }
 0x474   :  { %v2705_v15 = vadd.f32 %v2656_v25, %v12654_v13  ;;  %v2658_v12 = vpop.f32.mrb[91].mxu0  ;;  %v12750_v38 = vpop.f32.mrb[108].mxu1  ;;  %v12753_v43 = vadd.f32 %v12628_v62, %v2704_v2 }
 0x475   :  { %v3915_v57 = vpop.f32.mrb[109].mxu1 }
 0x476   :  { %v12757_v4 = vpop.f32.mrb[110].mxu1  ;;  %v12760_v34 = vadd.f32 %v12634_v10, %v2705_v15 }
 0x477   :  { %v3918_v21 = vpop.f32.mrb[111].mxu1 }
 0x478   :  { %v4966_v21 = vld [vmem:[#allocation11 + $0x20] sm:$0xff] }
 0x479   :  { %v2661_v26 = vpop.f32.mrb[92].mxu0 }
 0x47a   :  { %v2706_v13 = vadd.f32 %v2661_v26, %v12662_v8  ;;  %v2663_v52 = vpop.f32.mrb[93].mxu0 }
 0x47b   :  { %v2664_v62 = vpop.f32.mrb[94].mxu0 }
 0x47c   :  { %v2707_v27 = vadd.f32 %v2664_v62, %v12667_v37  ;;  %v2666_v54 = vpop.f32.mrb[95].mxu0  ;;  %v12764_v1 = vpop.f32.mrb[112].mxu1  ;;  %v12767_v32 = vadd.f32 %v12644_v20, %v2706_v13  ;;  %v4965_v20 = vld [vmem:[#allocation11 + $0x18] sm:$0xff] }
 0x47d   :  { %v3923_v7 = vpop.f32.mrb[113].mxu1  ;;  %v10510_v61 = vpack.c.bf16 %v4965_v20, %v4964_v9 }
 0x47e   :  { %v12769_v10 = vpop.f32.mrb[114].mxu1  ;;  %v12772_v8 = vadd.f32 %v12651_v17, %v2707_v27 }
 0x47f   :  { %v3926_v36 = vpop.f32.mrb[115].mxu1  ;;  %10511 = vmatpush3.bf16.msra.mxu0 %v10510_v61  ;;  %10535 = vmatpush3.bf16.msra.mxu1 %v10510_v61 }
 0x480   :  { %10512 = vmatprep.subr.bf16.mxu0 %v15079_v63  ;;  %10536 = vmatprep.subr.bf16.mxu1 %v15079_v63  ;;  %v4968_v36 = vld [vmem:[#allocation11 + $0x30] sm:$0xff] }
 0x481   :  { %v2669_v37 = vpop.f32.mrb[96].mxu0 }
 0x482   :  { %v2708_v53 = vadd.f32 %v2669_v37, %v12678_v40  ;;  %v2671_v46 = vpop.f32.mrb[97].mxu0 }
 0x483   :  { %v2672_v11 = vpop.f32.mrb[98].mxu0 }
 0x484   :  { %v2709_v49 = vadd.f32 %v2672_v11, %v12686_v29  ;;  %v2674_v33 = vpop.f32.mrb[99].mxu0  ;;  %v12778_v2 = vpop.f32.mrb[116].mxu1  ;;  %v12781_v17 = vadd.f32 %v12659_v6, %v2708_v53  ;;  %v4967_v6 = vld [vmem:[#allocation11 + $0x28] sm:$0xff] }
 0x485   :  { %v3931_v39 = vpop.f32.mrb[117].mxu1  ;;  %v10513_v13 = vpack.c.bf16 %v4967_v6, %v4966_v21 }
 0x486   :  { %v12783_v25 = vpop.f32.mrb[118].mxu1  ;;  %v12786_v40 = vadd.f32 %v12664_v5, %v2709_v49 }
 0x487   :  { %v3934_v15 = vpop.f32.mrb[119].mxu1  ;;  %10514 = vmatpush3.bf16.msra.mxu0 %v10513_v13  ;;  %10538 = vmatpush3.bf16.msra.mxu1 %v10513_v13 }
 0x488   :  { %10515 = vmatprep.subr.bf16.mxu0 %v15079_v63  ;;  %10539 = vmatprep.subr.bf16.mxu1 %v15079_v63  ;;  %v4970_v15 = vld [vmem:[#allocation11 + $0x40] sm:$0xff] }
 0x489   :  { %v2677_v29 = vpop.f32.mrb[100].mxu0 }
 0x48a   :  { %v2710_v12 = vadd.f32 %v2677_v29, %v12693_v18  ;;  %v2679_v57 = vpop.f32.mrb[101].mxu0 }
 0x48b   :  { %v2680_v26 = vpop.f32.mrb[102].mxu0 }
 0x48c   :  { %v2711_v52 = vadd.f32 %v2680_v26, %v12698_v51  ;;  %v2682_v47 = vpop.f32.mrb[103].mxu0  ;;  %v12792_v56 = vpop.f32.mrb[120].mxu1  ;;  %v12795_v5 = vadd.f32 %v12675_v55, %v2710_v12  ;;  %v4969_v55 = vld [vmem:[#allocation11 + $0x38] sm:$0xff] }
 0x48d   :  { %v3939_v62 = vpop.f32.mrb[121].mxu1  ;;  %v10516_v53 = vpack.c.bf16 %v4969_v55, %v4968_v36 }
 0x48e   :  { %v12797_v22 = vpop.f32.mrb[122].mxu1  ;;  %v12800_v18 = vadd.f32 %v12683_v41, %v2711_v52 }
 0x48f   :  { %v3942_v27 = vpop.f32.mrb[123].mxu1  ;;  %10517 = vmatpush3.bf16.msra.mxu0 %v10516_v53  ;;  %10541 = vmatpush3.bf16.msra.mxu1 %v10516_v53 }
 0x490   :  { %10518 = vmatprep.subr.bf16.mxu0 %v15079_v63  ;;  %10542 = vmatprep.subr.bf16.mxu1 %v15079_v63  ;;  %v4972_v27 = vld [vmem:[#allocation11 + $0x50] sm:$0xff] }
 0x491   :  { %v2685_v51 = vpop.f32.mrb[104].mxu0 }
 0x492   :  { %v2712_v54 = vadd.f32 %v2685_v51, %v12705_v48  ;;  %v2687_v7 = vpop.f32.mrb[105].mxu0 }
 0x493   :  { %v2688_v37 = vpop.f32.mrb[106].mxu0 }
 0x494   :  { %v2713_v46 = vadd.f32 %v2688_v37, %v12710_v44  ;;  %v2690_v9 = vpop.f32.mrb[107].mxu0  ;;  %v12806_v20 = vpop.f32.mrb[124].mxu1  ;;  %v12809_v41 = vadd.f32 %v12690_v14, %v2712_v54  ;;  %v4971_v14 = vld [vmem:[#allocation11 + $0x48] sm:$0xff] }
 0x495   :  { %v3947_v11 = vpop.f32.mrb[125].mxu1  ;;  %v10519_v12 = vpack.c.bf16 %v4971_v14, %v4970_v15  ;;  %v4975_v15 = vld [vmem:[#allocation11 + $0x68] sm:$0xff]  ;;  %v4976_v14 = vld [vmem:[#allocation11 + $0x70] sm:$0xff] }
 0x496   :  { %v12811_v61 = vpop.f32.mrb[126].mxu1  ;;  %v12814_v48 = vadd.f32 %v12695_v31, %v2713_v46 }
 0x497   :  { %v3950_v49 = vpop.f32.mrb[127].mxu1  ;;  %10520 = vmatpush3.bf16.msra.mxu0 %v10519_v12  ;;  %10544 = vmatpush3.bf16.msra.mxu1 %v10519_v12 }
 0x498   :  { %10521 = vmatprep.subr.bf16.mxu0 %v15079_v63  ;;  %10545 = vmatprep.subr.bf16.mxu1 %v15079_v63 }
 0x499   :  { %v2693_v44 = vpop.f32.mrb[108].mxu0 }
 0x49a   :  { %v2714_v33 = vadd.f32 %v2693_v44, %v12717_v30  ;;  %v2695_v39 = vpop.f32.mrb[109].mxu0 }
 0x49b   :  { %v2696_v29 = vpop.f32.mrb[110].mxu0 }
 0x49c   :  { %v2715_v57 = vadd.f32 %v2696_v29, %v12722_v28  ;;  %v2698_v21 = vpop.f32.mrb[111].mxu0  ;;  %v12820_v6 = vpop.f32.mrb[128].mxu1  ;;  %v12823_v31 = vadd.f32 %v12702_v0, %v2714_v33  ;;  %v4973_v0 = vld [vmem:[#allocation11 + $0x58] sm:$0xff] }
 0x49d   :  { %v4805_v26 = vpop.f32.mrb[129].mxu1  ;;  %v10522_v54 = vpack.c.bf16 %v4973_v0, %v4972_v27  ;;  %v15188_v21 = vmov 0.0  }
 0x49e   :  { %v12825_v13 = vpop.f32.mrb[130].mxu1  ;;  %v12828_v30 = vadd.f32 %v12707_v42, %v2715_v57  ;;  %v4977_v57 = vld [vmem:[#allocation11 + $0x78] sm:$0xff]  ;;  %10334 = vmatprep.mubr.msk.f32.mxu0 %vm15076_vm11, %v15188_v21  ;;  %10369 = vmatprep.mubr.msk.f32.mxu1 %vm15076_vm11, %v15188_v21  ;;  %vm5446_vm11 = vcmask 64512  }
 0x49f   :  { %v4808_v52 = vpop.f32.mrb[131].mxu1  ;;  %10523 = vmatpush3.bf16.msra.mxu0 %v10522_v54  ;;  %10547 = vmatpush3.bf16.msra.mxu1 %v10522_v54  ;;  %v10528_v26 = vpack.c.bf16 %v4977_v57, %v4976_v14  ;;  %v15189_v54 = vmov 0  }
 0x4a0   :  { %10524 = vmatprep.subr.bf16.mxu0 %v15079_v63  ;;  %10548 = vmatprep.subr.bf16.mxu1 %v15079_v63 }
 0x4a1   :  { %v3551_v28 = vpop.f32.mrb[112].mxu0 }
 0x4a2   :  { %v3614_v47 = vadd.f32 %v3551_v28, %v12729_v19  ;;  %v3553_v62 = vpop.f32.mrb[113].mxu0 }
 0x4a3   :  { %v3554_v51 = vpop.f32.mrb[114].mxu0 }
 0x4a4   :  { %v3615_v7 = vadd.f32 %v3554_v51, %v12734_v45  ;;  %v3556_v36 = vpop.f32.mrb[115].mxu0  ;;  %v12834_v55 = vpop.f32.mrb[132].mxu1  ;;  %v12837_v42 = vadd.f32 %v12714_v59, %v3614_v47 }
 0x4a5   :  { %v4813_v37 = vpop.f32.mrb[133].mxu1 }
 0x4a6   :  { %v12839_v53 = vpop.f32.mrb[134].mxu1  ;;  %v12842_v19 = vadd.f32 %v12719_v3, %v3615_v7  ;;  %v4974_v3 = vld [vmem:[#allocation11 + $0x60] sm:$0xff] }
 0x4a7   :  { %v4816_v46 = vpop.f32.mrb[135].mxu1  ;;  %v10525_v12 = vpack.c.bf16 %v4975_v15, %v4974_v3 }
 0x4a9   :  { %v3559_v45 = vpop.f32.mrb[116].mxu0  ;;  %10526 = vmatpush3.bf16.msra.mxu0 %v10525_v12  ;;  %10550 = vmatpush3.bf16.msra.mxu1 %v10525_v12 }
 0x4aa   :  { %v3616_v9 = vadd.f32 %v3559_v45, %v12741_v23  ;;  %v3561_v11 = vpop.f32.mrb[117].mxu0  ;;  %10527 = vmatprep.subr.bf16.mxu0 %v15079_v63  ;;  %10551 = vmatprep.subr.bf16.mxu1 %v15079_v63 }
 0x4ab   :  { %v3562_v49 = vpop.f32.mrb[118].mxu0 }
 0x4ac   :  { %v3617_v59 = vadd.f32 %v3562_v49, %v12746_v35  ;;  %v3564_v44 = vpop.f32.mrb[119].mxu0  ;;  %v12848_v33 = vpop.f32.mrb[136].mxu1  ;;  %v12851_v39 = vadd.f32 %v12726_v24, %v3616_v9 }
 0x4ad   :  { %v4821_v29 = vpop.f32.mrb[137].mxu1  ;;  %10529 = vmatpush3.bf16.msra.mxu0 %v10528_v26  ;;  %10553 = vmatpush3.bf16.msra.mxu1 %v10528_v26 }
 0x4ae   :  { %v12857_v23 = vpop.f32.mrb[138].mxu1  ;;  %v12860_v35 = vadd.f32 %v12731_v16, %v3617_v59  ;;  %6260 = vmatprep.subr.bf16.mxu1 %v15189_v54  ;;  %6013 = vmatprep.subr.bf16.mxu0 %v15189_v54 }
 0x4af   :  { %v4824_v24 = vpop.f32.mrb[139].mxu1 }
 0x4b1   :  { %v3567_v52 = vpop.f32.mrb[120].mxu0 }
 0x4b2   :  { %v3618_v28 = vadd.f32 %v3567_v52, %v12753_v43  ;;  %v3569_v47 = vpop.f32.mrb[121].mxu0 }
 0x4b3   :  { %v3570_v62 = vpop.f32.mrb[122].mxu0 }
 0x4b4   :  { %v3619_v27 = vadd.f32 %v3570_v62, %v12760_v34  ;;  %v3572_v0 = vpop.f32.mrb[123].mxu0  ;;  %v12866_v16 = vpop.f32.mrb[140].mxu1  ;;  %v12869_v51 = vadd.f32 %v12738_v50, %v3618_v28 }
 0x4b5   :  { %v4829_v7 = vpop.f32.mrb[141].mxu1 }
 0x4b6   :  { %v12873_v36 = vpop.f32.mrb[142].mxu1  ;;  %v12876_v43 = vadd.f32 %v12743_v58, %v3619_v27 }
 0x4b7   :  { %v4832_v37 = vpop.f32.mrb[143].mxu1 }
 0x4b9   :  { %v3575_v46 = vpop.f32.mrb[124].mxu0 }
 0x4ba   :  { %v3620_v34 = vadd.f32 %v3575_v46, %v12767_v32  ;;  %v3577_v45 = vpop.f32.mrb[125].mxu0 }
 0x4bb   :  { %v3578_v9 = vpop.f32.mrb[126].mxu0 }
 0x4bc   :  { %v3621_v11 = vadd.f32 %v3578_v9, %v12772_v8  ;;  %v3580_v50 = vpop.f32.mrb[127].mxu0  ;;  %v12880_v49 = vpop.f32.mrb[144].mxu1  ;;  %v12883_v59 = vadd.f32 %v12750_v38, %v3620_v34 }
 0x4bd   :  { %v4837_v44 = vpop.f32.mrb[145].mxu1 }
 0x4be   :  { %v12885_v3 = vpop.f32.mrb[146].mxu1  ;;  %v12888_v58 = vadd.f32 %v12757_v4, %v3621_v11 }
 0x4bf   :  { %v4840_v15 = vpop.f32.mrb[147].mxu1 }
 0x4c1   :  { %v3583_v14 = vpop.f32.mrb[128].mxu0 }
 0x4c2   :  { %v3622_v32 = vadd.f32 %v3583_v14, %v12781_v17  ;;  %v3585_v29 = vpop.f32.mrb[129].mxu0 }
 0x4c3   :  { %v3586_v12 = vpop.f32.mrb[130].mxu0 }
 0x4c4   :  { %v3623_v8 = vadd.f32 %v3586_v12, %v12786_v40  ;;  %v3588_v57 = vpop.f32.mrb[131].mxu0  ;;  %v12892_v24 = vpop.f32.mrb[148].mxu1  ;;  %v12895_v38 = vadd.f32 %v12764_v1, %v3622_v32 }
 0x4c5   :  { %v4845_v26 = vpop.f32.mrb[149].mxu1 }
 0x4c6   :  { %v12897_v52 = vpop.f32.mrb[150].mxu1  ;;  %v12900_v4 = vadd.f32 %v12769_v10, %v3623_v8 }
 0x4c7   :  { %v4848_v28 = vpop.f32.mrb[151].mxu1 }
 0x4c9   :  { %v3591_v47 = vpop.f32.mrb[132].mxu0 }
 0x4ca   :  { %v3624_v17 = vadd.f32 %v3591_v47, %v12795_v5  ;;  %v3593_v62 = vpop.f32.mrb[133].mxu0 }
 0x4cb   :  { %v3594_v27 = vpop.f32.mrb[134].mxu0 }
 0x4cc   :  { %v3625_v40 = vadd.f32 %v3594_v27, %v12800_v18  ;;  %v3596_v0 = vpop.f32.mrb[135].mxu0  ;;  %v12904_v7 = vpop.f32.mrb[152].mxu1  ;;  %v12907_v1 = vadd.f32 %v12778_v2, %v3624_v17 }
 0x4cd   :  { %v4853_v37 = vpop.f32.mrb[153].mxu1 }
 0x4ce   :  { %v12909_v46 = vpop.f32.mrb[154].mxu1  ;;  %v12912_v10 = vadd.f32 %v12783_v25, %v3625_v40 }
 0x4cf   :  { %v4856_v34 = vpop.f32.mrb[155].mxu1 }
 0x4d1   :  { %v3599_v45 = vpop.f32.mrb[136].mxu0 }
 0x4d2   :  { %v3626_v5 = vadd.f32 %v3599_v45, %v12809_v41  ;;  %v3601_v9 = vpop.f32.mrb[137].mxu0 }
 0x4d3   :  { %v3602_v11 = vpop.f32.mrb[138].mxu0 }
 0x4d4   :  { %v3627_v18 = vadd.f32 %v3602_v11, %v12814_v48  ;;  %v3604_v50 = vpop.f32.mrb[139].mxu0  ;;  %v12917_v44 = vadd.f32 %v12792_v56, %v3626_v5  ;;  %v12919_v2 = vpop.f32.mrb[156].mxu1 }
 0x4d5   :  { %v4861_v15 = vpop.f32.mrb[157].mxu1 }
 0x4d6   :  { %v12922_v14 = vadd.f32 %v12797_v22, %v3627_v18  ;;  %v12924_v25 = vpop.f32.mrb[158].mxu1 }
 0x4d7   :  { %v4864_v32 = vpop.f32.mrb[159].mxu1 }
 0x4d9   :  { %v3607_v29 = vpop.f32.mrb[140].mxu0 }
 0x4da   :  { %v3628_v41 = vadd.f32 %v3607_v29, %v12823_v31  ;;  %v3609_v12 = vpop.f32.mrb[141].mxu0 }
 0x4db   :  { %v3610_v8 = vpop.f32.mrb[142].mxu0 }
 0x4dc   :  { %v3629_v48 = vadd.f32 %v3610_v8, %v12828_v30  ;;  %v3612_v57 = vpop.f32.mrb[143].mxu0  ;;  %v12929_v56 = vadd.f32 %v12806_v20, %v3628_v41 }
 0x4de   :  { %v12932_v26 = vadd.f32 %v12811_v61, %v3629_v48 }
 0x4e1   :  { %v4410_v28 = vpop.f32.mrb[144].mxu0 }
 0x4e2   :  { %v4473_v22 = vadd.f32 %v4410_v28, %v12837_v42  ;;  %v4412_v47 = vpop.f32.mrb[145].mxu0 }
 0x4e3   :  { %v4413_v17 = vpop.f32.mrb[146].mxu0 }
 0x4e4   :  { %v4866_v62 = vadd.f32 %v12820_v6, %v4473_v22  ;;  %v4474_v31 = vadd.f32 %v4413_v17, %v12842_v19  ;;  %v4415_v27 = vpop.f32.mrb[147].mxu0 }
 0x4e6   :  { %v4867_v40 = vadd.f32 %v12825_v13, %v4474_v31  ;;  %v12946_v13 = vld [vmem:[%s15056_s7] ss:$0 sm:$0xff] }
 0x4e9   :  { %v4418_v30 = vpop.f32.mrb[148].mxu0 }
 0x4ea   :  { %v4475_v0 = vadd.f32 %v4418_v30, %v12851_v39  ;;  %v4420_v20 = vpop.f32.mrb[149].mxu0  ;;  %v12949_v39 = vadd.f32 %v12946_v13, %v4867_v40 }
 0x4eb   :  { %v4421_v37 = vpop.f32.mrb[150].mxu0 }
 0x4ec   :  { %v4868_v61 = vadd.f32 %v12834_v55, %v4475_v0  ;;  %v4476_v34 = vadd.f32 %v4421_v37, %v12860_v35  ;;  %v4423_v45 = vpop.f32.mrb[151].mxu0  ;;  %v4926_v50 = vmul.f32 %v12949_v39, %v12949_v39 }
 0x4ee   :  { %v4869_v42 = vadd.f32 %v12839_v53, %v4476_v34  ;;  %v12954_v53 = vadd.f32 %v12946_v13, %v4866_v62 }
 0x4f0   :  { %v4904_v15 = vadd.f32 %v12949_v39, %v12954_v53  ;;  %v12969_v29 = vadd.f32 %v12946_v13, %v4869_v42 }
 0x4f1   :  { %v4426_v5 = vpop.f32.mrb[152].mxu0 }
 0x4f2   :  { %v4477_v6 = vadd.f32 %v4426_v5, %v12869_v51  ;;  %v4428_v9 = vpop.f32.mrb[153].mxu0  ;;  %v12957_v51 = vadd.f32 %v12946_v13, %v4868_v61  ;;  %v4928_v62 = vmul.f32 %v12969_v29, %v12969_v29 }
 0x4f3   :  { %v4429_v19 = vpop.f32.mrb[154].mxu0 }
 0x4f4   :  { %v4870_v55 = vadd.f32 %v12848_v33, %v4477_v6  ;;  %v4478_v35 = vadd.f32 %v4429_v19, %v12876_v43  ;;  %v4431_v11 = vpop.f32.mrb[155].mxu0  ;;  %v4925_v33 = vmul.f32 %v12954_v53, %v12954_v53  ;;  %v4927_v43 = vmul.f32 %v12957_v51, %v12957_v51 }
 0x4f6   :  { %v4871_v18 = vadd.f32 %v12857_v23, %v4478_v35  ;;  %v4905_v23 = vadd.f32 %v4904_v15, %v12957_v51  ;;  %v4941_v48 = vadd.f32 %v4926_v50, %v4925_v33  ;;  %v12974_v57 = vadd.f32 %v12946_v13, %v4870_v55 }
 0x4f8   :  { %v4942_v17 = vadd.f32 %v4941_v48, %v4927_v43  ;;  %v4929_v27 = vmul.f32 %v12974_v57, %v12974_v57  ;;  %v12985_v40 = vadd.f32 %v12946_v13, %v4871_v18 }
 0x4f9   :  { %v4434_v32 = vpop.f32.mrb[156].mxu0 }
 0x4fa   :  { %v4479_v41 = vadd.f32 %v4434_v32, %v12883_v59  ;;  %v4436_v12 = vpop.f32.mrb[157].mxu0  ;;  %v4906_v59 = vadd.f32 %v4905_v23, %v12969_v29  ;;  %v4943_v0 = vadd.f32 %v4942_v17, %v4928_v62  ;;  %v4930_v34 = vmul.f32 %v12985_v40, %v12985_v40 }
 0x4fb   :  { %v4437_v8 = vpop.f32.mrb[158].mxu0 }
 0x4fc   :  { %v4872_v28 = vadd.f32 %v12866_v16, %v4479_v41  ;;  %v4480_v22 = vadd.f32 %v4437_v8, %v12888_v58  ;;  %v4439_v47 = vpop.f32.mrb[159].mxu0  ;;  %v4907_v30 = vadd.f32 %v4906_v59, %v12974_v57 }
 0x4fe   :  { %v4873_v31 = vadd.f32 %v12873_v36, %v4480_v22  ;;  %v12989_v58 = vadd.f32 %v12946_v13, %v4872_v28  ;;  %v4944_v36 = vadd.f32 %v4943_v0, %v4929_v27  ;;  %v4908_v6 = vadd.f32 %v4907_v30, %v12985_v40 }
 0x500   :  { %v4931_v9 = vmul.f32 %v12989_v58, %v12989_v58  ;;  %v13000_v19 = vadd.f32 %v12946_v13, %v4873_v31  ;;  %v4909_v55 = vadd.f32 %v4908_v6, %v12989_v58  ;;  %v4945_v35 = vadd.f32 %v4944_v36, %v4930_v34 }
 0x501   :  { %v4442_v16 = vpop.f32.mrb[160].mxu0 }
 0x502   :  { %v4481_v20 = vadd.f32 %v4442_v16, %v12895_v38  ;;  %v4444_v37 = vpop.f32.mrb[161].mxu0  ;;  %v4946_v18 = vadd.f32 %v4945_v35, %v4931_v9  ;;  %v4910_v32 = vadd.f32 %v4909_v55, %v13000_v19 }
 0x503   :  { %v4445_v61 = vpop.f32.mrb[162].mxu0 }
 0x504   :  { %v4874_v45 = vadd.f32 %v12880_v49, %v4481_v20  ;;  %v4482_v42 = vadd.f32 %v4445_v61, %v12900_v4  ;;  %v4447_v5 = vpop.f32.mrb[163].mxu0  ;;  %v4932_v4 = vmul.f32 %v13000_v19, %v13000_v19 }
 0x506   :  { %v4875_v38 = vadd.f32 %v12885_v3, %v4482_v42  ;;  %v13005_v11 = vadd.f32 %v12946_v13, %v4874_v45  ;;  %v4947_v8 = vadd.f32 %v4946_v18, %v4932_v4 }
 0x508   :  { %v4933_v3 = vmul.f32 %v13005_v11, %v13005_v11  ;;  %v13014_v43 = vadd.f32 %v12946_v13, %v4875_v38  ;;  %v4911_v48 = vadd.f32 %v4910_v32, %v13005_v11 }
 0x509   :  { %v4450_v49 = vpop.f32.mrb[164].mxu0 }
 0x50a   :  { %v4483_v50 = vadd.f32 %v4450_v49, %v12907_v1  ;;  %v4452_v15 = vpop.f32.mrb[165].mxu0  ;;  %v4948_v22 = vadd.f32 %v4947_v8, %v4933_v3  ;;  %v4934_v47 = vmul.f32 %v13014_v43, %v13014_v43  ;;  %v4912_v62 = vadd.f32 %v4911_v48, %v13014_v43 }
 0x50b   :  { %v4453_v33 = vpop.f32.mrb[166].mxu0 }
 0x50c   :  { %v4876_v41 = vadd.f32 %v12892_v24, %v4483_v50  ;;  %v4484_v12 = vadd.f32 %v4453_v33, %v12912_v10  ;;  %v4455_v23 = vpop.f32.mrb[167].mxu0  ;;  %v4949_v30 = vadd.f32 %v4948_v22, %v4934_v47 }
 0x50e   :  { %v13020_v1 = vadd.f32 %v12946_v13, %v4876_v41  ;;  %v4877_v28 = vadd.f32 %v12897_v52, %v4484_v12 }
 0x510   :  { %v4935_v24 = vmul.f32 %v13020_v1, %v13020_v1  ;;  %v13029_v10 = vadd.f32 %v12946_v13, %v4877_v28  ;;  %v4913_v52 = vadd.f32 %v4912_v62, %v13020_v1 }
 0x511   :  { %v4458_v17 = vpop.f32.mrb[168].mxu0 }
 0x512   :  { %v4485_v31 = vadd.f32 %v4458_v17, %v12917_v44  ;;  %v4460_v59 = vpop.f32.mrb[169].mxu0  ;;  %v4950_v37 = vadd.f32 %v4949_v30, %v4935_v24  ;;  %v4936_v61 = vmul.f32 %v13029_v10, %v13029_v10  ;;  %v4914_v44 = vadd.f32 %v4913_v52, %v13029_v10  ;;  %v10831_v30 = vld [vmem:[%s15057_s8 + $0x8] sm:$0xff]   ;;  %v10834_v52 = vld [vmem:[%s15057_s8 + $0x50] sm:$0xff]  }
 0x513   :  { %v4461_v27 = vpop.f32.mrb[170].mxu0  ;;  %v10830_v59 = vld [vmem:[%s15057_s8] sm:$0xff]  }
 0x514   :  { %v4878_v16 = vadd.f32 %v12904_v7, %v4485_v31  ;;  %v4486_v0 = vadd.f32 %v4461_v27, %v12922_v14  ;;  %v4463_v20 = vpop.f32.mrb[171].mxu0  ;;  %v4951_v14 = vadd.f32 %v4950_v37, %v4936_v61  ;;  %v10832_v27 = vld [vmem:[%s15057_s8 + $0x48] sm:$0xff]   ;;  %v10837_v37 = vld [vmem:[%s15057_s8 + $0x20] sm:$0xff]  }
 0x515   :  { %v10835_v20 = vld [vmem:[%s15057_s8 + $0x18] sm:$0xff]  }
 0x516   :  { %v13038_v36 = vadd.f32 %v12946_v13, %v4878_v16  ;;  %v4879_v34 = vadd.f32 %v12909_v46, %v4486_v0  ;;  %v10833_v16 = vld [vmem:[%s15057_s8 + $0x10] sm:$0xff]   ;;  %v10836_v0 = vld [vmem:[%s15057_s8 + $0x58] sm:$0xff]  }
 0x518   :  { %v4937_v45 = vmul.f32 %v13038_v36, %v13038_v36  ;;  %v13045_v42 = vadd.f32 %v12946_v13, %v4879_v34  ;;  %v4915_v5 = vadd.f32 %v4914_v44, %v13038_v36 }
 0x519   :  { %v4466_v7 = vpop.f32.mrb[172].mxu0 }
 0x51a   :  { %v4487_v6 = vadd.f32 %v4466_v7, %v12929_v56  ;;  %v4468_v9 = vpop.f32.mrb[173].mxu0  ;;  %v4952_v55 = vadd.f32 %v4951_v14, %v4937_v45  ;;  %v4938_v46 = vmul.f32 %v13045_v42, %v13045_v42  ;;  %v4916_v50 = vadd.f32 %v4915_v5, %v13045_v42 }
 0x51b   :  { %v4469_v38 = vpop.f32.mrb[174].mxu0 }
 0x51c   :  { %v4880_v35 = vadd.f32 %v12919_v2, %v4487_v6  ;;  %v4488_v49 = vadd.f32 %v4469_v38, %v12932_v26  ;;  %v4471_v18 = vpop.f32.mrb[175].mxu0  ;;  %v4953_v33 = vadd.f32 %v4952_v55, %v4938_v46  ;;  %v5123_v38 = vld [vmem:[%s15059_s10] sm:$0x1] }
 0x51d   :  { %v15190_v18 = vld [vmem:[#allocation17_spill] sm:$0xff] }
 0x51e   :  { %v13054_v4 = vadd.f32 %v12946_v13, %v4880_v35  ;;  %v4881_v15 = vadd.f32 %v12924_v25, %v4488_v49  ;;  %v5127_v35 = vld [vmem:[%s15060_s11] sm:$0x1] }
 0x520   :  { %v4917_v56 = vadd.f32 %v4916_v50, %v13054_v4  ;;  %v4939_v32 = vmul.f32 %v13054_v4, %v13054_v4  ;;  %v13062_v3 = vadd.f32 %v12946_v13, %v4881_v15 }
 0x522   :  { %v4954_v2 = vadd.f32 %v4953_v33, %v4939_v32  ;;  %v4918_v26 = vadd.f32 %v4917_v56, %v13062_v3  ;;  %v4940_v41 = vmul.f32 %v13062_v3, %v13062_v3 }
 0x524   :  { %v4919_v12 = vrot.slane %v4918_v26, 4  ;;  %v4955_v23 = vadd.f32 %v4954_v2, %v4940_v41 }
 0x526   :  { %v4920_v8 = vadd.f32 %v4919_v12, %v4918_v26  ;;  %v4956_v48 = vrot.slane %v4955_v23, 4 }
 0x528   :  { %v4921_v25 = vrot.slane %v4920_v8, 2  ;;  %v4957_v28 = vadd.f32 %v4956_v48, %v4955_v23 }
 0x52a   :  { %v4922_v22 = vadd.f32 %v4921_v25, %v4920_v8  ;;  %v4958_v47 = vrot.slane %v4957_v28, 2 }
 0x52c   :  { %v4923_v17 = vrot.slane %v4922_v22, 1  ;;  %v4959_v62 = vadd.f32 %v4958_v47, %v4957_v28 }
 0x52e   :  { %v4924_v24 = vadd.f32 %v4923_v17, %v4922_v22  ;;  %v4960_v31 = vrot.slane %v4959_v62, 1 }
 0x530   :  { %10335 = vmatmul.mubr.f32.vlgmr.msra.gmra.mrb[176].mxu0 %v4924_v24  ;;  %v4961_v13 = vadd.f32 %v4960_v31, %v4959_v62 }
 0x531   :  { %6014 = vmatpush1.bf16.msra.mxu0 %v10832_v27 }
 0x532   :  { %10370 = vmatmul.mubr.f32.vlgmr.msra.gmra.mrb[160].mxu1 %v4961_v13  ;;  %6015 = vmatprep.subr.bf16.mxu0 %v15189_v54 }
 0x533   :  { %6261 = vmatpush1.bf16.msra.mxu1 %v10830_v59 }
 0x534   :  { %6262 = vmatprep.subr.bf16.mxu1 %v15189_v54 }
 0x535   :  { %6016 = vmatpush1.bf16.msra.mxu0 %v10834_v52 }
 0x536   :  { %6017 = vmatprep.subr.bf16.mxu0 %v15189_v54 }
 0x537   :  { %6263 = vmatpush1.bf16.msra.mxu1 %v10831_v30 }
 0x538   :  { %6264 = vmatprep.subr.bf16.mxu1 %v15189_v54 }
 0x539   :  { %6018 = vmatpush1.bf16.msra.mxu0 %v10836_v0 }
 0x53a   :  { %6019 = vmatprep.subr.bf16.mxu0 %v15189_v54 }
 0x53b   :  { %6265 = vmatpush1.bf16.msra.mxu1 %v10833_v16 }
 0x53c   :  { %6266 = vmatprep.subr.bf16.mxu1 %v15189_v54 }
 0x53f   :  { %6267 = vmatpush1.bf16.msra.mxu1 %v10835_v20 }
 0x540   :  { %6268 = vmatprep.subr.bf16.mxu1 %v15189_v54 }
 0x543   :  { %6269 = vmatpush1.bf16.msra.mxu1 %v10837_v37 }
 0x544   :  { %6270 = vmatprep.subr.bf16.mxu1 %v15189_v54 }
 0x603   :  { %v5044_v61 = vpop.f32.mrb[176].mxu0 }
 0x604   :  { %v5049_v34 = vmul.f32 0.00048828125, %v5044_v61  ;;  %v10336_v44 = vpop.f32.mrb[177].mxu0 }
 0x605   :  { %v5116_v45 = vpop.f32.mrb[160].mxu1 }
 0x606   :  { %v5121_v7 = vmul.f32 %v5049_v34, %v5049_v34  ;;  %v5120_v14 = vmul.f32 0.00048828125, %v5116_v45  ;;  %v10371_v5 = vpop.f32.mrb[161].mxu1 }
 0x608   :  { %v5122_v6 = vsub.f32 %v5120_v14, %v5121_v7 }
 0x60a   :  { %v5124_v9 = vadd.f32 1e-05, %v5122_v6 }
 0x60c   :  { %10943 = vrsqrt.f32 %v5124_v9 }
 0x616   :  { %v10944_v55 = vpop.eup %10943 }
 0x617   :  { %v5126_v46 = vmul.f32 %v10944_v55, %v5123_v38 }
 0x619   :  { %v5128_v49 = vmul.f32 %v5126_v46, %v5049_v34  ;;  %v13106_v50 = vrot.slane %v5126_v46, %v15190_v18 }
 0x61b   :  { %v5129_v15 = vsub.f32 %v5127_v35, %v5128_v49  ;;  %v5137_v56 = vmul.f32 %v13106_v50, %v12949_v39  ;;  %v5136_v32 = vmul.f32 %v13106_v50, %v12954_v53  ;;  %v5138_v2 = vmul.f32 %v13106_v50, %v12957_v51 }
 0x61c   :  { %v5140_v26 = vmul.f32 %v13106_v50, %v12974_v57  ;;  %v5139_v41 = vmul.f32 %v13106_v50, %v12969_v29  ;;  %v5141_v12 = vmul.f32 %v13106_v50, %v12985_v40  ;;  %v5144_v39 = vmul.f32 %v13106_v50, %v13005_v11 }
 0x61d   :  { %v13113_v33 = vrot.slane %v5129_v15, %v15190_v18  ;;  %v5146_v53 = vmul.f32 %v13106_v50, %v13020_v1  ;;  %v13129_v23 = vmul.f32 %v13106_v50, %v13014_v43  ;;  %v5147_v24 = vmul.f32 %v13106_v50, %v13029_v10 }
 0x61e   :  { %v5148_v61 = vmul.f32 %v13106_v50, %v13038_v36  ;;  %v5149_v34 = vmul.f32 %v13106_v50, %v13045_v42 }
 0x61f   :  { %v5159_v51 = vadd.f32 %v13113_v33, %v5137_v56  ;;  %v5158_v57 = vadd.f32 %v13113_v33, %v5136_v32  ;;  %v5160_v8 = vadd.f32 %v13113_v33, %v5138_v2  ;;  %v5162_v29 = vadd.f32 %v13113_v33, %v5140_v26 }
 0x620   :  { %v5161_v40 = vadd.f32 %v13113_v33, %v5139_v41  ;;  %v5163_v48 = vadd.f32 %v13113_v33, %v5141_v12  ;;  %v5166_v11 = vadd.f32 %v13113_v33, %v5144_v39  ;;  %v5168_v1 = vadd.f32 %v13113_v33, %v5146_v53  ;;  %v10850_v41 = vld [vmem:[%s15057_s8 + $0x90] sm:$0xff]  }
 0x621   :  { %v5175_v25 = vmax.f32 %v5159_v51, 0.0  ;;  %v5174_v28 = vmax.f32 %v5158_v57, 0.0  ;;  %v5176_v43 = vmax.f32 %v5160_v8, 0.0  ;;  %v5178_v22 = vmax.f32 %v5162_v29, 0.0  ;;  %v10838_v57 = vld [vmem:[%s15057_s8 + $0x60] sm:$0xff]   ;;  %v10839_v8 = vld [vmem:[%s15057_s8 + $0x28] sm:$0xff]  }
 0x622   :  { %v5177_v47 = vmax.f32 %v5161_v40, 0.0  ;;  %v5179_v17 = vmax.f32 %v5163_v48, 0.0  ;;  %v5182_v62 = vmax.f32 %v5166_v11, 0.0  ;;  %v5184_v0 = vmax.f32 %v5168_v1, 0.0  ;;  %6020 = vmatpush1.bf16.msra.mxu0 %v10838_v57  ;;  %6271 = vmatpush1.bf16.msra.mxu1 %v10839_v8  ;;  %v10845_v57 = vld [vmem:[%s15057_s8 + $0x40] sm:$0xff]  }
 0x623   :  { %v10219_v31 = vpack.c.bf16 %v5175_v25, %v5175_v25  ;;  %v10218_v13 = vpack.c.bf16 %v5174_v28, %v5174_v28  ;;  %v10220_v59 = vpack.c.bf16 %v5176_v43, %v5176_v43  ;;  %v10222_v27 = vpack.c.bf16 %v5178_v22, %v5178_v22  ;;  %v10840_v43 = vld [vmem:[%s15057_s8 + $0x68] sm:$0xff]   ;;  %v10841_v22 = vld [vmem:[%s15057_s8 + $0x30] sm:$0xff]   ;;  %6021 = vmatprep.subr.bf16.mxu0 %v15189_v54 }
 0x624   :  { %v10221_v30 = vpack.c.bf16 %v5177_v47, %v5177_v47  ;;  %v10223_v52 = vpack.c.bf16 %v5179_v17, %v5179_v17  ;;  %v13141_v16 = vpack.c.bf16 %v5182_v62, %v5182_v62  ;;  %v13148_v35 = vpack.c.bf16 %v5184_v0, %v5184_v0  ;;  %6272 = vmatprep.subr.bf16.mxu1 %v15189_v54 }
 0x625   :  { %v5247_v20 = vshrl.u32 %v10219_v31, 16  ;;  %v5239_v37 = vshrl.u32 %v10218_v13, 16  ;;  %v5242_v44 = vshll.u32 %v10218_v13, 16  ;;  %v5250_v45 = vshll.u32 %v10219_v31, 16 }
 0x626   :  { %v5256_v10 = vshrl.u32 %v10220_v59, 16  ;;  %v5273_v7 = vshrl.u32 %v10222_v27, 16  ;;  %v5264_v6 = vshrl.u32 %v10221_v30, 16  ;;  %v5281_v9 = vshrl.u32 %v10223_v52, 16  ;;  %6022 = vmatpush1.bf16.msra.mxu0 %v10840_v43  ;;  %6273 = vmatpush1.bf16.msra.mxu1 %v10841_v22 }
 0x627   :  { %v5249_v14 = vrot.slane %v5247_v20, 7  ;;  %v5241_v5 = vrot.slane %v5239_v37, 7  ;;  %v5307_v46 = vshrl.u32 %v13141_v16, 16  ;;  %v5259_v32 = vshll.u32 %v10220_v59, 16  ;;  %6023 = vmatprep.subr.bf16.mxu0 %v15189_v54  ;;  %6274 = vmatprep.subr.bf16.mxu1 %v15189_v54 }
 0x628   :  { %v5258_v38 = vrot.slane %v5256_v10, 7  ;;  %v5275_v55 = vrot.slane %v5273_v7, 7  ;;  %v5276_v42 = vshll.u32 %v10222_v27, 16  ;;  %v5266_v2 = vrot.slane %v5264_v6, 7  ;;  %v10842_v6 = vld [vmem:[%s15057_s8 + $0x70] sm:$0xff]  }
 0x629   :  { %v5254_v49 = vrot.slane %v5249_v14, 4  ;;  %v5244_v15 = vor.u32 %v5242_v44, %v5241_v5  ;;  %v5245_v36 = vrot.slane %v5241_v5, 4  ;;  %v5252_v56 = vor.u32 %v5250_v45, %v5249_v14 }
 0x62a   :  { %v5267_v26 = vshll.u32 %v10221_v30, 16  ;;  %v13154_v39 = vrot.slane %v5281_v9, 7  ;;  %v5262_v53 = vrot.slane %v5258_v38, 4  ;;  %v5143_v51 = vmul.f32 %v13106_v50, %v13000_v19  ;;  %v10843_v9 = vld [vmem:[%s15057_s8 + $0x38] sm:$0xff]   ;;  %6024 = vmatpush1.bf16.msra.mxu0 %v10842_v6 }
 0x62b   :  { %5378 = vrot.lane.b32.xlu1 %v5254_v49, %s11105_s21  ;;  %5374 = vrot.lane.b32.xlu0 %v5244_v15, %s11105_s21  ;;  %v5253_v12 = vsel %vm11625_vm10, %v5245_v36, %v5252_v56  ;;  %v5261_v29 = vor.u32 %v5259_v32, %v5258_v38  ;;  %v5278_v40 = vor.u32 %v5276_v42, %v5275_v55  ;;  %v13166_v1 = vrot.slane %v5307_v46, 7 }
 0x62c   :  { %v5269_v48 = vor.u32 %v5267_v26, %v5266_v2  ;;  %v5142_v11 = vmul.f32 %v13106_v50, %v12989_v58  ;;  %v5279_v25 = vrot.slane %v5275_v55, 4  ;;  %v5284_v28 = vshll.u32 %v10223_v52, 16  ;;  %6275 = vmatpush1.bf16.msra.mxu1 %v10843_v9  ;;  %6025 = vmatprep.subr.bf16.mxu0 %v15189_v54 }
 0x62d   :  { %v5324_v19 = vshrl.u32 %v13148_v35, 16  ;;  %v5310_v58 = vshll.u32 %v13141_v16, 16  ;;  %v5167_v17 = vadd.f32 %v13113_v33, %v13129_v23  ;;  %v5169_v62 = vadd.f32 %v13113_v33, %v5147_v24  ;;  %6276 = vmatprep.subr.bf16.mxu1 %v15189_v54 }
 0x62e   :  { %v5270_v47 = vsel %vm11625_vm10, %v5262_v53, %v5269_v48  ;;  %v5286_v31 = vor.u32 %v5284_v28, %v13154_v39  ;;  %v5170_v59 = vadd.f32 %v13113_v33, %v5148_v61  ;;  %v5171_v27 = vadd.f32 %v13113_v33, %v5149_v34 }
 0x62f   :  { %5376 = vrot.lane.b32.xlu1 %v5253_v12, %s11105_s21  ;;  %5380 = vrot.lane.b32.xlu0 %v5261_v29, %s11105_s21  ;;  %v13186_v13 = vrot.slane %v5324_v19, 7  ;;  %v5183_v30 = vmax.f32 %v5167_v17, 0.0  ;;  %v5185_v23 = vmax.f32 %v5169_v62, 0.0  ;;  %v5165_v24 = vadd.f32 %v13113_v33, %v5143_v51  ;;  %v10844_v51 = vld [vmem:[%s15057_s8 + $0x78] sm:$0xff]  }
 0x630   :  { %v5164_v52 = vadd.f32 %v13113_v33, %v5142_v11  ;;  %v5271_v16 = vrot.slane %v5266_v2, 4  ;;  %v5288_v0 = vrot.slane %v13154_v39, 4  ;;  %v5287_v20 = vsel %vm11625_vm10, %v5279_v25, %v5286_v31  ;;  %6026 = vmatpush1.bf16.msra.mxu0 %v10844_v51  ;;  %6277 = vmatpush1.bf16.msra.mxu1 %v10845_v57 }
 0x631   :  { %v5186_v37 = vmax.f32 %v5170_v59, 0.0  ;;  %v10227_v44 = vpack.c.bf16 %v5183_v30, %v5183_v30  ;;  %v10229_v45 = vpack.c.bf16 %v5185_v23, %v5185_v23  ;;  %v5187_v61 = vmax.f32 %v5171_v27, 0.0  ;;  %6027 = vmatprep.subr.bf16.mxu0 %v15189_v54  ;;  %6888 = vmatprep.subr.bf16.mxu1 %v15189_v54 }
 0x632   :  { %v5181_v10 = vmax.f32 %v5165_v24, 0.0  ;;  %v5313_v34 = vrot.slane %v13166_v1, 4  ;;  %v5330_v7 = vrot.slane %v13186_v13, 4  ;;  %v5180_v5 = vmax.f32 %v5164_v52, 0.0 }
 0x633   :  { %5386 = vrot.lane.b32.xlu1 %v5278_v40, %s11105_s21  ;;  %5384 = vrot.lane.b32.xlu0 %v5271_v16, %s11105_s21  ;;  %v13201_v14 = vpack.c.bf16 %v5186_v37, %v5186_v37  ;;  %v5315_v38 = vshrl.u32 %v10227_v44, 16  ;;  %v5332_v55 = vshrl.u32 %v10229_v45, 16  ;;  %v5318_v46 = vshll.u32 %v10227_v44, 16  ;;  %v10848_v44 = vld [vmem:[%s15057_s8 + $0x88] sm:$0xff]  }
 0x634   :  { %v5150_v49 = vmul.f32 %v13106_v50, %v13054_v4  ;;  %v5335_v15 = vshll.u32 %v10229_v45, 16  ;;  %v10231_v56 = vpack.c.bf16 %v5187_v61, %v5187_v61  ;;  %v10225_v32 = vpack.c.bf16 %v5181_v10, %v5181_v10 }
 0x635   :  { %v5341_v36 = vshrl.u32 %v13201_v14, 16  ;;  %v5317_v42 = vrot.slane %v5315_v38, 7  ;;  %v13212_v2 = vrot.slane %v5332_v55, 7  ;;  %v13214_v26 = vpack.c.bf16 %v5180_v5, %v5180_v5 }
 0x636   :  { %v5172_v12 = vadd.f32 %v13113_v33, %v5150_v49  ;;  %v5349_v39 = vshrl.u32 %v10231_v56, 16  ;;  %v5298_v53 = vshrl.u32 %v10225_v32, 16  ;;  %v5312_v8 = vor.u32 %v5310_v58, %v13166_v1  ;;  %v10847_v58 = vld [vmem:[%s15057_s8 + $0x80] sm:$0xff]  }
 0x637   :  { %5390 = vrot.lane.b32.xlu1 %v5288_v0, %s11105_s21  ;;  %5382 = vrot.lane.b32.xlu0 %v5270_v47, %s11105_s21  ;;  %v13221_v4 = vrot.slane %v5341_v36, 7  ;;  %v5327_v29 = vshll.u32 %v13148_v35, 16  ;;  %v5320_v40 = vor.u32 %v5318_v46, %v5317_v42  ;;  %v5337_v48 = vor.u32 %v5335_v15, %v13212_v2  ;;  %v5625_v47 = vld [vmem:[#allocation2] sm:$0xff] }
 0x638   :  { %v13233_v25 = vrot.slane %v5349_v39, 7  ;;  %v5352_v28 = vshll.u32 %v10231_v56, 16  ;;  %v5151_v19 = vmul.f32 %v13106_v50, %v13062_v3  ;;  %v13241_v35 = vrot.slane %v5298_v53, 7  ;;  %6028 = vmatpush1.bf16.msra.mxu0 %v10847_v58  ;;  %v10860_v58 = vld [vmem:[%s15057_s8 + $0xe0] sm:$0xff]  }
 0x639   :  { %v5347_v11 = vrot.slane %v13221_v4, 4  ;;  %v5321_v43 = vsel %vm11625_vm10, %v5313_v34, %v5320_v40  ;;  %v5338_v1 = vsel %vm11625_vm10, %v5330_v7, %v5337_v48  ;;  %v5290_v22 = vshrl.u32 %v13214_v26, 16  ;;  %6029 = vmatprep.subr.bf16.mxu0 %v15189_v54  ;;  %v13276_v7 = vld [vmem:[#allocation2 + $0x10] sm:$0x11] }
 0x63a   :  { %v5354_v3 = vor.u32 %v5352_v28, %v13233_v25  ;;  %v5188_v50 = vmax.f32 %v5172_v12, 0.0  ;;  %v5329_v17 = vor.u32 %v5327_v29, %v13186_v13  ;;  %v5301_v31 = vshll.u32 %v10225_v32, 16 }
 0x63b   :  { %5398 = vrot.lane.b32.xlu1 %v5312_v8, %s11105_s21  ;;  %5388 = vrot.lane.b32.xlu0 %v5287_v20, %s11105_s21  ;;  %v13253_v62 = vrot.slane %v5290_v22, 7  ;;  %v5173_v59 = vadd.f32 %v13113_v33, %v5151_v19  ;;  %v5322_v27 = vrot.slane %v5317_v42, 4  ;;  %v5668_v24 = vshrl.u32 %v5625_v47, 16  ;;  %v13262_v20 = vld [vmem:[#allocation2 + $0x8] sm:$0xff] }
 0x63c   :  { %v5355_v30 = vsel %vm11625_vm10, %v5347_v11, %v5354_v3  ;;  %v13258_v23 = vpack.c.bf16 %v5188_v50, %v5188_v50  ;;  %v5303_v16 = vor.u32 %v5301_v31, %v13241_v35  ;;  %v5339_v33 = vrot.slane %v13212_v2, 4  ;;  %6030 = vmatpush1.bf16.msra.mxu0 %v10848_v44  ;;  %v10855_v3 = vld [vmem:[%s15057_s8 + $0xd8] sm:$0xff]   ;;  %v10858_v50 = vld [vmem:[%s15057_s8 + $0xa8] sm:$0xff]   ;;  %v10874_v44 = vld [vmem:[%s15057_s8 + $0x110] sm:$0xff]  }
 0x63d   :  { %v5296_v52 = vrot.slane %v13253_v62, 4  ;;  %v5189_v0 = vmax.f32 %v5173_v59, 0.0  ;;  %v5671_v37 = vshll.u32 %v5625_v47, 16  ;;  %v9788_v10 = vcombine.high %v5625_v47, %v13262_v20  ;;  %6590 = vmatprep.subr.bf16.mxu0 %v15189_v54  ;;  %v10867_v31 = vld [vmem:[%s15057_s8 + $0xb8] sm:$0xff]   ;;  %v10865_v59 = vld [vmem:[%s15057_s8 + $0xf0] sm:$0xff]  }
 0x63e   :  { %v5358_v13 = vshrl.u32 %v13258_v23, 16  ;;  %v9787_v34 = vcombine.low %v5625_v47, %v13262_v20  ;;  %v5670_v6 = vrot.slane %v5668_v24, 4  ;;  %v5677_v38 = vshll.u32 %v13262_v20, 16  ;;  %v10870_v24 = vld [vmem:[%s15057_s8 + $0x100] sm:$0xff]  }
 0x63f   :  { %5404 = vrot.lane.b32.xlu1 %v5329_v17, %s11105_s21  ;;  %5402 = vrot.lane.b32.xlu0 %v5322_v27, %s11105_s21  ;;  %v5304_v45 = vsel %vm11625_vm10, %v5296_v52, %v5303_v16  ;;  %v10233_v61 = vpack.c.bf16 %v5189_v0, %v5189_v0  ;;  %v5673_v9 = vrot.slane %v5671_v37, 5  ;;  %v5681_v46 = vshrl.u32 %v13262_v20, 16  ;;  %v10862_v17 = vld [vmem:[%s15057_s8 + $0xb0] sm:$0xff]   ;;  %v10871_v27 = vld [vmem:[%s15057_s8 + $0xc0] sm:$0xff]  }
 0x640   :  { %v5360_v5 = vrot.slane %v5358_v13, 7  ;;  %9812 = vmatprep.mubr.msk.bf16.mxu1 %vm15078_vm15, %v9788_v10  ;;  %v5687_v49 = vshll.u32 %v13276_v7, 16  ;;  %v5344_v15 = vshll.u32 %v13201_v14, 16  ;;  %v5679_v56 = vrot.slane %v5677_v38, 5  ;;  %v10872_v52 = vld [vmem:[%s15057_s8 + $0x108] sm:$0xff]   ;;  %v10877_v16 = vld [vmem:[%s15057_s8 + $0xd0] sm:$0xff]  }
 0x641   :  { %v5366_v55 = vshrl.u32 %v10233_v61, 16  ;;  %v5674_v36 = vor.u32 %v5673_v9, %v5670_v6  ;;  %v5369_v2 = vshll.u32 %v10233_v61, 16  ;;  %6293 = vmatmul.mubr.bf16.vlgmr.msra.gmra.mrb[164].mxu1 %v9787_v34  ;;  %v5683_v12 = vrot.slane %v5681_v46, 4  ;;  %v6357_v0 = vld [vmem:[#allocation2] sm:$0xee]  ;;  %v13395_v6 = vld [vmem:[#allocation2 + $0x98] sm:$0xff] }
 0x642   :  { %v5364_v32 = vrot.slane %v5360_v5, 4  ;;  %v5346_v39 = vor.u32 %v5344_v15, %v13221_v4  ;;  %v5689_v8 = vrot.slane %v5687_v49, 5  ;;  %v5356_v48 = vrot.slane %v13233_v25, 4  ;;  %6889 = vmatpush1.bf16.msra.mxu1 %v10855_v3  ;;  %v13397_v9 = vld [vmem:[#allocation2 + $0xa0] sm:$0x11]  ;;  %v5514_v3 = vld [vmem:[#allocation2 + $0x30] sm:$0xff] }
 0x643   :  { %5408 = vrot.lane.b32.xlu1 %v5339_v33, %s11105_s21  ;;  %5400 = vrot.lane.b32.xlu0 %v5321_v43, %s11105_s21  ;;  %v5368_v42 = vrot.slane %v5366_v55, 7  ;;  %v5675_v53 = vrot.slane %v5674_v36, 4  ;;  %v5684_v57 = vor.u32 %v5683_v12, %v5679_v56  ;;  %v5293_v11 = vshll.u32 %v13214_v26, 16  ;;  %v10853_v26 = vld [vmem:[%s15057_s8 + $0x98] sm:$0xff]   ;;  %v6361_v46 = vld [vmem:[#allocation2 + $0x90] sm:$0xee] }
 0x644   :  { %v5305_v43 = vrot.slane %v13241_v35, 4  ;;  %v5361_v25 = vshll.u32 %v13258_v23, 16  ;;  %v10854_v35 = vld [vmem:[%s15057_s8 + $0xa0] sm:$0xff]   ;;  %6890 = vmatprep.subr.bf16.mxu1 %v15189_v54  ;;  %v10875_v23 = vld [vmem:[%s15057_s8 + $0xc8] sm:$0xff]   ;;  %v6383_v33 = vrot.slane %v13262_v20, 5  ;;  %v6386_v13 = vrot.slane %v13276_v7, 5 }
 0x645   :  { %v5371_v51 = vor.u32 %v5369_v2, %v5368_v42  ;;  %v5680_v29 = vsel %vm11653_vm0, %v5675_v53, %v5679_v56  ;;  %v5685_v40 = vrot.slane %v5684_v57, 4  ;;  %v5373_v47 = vrot.slane %v5368_v42, 4  ;;  %v13423_v53 = vld [vmem:[#allocation2 + $0x90] sm:$0xff] }
 0x646   :  { %v5363_v22 = vor.u32 %v5361_v25, %v5360_v5  ;;  %6891 = vmatpush1.bf16.msra.mxu1 %v10860_v58  ;;  %v9820_v37 = vrot.slane %v6357_v0, 9  ;;  %v10876_v5 = vld [vmem:[%s15057_s8 + $0x118] sm:$0xff]   ;;  %v6411_v38 = vrot.slane %v13395_v6, 5  ;;  %v6414_v55 = vrot.slane %v13397_v9, 5  ;;  %v5521_v0 = vld [vmem:[#allocation2 + $0x48] sm:$0xff] }
 0x647   :  { %5406 = vrot.lane.b32.xlu1 %v5338_v1, %s11105_s21  ;;  %5410 = vrot.lane.b32.xlu0 %v5346_v39, %s11105_s21  ;;  %v5372_v14 = vsel %vm11625_vm10, %v5364_v32, %v5371_v51  ;;  %v5690_v4 = vsel %vm11653_vm0, %v5685_v40, %v5689_v8  ;;  %v5295_v1 = vor.u32 %v5293_v11, %v13253_v62  ;;  %v10861_v62 = vld [vmem:[%s15057_s8 + $0xe8] sm:$0xff]   ;;  %v9824_v49 = vrot.slane %v6361_v46, 9 }
 0x648   :  { %v9755_v28 = vcombine.high %v5680_v29, %v5690_v4  ;;  %v9754_v19 = vcombine.low %v5680_v29, %v5690_v4  ;;  %6892 = vmatprep.subr.bf16.mxu1 %v15189_v54  ;;  %v13379_v10 = vsel %vm11633_vm12, %v9820_v37, %v6383_v33  ;;  %v6413_v15 = vrot.slane %v6411_v38, 4 }
 0x649   :  { %v13403_v36 = vsel %vm11633_vm12, %v9824_v49, %v6411_v38  ;;  %vm5506_vm10 = vcmask 1040448   ;;  %v5767_v4 = vshll.u32 %v13423_v53, 16  ;;  %v5777_v25 = vshrl.u32 %v13395_v6, 16 }
 0x64a   :  { %9779 = vmatprep.mubr.msk.bf16.mxu0 %vm15078_vm15, %v9755_v28  ;;  %6893 = vmatpush1.bf16.msra.mxu1 %v10861_v62  ;;  %v13407_v56 = vsel %vm11633_vm12, %v6413_v15, %v6414_v55  ;;  %vm5507_vm4 = vmand %vm5506_vm10, %vm844_vm7  ;;  %v10959_v28 = vld [vmem:[#allocation2 + $0x18] sm:$0xff]  ;;  %vm15205_vm7 = vcmask 130048  }
 0x64b   :  { %5412 = vrot.lane.b32.xlu1 %v5355_v30, %s11105_s21  ;;  %5414 = vrot.lane.b32.xlu0 %v5356_v48, %s11105_s21  ;;  %v10866_v30 = vld [vmem:[%s15057_s8 + $0xf8] sm:$0xff]   ;;  %v9855_v32 = vcombine.high %v13403_v36, %v13407_v56  ;;  %v9854_v42 = vcombine.low %v13403_v36, %v13407_v56  ;;  %vm13419_vm15 = vmor %vm5509_vm1, %vm5507_vm4  ;;  %v5764_v48 = vshrl.u32 %v13423_v53, 16 }
 0x64c   :  { %6046 = vmatmul.mubr.bf16.vlgmr.msra.gmra.mrb[180].mxu0 %v9754_v19  ;;  %6894 = vmatprep.subr.bf16.mxu1 %v15189_v54  ;;  %vm13425_vm10 = vmor %vm5498_vm8, %vm5496_vm6 }
 0x64d   :  { %6591 = vmatpush1.bf16.msra.mxu0 %v10850_v41  ;;  %v5766_v58 = vrot.slane %v5764_v48, 4  ;;  %vm13453_vm4 = vmand %vm5563_vm13, %vm15200_vm3 }
 0x64e   :  { %6592 = vmatprep.subr.bf16.mxu0 %v15189_v54  ;;  %6895 = vmatpush1.bf16.msra.mxu1 %v10865_v59  ;;  %v5769_v59 = vrot.slane %v5767_v4, 5  ;;  %vm15206_vm1 = vmmov %vm15205_vm7 }
 0x64f   :  { %5396 = vrot.lane.b32.xlu1 %v5305_v43, %s11105_s21  ;;  %5392 = vrot.lane.b32.xlu0 %v5295_v1, %s11105_s21  ;;  %v5773_v1 = vshll.u32 %v13395_v6, 16  ;;  %vm15207_vm14 = vmmov %vm15206_vm1 }
 0x650   :  { %6896 = vmatprep.subr.bf16.mxu1 %v15189_v54  ;;  %v5770_v15 = vor.u32 %v5769_v59, %v5766_v58  ;;  %vm15208_vm6 = vmmov %vm15206_vm1 }
 0x651   :  { %6593 = vmatpush1.bf16.msra.mxu0 %v10853_v26  ;;  %vm15209_vm8 = vmmov %vm15206_vm1 }
 0x652   :  { %6594 = vmatprep.subr.bf16.mxu0 %v15189_v54  ;;  %6897 = vmatpush1.bf16.msra.mxu1 %v10866_v30  ;;  %v5779_v30 = vrot.slane %v5777_v25, 4  ;;  %vm15210_vm2 = vmmov %vm15206_vm1 }
 0x653   :  { %5416 = vrot.lane.b32.xlu1 %v5363_v22, %s11105_s21  ;;  %5394 = vrot.lane.b32.xlu0 %v5304_v45, %s11105_s21  ;;  %v6385_v45 = vrot.slane %v6383_v33, 4  ;;  %vm15216_vm3 = vmmov %vm15206_vm1 }
 0x654   :  { %6898 = vmatprep.subr.bf16.mxu1 %v15189_v54 }
 0x655   :  { %6595 = vmatpush1.bf16.msra.mxu0 %v10854_v35  ;;  %v13384_v20 = vsel %vm11633_vm12, %v6385_v45, %v6386_v13  ;;  %v5518_v13 = vld [vmem:[#allocation2 + $0x40] sm:$0x11] }
 0x656   :  { %6596 = vmatprep.subr.bf16.mxu0 %v15189_v54  ;;  %6899 = vmatpush1.bf16.msra.mxu1 %v10870_v24  ;;  %v9846_v34 = vcombine.low %v13379_v10, %v13384_v20  ;;  %v9847_v7 = vcombine.high %v13379_v10, %v13384_v20  ;;  %v10888_v10 = vld [vmem:[%s15057_s8 + $0x180] sm:$0xff]  }
 0x657   :  { %5418 = vrot.lane.b32.xlu1 %v5372_v14, %s11105_s21  ;;  %5420 = vrot.lane.b32.xlu0 %v5373_v47, %s11105_s21  ;;  %v5511_v14 = vld [vmem:[#allocation2 + $0x28] sm:$0x11] }
 0x658   :  { %6900 = vmatprep.subr.bf16.mxu1 %v15189_v54 }
 0x659   :  { %6597 = vmatpush1.bf16.msra.mxu0 %v10858_v50 }
 0x65a   :  { %6598 = vmatprep.subr.bf16.mxu0 %v15189_v54  ;;  %6901 = vmatpush1.bf16.msra.mxu1 %v10872_v52 }
 0x65b   :  { %6902 = vmatprep.subr.bf16.mxu1 %v15189_v54 }
 0x65d   :  { %6599 = vmatpush1.bf16.msra.mxu0 %v10862_v17 }
 0x65e   :  { %6600 = vmatprep.subr.bf16.mxu0 %v15189_v54  ;;  %6903 = vmatpush1.bf16.msra.mxu1 %v10874_v44  ;;  %v5783_v44 = vshll.u32 %v13397_v9, 16 }
 0x65f   :  { %6904 = vmatprep.subr.bf16.mxu1 %v15189_v54 }
 0x661   :  { %6601 = vmatpush1.bf16.msra.mxu0 %v10867_v31 }
 0x662   :  { %6602 = vmatprep.subr.bf16.mxu0 %v15189_v54  ;;  %6905 = vmatpush1.bf16.msra.mxu1 %v10876_v5 }
 0x663   :  { %7724 = vmatprep.subr.bf16.mxu1 %v15189_v54 }
 0x665   :  { %6603 = vmatpush1.bf16.msra.mxu0 %v10871_v27  ;;  %v5775_v27 = vrot.slane %v5773_v1, 5  ;;  %v5785_v1 = vrot.slane %v5783_v44, 5 }
 0x666   :  { %6604 = vmatprep.subr.bf16.mxu0 %v15189_v54 }
 0x669   :  { %6605 = vmatpush1.bf16.msra.mxu0 %v10875_v23 }
 0x66a   :  { %6606 = vmatprep.subr.bf16.mxu0 %v15189_v54 }
 0x66d   :  { %6607 = vmatpush1.bf16.msra.mxu0 %v10877_v16 }
 0x66e   :  { %7370 = vmatprep.subr.bf16.mxu0 %v15189_v54 }
 0x69d   :  { %v5379_v12 = vpop.permute.xlu1 %5378  ;;  %v5375_v39 = vpop.permute.xlu0 %5374 }
 0x69e   :  { %v5424_v51 = vrot.slane %v5379_v12, 4  ;;  %v5422_v8 = vrot.slane %v5375_v39, 4 }
 0x6a0   :  { %v5449_v29 = vsel %vm5446_vm11, %v5424_v51, %v5379_v12  ;;  %v5447_v40 = vsel %vm5446_vm11, %v5422_v8, %v5375_v39  ;;  %v5780_v12 = vor.u32 %v5779_v30, %v5775_v27 }
 0x6a1   :  { %v5512_v11 = vsel %vm13419_vm15, %v5449_v29, %v5511_v14  ;;  %v5500_v19 = vsel %vm13425_vm10, %v5447_v40, %v10959_v28  ;;  %v5377_v41 = vpop.permute.xlu1 %5376  ;;  %v5381_v43 = vpop.permute.xlu0 %5380  ;;  %v5525_v14 = vld [vmem:[#allocation2 + $0x58] sm:$0x11] }
 0x6a2   :  { %5513 = vst [vmem:[#allocation2 + $0x28] sm:$0x11] %v5512_v11  ;;  %5501 = vst [vmem:[#allocation2 + $0x18] sm:$0xff] %v5500_v19  ;;  %v5423_v22 = vrot.slane %v5377_v41, 4  ;;  %v5425_v35 = vrot.slane %v5381_v43, 4 }
 0x6a4   :  { %v5448_v47 = vsel %vm5446_vm11, %v5423_v22, %v5377_v41  ;;  %v5450_v50 = vsel %vm5446_vm11, %v5425_v35, %v5381_v43  ;;  %v5771_v41 = vrot.slane %v5770_v15, 4  ;;  %v5781_v43 = vrot.slane %v5780_v12, 4  ;;  %v5542_v12 = vld [vmem:[#allocation2 + $0xc0] sm:$0xff] }
 0x6a5   :  { %5505 = vst.msk [vmem:[#allocation2 + $0x20] sm:$0xff] %vm13441_vm5, %v5448_v47  ;;  %v5515_v17 = vsel %vm13425_vm10, %v5450_v50, %v5514_v3  ;;  %v5387_v62 = vpop.permute.xlu1 %5386  ;;  %v5385_v31 = vpop.permute.xlu0 %5384  ;;  %v5535_v50 = vld [vmem:[#allocation2 + $0xa8] sm:$0xff] }
 0x6a6   :  { %5569 = vst.msk [vmem:[#allocation2 + $0x24] sm:$0xf] %vm5563_vm13, %v15189_v54  ;;  %5516 = vst [vmem:[#allocation2 + $0x30] sm:$0xff] %v5515_v17  ;;  %v5428_v24 = vrot.slane %v5387_v62, 4  ;;  %v5427_v52 = vrot.slane %v5385_v31, 4 }
 0x6a8   :  { %v5453_v33 = vsel %vm5446_vm11, %v5428_v24, %v5387_v62  ;;  %v5452_v37 = vsel %vm5446_vm11, %v5427_v52, %v5385_v31  ;;  %v9796_v31 = vcombine.high %v13423_v53, %v13395_v6 }
 0x6a9   :  { %v5572_v45 = vld [vmem:[#allocation2 + $0x2c] sm:$0x1]  ;;  %v5565_v5 = vld [vmem:[#allocation2 + $0x1c] sm:$0xf]  ;;  %v5522_v38 = vsel %vm13425_vm10, %v5453_v33, %v5521_v0  ;;  %v5519_v55 = vsel %vm13419_vm15, %v5452_v37, %v5518_v13  ;;  %v5391_v46 = vpop.permute.xlu1 %5390  ;;  %v5383_v49 = vpop.permute.xlu0 %5382  ;;  %v9795_v33 = vcombine.low %v13423_v53, %v13395_v6  ;;  %v13504_v13 = vsel %vm11653_vm0, %v5771_v41, %v5775_v27 }
 0x6aa   :  { %v5573_v39 = vsel %vm13461_vm9, 0, %v5572_v45  ;;  %v5566_v51 = vsel %vm13453_vm4, 0, %v5565_v5  ;;  %5523 = vst [vmem:[#allocation2 + $0x48] sm:$0xff] %v5522_v38  ;;  %5520 = vst [vmem:[#allocation2 + $0x40] sm:$0x11] %v5519_v55  ;;  %v5430_v9 = vrot.slane %v5391_v46, 4  ;;  %v13514_v55 = vsel %vm11653_vm0, %v5781_v43, %v5785_v1 }
 0x6ab   :  { %v5426_v8 = vrot.slane %v5383_v49, 4  ;;  %5574 = vst [vmem:[#allocation2 + $0x2c] sm:$0x1] %v5573_v39  ;;  %5567 = vst [vmem:[#allocation2 + $0x1c] sm:$0xf] %v5566_v51 }
 0x6ac   :  { %v5455_v29 = vsel %vm5446_vm11, %v5430_v9, %v5391_v46  ;;  %v5539_v51 = vld [vmem:[#allocation2 + $0xb8] sm:$0x11] }
 0x6ad   :  { %v5451_v40 = vsel %vm5446_vm11, %v5426_v8, %v5383_v49  ;;  %v5526_v48 = vsel %vm13419_vm15, %v5455_v29, %v5525_v14  ;;  %v5399_v4 = vpop.permute.xlu1 %5398  ;;  %v5389_v11 = vpop.permute.xlu0 %5388  ;;  %v13482_v28 = vld [vmem:[#allocation2 + $0x20] sm:$0xff]  ;;  %v5575_v19 = vld [vmem:[#allocation2 + $0x34] sm:$0xf] }
 0x6ae   :  { %5517 = vst.msk [vmem:[#allocation2 + $0x38] sm:$0xff] %vm13441_vm5, %v5451_v40  ;;  %5527 = vst [vmem:[#allocation2 + $0x58] sm:$0x11] %v5526_v48  ;;  %v5434_v25 = vrot.slane %v5399_v4, 4  ;;  %v5429_v22 = vrot.slane %v5389_v11, 4  ;;  %v5576_v35 = vsel %vm13453_vm4, 0, %v5575_v19 }
 0x6af   :  { %5578 = vst.msk [vmem:[#allocation2 + $0x3c] sm:$0xf] %vm5563_vm13, %v15189_v54  ;;  %v5701_v47 = vshll.u32 %v13482_v28, 16  ;;  %5577 = vst [vmem:[#allocation2 + $0x34] sm:$0xf] %v5576_v35  ;;  %v5705_v3 = vshrl.u32 %v13482_v28, 16 }
 0x6b0   :  { %v5459_v58 = vsel %vm5446_vm11, %v5434_v25, %v5399_v4  ;;  %v5454_v17 = vsel %vm5446_vm11, %v5429_v22, %v5389_v11 }
 0x6b1   :  { %v13492_v62 = vrot.slane %v5701_v47, 5  ;;  %v5579_v59 = vld [vmem:[#allocation2 + $0x44] sm:$0x1]  ;;  %v5536_v30 = vsel %vm13425_vm10, %v5459_v58, %v5535_v50  ;;  %5524 = vst.msk [vmem:[#allocation2 + $0x50] sm:$0xff] %vm13441_vm5, %v5454_v17  ;;  %v5405_v24 = vpop.permute.xlu1 %5404  ;;  %v5403_v52 = vpop.permute.xlu0 %5402  ;;  %v5707_v0 = vrot.slane %v5705_v3, 4 }
 0x6b2   :  { %v5580_v37 = vsel %vm13461_vm9, 0, %v5579_v59  ;;  %5537 = vst [vmem:[#allocation2 + $0xa8] sm:$0xff] %v5536_v30  ;;  %5585 = vst.msk [vmem:[#allocation2 + $0x54] sm:$0xf] %vm5563_vm13, %v15189_v54  ;;  %v5437_v44 = vrot.slane %v5405_v24, 4  ;;  %v5436_v45 = vrot.slane %v5403_v52, 4 }
 0x6b3   :  { %v5627_v5 = vld [vmem:[#allocation2 + $0x18] sm:$0xff]  ;;  %v13510_v38 = vld [vmem:[#allocation2 + $0x28] sm:$0x11]  ;;  %5581 = vst [vmem:[#allocation2 + $0x44] sm:$0x1] %v5580_v37  ;;  %v5708_v8 = vor.u32 %v5707_v0, %v13492_v62 }
 0x6b4   :  { %v5692_v46 = vshrl.u32 %v5627_v5, 16  ;;  %v5695_v27 = vshll.u32 %v5627_v5, 16  ;;  %v13517_v49 = vcombine.high %v5627_v5, %v13482_v28  ;;  %v13520_v15 = vcombine.low %v5627_v5, %v13482_v28  ;;  %v5582_v29 = vld [vmem:[#allocation2 + $0x4c] sm:$0xf]  ;;  %v5546_v30 = vld [vmem:[#allocation2 + $0xd0] sm:$0x11] }
 0x6b5   :  { %v5462_v39 = vsel %vm5446_vm11, %v5437_v44, %v5405_v24  ;;  %v5461_v9 = vsel %vm5446_vm11, %v5436_v45, %v5403_v52  ;;  %v5711_v14 = vshll.u32 %v13510_v38, 16  ;;  %v5586_v40 = vld [vmem:[#allocation2 + $0x5c] sm:$0x1]  ;;  %v5409_v11 = vpop.permute.xlu1 %5408  ;;  %v5401_v19 = vpop.permute.xlu0 %5400  ;;  %v5709_v3 = vrot.slane %v5708_v8, 4  ;;  %v7483_v36 = vld [vmem:[#allocation2 + $0x18] sm:$0xee] }
 0x6b6   :  { %v5543_v48 = vsel %vm13425_vm10, %v5462_v39, %v5542_v12  ;;  %v5540_v4 = vsel %vm13419_vm15, %v5461_v9, %v5539_v51  ;;  %9813 = vmatprep.mubr.msk.bf16.mxu1 %vm15205_vm7, %v13517_v49  ;;  %v13532_v41 = vld [vmem:[#allocation2 + $0x38] sm:$0xff]  ;;  %v5694_v43 = vrot.slane %v5692_v46, 4  ;;  %v5697_v1 = vrot.slane %v5695_v27, 5  ;;  %v5629_v47 = vld [vmem:[#allocation2 + $0x30] sm:$0xff]  ;;  %vm15219_vm7 = vmmov %vm15206_vm1 }
 0x6b7   :  { %v5587_v25 = vsel %vm13461_vm9, 0, %v5586_v40  ;;  %5544 = vst [vmem:[#allocation2 + $0xc0] sm:$0xff] %v5543_v48  ;;  %5541 = vst [vmem:[#allocation2 + $0xb8] sm:$0x11] %v5540_v4  ;;  %v5439_v22 = vrot.slane %v5409_v11, 4  ;;  %v5435_v35 = vrot.slane %v5401_v19, 4  ;;  %6301 = vmatmul.mubr.bf16.gmra.mrb[168].mxu1 %v13520_v15  ;;  %v13538_v17 = vcombine.high %v5629_v47, %v13532_v41 }
 0x6b8   :  { %5588 = vst [vmem:[#allocation2 + $0x5c] sm:$0x1] %v5587_v25  ;;  %v5716_v50 = vshrl.u32 %v5629_v47, 16  ;;  %v5719_v58 = vshll.u32 %v5629_v47, 16  ;;  %v5698_v59 = vor.u32 %v5697_v1, %v5694_v43  ;;  %v5713_v0 = vrot.slane %v5711_v14, 5  ;;  %v5549_v43 = vld [vmem:[#allocation2 + $0xd8] sm:$0xff] }
 0x6b9   :  { %v5464_v24 = vsel %vm5446_vm11, %v5439_v22, %v5409_v11  ;;  %v5460_v52 = vsel %vm5446_vm11, %v5435_v35, %v5401_v19  ;;  %v13543_v37 = vcombine.low %v5629_v47, %v13532_v41  ;;  %v5596_v44 = vld [vmem:[#allocation2 + $0xac] sm:$0xf]  ;;  %v5407_v5 = vpop.permute.xlu1 %5406  ;;  %9814 = vmatprep.mubr.msk.bf16.mxu1 %vm15206_vm1, %v13538_v17  ;;  %v5411_v46 = vpop.permute.xlu0 %5410  ;;  %v5583_v12 = vsel %vm13453_vm4, 0, %v5582_v29  ;;  %v13568_v35 = vld [vmem:[#allocation2 + $0x50] sm:$0xff] }
 0x6ba   :  { %v5547_v45 = vsel %vm13419_vm15, %v5464_v24, %v5546_v30  ;;  %5538 = vst.msk [vmem:[#allocation2 + $0xb0] sm:$0xff] %vm13441_vm5, %v5460_v52  ;;  %v5699_v27 = vrot.slane %v5698_v59, 4  ;;  %v5718_v39 = vrot.slane %v5716_v50, 4  ;;  %v5597_v51 = vsel %vm13453_vm4, 0, %v5596_v44  ;;  %5584 = vst [vmem:[#allocation2 + $0x4c] sm:$0xf] %v5583_v12 }
 0x6bb   :  { %5548 = vst [vmem:[#allocation2 + $0xd0] sm:$0x11] %v5547_v45  ;;  %5599 = vst.msk [vmem:[#allocation2 + $0xb4] sm:$0xf] %vm5563_vm13, %v15189_v54  ;;  %v5438_v9 = vrot.slane %v5407_v5, 4  ;;  %v5440_v8 = vrot.slane %v5411_v46, 4  ;;  %v5714_v14 = vsel %vm11653_vm0, %v5709_v3, %v5713_v0 }
 0x6bc   :  { %5598 = vst [vmem:[#allocation2 + $0xac] sm:$0xf] %v5597_v51  ;;  %v5704_v40 = vsel %vm11653_vm0, %v5699_v27, %v13492_v62  ;;  %v13562_v29 = vld [vmem:[#allocation2 + $0x40] sm:$0x11]  ;;  %v5721_v48 = vrot.slane %v5719_v58, 5  ;;  %v5725_v4 = vshll.u32 %v13532_v41, 16 }
 0x6bd   :  { %v5729_v11 = vshrl.u32 %v13532_v41, 16  ;;  %v5463_v19 = vsel %vm5446_vm11, %v5438_v9, %v5407_v5  ;;  %v5465_v1 = vsel %vm5446_vm11, %v5440_v8, %v5411_v46  ;;  %v9757_v25 = vcombine.high %v5704_v40, %v5714_v14  ;;  %v5413_v3 = vpop.permute.xlu1 %5412  ;;  %v5415_v50 = vpop.permute.xlu0 %5414  ;;  %v5553_v51 = vld [vmem:[#allocation2 + $0xe8] sm:$0x11] }
 0x6be   :  { %v9756_v22 = vcombine.low %v5704_v40, %v5714_v14  ;;  %v5600_v47 = vld [vmem:[#allocation2 + $0xbc] sm:$0x1]  ;;  %5545 = vst.msk [vmem:[#allocation2 + $0xc8] sm:$0xff] %vm13441_vm5, %v5463_v19  ;;  %v5550_v62 = vsel %vm13425_vm10, %v5465_v1, %v5549_v43  ;;  %v5722_v58 = vor.u32 %v5721_v48, %v5718_v39  ;;  %v5727_v59 = vrot.slane %v5725_v4, 5 }
 0x6bf   :  { %v5731_v30 = vrot.slane %v5729_v11, 4  ;;  %v5601_v24 = vsel %vm13461_vm9, 0, %v5600_v47  ;;  %5606 = vst.msk [vmem:[#allocation2 + $0xcc] sm:$0xf] %vm5563_vm13, %v15189_v54  ;;  %5551 = vst [vmem:[#allocation2 + $0xd8] sm:$0xff] %v5550_v62  ;;  %v5441_v52 = vrot.slane %v5413_v3, 4  ;;  %9780 = vmatprep.mubr.msk.bf16.mxu0 %vm15207_vm14, %v9757_v25  ;;  %6309 = vmatmul.mubr.bf16.gmra.mrb[172].mxu1 %v13543_v37 }
 0x6c0   :  { %v5442_v0 = vrot.slane %v5415_v50, 4  ;;  %v5735_v44 = vshll.u32 %v13562_v29, 16  ;;  %v13581_v45 = vld [vmem:[#allocation2 + $0x58] sm:$0x11]  ;;  %5602 = vst [vmem:[#allocation2 + $0xbc] sm:$0x1] %v5601_v24  ;;  %6054 = vmatmul.mubr.bf16.gmra.mrb[184].mxu0 %v9756_v22  ;;  %vm15220_vm14 = vmmov %vm15206_vm1 }
 0x6c1   :  { %v5723_v5 = vrot.slane %v5722_v58, 4  ;;  %v5732_v46 = vor.u32 %v5731_v30, %v5727_v59  ;;  %v5749_v27 = vshll.u32 %v13568_v35, 16  ;;  %v5753_v12 = vshrl.u32 %v13568_v35, 16  ;;  %v5631_v4 = vld [vmem:[#allocation2 + $0x48] sm:$0xff]  ;;  %v5397_v11 = vpop.permute.xlu1 %5396  ;;  %v5393_v19 = vpop.permute.xlu0 %5392 }
 0x6c2   :  { %v5466_v39 = vsel %vm5446_vm11, %v5441_v52, %v5413_v3  ;;  %v5467_v9 = vsel %vm5446_vm11, %v5442_v0, %v5415_v50  ;;  %v5737_v8 = vrot.slane %v5735_v44, 5  ;;  %v5759_v14 = vshll.u32 %v13581_v45, 16  ;;  %v5607_v40 = vld [vmem:[#allocation2 + $0xd4] sm:$0x1] }
 0x6c3   :  { %5552 = vst.msk [vmem:[#allocation2 + $0xe0] sm:$0xff] %vm13441_vm5, %v5466_v39  ;;  %v5554_v48 = vsel %vm13419_vm15, %v5467_v9, %v5553_v51  ;;  %v5728_v43 = vsel %vm11653_vm0, %v5723_v5, %v5727_v59  ;;  %v5733_v1 = vrot.slane %v5732_v46, 4  ;;  %v13594_v25 = vrot.slane %v5749_v27, 5  ;;  %v13610_v5 = vld [vmem:[#allocation2 + $0xa8] sm:$0xff]  ;;  %v5532_v46 = vld [vmem:[#allocation2 + $0x70] sm:$0x11] }
 0x6c4   :  { %v5608_v22 = vsel %vm13461_vm9, 0, %v5607_v40  ;;  %5613 = vst.msk [vmem:[#allocation2 + $0xe4] sm:$0xf] %vm5563_vm13, %v15189_v54  ;;  %5555 = vst [vmem:[#allocation2 + $0xe8] sm:$0x11] %v5554_v48  ;;  %v5740_v47 = vshrl.u32 %v5631_v4, 16  ;;  %v13601_v3 = vcombine.high %v5631_v4, %v13568_v35  ;;  %v13606_v30 = vcombine.low %v5631_v4, %v13568_v35 }
 0x6c5   :  { %v5743_v62 = vshll.u32 %v5631_v4, 16  ;;  %5609 = vst [vmem:[#allocation2 + $0xd4] sm:$0x1] %v5608_v22  ;;  %v5433_v50 = vrot.slane %v5397_v11, 4  ;;  %v5431_v58 = vrot.slane %v5393_v19, 4  ;;  %v5738_v59 = vsel %vm11653_vm0, %v5733_v1, %v5737_v8  ;;  %v5528_v39 = vld [vmem:[#allocation2 + $0x60] sm:$0xff]  ;;  %v5417_v9 = vpop.permute.xlu1 %5416  ;;  %v5395_v8 = vpop.permute.xlu0 %5394 }
 0x6c6   :  { %9815 = vmatprep.mubr.msk.bf16.mxu1 %vm15208_vm6, %v13601_v3  ;;  %v9759_v24 = vcombine.high %v5728_v43, %v5738_v59  ;;  %v9758_v52 = vcombine.low %v5728_v43, %v5738_v59  ;;  %v5742_v0 = vrot.slane %v5740_v47, 4  ;;  %v5755_v40 = vrot.slane %v5753_v12, 4  ;;  %v13614_v4 = vld [vmem:[#allocation2 + $0xb0] sm:$0xff]  ;;  %vm15221_vm6 = vmmov %vm15206_vm1 }
 0x6c7   :  { %v5745_v44 = vrot.slane %v5743_v62, 5  ;;  %v5458_v27 = vsel %vm5446_vm11, %v5433_v50, %v5397_v11  ;;  %v5456_v51 = vsel %vm5446_vm11, %v5431_v58, %v5393_v19  ;;  %v5761_v48 = vrot.slane %v5759_v14, 5  ;;  %6317 = vmatmul.mubr.bf16.gmra.mrb[176].mxu1 %v13606_v30  ;;  %v5603_v11 = vld [vmem:[#allocation2 + $0xc4] sm:$0xf]  ;;  %v5556_v50 = vld [vmem:[#allocation2 + $0xf0] sm:$0xff] }
 0x6c8   :  { %v5533_v1 = vsel %vm13419_vm15, %v5458_v27, %v5532_v46  ;;  %v5529_v43 = vsel %vm13425_vm10, %v5456_v51, %v5528_v39  ;;  %9781 = vmatprep.mubr.msk.bf16.mxu0 %vm15209_vm8, %v9759_v24  ;;  %v5443_v22 = vrot.slane %v5417_v9, 4  ;;  %v5432_v47 = vrot.slane %v5395_v8, 4  ;;  %9816 = vmatprep.mubr.msk.bf16.mxu1 %vm15210_vm2, %v9796_v31  ;;  %vm15222_vm8 = vmmov %vm15206_vm1 }
 0x6c9   :  { %5534 = vst [vmem:[#allocation2 + $0x70] sm:$0x11] %v5533_v1  ;;  %5530 = vst [vmem:[#allocation2 + $0x60] sm:$0xff] %v5529_v43  ;;  %6062 = vmatmul.mubr.bf16.gmra.mrb[188].mxu0 %v9758_v52  ;;  %v5746_v12 = vor.u32 %v5745_v44, %v5742_v0  ;;  %v5756_v14 = vor.u32 %v5755_v40, %v13594_v25  ;;  %v5788_v19 = vshrl.u32 %v13610_v5, 16  ;;  %v5791_v62 = vshll.u32 %v13610_v5, 16  ;;  %v5419_v27 = vpop.permute.xlu1 %5418  ;;  %v5421_v39 = vpop.permute.xlu0 %5420  ;;  %v13647_v40 = vld [vmem:[#allocation2 + $0xc8] sm:$0xff] }
 0x6ca   :  { %v5468_v58 = vsel %vm5446_vm11, %v5443_v22, %v5417_v9  ;;  %v5457_v59 = vsel %vm5446_vm11, %v5432_v47, %v5395_v8  ;;  %v13633_v24 = vcombine.high %v13610_v5, %v13614_v4  ;;  %v9763_v52 = vcombine.high %v13504_v13, %v13514_v55  ;;  %v13654_v47 = vld [vmem:[#allocation2 + $0xb8] sm:$0x11]  ;;  %vm15223_vm2 = vmmov %vm15206_vm1 }
 0x6cb   :  { %v5614_v0 = vld [vmem:[#allocation2 + $0xec] sm:$0x1]  ;;  %v5557_v31 = vsel %vm13425_vm10, %v5468_v58, %v5556_v50  ;;  %5531 = vst.msk [vmem:[#allocation2 + $0x68] sm:$0xff] %vm13441_vm5, %v5457_v59  ;;  %v5747_v44 = vrot.slane %v5746_v12, 4  ;;  %v5757_v46 = vrot.slane %v5756_v14, 4  ;;  %v5604_v51 = vsel %vm13453_vm4, 0, %v5603_v11  ;;  %vm15211_vm10 = vmmov %vm15206_vm1 }
 0x6cc   :  { %v5615_v9 = vsel %vm13461_vm9, 0, %v5614_v0  ;;  %5558 = vst [vmem:[#allocation2 + $0xf0] sm:$0xff] %v5557_v31  ;;  %5592 = vst.msk [vmem:[#allocation2 + $0x6c] sm:$0xf] %vm5563_vm13, %v15189_v54  ;;  %v5444_v8 = vrot.slane %v5419_v27, 4  ;;  %v5445_v57 = vrot.slane %v5421_v39, 4 }
 0x6cd   :  { %5605 = vst [vmem:[#allocation2 + $0xc4] sm:$0xf] %v5604_v51  ;;  %v5790_v1 = vrot.slane %v5788_v19, 4  ;;  %5616 = vst [vmem:[#allocation2 + $0xec] sm:$0x1] %v5615_v9  ;;  %v5752_v43 = vsel %vm11653_vm0, %v5747_v44, %v13594_v25  ;;  %v5762_v22 = vsel %vm11653_vm0, %v5757_v46, %v5761_v48  ;;  %v5793_v11 = vrot.slane %v5791_v62, 5 }
 0x6ce   :  { %v5797_v12 = vshll.u32 %v13614_v4, 16  ;;  %v5610_v14 = vld [vmem:[#allocation2 + $0xdc] sm:$0xf]  ;;  %v9761_v50 = vcombine.high %v5752_v43, %v5762_v22  ;;  %v5469_v58 = vsel %vm5446_vm11, %v5444_v8, %v5419_v27  ;;  %v5560_v59 = vld [vmem:[#allocation2 + $0x100] sm:$0x11]  ;;  %v5470_v19 = vsel %vm5446_vm11, %v5445_v57, %v5421_v39  ;;  %vm15212_vm11 = vmmov %vm15206_vm1 }
 0x6cf   :  { %v9760_v0 = vcombine.low %v5752_v43, %v5762_v22  ;;  %5559 = vst.msk [vmem:[#allocation2 + $0xf8] sm:$0xff] %vm13441_vm5, %v5469_v58  ;;  %v5561_v25 = vsel %vm13419_vm15, %v5470_v19, %v5560_v59  ;;  %v5794_v48 = vor.u32 %v5793_v11, %v5790_v1  ;;  %v5801_v62 = vshrl.u32 %v13614_v4, 16  ;;  %6325 = vmatmul.mubr.bf16.gmra.mrb[180].mxu1 %v9795_v33  ;;  %vm15213_vm15 = vmmov %vm15206_vm1  ;;  %v13680_v6 = vld [vmem:[#allocation2 + $0xd0] sm:$0x11]  ;;  %v13682_v43 = vld [vmem:[#allocation2 + $0xe0] sm:$0xff] }
 0x6d0   :  { %v5799_v31 = vrot.slane %v5797_v12, 5  ;;  %v5593_v44 = vld [vmem:[#allocation2 + $0x74] sm:$0x1]  ;;  %9782 = vmatprep.mubr.msk.bf16.mxu0 %vm15211_vm10, %v9761_v50  ;;  %5620 = vst.msk [vmem:[#allocation2 + $0xfc] sm:$0xf] %vm5563_vm13, %v15189_v54  ;;  %v5807_v26 = vshll.u32 %v13654_v47, 16  ;;  %9817 = vmatprep.mubr.msk.bf16.mxu1 %vm15212_vm11, %v13633_v24  ;;  %v13686_v22 = vcombine.low %v13610_v5, %v13614_v4  ;;  %v9762_v11 = vcombine.low %v13504_v13, %v13514_v55  ;;  %vm15214_vm5 = vmmov %vm15206_vm1 }
 0x6d1   :  { %5562 = vst [vmem:[#allocation2 + $0x100] sm:$0x11] %v5561_v25  ;;  %v5611_v2 = vsel %vm13453_vm4, 0, %v5610_v14  ;;  %v5821_v46 = vshll.u32 %v13647_v40, 16  ;;  %v5825_v27 = vshrl.u32 %v13647_v40, 16  ;;  %v5594_v39 = vsel %vm13461_vm9, 0, %v5593_v44  ;;  %6070 = vmatmul.mubr.bf16.gmra.mrb[192].mxu0 %v9760_v0  ;;  %vm15215_vm13 = vmmov %vm15206_vm1 }
 0x6d2   :  { %v5795_v51 = vrot.slane %v5794_v48, 4  ;;  %v5803_v9 = vrot.slane %v5801_v62, 4  ;;  %5612 = vst [vmem:[#allocation2 + $0xdc] sm:$0xf] %v5611_v2  ;;  %5595 = vst [vmem:[#allocation2 + $0x74] sm:$0x1] %v5594_v39  ;;  %9783 = vmatprep.mubr.msk.bf16.mxu0 %vm15213_vm15, %v9763_v52 }
 0x6d3   :  { %v5823_v53 = vrot.slane %v5821_v46, 5  ;;  %v5827_v33 = vrot.slane %v5825_v27, 4  ;;  %v5809_v1 = vrot.slane %v5807_v26, 5  ;;  %v5831_v59 = vshll.u32 %v13680_v6, 16  ;;  %v13823_v20 = vld [vmem:[#allocation2 + $0x68] sm:$0xff]  ;;  %vm15224_vm10 = vmmov %vm15206_vm1 }
 0x6d4   :  { %v5637_v8 = vld [vmem:[#allocation2 + $0xc0] sm:$0xff]  ;;  %v5804_v57 = vor.u32 %v5803_v9, %v5799_v31  ;;  %v5800_v52 = vsel %vm11653_vm0, %v5795_v51, %v5799_v31  ;;  %v5845_v25 = vshll.u32 %v13682_v43, 16  ;;  %v5849_v48 = vshrl.u32 %v13682_v43, 16  ;;  %v13705_v51 = vld [vmem:[#allocation2 + $0xe8] sm:$0x11]  ;;  %vm15225_vm11 = vmmov %vm15206_vm1 }
 0x6d5   :  { %v5812_v12 = vshrl.u32 %v5637_v8, 16  ;;  %v5815_v14 = vshll.u32 %v5637_v8, 16  ;;  %v5828_v58 = vor.u32 %v5827_v33, %v5823_v53  ;;  %v13696_v62 = vcombine.high %v5637_v8, %v13647_v40  ;;  %vm15226_vm15 = vmmov %vm15206_vm1 }
 0x6d6   :  { %v5805_v50 = vrot.slane %v5804_v57, 4  ;;  %v5833_v39 = vrot.slane %v5831_v59, 5  ;;  %v5847_v9 = vrot.slane %v5845_v25, 5  ;;  %v5851_v33 = vrot.slane %v5849_v48, 4  ;;  %v5589_v57 = vld [vmem:[#allocation2 + $0x64] sm:$0xf] }
 0x6d7   :  { %v5814_v19 = vrot.slane %v5812_v12, 4  ;;  %v5817_v0 = vrot.slane %v5815_v14, 5  ;;  %6333 = vmatmul.mubr.bf16.gmra.mrb[184].mxu1 %v13686_v22  ;;  %v5829_v27 = vrot.slane %v5828_v58, 4  ;;  %v5855_v14 = vshll.u32 %v13705_v51, 16  ;;  %v6362_v25 = vld [vmem:[#allocation2 + $0xa8] sm:$0xee] }
 0x6d8   :  { %v5621_v5 = vld [vmem:[#allocation2 + $0x104] sm:$0x1]  ;;  %v5810_v13 = vsel %vm11653_vm0, %v5805_v50, %v5809_v1  ;;  %9818 = vmatprep.mubr.msk.bf16.mxu1 %vm15214_vm5, %v13696_v62  ;;  %v5590_v59 = vsel %vm13453_vm4, 0, %v5589_v57  ;;  %v5617_v48 = vld [vmem:[#allocation2 + $0xf4] sm:$0xf]  ;;  %vm15227_vm5 = vmmov %vm15206_vm1 }
 0x6d9   :  { %v5622_v55 = vsel %vm13461_vm9, 0, %v5621_v5  ;;  %v9765_v31 = vcombine.high %v5800_v52, %v5810_v13  ;;  %v5639_v44 = vld [vmem:[#allocation2 + $0xd8] sm:$0xff]  ;;  %v5818_v26 = vor.u32 %v5817_v0, %v5814_v19  ;;  %6078 = vmatmul.mubr.bf16.gmra.mrb[196].mxu0 %v9762_v11  ;;  %v5834_v50 = vsel %vm11653_vm0, %v5829_v27, %v5833_v39  ;;  %5591 = vst [vmem:[#allocation2 + $0x64] sm:$0xf] %v5590_v59  ;;  %vm15217_vm9 = vmmov %vm15206_vm1  ;;  %v6363_v27 = vld [vmem:[#allocation2 + $0xc0] sm:$0xee] }
 0x6da   :  { %5623 = vst [vmem:[#allocation2 + $0x104] sm:$0x1] %v5622_v55  ;;  %v5836_v2 = vshrl.u32 %v5639_v44, 16  ;;  %v5839_v46 = vshll.u32 %v5639_v44, 16  ;;  %v13716_v19 = vcombine.low %v5637_v8, %v13647_v40  ;;  %v5852_v0 = vor.u32 %v5851_v33, %v5847_v9 }
 0x6db   :  { %9784 = vmatprep.mubr.msk.bf16.mxu0 %vm15215_vm13, %v9765_v31  ;;  %v5819_v16 = vrot.slane %v5818_v26, 4  ;;  %v9764_v5 = vcombine.low %v5800_v52, %v5810_v13  ;;  %v13719_v55 = vcombine.high %v5639_v44, %v13682_v43  ;;  %v5857_v26 = vrot.slane %v5855_v14, 5  ;;  %v6364_v14 = vld [vmem:[#allocation2 + $0xd8] sm:$0xee]  ;;  %vm15228_vm13 = vmmov %vm15206_vm1 }
 0x6dc   :  { %v5838_v1 = vrot.slane %v5836_v2, 4  ;;  %v5841_v12 = vrot.slane %v5839_v46, 5  ;;  %v6418_v2 = vrot.slane %v13614_v4, 5  ;;  %v9825_v8 = vrot.slane %v6362_v25, 9 }
 0x6dd   :  { %v5824_v11 = vsel %vm11653_vm0, %v5819_v16, %v5823_v53  ;;  %v6421_v46 = vrot.slane %v13654_v47, 5  ;;  %v5618_v52 = vsel %vm13453_vm4, 0, %v5617_v48  ;;  %v5853_v13 = vrot.slane %v5852_v0, 4  ;;  %vm15218_vm4 = vmmov %vm15206_vm1 }
 0x6de   :  { %v5842_v58 = vor.u32 %v5841_v12, %v5838_v1  ;;  %v9767_v53 = vcombine.high %v5824_v11, %v5834_v50  ;;  %5619 = vst [vmem:[#allocation2 + $0xf4] sm:$0xf] %v5618_v52  ;;  %v6420_v39 = vrot.slane %v6418_v2, 4  ;;  %v6425_v33 = vrot.slane %v13647_v40, 5 }
 0x6df   :  { %6341 = vmatmul.mubr.bf16.gmra.mrb[188].mxu1 %v13716_v19  ;;  %v5858_v4 = vsel %vm11653_vm0, %v5853_v13, %v5857_v26  ;;  %v13736_v47 = vsel %vm11633_vm12, %v9825_v8, %v6418_v2  ;;  %v9826_v57 = vrot.slane %v6363_v27, 9  ;;  %v6428_v1 = vrot.slane %v13680_v6, 5  ;;  %v10885_v27 = vld [vmem:[%s15057_s8 + $0x170] sm:$0xff]  }
 0x6e0   :  { %v5843_v31 = vrot.slane %v5842_v58, 4  ;;  %9819 = vmatprep.mubr.msk.bf16.mxu1 %vm15216_vm3, %v13719_v55  ;;  %v13740_v23 = vsel %vm11633_vm12, %v6420_v39, %v6421_v46  ;;  %v13744_v12 = vcombine.low %v5639_v44, %v13682_v43  ;;  %v9766_v58 = vcombine.low %v5824_v11, %v5834_v50  ;;  %v10886_v39 = vld [vmem:[%s15057_s8 + $0x178] sm:$0xff]   ;;  %vm15229_vm3 = vmmov %vm15206_vm1 }
 0x6e1   :  { %6086 = vmatmul.mubr.bf16.gmra.mrb[200].mxu0 %v9764_v5  ;;  %v9856_v40 = vcombine.low %v13736_v47, %v13740_v23  ;;  %v6427_v59 = vrot.slane %v6425_v33, 4  ;;  %v6432_v25 = vrot.slane %v13682_v43, 5  ;;  %v13756_v6 = vsel %vm11633_vm12, %v9826_v57, %v6425_v33  ;;  %v6709_v57 = vld [vmem:[#allocation2 + $0x60] sm:$0xff] }
 0x6e2   :  { %9785 = vmatprep.mubr.msk.bf16.mxu0 %vm15217_vm9, %v9767_v53  ;;  %v5848_v16 = vsel %vm11653_vm0, %v5843_v31, %v5847_v9  ;;  %v9857_v9 = vcombine.high %v13736_v47, %v13740_v23  ;;  %v9827_v48 = vrot.slane %v6364_v14, 9  ;;  %v6435_v11 = vrot.slane %v13705_v51, 5  ;;  %v6358_v31 = vld [vmem:[#allocation2 + $0x18] sm:$0xee]  ;;  %v10883_v51 = vld [vmem:[%s15057_s8 + $0x168] sm:$0xff]   ;;  %vm15230_vm9 = vmmov %vm15206_vm1 }
 0x6e3   :  { %v9769_v0 = vcombine.high %v5848_v16, %v5858_v4  ;;  %v13760_v44 = vsel %vm11633_vm12, %v6427_v59, %v6428_v1  ;;  %v9768_v8 = vcombine.low %v5848_v16, %v5858_v4  ;;  %v6390_v46 = vrot.slane %v13482_v28, 5  ;;  %v6359_v4 = vld [vmem:[#allocation2 + $0x30] sm:$0xee]  ;;  %v13831_v14 = vld [vmem:[#allocation2 + $0x70] sm:$0x11] }
 0x6e4   :  { %v9859_v43 = vcombine.high %v13756_v6, %v13760_v44  ;;  %v9858_v50 = vcombine.low %v13756_v6, %v13760_v44  ;;  %v13770_v5 = vsel %vm11633_vm12, %v9827_v48, %v6432_v25  ;;  %v9821_v52 = vrot.slane %v6358_v31, 9  ;;  %v7484_v47 = vld [vmem:[#allocation2 + $0x30] sm:$0xee]  ;;  %v14190_v23 = vld [vmem:[#allocation2 + $0x100] sm:$0x11] }
 0x6e5   :  { %v6393_v13 = vrot.slane %v13510_v38, 5  ;;  %v6392_v28 = vrot.slane %v6390_v46, 4  ;;  %v10878_v38 = vld [vmem:[%s15057_s8 + $0x120] sm:$0xff]   ;;  %v6400_v33 = vrot.slane %v13562_v29, 5  ;;  %v7101_v59 = vshll.u32 %v6709_v57, 16 }
 0x6e6   :  { %v6404_v48 = vrot.slane %v13568_v35, 5  ;;  %v6407_v35 = vrot.slane %v13581_v45, 5  ;;  %v10892_v45 = vld [vmem:[%s15057_s8 + $0x190] sm:$0xff]  }
 0x6e7   :  { %6349 = vmatmul.mubr.bf16.gmra.mrb[192].mxu1 %v13744_v12 }
 0x6e8   :  { %9922 = vmatprep.mubr.msk.bf16.mxu1 %vm15218_vm4, %v13517_v49  ;;  %v6434_v49 = vrot.slane %v6432_v25, 4  ;;  %vm15231_vm4 = vmmov %vm15206_vm1 }
 0x6e9   :  { %6094 = vmatmul.mubr.bf16.gmra.mrb[204].mxu0 %v9766_v58  ;;  %v7098_v58 = vshrl.u32 %v6709_v57, 16 }
 0x6ea   :  { %9786 = vmatprep.mubr.msk.bf16.mxu0 %vm15219_vm7, %v9769_v0  ;;  %v13774_v53 = vsel %vm11633_vm12, %v6434_v49, %v6435_v11  ;;  %v9904_v0 = vcombine.high %v6709_v57, %v13823_v20  ;;  %v10889_v11 = vld [vmem:[%s15057_s8 + $0x188] sm:$0xff]   ;;  %v7107_v49 = vshll.u32 %v13823_v20, 16  ;;  %vm15232_vm7 = vmmov %vm15206_vm1 }
 0x6eb   :  { %v9861_v26 = vcombine.high %v13770_v5, %v13774_v53  ;;  %v9860_v2 = vcombine.low %v13770_v5, %v13774_v53  ;;  %v14075_v53 = vld [vmem:[#allocation2 + $0xb0] sm:$0xff] }
 0x6ef   :  { %6921 = vmatmul.mubr.bf16.vlgmr.msra.gmra.mrb[196].mxu1 %v13520_v15  ;;  %v6391_v15 = vsel %vm11633_vm12, %v9821_v52, %v6390_v46  ;;  %v7103_v46 = vrot.slane %v7101_v59, 5  ;;  %v7111_v52 = vshrl.u32 %v13823_v20, 16 }
 0x6f0   :  { %9923 = vmatprep.mubr.msk.bf16.mxu1 %vm15206_vm1, %v13538_v17  ;;  %7725 = vmatpush1.bf16.msra.mxu1 %v10883_v51  ;;  %v6394_v17 = vsel %vm11633_vm12, %v6392_v28, %v6393_v13  ;;  %v6360_v51 = vld [vmem:[#allocation2 + $0x48] sm:$0xee]  ;;  %v7109_v13 = vrot.slane %v7107_v49, 5  ;;  %v10897_v49 = vld [vmem:[%s15057_s8 + $0x158] sm:$0xff]  }
 0x6f1   :  { %6102 = vmatmul.mubr.bf16.gmra.mrb[208].mxu0 %v9768_v8  ;;  %7726 = vmatprep.subr.bf16.mxu1 %v15189_v54  ;;  %v9849_v16 = vcombine.high %v6391_v15, %v6394_v17  ;;  %v9848_v29 = vcombine.low %v6391_v15, %v6394_v17  ;;  %v7100_v8 = vrot.slane %v7098_v58, 4  ;;  %v7113_v28 = vrot.slane %v7111_v52, 4  ;;  %v8623_v58 = vld [vmem:[#allocation2 + $0xf0] sm:$0xee] }
 0x6f2   :  { %9871 = vmatprep.mubr.msk.bf16.mxu0 %vm15220_vm14, %v9847_v7  ;;  %v6397_v7 = vrot.slane %v13532_v41, 5  ;;  %v10880_v41 = vld [vmem:[%s15057_s8 + $0x128] sm:$0xff]   ;;  %v9823_v15 = vrot.slane %v6360_v51, 9  ;;  %v6406_v17 = vrot.slane %v6404_v48, 4  ;;  %vm15235_vm14 = vmmov %vm15206_vm1 }
 0x6f4   :  { %7727 = vmatpush1.bf16.msra.mxu1 %v10885_v27  ;;  %v6399_v1 = vrot.slane %v6397_v7, 4  ;;  %v7117_v27 = vshll.u32 %v13831_v14, 16 }
 0x6f5   :  { %7728 = vmatprep.subr.bf16.mxu1 %v15189_v54 }
 0x6f7   :  { %6929 = vmatmul.mubr.bf16.gmra.mrb[200].mxu1 %v13543_v37  ;;  %v9822_v37 = vrot.slane %v6359_v4, 9 }
 0x6f8   :  { %9924 = vmatprep.mubr.msk.bf16.mxu1 %vm15221_vm6, %v13601_v3  ;;  %7729 = vmatpush1.bf16.msra.mxu1 %v10886_v39  ;;  %v10882_v3 = vld [vmem:[%s15057_s8 + $0x130] sm:$0xff]   ;;  %v7119_v39 = vrot.slane %v7117_v27, 5  ;;  %vm15236_vm6 = vmmov %vm15206_vm1 }
 0x6f9   :  { %6623 = vmatmul.mubr.bf16.vlgmr.msra.gmra.mrb[212].mxu0 %v9846_v34  ;;  %7730 = vmatprep.subr.bf16.mxu1 %v15189_v54  ;;  %v6401_v34 = vsel %vm11633_vm12, %v6399_v1, %v6400_v33  ;;  %v6398_v25 = vsel %vm11633_vm12, %v9822_v37, %v6397_v7  ;;  %v7114_v7 = vor.u32 %v7113_v28, %v7109_v13 }
 0x6fa   :  { %9872 = vmatprep.mubr.msk.bf16.mxu0 %vm15222_vm8, %v9849_v16  ;;  %7371 = vmatpush1.bf16.msra.mxu0 %v10878_v38  ;;  %v9851_v31 = vcombine.high %v6398_v25, %v6401_v34  ;;  %v7104_v38 = vor.u32 %v7103_v46, %v7100_v8  ;;  %v6408_v16 = vsel %vm11633_vm12, %v6406_v17, %v6407_v35  ;;  %v7001_v35 = vld [vmem:[#allocation2 + $0x18] sm:$0xff]  ;;  %v13943_v17 = vld [vmem:[#allocation2 + $0x28] sm:$0x11]  ;;  %vm15237_vm8 = vmmov %vm15206_vm1 }
 0x6fb   :  { %7372 = vmatprep.subr.bf16.mxu0 %v15189_v54  ;;  %v9903_v33 = vcombine.low %v6709_v57, %v13823_v20  ;;  %v7115_v37 = vrot.slane %v7114_v7, 4  ;;  %v9850_v1 = vcombine.low %v6398_v25, %v6401_v34  ;;  %v10893_v25 = vld [vmem:[%s15057_s8 + $0x150] sm:$0xff]  }
 0x6fc   :  { %7731 = vmatpush1.bf16.msra.mxu1 %v10888_v10  ;;  %v7105_v4 = vrot.slane %v7104_v38, 4  ;;  %v6405_v10 = vsel %vm11633_vm12, %v9823_v15, %v6404_v48  ;;  %v7029_v38 = vshll.u32 %v7001_v35, 16 }
 0x6fd   :  { %7732 = vmatprep.subr.bf16.mxu1 %v15189_v54  ;;  %v13876_v34 = vsel %vm11653_vm0, %v7115_v37, %v7119_v39  ;;  %v9852_v48 = vcombine.low %v6405_v10, %v6408_v16 }
 0x6fe   :  { %7373 = vmatpush1.bf16.msra.mxu0 %v10880_v41  ;;  %v10887_v41 = vld [vmem:[%s15057_s8 + $0x140] sm:$0xff]   ;;  %v13871_v57 = vsel %vm11653_vm0, %v7105_v4, %v7109_v13 }
 0x6ff   :  { %7374 = vmatprep.subr.bf16.mxu0 %v15189_v54  ;;  %6937 = vmatmul.mubr.bf16.gmra.mrb[204].mxu1 %v13606_v30  ;;  %v10884_v30 = vld [vmem:[%s15057_s8 + $0x138] sm:$0xff]  }
 0x700   :  { %9925 = vmatprep.mubr.msk.bf16.mxu1 %vm15223_vm2, %v9904_v0  ;;  %7733 = vmatpush1.bf16.msra.mxu1 %v10889_v11  ;;  %v10890_v0 = vld [vmem:[%s15057_s8 + $0x148] sm:$0xff]   ;;  %vm15238_vm2 = vmmov %vm15206_vm1 }
 0x701   :  { %6631 = vmatmul.mubr.bf16.gmra.mrb[216].mxu0 %v9848_v29  ;;  %7734 = vmatprep.subr.bf16.mxu1 %v15189_v54  ;;  %v10894_v29 = vld [vmem:[%s15057_s8 + $0x198] sm:$0xff]   ;;  %v10898_v11 = vld [vmem:[%s15057_s8 + $0x1a8] sm:$0xff]  }
 0x702   :  { %9873 = vmatprep.mubr.msk.bf16.mxu0 %vm15224_vm10, %v9851_v31  ;;  %7375 = vmatpush1.bf16.msra.mxu0 %v10882_v3  ;;  %v9853_v3 = vcombine.high %v6405_v10, %v6408_v16  ;;  %v13915_v31 = vld [vmem:[#allocation2 + $0xf8] sm:$0xff]  ;;  %v7520_v10 = vrot.slane %v13943_v17, 5  ;;  %vm15239_vm10 = vmmov %vm15206_vm1 }
 0x703   :  { %7376 = vmatprep.subr.bf16.mxu0 %v15189_v54  ;;  %v7203_v46 = vshll.u32 %v13915_v31, 16  ;;  %v7207_v52 = vshrl.u32 %v13915_v31, 16 }
 0x704   :  { %7735 = vmatpush1.bf16.msra.mxu1 %v10892_v45  ;;  %v7026_v45 = vshrl.u32 %v7001_v35, 16 }
 0x705   :  { %7736 = vmatprep.subr.bf16.mxu1 %v15189_v54  ;;  %v7205_v56 = vrot.slane %v7203_v46, 5 }
 0x706   :  { %7377 = vmatpush1.bf16.msra.mxu0 %v10884_v30 }
 0x707   :  { %7378 = vmatprep.subr.bf16.mxu0 %v15189_v54  ;;  %6945 = vmatmul.mubr.bf16.gmra.mrb[208].mxu1 %v9903_v33  ;;  %v9981_v33 = vrot.slane %v7483_v36, 9 }
 0x708   :  { %9926 = vmatprep.mubr.msk.bf16.mxu1 %vm15225_vm11, %v13633_v24  ;;  %7737 = vmatpush1.bf16.msra.mxu1 %v10894_v29  ;;  %v10896_v24 = vld [vmem:[%s15057_s8 + $0x1a0] sm:$0xff]   ;;  %vm15240_vm11 = vmmov %vm15206_vm1 }
 0x709   :  { %6639 = vmatmul.mubr.bf16.gmra.mrb[220].mxu0 %v9850_v1  ;;  %7738 = vmatprep.subr.bf16.mxu1 %v15189_v54 }
 0x70a   :  { %9874 = vmatprep.mubr.msk.bf16.mxu0 %vm15226_vm15, %v9853_v3  ;;  %7379 = vmatpush1.bf16.msra.mxu0 %v10887_v41  ;;  %vm15241_vm15 = vmmov %vm15206_vm1 }
 0x70b   :  { %7380 = vmatprep.subr.bf16.mxu0 %v15189_v54 }
 0x70c   :  { %7739 = vmatpush1.bf16.msra.mxu1 %v10896_v24  ;;  %v7028_v24 = vrot.slane %v7026_v45, 4 }
 0x70d   :  { %7740 = vmatprep.subr.bf16.mxu1 %v15189_v54 }
 0x70e   :  { %7381 = vmatpush1.bf16.msra.mxu0 %v10890_v0  ;;  %v13949_v0 = vld [vmem:[#allocation2 + $0x38] sm:$0xff] }
 0x70f   :  { %7382 = vmatprep.subr.bf16.mxu0 %v15189_v54  ;;  %6953 = vmatmul.mubr.bf16.gmra.mrb[212].mxu1 %v13686_v22  ;;  %v13913_v22 = vld [vmem:[#allocation2 + $0xf0] sm:$0xff]  ;;  %v7524_v46 = vrot.slane %v13949_v0, 5  ;;  %v7059_v36 = vshll.u32 %v13949_v0, 16 }
 0x710   :  { %9927 = vmatprep.mubr.msk.bf16.mxu1 %vm15227_vm5, %v13696_v62  ;;  %7741 = vmatpush1.bf16.msra.mxu1 %v10898_v11  ;;  %v10899_v62 = vld [vmem:[%s15057_s8 + $0x160] sm:$0xff]   ;;  %v7194_v51 = vshrl.u32 %v13913_v22, 16  ;;  %v7197_v8 = vshll.u32 %v13913_v22, 16  ;;  %v9912_v1 = vcombine.high %v13913_v22, %v13915_v31  ;;  %v9911_v45 = vcombine.low %v13913_v22, %v13915_v31  ;;  %vm15251_vm5 = vmmov %vm15206_vm1 }
 0x711   :  { %6647 = vmatmul.mubr.bf16.gmra.mrb[224].mxu0 %v9852_v48  ;;  %8504 = vmatprep.subr.bf16.mxu1 %v15189_v54 }
 0x712   :  { %9875 = vmatprep.mubr.msk.bf16.mxu0 %vm15228_vm13, %v9855_v32  ;;  %7383 = vmatpush1.bf16.msra.mxu0 %v10893_v25  ;;  %v13920_v32 = vld [vmem:[#allocation2 + $0x100] sm:$0x11]  ;;  %v7196_v30 = vrot.slane %v7194_v51, 4  ;;  %v7199_v28 = vrot.slane %v7197_v8, 5  ;;  %v7031_v25 = vrot.slane %v7029_v38, 5  ;;  %vm15254_vm13 = vmmov %vm15206_vm1 }
 0x713   :  { %7384 = vmatprep.subr.bf16.mxu0 %v15189_v54  ;;  %v7213_v13 = vshll.u32 %v13920_v32, 16  ;;  %v13981_v8 = vld [vmem:[#allocation2 + $0x40] sm:$0x11] }
 0x714   :  { %v13934_v27 = vpop.f32.mrb[164].mxu1  ;;  %v7200_v7 = vor.u32 %v7199_v28, %v7196_v30 }
 0x715   :  { %v6296_v15 = vpop.f32.mrb[165].mxu1  ;;  %v7215_v4 = vrot.slane %v7213_v13, 5  ;;  %v7032_v13 = vor.u32 %v7031_v25, %v7028_v24  ;;  %v14003_v24 = vld [vmem:[#allocation2 + $0xc0] sm:$0xff]  ;;  %v14009_v25 = vld [vmem:[#allocation2 + $0x58] sm:$0x11] }
 0x716   :  { %7385 = vmatpush1.bf16.msra.mxu0 %v10897_v49  ;;  %v7201_v37 = vrot.slane %v7200_v7, 4  ;;  %v13959_v49 = vld [vmem:[#allocation2 + $0x30] sm:$0xff]  ;;  %v9982_v7 = vrot.slane %v7484_v47, 9  ;;  %v7093_v5 = vshll.u32 %v14009_v25, 16 }
 0x717   :  { %7386 = vmatprep.subr.bf16.mxu0 %v15189_v54  ;;  %6961 = vmatmul.mubr.bf16.gmra.mrb[216].mxu1 %v13716_v19  ;;  %v7002_v19 = vld [vmem:[#allocation2 + $0x20] sm:$0xff]  ;;  %v7053_v30 = vshll.u32 %v13959_v49, 16  ;;  %v13986_v15 = vld [vmem:[#allocation2 + $0x50] sm:$0xff] }
 0x718   :  { %9928 = vmatprep.mubr.msk.bf16.mxu1 %vm15229_vm3, %v13719_v55  ;;  %v13941_v55 = vpop.f32.mrb[166].mxu1  ;;  %v7517_v16 = vrot.slane %v7002_v19, 5  ;;  %v7035_v41 = vshll.u32 %v7002_v19, 16  ;;  %v7039_v29 = vshrl.u32 %v7002_v19, 16  ;;  %v13953_v48 = vsel %vm11653_vm0, %v7201_v37, %v7205_v56  ;;  %v13998_v37 = vld [vmem:[#allocation2 + $0x48] sm:$0xff]  ;;  %vm15257_vm3 = vmmov %vm15206_vm1 }
 0x719   :  { %6655 = vmatmul.mubr.bf16.gmra.mrb[228].mxu0 %v9854_v42  ;;  %v7209_v42 = vrot.slane %v7207_v52, 4  ;;  %v6299_v39 = vpop.f32.mrb[167].mxu1  ;;  %v7050_v19 = vshrl.u32 %v13959_v49, 16  ;;  %v7531_v22 = vrot.slane %v13986_v15, 5  ;;  %v7074_v6 = vshrl.u32 %v13998_v37, 16 }
 0x71a   :  { %9876 = vmatprep.mubr.msk.bf16.mxu0 %vm15230_vm9, %v9857_v9  ;;  %7387 = vmatpush1.bf16.msra.mxu0 %v10899_v62  ;;  %v7519_v11 = vrot.slane %v7517_v16, 4  ;;  %v13971_v62 = vsel %vm11633_vm12, %v9981_v33, %v7517_v16  ;;  %v7041_v52 = vrot.slane %v7039_v29, 4  ;;  %v7527_v39 = vrot.slane %v13981_v8, 5  ;;  %vm15258_vm9 = vmmov %vm15206_vm1 }
 0x71b   :  { %8022 = vmatprep.subr.bf16.mxu0 %v15189_v54  ;;  %v7210_v9 = vor.u32 %v7209_v42, %v7205_v56  ;;  %v7063_v56 = vshrl.u32 %v13949_v0, 16  ;;  %v7055_v29 = vrot.slane %v7053_v30, 5  ;;  %v7077_v44 = vshll.u32 %v13998_v37, 16 }
 0x71c   :  { %v13979_v51 = vsel %vm11633_vm12, %v7519_v11, %v7520_v10  ;;  %v7052_v10 = vrot.slane %v7050_v19, 4  ;;  %v7533_v19 = vrot.slane %v7531_v22, 4  ;;  %v7534_v30 = vrot.slane %v14009_v25, 5  ;;  %v7013_v25 = vld [vmem:[#allocation2 + $0xa8] sm:$0xff] }
 0x71d   :  { %v7211_v3 = vrot.slane %v7210_v9, 4  ;;  %v10007_v38 = vcombine.low %v13971_v62, %v13979_v51  ;;  %v10008_v9 = vcombine.high %v13971_v62, %v13979_v51  ;;  %v7065_v11 = vrot.slane %v7063_v56, 4 }
 0x71e   :  { %v7087_v51 = vshrl.u32 %v13986_v15, 16  ;;  %v7056_v56 = vor.u32 %v7055_v29, %v7052_v10  ;;  %v14059_v10 = vsel %vm11633_vm12, %v7533_v19, %v7534_v30  ;;  %v14172_v29 = vld [vmem:[#allocation2 + $0xe8] sm:$0x11] }
 0x71f   :  { %6969 = vmatmul.mubr.bf16.gmra.mrb[220].mxu1 %v13744_v12  ;;  %v13963_v12 = vsel %vm11653_vm0, %v7211_v3, %v7215_v4  ;;  %v6047_v35 = vpop.f32.mrb[180].mxu0  ;;  %v7526_v4 = vrot.slane %v7524_v46, 4  ;;  %v14001_v3 = vld [vmem:[#allocation2 + $0xc8] sm:$0xff] }
 0x720   :  { %9929 = vmatprep.mubr.msk.bf16.mxu1 %vm15231_vm4, %v9912_v1  ;;  %v6049_v28 = vpop.f32.mrb[181].mxu0  ;;  %v7033_v1 = vrot.slane %v7032_v13, 4  ;;  %v14012_v62 = vadd.f32 %v13934_v27, %v6047_v35  ;;  %v14031_v35 = vsel %vm11633_vm12, %v9982_v7, %v7524_v46  ;;  %v7076_v46 = vrot.slane %v7074_v6, 4  ;;  %v10902_v27 = vld [vmem:[%s15057_s8 + $0x1c0] sm:$0xff]   ;;  %vm15261_vm4 = vmmov %vm15206_vm1 }
 0x721   :  { %6663 = vmatmul.mubr.bf16.gmra.mrb[232].mxu0 %v9856_v40  ;;  %v6050_v42 = vpop.f32.mrb[182].mxu0  ;;  %v7079_v7 = vrot.slane %v7077_v44, 5  ;;  %v7486_v44 = vld [vmem:[#allocation2 + $0x60] sm:$0xee] }
 0x722   :  { %9877 = vmatprep.mubr.msk.bf16.mxu0 %vm15232_vm7, %v9859_v43  ;;  %v7037_v43 = vrot.slane %v7035_v41, 5  ;;  %v6052_v16 = vpop.f32.mrb[183].mxu0  ;;  %v7045_v41 = vshll.u32 %v13943_v17, 16  ;;  %v7061_v17 = vrot.slane %v7059_v36, 5  ;;  %15233 = vst [vmem:[#allocation20_spill] sm:$0xff] %v14012_v62  ;;  %v14015_v47 = vadd.f32 %v13941_v55, %v6050_v42  ;;  %vm15262_vm7 = vmmov %vm15206_vm1 }
 0x723   :  { %v7485_v36 = vld [vmem:[#allocation2 + $0x48] sm:$0xee]  ;;  %v14043_v16 = vld [vmem:[#allocation2 + $0xd8] sm:$0xff]  ;;  %v9984_v30 = vrot.slane %v7486_v44, 9  ;;  %v14116_v44 = vld [vmem:[#allocation2 + $0x70] sm:$0x11] }
 0x724   :  { %v7042_v33 = vor.u32 %v7041_v52, %v7037_v43  ;;  %15234 = vst [vmem:[#allocation21_spill] sm:$0xff] %v14015_v47  ;;  %v7047_v13 = vrot.slane %v7045_v41, 5  ;;  %v14040_v28 = vsel %vm11653_vm0, %v7033_v1, %v7037_v43  ;;  %v7066_v42 = vor.u32 %v7065_v11, %v7061_v17  ;;  %v14054_v41 = vld [vmem:[#allocation2 + $0xe0] sm:$0xff] }
 0x725   :  { %v9983_v1 = vrot.slane %v7485_v36, 9  ;;  %v7057_v11 = vrot.slane %v7056_v56, 4  ;;  %v7541_v36 = vrot.slane %v13831_v14, 5  ;;  %v15082_v14 = vrot.slane %v14075_v53, 5 }
 0x726   :  { %v7043_v52 = vrot.slane %v7042_v33, 4  ;;  %v14067_v6 = vrot.slane %v7066_v42, 4 }
 0x727   :  { %6977 = vmatmul.mubr.bf16.gmra.mrb[224].mxu1 %v9911_v45  ;;  %v7069_v45 = vshll.u32 %v13981_v8, 16  ;;  %v14092_v42 = vsel %vm11653_vm0, %v7057_v11, %v7061_v17  ;;  %v8619_v17 = vld [vmem:[#allocation2 + $0x60] sm:$0xee]  ;;  %v10906_v11 = vld [vmem:[%s15057_s8 + $0x208] sm:$0xff]  }
 0x728   :  { %10032 = vmatprep.mubr.msk.bf16.mxu1 %vm15206_vm1, %v10008_v9  ;;  %v7048_v33 = vsel %vm11653_vm0, %v7043_v52, %v7047_v13  ;;  %v7080_v52 = vor.u32 %v7079_v7, %v7076_v46 }
 0x729   :  { %6671 = vmatmul.mubr.bf16.gmra.mrb[236].mxu0 %v9858_v50  ;;  %v7083_v50 = vshll.u32 %v13986_v15, 16  ;;  %v9949_v8 = vcombine.high %v14040_v28, %v7048_v33 }
 0x72a   :  { %9878 = vmatprep.mubr.msk.bf16.mxu0 %vm15235_vm14, %v9861_v26  ;;  %v14035_v26 = vsel %vm11633_vm12, %v7526_v4, %v7527_v39  ;;  %v7089_v39 = vrot.slane %v7087_v51, 4  ;;  %v10903_v4 = vld [vmem:[%s15057_s8 + $0x1f8] sm:$0xff]   ;;  %v7538_v51 = vrot.slane %v13823_v20, 5  ;;  %v14085_v20 = vsel %vm11633_vm12, %v9983_v1, %v7531_v22  ;;  %v10900_v22 = vld [vmem:[%s15057_s8 + $0x1b0] sm:$0xff]   ;;  %vm15263_vm14 = vmmov %vm15206_vm1 }
 0x72b   :  { %v14045_v9 = vrot.slane %v7083_v50, 5  ;;  %v10010_v43 = vcombine.high %v14031_v35, %v14035_v26  ;;  %v10009_v19 = vcombine.low %v14031_v35, %v14035_v26  ;;  %v10012_v56 = vcombine.high %v14085_v20, %v14059_v10  ;;  %v14102_v35 = vld [vmem:[#allocation2 + $0xb8] sm:$0x11] }
 0x72c   :  { %v7540_v26 = vrot.slane %v7538_v51, 4  ;;  %v7081_v46 = vrot.slane %v7080_v52, 4  ;;  %v7125_v1 = vshll.u32 %v7013_v25, 16 }
 0x72d   :  { %v7090_v13 = vor.u32 %v7089_v39, %v14045_v9  ;;  %v7095_v39 = vrot.slane %v7093_v5, 5  ;;  %v7547_v5 = vrot.slane %v15082_v14, 4  ;;  %v7155_v14 = vshll.u32 %v14001_v3, 16 }
 0x72f   :  { %7757 = vmatmul.mubr.bf16.vlgmr.msra.gmra.mrb[228].mxu1 %v10007_v38  ;;  %v7071_v38 = vrot.slane %v7069_v45, 5  ;;  %v14105_v7 = vrot.slane %v7090_v13, 4  ;;  %v14130_v13 = vld [vmem:[#allocation2 + $0xa8] sm:$0xee] }
 0x730   :  { %10033 = vmatprep.mubr.msk.bf16.mxu1 %vm15236_vm6, %v10010_v43  ;;  %8505 = vmatpush1.bf16.msra.mxu1 %v10903_v4  ;;  %v9948_v4 = vcombine.low %v14040_v28, %v7048_v33  ;;  %v10011_v43 = vcombine.low %v14085_v20, %v14059_v10  ;;  %v14122_v28 = vsel %vm11633_vm12, %v9984_v30, %v7538_v51  ;;  %v7548_v10 = vrot.slane %v14102_v35, 5  ;;  %vm15264_vm6 = vmmov %vm15206_vm1 }
 0x731   :  { %6679 = vmatmul.mubr.bf16.gmra.mrb[240].mxu0 %v9860_v2  ;;  %v10905_v2 = vld [vmem:[%s15057_s8 + $0x200] sm:$0xff]   ;;  %8506 = vmatprep.subr.bf16.mxu1 %v15189_v54  ;;  %v14097_v45 = vsel %vm11653_vm0, %v14067_v6, %v7071_v38  ;;  %v14114_v38 = vld [vmem:[#allocation2 + $0x68] sm:$0xff]  ;;  %v14126_v33 = vsel %vm11633_vm12, %v7540_v26, %v7541_v36  ;;  %v10144_v51 = vrot.slane %v8619_v17, 9  ;;  %v14140_v20 = vsel %vm11653_vm0, %v7081_v46, %v14045_v9  ;;  %v10901_v36 = vld [vmem:[%s15057_s8 + $0x1b8] sm:$0xff]  }
 0x732   :  { %9973 = vmatprep.mubr.msk.bf16.mxu0 %vm15237_vm8, %v9949_v8  ;;  %v7122_v8 = vshrl.u32 %v7013_v25, 16  ;;  %v9951_v52 = vcombine.high %v14092_v42, %v14097_v45  ;;  %v14145_v30 = vsel %vm11653_vm0, %v14105_v7, %v7095_v39  ;;  %v14150_v25 = vld [vmem:[#allocation2 + $0xd0] sm:$0x11]  ;;  %v9950_v26 = vcombine.low %v14092_v42, %v14097_v45  ;;  %vm15266_vm8 = vmmov %vm15206_vm1 }
 0x733   :  { %v10014_v9 = vcombine.high %v14122_v28, %v14126_v33  ;;  %v14161_v39 = vrot.slane %v7125_v1, 5  ;;  %v10908_v17 = vld [vmem:[%s15057_s8 + $0x210] sm:$0xff]   ;;  %v14169_v45 = vsel %vm11633_vm12, %v7547_v5, %v7548_v10  ;;  %v9953_v50 = vcombine.high %v14140_v20, %v14145_v30 }
 0x734   :  { %8507 = vmatpush1.bf16.msra.mxu1 %v10905_v2  ;;  %v7131_v2 = vshll.u32 %v14075_v53, 16  ;;  %v14159_v46 = vrot.slane %v7122_v8, 4  ;;  %v14184_v10 = vrot.slane %v14001_v3, 5  ;;  %v10013_v47 = vcombine.low %v14122_v28, %v14126_v33 }
 0x735   :  { %8508 = vmatprep.subr.bf16.mxu1 %v15189_v54  ;;  %v9952_v28 = vcombine.low %v14140_v20, %v14145_v30 }
 0x736   :  { %v14186_v5 = vrot.slane %v7131_v2, 5  ;;  %v7128_v2 = vor.u32 %v14161_v39, %v14159_v46  ;;  %v14213_v46 = vrot.slane %v14054_v41, 5  ;;  %v8689_v39 = vrot.slane %v14172_v29, 5 }
 0x737   :  { %7765 = vmatmul.mubr.bf16.gmra.mrb[232].mxu1 %v10009_v19  ;;  %v7135_v19 = vshrl.u32 %v14075_v53, 16 }
 0x738   :  { %10034 = vmatprep.mubr.msk.bf16.mxu1 %vm15238_vm2, %v10012_v56  ;;  %v8665_v56 = vrot.slane %v14114_v38, 5  ;;  %8509 = vmatpush1.bf16.msra.mxu1 %v10906_v11  ;;  %v8622_v11 = vld [vmem:[#allocation2 + $0xd8] sm:$0xee]  ;;  %vm15268_vm2 = vmmov %vm15206_vm1 }
 0x739   :  { %7403 = vmatmul.mubr.bf16.vlgmr.msra.gmra.mrb[244].mxu0 %v9948_v4  ;;  %v8621_v4 = vld [vmem:[#allocation2 + $0xc0] sm:$0xee]  ;;  %8510 = vmatprep.subr.bf16.mxu1 %v15189_v54  ;;  %v14188_v55 = vrot.slane %v7135_v19, 4  ;;  %v10909_v19 = vld [vmem:[%s15057_s8 + $0x218] sm:$0xff]  }
 0x73a   :  { %9974 = vmatprep.mubr.msk.bf16.mxu0 %vm15239_vm10, %v9951_v52  ;;  %8023 = vmatpush1.bf16.msra.mxu0 %v10900_v22  ;;  %v8668_v22 = vrot.slane %v14116_v44, 5  ;;  %v14176_v8 = vsel %vm11633_vm12, %v10144_v51, %v8665_v56  ;;  %v8667_v1 = vrot.slane %v8665_v56, 4  ;;  %v14193_v56 = vld [vmem:[#allocation2 + $0xf8] sm:$0xff]  ;;  %v10146_v63 = vrot.slane %v8621_v4, 9  ;;  %vm15269_vm10 = vmmov %vm15206_vm1 }
 0x73b   :  { %8024 = vmatprep.subr.bf16.mxu0 %v15189_v54  ;;  %v15081_v4 = vrot.slane %v14184_v10, 4  ;;  %v8693_v59 = vrot.slane %v14193_v56, 5  ;;  %v7146_v51 = vshrl.u32 %v14003_v24, 16 }
 0x73c   :  { %v14197_v40 = vsel %vm11633_vm12, %v8667_v1, %v8668_v22  ;;  %8511 = vmatpush1.bf16.msra.mxu1 %v10908_v17  ;;  %v8682_v22 = vrot.slane %v14150_v25, 5  ;;  %v10147_v1 = vrot.slane %v8622_v11, 9  ;;  %v7138_v17 = vor.u32 %v14188_v55, %v14186_v5  ;;  %v10904_v11 = vld [vmem:[%s15057_s8 + $0x1c8] sm:$0xff]  }
 0x73d   :  { %8512 = vmatprep.subr.bf16.mxu1 %v15189_v54  ;;  %v8695_v52 = vrot.slane %v8693_v59, 4  ;;  %v7159_v55 = vshrl.u32 %v14001_v3, 16  ;;  %v15289_v61 = vcombine.high %v14176_v8, %v14197_v40 }
 0x73e   :  { %8025 = vmatpush1.bf16.msra.mxu0 %v10901_v36  ;;  %v10148_v36 = vrot.slane %v8623_v58, 9  ;;  %v14235_v58 = vsel %vm11633_vm12, %v15081_v4, %v8682_v22  ;;  %v14247_v22 = vld [vmem:[#allocation2 + $0xd0] sm:$0x11]  ;;  %v7488_v4 = vld [vmem:[#allocation2 + $0xc0] sm:$0xee]  ;;  %v7139_v30 = vrot.slane %v7138_v17, 4 }
 0x73f   :  { %8026 = vmatprep.subr.bf16.mxu0 %v15189_v54  ;;  %7773 = vmatmul.mubr.bf16.gmra.mrb[236].mxu1 %v10011_v43  ;;  %v8696_v43 = vrot.slane %v14190_v23, 5  ;;  %15243 = vst [vmem:[#allocation19_spill] sm:$0xff] %v14235_v58  ;;  %v9986_v33 = vrot.slane %v7488_v4, 9  ;;  %v15252_v4 = vshll.u32 %v14102_v35, 16  ;;  %v7161_v58 = vrot.slane %v7159_v55, 4 }
 0x740   :  { %10035 = vmatprep.mubr.msk.bf16.mxu1 %vm15240_vm11, %v10014_v9  ;;  %8513 = vmatpush1.bf16.msra.mxu1 %v10909_v19  ;;  %v14255_v19 = vsel %vm11633_vm12, %v10147_v1, %v14213_v46  ;;  %v14315_v35 = vld [vmem:[#allocation2 + $0xe8] sm:$0x11]  ;;  %vm15270_vm11 = vmmov %vm15206_vm1 }
 0x741   :  { %7411 = vmatmul.mubr.bf16.gmra.mrb[248].mxu0 %v9950_v26  ;;  %v14229_v26 = vsel %vm11633_vm12, %v10146_v63, %v14184_v10  ;;  %8514 = vmatprep.subr.bf16.mxu1 %v15189_v54  ;;  %15244 = vst [vmem:[#allocation22_spill] sm:$0xff] %v14255_v19  ;;  %v15245_v63 = vrot.slane %v14213_v46, 4  ;;  %v14273_v1 = vsel %vm11633_vm12, %v8695_v52, %v8696_v43  ;;  %v10913_v43 = vld [vmem:[%s15057_s8 + $0x228] sm:$0xff]   ;;  %v7157_v52 = vrot.slane %v7155_v14, 5  ;;  %v10914_v14 = vld [vmem:[%s15057_s8 + $0x230] sm:$0xff]  }
 0x742   :  { %9975 = vmatprep.mubr.msk.bf16.mxu0 %vm15241_vm15, %v9953_v50  ;;  %8027 = vmatpush1.bf16.msra.mxu0 %v10902_v27  ;;  %15242 = vst [vmem:[#allocation18_spill] sm:$0xff] %v14229_v26  ;;  %v7149_v27 = vshll.u32 %v14003_v24, 16  ;;  %v10911_v50 = vld [vmem:[%s15057_s8 + $0x220] sm:$0xff]   ;;  %v14269_v26 = vsel %vm11633_vm12, %v10148_v36, %v8693_v59  ;;  %15248 = vst [vmem:[#allocation25_spill] sm:$0xff] %v14273_v1  ;;  %v10907_v59 = vld [vmem:[%s15057_s8 + $0x1d0] sm:$0xff]   ;;  %v7143_v36 = vrot.slane %v15252_v4, 5 }
 0x743   :  { %8028 = vmatprep.subr.bf16.mxu0 %v15189_v54  ;;  %v14261_v9 = vsel %vm11633_vm12, %v15245_v63, %v8689_v39  ;;  %15247 = vst [vmem:[#allocation24_spill] sm:$0xff] %v14269_v26  ;;  %v15249_v39 = vrot.slane %v14075_v53, 5  ;;  %v15250_v63 = vrot.slane %v14130_v13, 9  ;;  %v7555_v13 = vrot.slane %v14247_v22, 5  ;;  %vm15271_vm15 = vmmov %vm15206_vm1 }
 0x744   :  { %15246 = vst [vmem:[#allocation23_spill] sm:$0xff] %v14261_v9  ;;  %8515 = vmatpush1.bf16.msra.mxu1 %v10911_v50  ;;  %v15253_v50 = vcombine.high %v13871_v57, %v13876_v34  ;;  %v14324_v17 = vsel %vm11633_vm12, %v9986_v33, %v14184_v10  ;;  %v15256_v26 = vcombine.low %v13871_v57, %v13876_v34 }
 0x745   :  { %v7546_v18 = vsel %vm11633_vm12, %v15250_v63, %v15249_v39  ;;  %v7148_v39 = vrot.slane %v7146_v51, 4  ;;  %v7151_v63 = vrot.slane %v7149_v27, 5  ;;  %8516 = vmatprep.subr.bf16.mxu1 %v15189_v54  ;;  %v15255_v51 = vrot.slane %v14184_v10, 4 }
 0x746   :  { %8029 = vmatpush1.bf16.msra.mxu0 %v10904_v11  ;;  %v10016_v53 = vcombine.high %v7546_v18, %v14169_v45  ;;  %v7129_v11 = vrot.slane %v7128_v2, 4  ;;  %v7173_v10 = vshll.u32 %v14043_v16, 16  ;;  %v10015_v33 = vcombine.low %v7546_v18, %v14169_v45  ;;  %v8620_v18 = vld [vmem:[#allocation2 + $0x78] sm:$0xee] }
 0x747   :  { %8030 = vmatprep.subr.bf16.mxu0 %v15189_v54  ;;  %7781 = vmatmul.mubr.bf16.gmra.mrb[240].mxu1 %v10013_v47  ;;  %v10910_v47 = vld [vmem:[%s15057_s8 + $0x1d8] sm:$0xff]   ;;  %v14313_v2 = vsel %vm11633_vm12, %v15255_v51, %v7555_v13  ;;  %v7152_v27 = vor.u32 %v7151_v63, %v7148_v39  ;;  %v7162_v13 = vor.u32 %v7161_v58, %v7157_v52  ;;  %v14351_v39 = vld [vmem:[#allocation2 + $0x88] sm:$0x11]  ;;  %v7179_v63 = vshll.u32 %v14054_v41, 16 }
 0x748   :  { %10036 = vmatprep.mubr.msk.bf16.mxu1 %vm15251_vm5, %v10016_v53  ;;  %8517 = vmatpush1.bf16.msra.mxu1 %v10913_v43  ;;  %v14329_v55 = vsel %vm11653_vm0, %v7129_v11, %v14186_v5  ;;  %v7489_v53 = vld [vmem:[#allocation2 + $0xd8] sm:$0xee]  ;;  %v7170_v43 = vshrl.u32 %v14043_v16, 16  ;;  %v10912_v5 = vld [vmem:[%s15057_s8 + $0x1e0] sm:$0xff]   ;;  %v7562_v11 = vrot.slane %v14315_v35, 5  ;;  %v8675_v4 = vrot.slane %v14351_v39, 5  ;;  %vm15272_vm5 = vmmov %vm15206_vm1 }
 0x749   :  { %7419 = vmatmul.mubr.bf16.gmra.mrb[252].mxu0 %v9952_v28  ;;  %8518 = vmatprep.subr.bf16.mxu1 %v15189_v54  ;;  %v14335_v28 = vsel %vm11653_vm0, %v7139_v30, %v7143_v36  ;;  %v10916_v58 = vld [vmem:[%s15057_s8 + $0x238] sm:$0xff]   ;;  %v14349_v36 = vld [vmem:[#allocation2 + $0x80] sm:$0xff]  ;;  %v7183_v30 = vshrl.u32 %v14054_v41, 16  ;;  %v10145_v1 = vrot.slane %v8620_v18, 9  ;;  %v7175_v19 = vrot.slane %v7173_v10, 5 }
 0x74a   :  { %9976 = vmatprep.mubr.msk.bf16.mxu0 %vm15254_vm13, %v15253_v50  ;;  %8031 = vmatpush1.bf16.msra.mxu0 %v10907_v59  ;;  %v7165_v59 = vshll.u32 %v14247_v22, 16  ;;  %v10018_v22 = vcombine.high %v14324_v17, %v14313_v2  ;;  %v8672_v45 = vrot.slane %v14349_v36, 5  ;;  %v9957_v50 = vcombine.high %v14329_v55, %v14335_v28  ;;  %vm15273_vm13 = vmmov %vm15206_vm1 }
 0x74b   :  { %8032 = vmatprep.subr.bf16.mxu0 %v15189_v54  ;;  %v7172_v9 = vrot.slane %v7170_v43, 4  ;;  %v7181_v57 = vrot.slane %v7179_v63, 5  ;;  %v7185_v34 = vrot.slane %v7183_v30, 4  ;;  %v15260_v10 = vmov 0.0|0.0  }
 0x74c   :  { %8519 = vmatpush1.bf16.msra.mxu1 %v10914_v14  ;;  %v7167_v51 = vrot.slane %v7165_v59, 5  ;;  %v14365_v14 = vrot.slane %v7162_v13, 4  ;;  %v8674_v62 = vrot.slane %v8672_v45, 4  ;;  %v14373_v59 = vsel %vm11633_vm12, %v10145_v1, %v8672_v45  ;;  %v14412_v45 = vld [vmem:[#allocation2 + $0x40] sm:$0x11] }
 0x74d   :  { %8520 = vmatprep.subr.bf16.mxu1 %v15189_v54  ;;  %v7566_v30 = vrot.slane %v13915_v31, 5  ;;  %v9956_v18 = vcombine.low %v14329_v55, %v14335_v28 }
 0x74e   :  { %8033 = vmatpush1.bf16.msra.mxu0 %v10910_v47  ;;  %v7153_v47 = vrot.slane %v7152_v27, 4  ;;  %v10915_v27 = vld [vmem:[%s15057_s8 + $0x1e8] sm:$0xff]  }
 0x74f   :  { %8034 = vmatprep.subr.bf16.mxu0 %v15189_v54  ;;  %7789 = vmatmul.mubr.bf16.gmra.mrb[244].mxu1 %v10015_v33  ;;  %v9987_v33 = vrot.slane %v7489_v53, 9  ;;  %v15259_v53 = vrot.slane %v14213_v46, 4  ;;  %v7568_v28 = vrot.slane %v7566_v30, 4 }
 0x750   :  { %10037 = vmatprep.mubr.msk.bf16.mxu1 %vm15257_vm3, %v10018_v22  ;;  %8521 = vmatpush1.bf16.msra.mxu1 %v10916_v58  ;;  %v7176_v22 = vor.u32 %v7175_v19, %v7172_v9  ;;  %v7189_v58 = vshll.u32 %v14315_v35, 16  ;;  %v7490_v19 = vld [vmem:[#allocation2 + $0xf0] sm:$0xee]  ;;  %v7186_v35 = vor.u32 %v7185_v34, %v7181_v57  ;;  %vm15274_vm3 = vmmov %vm15206_vm1 }
 0x751   :  { %7427 = vmatmul.mubr.bf16.gmra.mrb[0].mxu0 %v15256_v26  ;;  %v14378_v26 = vsel %vm11633_vm12, %v8674_v62, %v8675_v4  ;;  %v7563_v13 = vsel %vm11633_vm12, %v15259_v53, %v7562_v11  ;;  %10554 = vmatprep.subr.bf16.mxu1 %v15260_v10  ;;  %v7168_v62 = vsel %vm11653_vm0, %v14365_v14, %v7167_v51  ;;  %v9988_v55 = vrot.slane %v7490_v19, 9  ;;  %v14446_v19 = vld [vmem:[#allocation2 + $0x78] sm:$0xff] }
 0x752   :  { %9977 = vmatprep.mubr.msk.bf16.mxu0 %vm15258_vm9, %v9957_v50  ;;  %8035 = vmatpush1.bf16.msra.mxu0 %v10912_v5  ;;  %v10174_v43 = vcombine.low %v14373_v59, %v14378_v26  ;;  %v10175_v1 = vcombine.high %v14373_v59, %v14378_v26  ;;  %v14391_v5 = vsel %vm11653_vm0, %v7153_v47, %v7157_v52  ;;  %v10919_v52 = vld [vmem:[%s15057_s8 + $0x1f0] sm:$0xff]   ;;  %v7177_v31 = vrot.slane %v7176_v22, 4  ;;  %vm15275_vm9 = vmmov %vm15206_vm1 }
 0x753   :  { %8036 = vmatprep.subr.bf16.mxu0 %v15189_v54  ;;  %v10017_v11 = vcombine.low %v14324_v17, %v14313_v2  ;;  %v7560_v63 = vsel %vm11633_vm12, %v9987_v33, %v14213_v46  ;;  %v9959_v2 = vcombine.high %v14391_v5, %v7168_v62  ;;  %v7569_v46 = vrot.slane %v13920_v32, 5 }
 0x754   :  { %v10020_v9 = vcombine.high %v7560_v63, %v7563_v13  ;;  %v7191_v17 = vrot.slane %v7189_v58, 5  ;;  %v14415_v4 = vrot.slane %v7186_v35, 4  ;;  %v8179_v32 = vshll.u32 %v14412_v45, 16 }
 0x755   :  { %v7570_v50 = vsel %vm11633_vm12, %v7568_v28, %v7569_v46  ;;  %v14423_v47 = vsel %vm11653_vm0, %v7177_v31, %v7181_v57  ;;  %v10019_v33 = vcombine.low %v7560_v63, %v7563_v13  ;;  %v9958_v34 = vcombine.low %v14391_v5, %v7168_v62  ;;  %v14433_v57 = vld [vmem:[#allocation2 + $0x58] sm:$0x11] }
 0x756   :  { %8037 = vmatpush1.bf16.msra.mxu0 %v10915_v27  ;;  %v7192_v51 = vsel %vm11653_vm0, %v14415_v4, %v7191_v17  ;;  %v7567_v27 = vsel %vm11633_vm12, %v9988_v55, %v7566_v30  ;;  %v8181_v58 = vrot.slane %v8179_v32, 5  ;;  %v8203_v62 = vshll.u32 %v14433_v57, 16 }
 0x757   :  { %8038 = vmatprep.subr.bf16.mxu0 %v15189_v54  ;;  %7797 = vmatmul.mubr.bf16.gmra.mrb[248].mxu1 %v10017_v11  ;;  %v10022_v53 = vcombine.high %v7567_v27, %v7570_v50  ;;  %v9961_v22 = vcombine.high %v14423_v47, %v7192_v51  ;;  %v14435_v11 = vld [vmem:[#allocation2 + $0x60] sm:$0xff]  ;;  %v9960_v35 = vcombine.low %v14423_v47, %v7192_v51  ;;  %v8232_v28 = vshrl.u32 %v14446_v19, 16 }
 0x758   :  { %10038 = vmatprep.mubr.msk.bf16.mxu1 %vm15261_vm4, %v10020_v9  ;;  %v8182_v13 = vsel %vm11653_vm0, %v14067_v6, %v8181_v58  ;;  %v8208_v63 = vshrl.u32 %v14435_v11, 16  ;;  %v8211_v30 = vshll.u32 %v14435_v11, 16  ;;  %v10021_v9 = vcombine.low %v7567_v27, %v7570_v50  ;;  %vm15276_vm4 = vmmov %vm15206_vm1 }
 0x759   :  { %7435 = vmatmul.mubr.bf16.gmra.mrb[4].mxu0 %v9956_v18  ;;  %v8221_v18 = vshrl.u32 %v14114_v38, 16  ;;  %v8205_v46 = vrot.slane %v8203_v62, 5  ;;  %v15265_v50 = vcombine.high %v13953_v48, %v13963_v12  ;;  %v8235_v32 = vshll.u32 %v14446_v19, 16 }
 0x75a   :  { %9978 = vmatprep.mubr.msk.bf16.mxu0 %vm15262_vm7, %v9959_v2  ;;  %8039 = vmatpush1.bf16.msra.mxu0 %v10919_v52  ;;  %v8217_v52 = vshll.u32 %v14114_v38, 16  ;;  %v10110_v2 = vcombine.high %v14092_v42, %v8182_v13  ;;  %v8210_v6 = vrot.slane %v8208_v63, 4  ;;  %v8213_v31 = vrot.slane %v8211_v30, 5  ;;  %vm15278_vm7 = vmmov %vm15206_vm1 }
 0x75b   :  { %8858 = vmatprep.subr.bf16.mxu0 %v15189_v54  ;;  %v8223_v55 = vrot.slane %v8221_v18, 4  ;;  %v8241_v51 = vshll.u32 %v14349_v36, 16  ;;  %v8206_v27 = vsel %vm11653_vm0, %v14105_v7, %v8205_v46  ;;  %v8234_v58 = vrot.slane %v8232_v28, 4  ;;  %v14464_v18 = vld [vmem:[#allocation2 + $0x110] sm:$0xff] }
 0x75c   :  { %v8219_v17 = vrot.slane %v8217_v52, 5  ;;  %v10109_v62 = vcombine.low %v14092_v42, %v8182_v13  ;;  %v8237_v63 = vrot.slane %v8235_v32, 5  ;;  %v15267_v13 = vcombine.low %v13953_v48, %v13963_v12 }
 0x75d   :  { %v8243_v30 = vrot.slane %v8241_v51, 5  ;;  %v8251_v51 = vshll.u32 %v14351_v39, 16 }
 0x75e   :  { %v8238_v28 = vor.u32 %v8237_v63, %v8234_v58  ;;  %v10922_v58 = vld [vmem:[%s15057_s8 + $0x240] sm:$0xff]  }
 0x75f   :  { %7805 = vmatmul.mubr.bf16.gmra.mrb[252].mxu1 %v10019_v33  ;;  %v8245_v33 = vshrl.u32 %v14349_v36, 16 }
 0x760   :  { %10039 = vmatprep.mubr.msk.bf16.mxu1 %vm15206_vm1, %v10022_v53  ;;  %v8224_v53 = vor.u32 %v8223_v55, %v8219_v17 }
 0x761   :  { %7443 = vmatmul.mubr.bf16.gmra.mrb[8].mxu0 %v9958_v34  ;;  %v8214_v34 = vor.u32 %v8213_v31, %v8210_v6  ;;  %v8247_v52 = vrot.slane %v8245_v33, 4 }
 0x762   :  { %9979 = vmatprep.mubr.msk.bf16.mxu0 %vm15263_vm14, %v9961_v22  ;;  %v8227_v22 = vshll.u32 %v14116_v44, 16  ;;  %v10059_v44 = vcombine.high %v13959_v49, %v13949_v0  ;;  %v8225_v6 = vrot.slane %v8224_v53, 4  ;;  %vm15281_vm14 = vmmov %vm15206_vm1 }
 0x763   :  { %v8215_v46 = vrot.slane %v8214_v34, 4  ;;  %v8248_v32 = vor.u32 %v8247_v52, %v8243_v30  ;;  %v8253_v52 = vrot.slane %v8251_v51, 5  ;;  %v10065_v51 = vcombine.high %v14446_v19, %v14349_v36 }
 0x764   :  { %v8229_v31 = vrot.slane %v8227_v22, 5  ;;  %v10111_v22 = vcombine.low %v14140_v20, %v8206_v27 }
 0x765   :  { %v8220_v48 = vsel %vm11653_vm0, %v8215_v46, %v8219_v17  ;;  %v8249_v63 = vrot.slane %v8248_v32, 4  ;;  %v10058_v17 = vcombine.low %v13959_v49, %v13949_v0  ;;  %v8275_v49 = vshll.u32 %v14150_v25, 16  ;;  %v14523_v25 = vld [vmem:[#allocation2 + $0xf0] sm:$0xff] }
 0x766   :  { %v8230_v39 = vsel %vm11653_vm0, %v8225_v6, %v8229_v31  ;;  %v10060_v46 = vcombine.low %v13998_v37, %v13986_v15  ;;  %v8304_v31 = vshrl.u32 %v14523_v25, 16  ;;  %v8317_v32 = vshrl.u32 %v14193_v56, 16 }
 0x767   :  { %7813 = vmatmul.mubr.bf16.gmra.mrb[0].mxu1 %v10021_v9  ;;  %v14466_v9 = vld [vmem:[#allocation2 + $0x118] sm:$0x11]  ;;  %v8254_v0 = vsel %vm11653_vm0, %v8249_v63, %v8253_v52  ;;  %v10071_v60 = vcombine.high %v14523_v25, %v14193_v56 }
 0x768   :  { %10134 = vmatprep.mubr.msk.bf16.mxu1 %vm15264_vm6, %v10110_v2  ;;  %v8624_v2 = vld [vmem:[#allocation2 + $0x108] sm:$0xee]  ;;  %v8703_v7 = vrot.slane %v14466_v9, 5  ;;  %v8319_v52 = vrot.slane %v8317_v32, 4 }
 0x769   :  { %7451 = vmatmul.mubr.bf16.gmra.mrb[12].mxu0 %v9960_v35  ;;  %v10112_v35 = vcombine.high %v14140_v20, %v8206_v27  ;;  %v10149_v42 = vrot.slane %v8624_v2, 9  ;;  %v10061_v2 = vcombine.high %v13998_v37, %v13986_v15  ;;  %v10925_v20 = vld [vmem:[%s15057_s8 + $0x248] sm:$0xff]   ;;  %v8299_v15 = vshll.u32 %v14172_v29, 16  ;;  %v10932_v29 = vld [vmem:[%s15057_s8 + $0x260] sm:$0xff]  }
 0x76a   :  { %9980 = vmatprep.mubr.msk.bf16.mxu0 %vm15266_vm8, %v15265_v50  ;;  %v8700_v50 = vrot.slane %v14464_v18, 5  ;;  %vm15285_vm8 = vmmov 0  }
 0x76c   :  { %v8702_v55 = vrot.slane %v8700_v50, 4  ;;  %v14481_v33 = vsel %vm11633_vm12, %v10149_v42, %v8700_v50  ;;  %v8277_v42 = vrot.slane %v8275_v49, 5 }
 0x76e   :  { %v14485_v34 = vsel %vm11633_vm12, %v8702_v55, %v8703_v7  ;;  %v10113_v7 = vcombine.low %v8220_v48, %v8230_v39  ;;  %v8278_v6 = vsel %vm11653_vm0, %v14365_v14, %v8277_v42  ;;  %v8307_v55 = vshll.u32 %v14523_v25, 16 }
 0x76f   :  { %8537 = vmatmul.mubr.bf16.vlgmr.msra.gmra.mrb[4].mxu1 %v10109_v62  ;;  %v10182_v12 = vcombine.low %v14481_v33, %v14485_v34  ;;  %v10183_v53 = vcombine.high %v14481_v33, %v14485_v34  ;;  %v8239_v62 = vrot.slane %v8238_v28, 4  ;;  %v8313_v28 = vshll.u32 %v14193_v56, 16 }
 0x770   :  { %10135 = vmatprep.mubr.msk.bf16.mxu1 %vm15268_vm2, %v10112_v35  ;;  %v10114_v35 = vcombine.high %v8220_v48, %v8230_v39  ;;  %v10062_v48 = vcombine.low %v14435_v11, %v14114_v38  ;;  %v10118_v14 = vcombine.high %v14391_v5, %v8278_v6  ;;  %v8301_v39 = vrot.slane %v8299_v15, 5 }
 0x771   :  { %7459 = vmatmul.mubr.bf16.gmra.mrb[16].mxu0 %v15267_v13  ;;  %v8244_v27 = vsel %vm11653_vm0, %v8239_v62, %v8243_v30  ;;  %v10063_v30 = vcombine.high %v14435_v11, %v14114_v38  ;;  %v10929_v13 = vld [vmem:[%s15057_s8 + $0x258] sm:$0xff]   ;;  %v8309_v62 = vrot.slane %v8307_v55, 5  ;;  %v8315_v63 = vrot.slane %v8313_v28, 5  ;;  %v10935_v38 = vld [vmem:[%s15057_s8 + $0x268] sm:$0xff]  }
 0x772   :  { %10083 = vmatprep.mubr.msk.bf16.mxu0 %vm15269_vm10, %v10059_v44  ;;  %v10116_v50 = vcombine.high %v8244_v27, %v8254_v0  ;;  %v10926_v44 = vld [vmem:[%s15057_s8 + $0x250] sm:$0xff]   ;;  %v10115_v37 = vcombine.low %v8244_v27, %v8254_v0  ;;  %v8302_v0 = vsel %vm11653_vm0, %v14415_v4, %v8301_v39 }
 0x773   :  { %v10120_v55 = vcombine.high %v14423_v47, %v8302_v0 }
 0x777   :  { %8545 = vmatmul.mubr.bf16.gmra.mrb[8].mxu1 %v10111_v22  ;;  %v14547_v22 = vld [vmem:[#allocation2 + $0x108] sm:$0xff] }
 0x778   :  { %10136 = vmatprep.mubr.msk.bf16.mxu1 %vm15270_vm11, %v10114_v35  ;;  %v8328_v11 = vshrl.u32 %v14547_v22, 16  ;;  %v8337_v35 = vshll.u32 %v14464_v18, 16 }
 0x779   :  { %8055 = vmatmul.mubr.bf16.vlgmr.msra.gmra.mrb[20].mxu0 %v10058_v17  ;;  %v8331_v17 = vshll.u32 %v14547_v22, 16 }
 0x77a   :  { %10084 = vmatprep.mubr.msk.bf16.mxu0 %vm15271_vm15, %v10061_v2  ;;  %8859 = vmatpush1.bf16.msra.mxu0 %v10922_v58  ;;  %v8306_v58 = vrot.slane %v8304_v31, 4  ;;  %v8341_v2 = vshrl.u32 %v14464_v18, 16  ;;  %v8330_v15 = vrot.slane %v8328_v11, 4  ;;  %v8339_v31 = vrot.slane %v8337_v35, 5 }
 0x77b   :  { %8860 = vmatprep.subr.bf16.mxu0 %v15189_v54  ;;  %v10119_v11 = vcombine.low %v14423_v47, %v8302_v0  ;;  %v15279_v47 = vcombine.low %v14003_v24, %v14001_v3 }
 0x77c   :  { %v8310_v49 = vor.u32 %v8309_v62, %v8306_v58  ;;  %v8343_v4 = vrot.slane %v8341_v2, 4 }
 0x77e   :  { %8861 = vmatpush1.bf16.msra.mxu0 %v10925_v20  ;;  %v8344_v32 = vor.u32 %v8343_v4, %v8339_v31 }
 0x77f   :  { %8862 = vmatprep.subr.bf16.mxu0 %v15189_v54  ;;  %8553 = vmatmul.mubr.bf16.gmra.mrb[12].mxu1 %v10113_v7  ;;  %v10117_v7 = vcombine.low %v14391_v5, %v8278_v6  ;;  %v10939_v6 = vld [vmem:[%s15057_s8 + $0x278] sm:$0xff]  }
 0x780   :  { %10137 = vmatprep.mubr.msk.bf16.mxu1 %vm15272_vm5, %v10116_v50  ;;  %v8323_v50 = vshll.u32 %v14190_v23, 16  ;;  %v8311_v23 = vrot.slane %v8310_v49, 4  ;;  %v8345_v2 = vrot.slane %v8344_v32, 4  ;;  %v10942_v49 = vld [vmem:[%s15057_s8 + $0x280] sm:$0xff]  }
 0x781   :  { %8063 = vmatmul.mubr.bf16.gmra.mrb[24].mxu0 %v10060_v46  ;;  %v10064_v46 = vcombine.low %v14446_v19, %v14349_v36  ;;  %v15277_v36 = vcombine.high %v14003_v24, %v14001_v3 }
 0x782   :  { %10085 = vmatprep.mubr.msk.bf16.mxu0 %vm15273_vm13, %v10063_v30  ;;  %8863 = vmatpush1.bf16.msra.mxu0 %v10926_v44  ;;  %v8320_v30 = vor.u32 %v8319_v52, %v8315_v63  ;;  %v8325_v5 = vrot.slane %v8323_v50, 5  ;;  %v8316_v39 = vsel %vm11653_vm0, %v8311_v23, %v8315_v63 }
 0x783   :  { %8864 = vmatprep.subr.bf16.mxu0 %v15189_v54 }
 0x784   :  { %v8321_v19 = vrot.slane %v8320_v30, 4 }
 0x786   :  { %8865 = vmatpush1.bf16.msra.mxu0 %v10929_v13  ;;  %v10938_v13 = vld [vmem:[%s15057_s8 + $0x270] sm:$0xff]   ;;  %v8326_v58 = vsel %vm11653_vm0, %v8321_v19, %v8325_v5 }
 0x787   :  { %8866 = vmatprep.subr.bf16.mxu0 %v15189_v54  ;;  %8561 = vmatmul.mubr.bf16.gmra.mrb[16].mxu1 %v10115_v37  ;;  %v8333_v37 = vrot.slane %v8331_v17, 5 }
 0x788   :  { %10138 = vmatprep.mubr.msk.bf16.mxu1 %vm15274_vm3, %v10118_v14 }
 0x789   :  { %8071 = vmatmul.mubr.bf16.gmra.mrb[28].mxu0 %v10062_v48  ;;  %v8334_v28 = vor.u32 %v8333_v37, %v8330_v15  ;;  %v10121_v15 = vcombine.low %v8316_v39, %v8326_v58 }
 0x78a   :  { %10086 = vmatprep.mubr.msk.bf16.mxu0 %vm15275_vm9, %v10065_v51  ;;  %8867 = vmatpush1.bf16.msra.mxu0 %v10932_v29  ;;  %v6302_v20 = vpop.f32.mrb[168].mxu1  ;;  %v8347_v51 = vshll.u32 %v14466_v9, 16 }
 0x78b   :  { %8868 = vmatprep.subr.bf16.mxu0 %v15189_v54  ;;  %v6304_v27 = vpop.f32.mrb[169].mxu1  ;;  %v8335_v9 = vrot.slane %v8334_v28, 4 }
 0x78c   :  { %v6305_v44 = vpop.f32.mrb[170].mxu1  ;;  %v8349_v27 = vrot.slane %v8347_v51, 5 }
 0x78d   :  { %v6307_v42 = vpop.f32.mrb[171].mxu1  ;;  %v8340_v0 = vsel %vm11653_vm0, %v8335_v9, %v8339_v31  ;;  %v15282_v31 = vcombine.low %v14043_v16, %v14054_v41 }
 0x78e   :  { %8869 = vmatpush1.bf16.msra.mxu0 %v10935_v38 }
 0x78f   :  { %8870 = vmatprep.subr.bf16.mxu0 %v15189_v54  ;;  %8569 = vmatmul.mubr.bf16.gmra.mrb[20].mxu1 %v10117_v7  ;;  %v10122_v7 = vcombine.high %v8316_v39, %v8326_v58  ;;  %v10960_v58 = vld [vmem:[#allocation2 + $0x38] sm:$0xff] }
 0x790   :  { %10139 = vmatprep.mubr.msk.bf16.mxu1 %vm15276_vm4, %v10120_v55 }
 0x791   :  { %8079 = vmatmul.mubr.bf16.gmra.mrb[32].mxu0 %v10064_v46 }
 0x792   :  { %10087 = vmatprep.mubr.msk.bf16.mxu0 %vm15278_vm7, %v15277_v36  ;;  %8871 = vmatpush1.bf16.msra.mxu0 %v10938_v13  ;;  %v6310_v29 = vpop.f32.mrb[172].mxu1 }
 0x793   :  { %8872 = vmatprep.subr.bf16.mxu0 %v15189_v54  ;;  %v6055_v48 = vpop.f32.mrb[184].mxu0  ;;  %v6312_v14 = vpop.f32.mrb[173].mxu1 }
 0x794   :  { %v14585_v62 = vadd.f32 %v6302_v20, %v6055_v48  ;;  %v6057_v52 = vpop.f32.mrb[185].mxu0  ;;  %v6313_v38 = vpop.f32.mrb[174].mxu1  ;;  %v15280_v20 = vcombine.high %v14043_v16, %v14054_v41  ;;  %v10073_v14 = vcombine.high %v14547_v22, %v14464_v18  ;;  %v10070_v16 = vcombine.low %v14523_v25, %v14193_v56 }
 0x795   :  { %v6058_v17 = vpop.f32.mrb[186].mxu0  ;;  %v6315_v35 = vpop.f32.mrb[175].mxu1  ;;  %v8651_v52 = vrot.slane %v10960_v58, 5 }
 0x796   :  { %8873 = vmatpush1.bf16.msra.mxu0 %v10939_v6  ;;  %v14591_v63 = vadd.f32 %v6305_v44, %v6058_v17  ;;  %v6060_v50 = vpop.f32.mrb[187].mxu0  ;;  %v8350_v44 = vsel %vm11653_vm0, %v8345_v2, %v8349_v27  ;;  %vm15283_vm0 = vmmov %vm15206_vm1 }
 0x797   :  { %8874 = vmatprep.subr.bf16.mxu0 %v15189_v54  ;;  %8577 = vmatmul.mubr.bf16.gmra.mrb[24].mxu1 %v10119_v11  ;;  %v10124_v13 = vcombine.high %v8340_v0, %v8350_v44  ;;  %vm15284_vm6 = vmmov %vm15283_vm0  ;;  %v10123_v6 = vcombine.low %v8340_v0, %v8350_v44  ;;  %v8654_v11 = vrot.slane %v14412_v45, 5  ;;  %v8653_v9 = vrot.slane %v8651_v52, 4 }
 0x798   :  { %10140 = vmatprep.mubr.msk.bf16.mxu1 %vm15206_vm1, %v10122_v7  ;;  %vm15286_vm2 = vmmov %vm15283_vm0  ;;  %v10072_v50 = vcombine.low %v14547_v22, %v14464_v18 }
 0x799   :  { %8087 = vmatmul.mubr.bf16.gmra.mrb[36].mxu0 %v15279_v47  ;;  %v8655_v45 = vsel %vm11633_vm12, %v8653_v9, %v8654_v11  ;;  %vm15287_vm10 = vmmov %vm15283_vm0 }
 0x79a   :  { %10088 = vmatprep.mubr.msk.bf16.mxu0 %vm15281_vm14, %v15280_v20  ;;  %8875 = vmatpush1.bf16.msra.mxu0 %v10942_v49  ;;  %v6318_v54 = vpop.f32.mrb[176].mxu1  ;;  %vm15288_vm11 = vmmov %vm15283_vm0 }
 0x79b   :  { %v6320_v30 = vpop.f32.mrb[177].mxu1  ;;  %vm15292_vm15 = vmmov %vm15283_vm0 }
 0x79c   :  { %v6063_v46 = vpop.f32.mrb[188].mxu0  ;;  %v6321_v24 = vpop.f32.mrb[178].mxu1  ;;  %vm15298_vm5 = vmmov %vm15283_vm0 }
 0x79d   :  { %v14606_v42 = vadd.f32 %v6310_v29, %v6063_v46  ;;  %v6065_v3 = vpop.f32.mrb[189].mxu0  ;;  %v6323_v4 = vpop.f32.mrb[179].mxu1  ;;  %vm15303_vm13 = vmmov %vm15283_vm0 }
 0x79e   :  { %v6066_v37 = vpop.f32.mrb[190].mxu0  ;;  %v8618_v3 = vld [vmem:[#allocation2 + $0x48] sm:$0xee]  ;;  %vm15308_vm3 = vmmov %vm15283_vm0 }
 0x79f   :  { %v14608_v55 = vadd.f32 %v6313_v38, %v6066_v37  ;;  %v6068_v23 = vpop.f32.mrb[191].mxu0  ;;  %8585 = vmatmul.mubr.bf16.gmra.mrb[28].mxu1 %v10121_v15  ;;  %v8617_v38 = vld [vmem:[#allocation2 + $0x30] sm:$0xee]  ;;  %v10143_v22 = vrot.slane %v8618_v3, 9  ;;  %v15293_v3 = vld [vmem:[#allocation20_spill] sm:$0xff]  ;;  %vm15310_vm9 = vmmov %vm15283_vm0 }
 0x7a0   :  { %10141 = vmatprep.mubr.msk.bf16.mxu1 %vm15283_vm0, %v10124_v13  ;;  %v10142_v35 = vrot.slane %v8617_v38, 9 }
 0x7a1   :  { %8095 = vmatmul.mubr.bf16.gmra.mrb[40].mxu0 %v15282_v31 }
 0x7a2   :  { %10089 = vmatprep.mubr.msk.bf16.mxu0 %vm15284_vm6, %v10071_v60  ;;  %v6326_v5 = vpop.f32.mrb[180].mxu1  ;;  %v8652_v44 = vsel %vm11633_vm12, %v10142_v35, %v8651_v52 }
 0x7a3   :  { %v6328_v19 = vpop.f32.mrb[181].mxu1  ;;  %v10169_v30 = vcombine.high %v8652_v44, %v8655_v45 }
 0x7a4   :  { %v6071_v36 = vpop.f32.mrb[192].mxu0  ;;  %v6329_v51 = vpop.f32.mrb[182].mxu1  ;;  %v10168_v19 = vcombine.low %v8652_v44, %v8655_v45  ;;  %v15291_v44 = vcombine.low %v14176_v8, %v14197_v40  ;;  %v15295_v8 = vld [vmem:[#allocation18_spill] sm:$0xff] }
 0x7a5   :  { %v14617_v28 = vadd.f32 %v6318_v54, %v6071_v36  ;;  %v6073_v32 = vpop.f32.mrb[193].mxu0  ;;  %v6331_v48 = vpop.f32.mrb[183].mxu1  ;;  %v10961_v54 = vld [vmem:[#allocation2 + $0x50] sm:$0xff] }
 0x7a6   :  { %v6074_v29 = vpop.f32.mrb[194].mxu0  ;;  %v8658_v46 = vrot.slane %v10961_v54, 5 }
 0x7a7   :  { %v14623_v41 = vadd.f32 %v6321_v24, %v6074_v29  ;;  %v6076_v39 = vpop.f32.mrb[195].mxu0  ;;  %8593 = vmatmul.mubr.bf16.gmra.mrb[32].mxu1 %v10123_v6  ;;  %v8661_v24 = vrot.slane %v14433_v57, 5 }
 0x7a8   :  { %10404 = vmatprep.mubr.msk.f32.mxu1 %vm15285_vm8, %v15188_v21  ;;  %v8660_v13 = vrot.slane %v8658_v46, 4  ;;  %v8659_v32 = vsel %vm11633_vm12, %v10143_v22, %v8658_v46 }
 0x7a9   :  { %8103 = vmatmul.mubr.bf16.gmra.mrb[44].mxu0 %v10070_v16 }
 0x7aa   :  { %10090 = vmatprep.mubr.msk.bf16.mxu0 %vm15286_vm2, %v10073_v14  ;;  %v6334_v17 = vpop.f32.mrb[184].mxu1  ;;  %v8662_v31 = vsel %vm11633_vm12, %v8660_v13, %v8661_v24  ;;  %vm15290_vm12 = vmmov %vm15283_vm0 }
 0x7ab   :  { %v6336_v56 = vpop.f32.mrb[185].mxu1  ;;  %v10170_v11 = vcombine.low %v8659_v32, %v8662_v31 }
 0x7ac   :  { %v6079_v2 = vpop.f32.mrb[196].mxu0  ;;  %v6337_v49 = vpop.f32.mrb[186].mxu1 }
 0x7ad   :  { %v14629_v25 = vadd.f32 %v6326_v5, %v6079_v2  ;;  %v6081_v27 = vpop.f32.mrb[197].mxu0  ;;  %v6339_v47 = vpop.f32.mrb[187].mxu1 }
 0x7ae   :  { %v6082_v7 = vpop.f32.mrb[198].mxu0 }
 0x7af   :  { %v14635_v20 = vadd.f32 %v6329_v51, %v6082_v7  ;;  %v6084_v0 = vpop.f32.mrb[199].mxu0  ;;  %v10171_v51 = vcombine.high %v8659_v32, %v8662_v31 }
 0x7b1   :  { %8111 = vmatmul.mubr.bf16.gmra.mrb[48].mxu0 %v10072_v50 }
 0x7b2   :  { %10193 = vmatprep.mubr.msk.bf16.mxu0 %vm15287_vm10, %v10169_v30  ;;  %v6342_v18 = vpop.f32.mrb[188].mxu1 }
 0x7b3   :  { %v6344_v37 = vpop.f32.mrb[189].mxu1 }
 0x7b4   :  { %v6087_v15 = vpop.f32.mrb[200].mxu0  ;;  %v6345_v60 = vpop.f32.mrb[190].mxu1  ;;  %v15294_v37 = vld [vmem:[#allocation21_spill] sm:$0xff] }
 0x7b5   :  { %v14641_v4 = vadd.f32 %v6334_v17, %v6087_v15  ;;  %v6089_v23 = vpop.f32.mrb[201].mxu0  ;;  %v6347_v36 = vpop.f32.mrb[191].mxu1 }
 0x7b6   :  { %v6090_v5 = vpop.f32.mrb[202].mxu0 }
 0x7b7   :  { %v14645_v6 = vadd.f32 %v6337_v49, %v6090_v5  ;;  %v6092_v57 = vpop.f32.mrb[203].mxu0 }
 0x7b9   :  { %8891 = vmatmul.mubr.bf16.vlgmr.msra.gmra.mrb[52].mxu0 %v10168_v19 }
 0x7ba   :  { %10194 = vmatprep.mubr.msk.bf16.mxu0 %vm15288_vm11, %v10171_v51  ;;  %v6350_v29 = vpop.f32.mrb[192].mxu1 }
 0x7bb   :  { %v6352_v14 = vpop.f32.mrb[193].mxu1 }
 0x7bc   :  { %v6095_v48 = vpop.f32.mrb[204].mxu0  ;;  %v6353_v58 = vpop.f32.mrb[194].mxu1 }
 0x7bd   :  { %v14650_v16 = vadd.f32 %v6342_v18, %v6095_v48  ;;  %v6097_v39 = vpop.f32.mrb[205].mxu0  ;;  %v6355_v38 = vpop.f32.mrb[195].mxu1 }
 0x7be   :  { %v6098_v52 = vpop.f32.mrb[206].mxu0  ;;  %v15301_v38 = vld [vmem:[#allocation23_spill] sm:$0xff] }
 0x7bf   :  { %v14652_v17 = vadd.f32 %v6345_v60, %v6098_v52  ;;  %v6100_v35 = vpop.f32.mrb[207].mxu0  ;;  %v15300_v52 = vld [vmem:[#allocation22_spill] sm:$0xff] }
 0x7c1   :  { %8899 = vmatmul.mubr.bf16.gmra.mrb[56].mxu0 %v10170_v11  ;;  %v15302_v11 = vcombine.high %v15300_v52, %v15301_v38 }
 0x7c2   :  { %10195 = vmatprep.mubr.msk.bf16.mxu0 %vm15290_vm12, %v15289_v61  ;;  %v6922_v9 = vpop.f32.mrb[196].mxu1 }
 0x7c3   :  { %v6924_v56 = vpop.f32.mrb[197].mxu1 }
 0x7c4   :  { %v6103_v2 = vpop.f32.mrb[208].mxu0  ;;  %v6925_v50 = vpop.f32.mrb[198].mxu1 }
 0x7c5   :  { %v14658_v27 = vadd.f32 %v6350_v29, %v6103_v2  ;;  %v6105_v49 = vpop.f32.mrb[209].mxu0  ;;  %v6927_v7 = vpop.f32.mrb[199].mxu1 }
 0x7c6   :  { %v6106_v45 = vpop.f32.mrb[210].mxu0 }
 0x7c7   :  { %v14660_v47 = vadd.f32 %v6353_v58, %v6106_v45  ;;  %v6108_v0 = vpop.f32.mrb[211].mxu0 }
 0x7c8   :  { %v15304_v0 = vcombine.low %v15300_v52, %v15301_v38 }
 0x7c9   :  { %8907 = vmatmul.mubr.bf16.gmra.mrb[60].mxu0 %v15291_v44 }
 0x7ca   :  { %10196 = vmatprep.mubr.msk.bf16.mxu0 %vm15292_vm15, %v10175_v1  ;;  %v6930_v54 = vpop.f32.mrb[200].mxu1  ;;  %v15296_v1 = vld [vmem:[#allocation19_spill] sm:$0xff] }
 0x7cb   :  { %v6932_v30 = vpop.f32.mrb[201].mxu1  ;;  %v15297_v5 = vcombine.high %v15295_v8, %v15296_v1 }
 0x7cc   :  { %v6624_v46 = vpop.f32.mrb[212].mxu0  ;;  %v6933_v22 = vpop.f32.mrb[202].mxu1 }
 0x7cd   :  { %v6687_v24 = vadd.f32 %v6624_v46, %v15293_v3  ;;  %v6626_v18 = vpop.f32.mrb[213].mxu0  ;;  %v6935_v15 = vpop.f32.mrb[203].mxu1  ;;  %v15306_v46 = vld [vmem:[#allocation25_spill] sm:$0xff] }
 0x7ce   :  { %v6627_v13 = vpop.f32.mrb[214].mxu0 }
 0x7cf   :  { %v6688_v23 = vadd.f32 %v6627_v13, %v15294_v37  ;;  %v6629_v60 = vpop.f32.mrb[215].mxu0  ;;  %v14671_v31 = vadd.f32 %v6922_v9, %v6687_v24 }
 0x7d1   :  { %8915 = vmatmul.mubr.bf16.gmra.mrb[64].mxu0 %v10174_v43  ;;  %v14676_v40 = vadd.f32 %v6925_v50, %v6688_v23  ;;  %v15299_v43 = vcombine.low %v15295_v8, %v15296_v1 }
 0x7d2   :  { %10197 = vmatprep.mubr.msk.bf16.mxu0 %vm15298_vm5, %v15297_v5  ;;  %v6938_v36 = vpop.f32.mrb[204].mxu1 }
 0x7d3   :  { %v6940_v57 = vpop.f32.mrb[205].mxu1 }
 0x7d4   :  { %v6632_v19 = vpop.f32.mrb[216].mxu0  ;;  %v6941_v29 = vpop.f32.mrb[206].mxu1 }
 0x7d5   :  { %v6689_v32 = vadd.f32 %v6632_v19, %v14585_v62  ;;  %v6634_v51 = vpop.f32.mrb[217].mxu0  ;;  %v6943_v14 = vpop.f32.mrb[207].mxu1 }
 0x7d6   :  { %v6635_v48 = vpop.f32.mrb[218].mxu0 }
 0x7d7   :  { %v6690_v39 = vadd.f32 %v6635_v48, %v14591_v63  ;;  %v6637_v59 = vpop.f32.mrb[219].mxu0  ;;  %v14684_v26 = vadd.f32 %v6930_v54, %v6689_v32  ;;  %v15305_v54 = vld [vmem:[#allocation24_spill] sm:$0xff] }
 0x7d8   :  { %v15307_v30 = vcombine.high %v15305_v54, %v15306_v46  ;;  %v15309_v8 = vcombine.low %v15305_v54, %v15306_v46 }
 0x7d9   :  { %8923 = vmatmul.mubr.bf16.gmra.mrb[68].mxu0 %v15299_v43  ;;  %v14689_v58 = vadd.f32 %v6933_v22, %v6690_v39 }
 0x7da   :  { %10198 = vmatprep.mubr.msk.bf16.mxu0 %vm15303_vm13, %v15302_v11  ;;  %v6946_v62 = vpop.f32.mrb[208].mxu1 }
 0x7db   :  { %v6948_v61 = vpop.f32.mrb[209].mxu1 }
 0x7dc   :  { %v6640_v35 = vpop.f32.mrb[220].mxu0  ;;  %v6949_v2 = vpop.f32.mrb[210].mxu1 }
 0x7dd   :  { %v6691_v9 = vadd.f32 %v6640_v35, %v14606_v42  ;;  %v6642_v63 = vpop.f32.mrb[221].mxu0  ;;  %v6951_v49 = vpop.f32.mrb[211].mxu1 }
 0x7de   :  { %v6643_v56 = vpop.f32.mrb[222].mxu0 }
 0x7df   :  { %v6692_v50 = vadd.f32 %v6643_v56, %v14608_v55  ;;  %v6645_v45 = vpop.f32.mrb[223].mxu0  ;;  %v14697_v7 = vadd.f32 %v6938_v36, %v6691_v9 }
 0x7e1   :  { %8931 = vmatmul.mubr.bf16.gmra.mrb[72].mxu0 %v15304_v0  ;;  %v14702_v44 = vadd.f32 %v6941_v29, %v6692_v50 }
 0x7e2   :  { %10199 = vmatprep.mubr.msk.bf16.mxu0 %vm15308_vm3, %v15307_v30  ;;  %v6954_v42 = vpop.f32.mrb[212].mxu1 }
 0x7e3   :  { %v6956_v24 = vpop.f32.mrb[213].mxu1 }
 0x7e4   :  { %v6648_v3 = vpop.f32.mrb[224].mxu0  ;;  %v6957_v22 = vpop.f32.mrb[214].mxu1 }
 0x7e5   :  { %v6693_v18 = vadd.f32 %v6648_v3, %v14617_v28  ;;  %v6650_v55 = vpop.f32.mrb[225].mxu0  ;;  %v6959_v15 = vpop.f32.mrb[215].mxu1 }
 0x7e6   :  { %v6651_v13 = vpop.f32.mrb[226].mxu0 }
 0x7e7   :  { %v6694_v37 = vadd.f32 %v6651_v13, %v14623_v41  ;;  %v6653_v23 = vpop.f32.mrb[227].mxu0  ;;  %v14710_v60 = vadd.f32 %v6946_v62, %v6693_v18 }
 0x7e9   :  { %8939 = vmatmul.mubr.bf16.gmra.mrb[76].mxu0 %v15309_v8  ;;  %v14715_v1 = vadd.f32 %v6949_v2, %v6694_v37 }
 0x7ea   :  { %10200 = vmatprep.mubr.msk.bf16.mxu0 %vm15310_vm9, %v10183_v53  ;;  %v6962_v28 = vpop.f32.mrb[216].mxu1 }
 0x7eb   :  { %v6964_v36 = vpop.f32.mrb[217].mxu1 }
 0x7ec   :  { %v6656_v5 = vpop.f32.mrb[228].mxu0  ;;  %v6965_v57 = vpop.f32.mrb[218].mxu1 }
 0x7ed   :  { %v6695_v19 = vadd.f32 %v6656_v5, %v14629_v25  ;;  %v6658_v41 = vpop.f32.mrb[229].mxu0  ;;  %v6967_v51 = vpop.f32.mrb[219].mxu1 }
 0x7ee   :  { %v6659_v32 = vpop.f32.mrb[230].mxu0 }
 0x7ef   :  { %v6696_v29 = vadd.f32 %v6659_v32, %v14635_v20  ;;  %v6661_v48 = vpop.f32.mrb[231].mxu0  ;;  %v14723_v14 = vadd.f32 %v6954_v42, %v6695_v19 }
 0x7f1   :  { %8947 = vmatmul.mubr.bf16.gmra.mrb[80].mxu0 %v10182_v12  ;;  %v14728_v39 = vadd.f32 %v6957_v22, %v6696_v29 }
 0x7f2   :  { %v6970_v53 = vpop.f32.mrb[220].mxu1 }
 0x7f3   :  { %v6972_v43 = vpop.f32.mrb[221].mxu1 }
 0x7f4   :  { %v6664_v59 = vpop.f32.mrb[232].mxu0  ;;  %v6973_v38 = vpop.f32.mrb[222].mxu1 }
 0x7f5   :  { %v6697_v25 = vadd.f32 %v6664_v59, %v14641_v4  ;;  %v6666_v52 = vpop.f32.mrb[233].mxu0  ;;  %v6975_v62 = vpop.f32.mrb[223].mxu1 }
 0x7f6   :  { %v6667_v11 = vpop.f32.mrb[234].mxu0 }
 0x7f7   :  { %v6698_v20 = vadd.f32 %v6667_v11, %v14645_v6  ;;  %v6669_v35 = vpop.f32.mrb[235].mxu0  ;;  %v14732_v61 = vadd.f32 %v6962_v28, %v6697_v25 }
 0x7f9   :  { %v14734_v9 = vadd.f32 %v6965_v57, %v6698_v20 }
 0x7fa   :  { %v6978_v33 = vpop.f32.mrb[224].mxu1 }
 0x7fb   :  { %v6980_v12 = vpop.f32.mrb[225].mxu1 }
 0x7fc   :  { %v6672_v34 = vpop.f32.mrb[236].mxu0  ;;  %v6981_v56 = vpop.f32.mrb[226].mxu1  ;;  %v9051_v12 = vld [vmem:[#allocation11] sm:$0xff] }
 0x7fd   :  { %v6699_v63 = vadd.f32 %v6672_v34, %v14650_v16  ;;  %v6674_v2 = vpop.f32.mrb[237].mxu0  ;;  %v6983_v4 = vpop.f32.mrb[227].mxu1 }
 0x7fe   :  { %v6675_v49 = vpop.f32.mrb[238].mxu0 }
 0x7ff   :  { %v6700_v50 = vadd.f32 %v6675_v49, %v14652_v17  ;;  %v6677_v45 = vpop.f32.mrb[239].mxu0  ;;  %v14738_v0 = vadd.f32 %v6970_v53, %v6699_v63 }
 0x801   :  { %v14740_v6 = vadd.f32 %v6973_v38, %v6700_v50 }
 0x802   :  { %v7758_v54 = vpop.f32.mrb[228].mxu1 }
 0x803   :  { %v7760_v30 = vpop.f32.mrb[229].mxu1 }
 0x804   :  { %v6680_v46 = vpop.f32.mrb[240].mxu0  ;;  %v7761_v24 = vpop.f32.mrb[230].mxu1 }
 0x805   :  { %v6701_v42 = vadd.f32 %v6680_v46, %v14658_v27  ;;  %v6682_v3 = vpop.f32.mrb[241].mxu0  ;;  %v7763_v16 = vpop.f32.mrb[231].mxu1 }
 0x806   :  { %v6683_v18 = vpop.f32.mrb[242].mxu0  ;;  %v9053_v3 = vld [vmem:[#allocation11 + $0x10] sm:$0xff] }
 0x807   :  { %v6702_v55 = vadd.f32 %v6683_v18, %v14660_v47  ;;  %v6685_v22 = vpop.f32.mrb[243].mxu0  ;;  %v14744_v13 = vadd.f32 %v6978_v33, %v6701_v42 }
 0x809   :  { %v14746_v17 = vadd.f32 %v6981_v56, %v6702_v55 }
 0x80a   :  { %v7766_v15 = vpop.f32.mrb[232].mxu1 }
 0x80b   :  { %v7768_v23 = vpop.f32.mrb[233].mxu1 }
 0x80c   :  { %v7404_v37 = vpop.f32.mrb[244].mxu0  ;;  %v7769_v5 = vpop.f32.mrb[234].mxu1 }
 0x80d   :  { %v7467_v8 = vadd.f32 %v7404_v37, %v14671_v31  ;;  %v7406_v28 = vpop.f32.mrb[245].mxu0  ;;  %v7771_v27 = vpop.f32.mrb[235].mxu1 }
 0x80e   :  { %v7407_v36 = vpop.f32.mrb[246].mxu0  ;;  %v9055_v27 = vld [vmem:[#allocation11 + $0x20] sm:$0xff] }
 0x80f   :  { %v7468_v19 = vadd.f32 %v7407_v36, %v14676_v40  ;;  %v7409_v41 = vpop.f32.mrb[247].mxu0  ;;  %v14750_v57 = vadd.f32 %v7758_v54, %v7467_v8 }
 0x811   :  { %v14752_v47 = vadd.f32 %v7761_v24, %v7468_v19  ;;  %v9054_v24 = vld [vmem:[#allocation11 + $0x18] sm:$0xff]  ;;  %v9056_v19 = vld [vmem:[#allocation11 + $0x28] sm:$0xff] }
 0x812   :  { %v7774_v32 = vpop.f32.mrb[236].mxu1  ;;  %v14771_v16 = vpack.c.bf16 %v9054_v24, %v9053_v3 }
 0x813   :  { %v7776_v29 = vpop.f32.mrb[237].mxu1 }
 0x814   :  { %v7412_v51 = vpop.f32.mrb[248].mxu0  ;;  %v7777_v59 = vpop.f32.mrb[238].mxu1 }
 0x815   :  { %v7469_v48 = vadd.f32 %v7412_v51, %v14684_v26  ;;  %v7414_v53 = vpop.f32.mrb[249].mxu0  ;;  %v7779_v31 = vpop.f32.mrb[239].mxu1  ;;  %v9052_v26 = vld [vmem:[#allocation11 + $0x8] sm:$0xff] }
 0x816   :  { %v7415_v43 = vpop.f32.mrb[250].mxu0  ;;  %v14761_v56 = vpack.c.bf16 %v9052_v26, %v9051_v12 }
 0x817   :  { %v7470_v25 = vadd.f32 %v7415_v43, %v14689_v58  ;;  %v7417_v52 = vpop.f32.mrb[251].mxu0  ;;  %v14756_v38 = vadd.f32 %v7766_v15, %v7469_v48 }
 0x818   :  { %10556 = vmatpush3.bf16.msra.mxu1 %v14761_v56 }
 0x819   :  { %v14758_v40 = vadd.f32 %v7769_v5, %v7470_v25  ;;  %10557 = vmatprep.subr.bf16.mxu1 %v15260_v10 }
 0x81a   :  { %v7782_v11 = vpop.f32.mrb[240].mxu1 }
 0x81b   :  { %v7784_v20 = vpop.f32.mrb[241].mxu1 }
 0x81c   :  { %v7420_v62 = vpop.f32.mrb[252].mxu0  ;;  %v7785_v34 = vpop.f32.mrb[242].mxu1  ;;  %10559 = vmatpush3.bf16.msra.mxu1 %v14771_v16 }
 0x81d   :  { %v7471_v35 = vadd.f32 %v7420_v62, %v14697_v7  ;;  %v7422_v33 = vpop.f32.mrb[253].mxu0  ;;  %v7787_v2 = vpop.f32.mrb[243].mxu1  ;;  %10560 = vmatprep.subr.bf16.mxu1 %v15260_v10  ;;  %v9058_v62 = vld [vmem:[#allocation11 + $0x38] sm:$0xff] }
 0x81e   :  { %v7423_v63 = vpop.f32.mrb[254].mxu0 }
 0x81f   :  { %v7472_v58 = vadd.f32 %v7423_v63, %v14702_v44  ;;  %v7425_v49 = vpop.f32.mrb[255].mxu0  ;;  %v14764_v4 = vadd.f32 %v7774_v32, %v7471_v35  ;;  %v14781_v32 = vpack.c.bf16 %v9056_v19, %v9055_v27 }
 0x821   :  { %v14767_v50 = vadd.f32 %v7777_v59, %v7472_v58  ;;  %10562 = vmatpush3.bf16.msra.mxu1 %v14781_v32 }
 0x822   :  { %v7790_v7 = vpop.f32.mrb[244].mxu1  ;;  %10563 = vmatprep.subr.bf16.mxu1 %v15260_v10 }
 0x823   :  { %v7792_v54 = vpop.f32.mrb[245].mxu1 }
 0x824   :  { %v7428_v45 = vpop.f32.mrb[0].mxu0  ;;  %v7793_v42 = vpop.f32.mrb[246].mxu1  ;;  %v9060_v54 = vld [vmem:[#allocation11 + $0x48] sm:$0xff] }
 0x825   :  { %v7473_v46 = vadd.f32 %v7428_v45, %v14710_v60  ;;  %v7430_v30 = vpop.f32.mrb[1].mxu0  ;;  %v7795_v44 = vpop.f32.mrb[247].mxu1  ;;  %v9059_v45 = vld [vmem:[#allocation11 + $0x40] sm:$0xff] }
 0x826   :  { %v7431_v18 = vpop.f32.mrb[2].mxu0  ;;  %v14801_v30 = vpack.c.bf16 %v9060_v54, %v9059_v45  ;;  %v9063_v45 = vld [vmem:[#allocation11 + $0x60] sm:$0xff]  ;;  %v9064_v54 = vld [vmem:[#allocation11 + $0x68] sm:$0xff] }
 0x827   :  { %v7474_v55 = vadd.f32 %v7431_v18, %v14715_v1  ;;  %v7433_v22 = vpop.f32.mrb[3].mxu0  ;;  %v14774_v15 = vadd.f32 %v7782_v11, %v7473_v46  ;;  %v9057_v11 = vld [vmem:[#allocation11 + $0x30] sm:$0xff] }
 0x828   :  { %v14791_v35 = vpack.c.bf16 %v9058_v62, %v9057_v11 }
 0x829   :  { %v14777_v37 = vadd.f32 %v7785_v34, %v7474_v55 }
 0x82a   :  { %v7798_v60 = vpop.f32.mrb[248].mxu1  ;;  %10565 = vmatpush3.bf16.msra.mxu1 %v14791_v35 }
 0x82b   :  { %v7800_v8 = vpop.f32.mrb[249].mxu1  ;;  %10566 = vmatprep.subr.bf16.mxu1 %v15260_v10 }
 0x82c   :  { %v7436_v23 = vpop.f32.mrb[4].mxu0  ;;  %v7801_v36 = vpop.f32.mrb[250].mxu1  ;;  %v9061_v8 = vld [vmem:[#allocation11 + $0x50] sm:$0xff] }
 0x82d   :  { %v7475_v28 = vadd.f32 %v7436_v23, %v14723_v14  ;;  %v7438_v5 = vpop.f32.mrb[5].mxu0  ;;  %v7803_v1 = vpop.f32.mrb[251].mxu1 }
 0x82e   :  { %v7439_v41 = vpop.f32.mrb[6].mxu0  ;;  %10568 = vmatpush3.bf16.msra.mxu1 %v14801_v30 }
 0x82f   :  { %v7476_v51 = vadd.f32 %v7439_v41, %v14728_v39  ;;  %v7441_v29 = vpop.f32.mrb[7].mxu0  ;;  %v14784_v48 = vadd.f32 %v7790_v7, %v7475_v28  ;;  %10569 = vmatprep.subr.bf16.mxu1 %v15260_v10  ;;  %v9062_v28 = vld [vmem:[#allocation11 + $0x58] sm:$0xff] }
 0x831   :  { %v14787_v53 = vadd.f32 %v7793_v42, %v7476_v51 }
 0x832   :  { %v7806_v14 = vpop.f32.mrb[252].mxu1 }
 0x833   :  { %v7808_v43 = vpop.f32.mrb[253].mxu1 }
 0x834   :  { %v7444_v59 = vpop.f32.mrb[8].mxu0  ;;  %v7809_v52 = vpop.f32.mrb[254].mxu1 }
 0x835   :  { %v7477_v31 = vadd.f32 %v7444_v59, %v14732_v61  ;;  %v7446_v25 = vpop.f32.mrb[9].mxu0  ;;  %v7811_v39 = vpop.f32.mrb[255].mxu1 }
 0x836   :  { %v7447_v20 = vpop.f32.mrb[10].mxu0 }
 0x837   :  { %v7478_v33 = vadd.f32 %v7447_v20, %v14734_v9  ;;  %v7449_v34 = vpop.f32.mrb[11].mxu0  ;;  %v14794_v12 = vadd.f32 %v7798_v60, %v7477_v31 }
 0x839   :  { %v14797_v26 = vadd.f32 %v7801_v36, %v7478_v33  ;;  %v14811_v36 = vpack.c.bf16 %v9062_v28, %v9061_v8 }
 0x83a   :  { %v7814_v61 = vpop.f32.mrb[0].mxu1 }
 0x83b   :  { %v7816_v2 = vpop.f32.mrb[1].mxu1  ;;  %10571 = vmatpush3.bf16.msra.mxu1 %v14811_v36 }
 0x83c   :  { %v7452_v63 = vpop.f32.mrb[12].mxu0  ;;  %v7817_v7 = vpop.f32.mrb[2].mxu1  ;;  %10572 = vmatprep.subr.bf16.mxu1 %v15260_v10 }
 0x83d   :  { %v7479_v58 = vadd.f32 %v7452_v63, %v14738_v0  ;;  %v7454_v49 = vpop.f32.mrb[13].mxu0  ;;  %v7819_v9 = vpop.f32.mrb[3].mxu1 }
 0x83e   :  { %v7455_v46 = vpop.f32.mrb[14].mxu0  ;;  %v14832_v9 = vpack.c.bf16 %v9064_v54, %v9063_v45 }
 0x83f   :  { %v7480_v42 = vadd.f32 %v7455_v46, %v14740_v6  ;;  %v7457_v3 = vpop.f32.mrb[15].mxu0  ;;  %v14804_v24 = vadd.f32 %v7806_v14, %v7479_v58  ;;  %v9065_v46 = vld [vmem:[#allocation11 + $0x70] sm:$0xff] }
 0x840   :  { %10574 = vmatpush3.bf16.msra.mxu1 %v14832_v9 }
 0x841   :  { %v14807_v18 = vadd.f32 %v7809_v52, %v7480_v42  ;;  %v9066_v42 = vld [vmem:[#allocation11 + $0x78] sm:$0xff]  ;;  %10575 = vmatprep.subr.bf16.mxu1 %v15260_v10 }
 0x842   :  { %v8538_v0 = vpop.f32.mrb[4].mxu1 }
 0x843   :  { %v8540_v55 = vpop.f32.mrb[5].mxu1 }
 0x844   :  { %v7460_v44 = vpop.f32.mrb[16].mxu0  ;;  %v8541_v23 = vpop.f32.mrb[6].mxu1 }
 0x845   :  { %v7481_v22 = vadd.f32 %v7460_v44, %v14744_v13  ;;  %v7462_v60 = vpop.f32.mrb[17].mxu0  ;;  %v8543_v6 = vpop.f32.mrb[7].mxu1  ;;  %v14835_v44 = vpack.c.bf16 %v9066_v42, %v9065_v46 }
 0x846   :  { %v7463_v5 = vpop.f32.mrb[18].mxu0 }
 0x847   :  { %v7482_v27 = vadd.f32 %v7463_v5, %v14746_v17  ;;  %v7465_v19 = vpop.f32.mrb[19].mxu0  ;;  %v14814_v41 = vadd.f32 %v7814_v61, %v7481_v22  ;;  %10577 = vmatpush3.bf16.msra.mxu1 %v14835_v44 }
 0x848   :  { %10578 = vmatprep.subr.bf16.mxu1 %v15260_v10 }
 0x849   :  { %v14817_v1 = vadd.f32 %v7817_v7, %v7482_v27 }
 0x84a   :  { %v8546_v13 = vpop.f32.mrb[8].mxu1 }
 0x84b   :  { %v8548_v29 = vpop.f32.mrb[9].mxu1 }
 0x84c   :  { %v8056_v51 = vpop.f32.mrb[20].mxu0  ;;  %v8549_v43 = vpop.f32.mrb[10].mxu1 }
 0x84d   :  { %v8119_v14 = vadd.f32 %v8056_v51, %v14750_v57  ;;  %v8058_v59 = vpop.f32.mrb[21].mxu0  ;;  %v8551_v25 = vpop.f32.mrb[11].mxu1 }
 0x84e   :  { %v8059_v31 = vpop.f32.mrb[22].mxu0 }
 0x84f   :  { %v8120_v17 = vadd.f32 %v8059_v31, %v14752_v47  ;;  %v8061_v52 = vpop.f32.mrb[23].mxu0  ;;  %v14822_v11 = vadd.f32 %v8538_v0, %v8119_v14 }
 0x851   :  { %v14824_v62 = vadd.f32 %v8541_v23, %v8120_v17 }
 0x852   :  { %v8554_v20 = vpop.f32.mrb[12].mxu1 }
 0x853   :  { %v8556_v33 = vpop.f32.mrb[13].mxu1 }
 0x854   :  { %v8064_v39 = vpop.f32.mrb[24].mxu0  ;;  %v8557_v63 = vpop.f32.mrb[14].mxu1 }
 0x855   :  { %v8121_v34 = vadd.f32 %v8064_v39, %v14756_v38  ;;  %v8066_v61 = vpop.f32.mrb[25].mxu0  ;;  %v8559_v57 = vpop.f32.mrb[15].mxu1 }
 0x856   :  { %v8067_v2 = vpop.f32.mrb[26].mxu0 }
 0x857   :  { %v8122_v58 = vadd.f32 %v8067_v2, %v14758_v40  ;;  %v8069_v49 = vpop.f32.mrb[27].mxu0  ;;  %v14828_v7 = vadd.f32 %v8546_v13, %v8121_v34 }
 0x859   :  { %v14830_v47 = vadd.f32 %v8549_v43, %v8122_v58 }
 0x85a   :  { %v8562_v3 = vpop.f32.mrb[16].mxu1 }
 0x85b   :  { %v8564_v38 = vpop.f32.mrb[17].mxu1 }
 0x85c   :  { %v8072_v0 = vpop.f32.mrb[28].mxu0  ;;  %v8565_v22 = vpop.f32.mrb[18].mxu1 }
 0x85d   :  { %v8123_v40 = vadd.f32 %v8072_v0, %v14764_v4  ;;  %v8074_v55 = vpop.f32.mrb[29].mxu0  ;;  %v8567_v23 = vpop.f32.mrb[19].mxu1 }
 0x85e   :  { %v8075_v60 = vpop.f32.mrb[30].mxu0 }
 0x85f   :  { %v8124_v8 = vadd.f32 %v8075_v60, %v14767_v50  ;;  %v8077_v28 = vpop.f32.mrb[31].mxu0  ;;  %v14840_v5 = vadd.f32 %v8554_v20, %v8123_v40 }
 0x861   :  { %v14843_v6 = vadd.f32 %v8557_v63, %v8124_v8 }
 0x862   :  { %v8570_v27 = vpop.f32.mrb[20].mxu1 }
 0x863   :  { %v8572_v4 = vpop.f32.mrb[21].mxu1 }
 0x864   :  { %v8080_v19 = vpop.f32.mrb[32].mxu0  ;;  %v8573_v29 = vpop.f32.mrb[22].mxu1 }
 0x865   :  { %v8125_v13 = vadd.f32 %v8080_v19, %v14774_v15  ;;  %v8082_v51 = vpop.f32.mrb[33].mxu0  ;;  %v8575_v59 = vpop.f32.mrb[23].mxu1 }
 0x866   :  { %v8083_v14 = vpop.f32.mrb[34].mxu0 }
 0x867   :  { %v8126_v50 = vadd.f32 %v8083_v14, %v14777_v37  ;;  %v8085_v43 = vpop.f32.mrb[35].mxu0  ;;  %v14848_v31 = vadd.f32 %v8562_v3, %v8125_v13 }
 0x869   :  { %v14850_v25 = vadd.f32 %v8565_v22, %v8126_v50 }
 0x86a   :  { %v8578_v17 = vpop.f32.mrb[24].mxu1 }
 0x86b   :  { %v8580_v20 = vpop.f32.mrb[25].mxu1 }
 0x86c   :  { %v8088_v52 = vpop.f32.mrb[36].mxu0  ;;  %v8581_v34 = vpop.f32.mrb[26].mxu1 }
 0x86d   :  { %v8127_v39 = vadd.f32 %v8088_v52, %v14784_v48  ;;  %v8090_v33 = vpop.f32.mrb[37].mxu0  ;;  %v8583_v15 = vpop.f32.mrb[27].mxu1 }
 0x86e   :  { %v8091_v61 = vpop.f32.mrb[38].mxu0 }
 0x86f   :  { %v8128_v63 = vadd.f32 %v8091_v61, %v14787_v53  ;;  %v8093_v2 = vpop.f32.mrb[39].mxu0  ;;  %v14854_v57 = vadd.f32 %v8570_v27, %v8127_v39 }
 0x871   :  { %v14856_v37 = vadd.f32 %v8573_v29, %v8128_v63 }
 0x872   :  { %v8586_v58 = vpop.f32.mrb[28].mxu1 }
 0x873   :  { %v8588_v45 = vpop.f32.mrb[29].mxu1 }
 0x874   :  { %v8096_v49 = vpop.f32.mrb[40].mxu0  ;;  %v8589_v42 = vpop.f32.mrb[30].mxu1 }
 0x875   :  { %v8129_v54 = vadd.f32 %v8096_v49, %v14794_v12  ;;  %v8098_v46 = vpop.f32.mrb[41].mxu0  ;;  %v8591_v48 = vpop.f32.mrb[31].mxu1 }
 0x876   :  { %v8099_v3 = vpop.f32.mrb[42].mxu0 }
 0x877   :  { %v8130_v0 = vadd.f32 %v8099_v3, %v14797_v26  ;;  %v8101_v38 = vpop.f32.mrb[43].mxu0  ;;  %v14860_v40 = vadd.f32 %v8578_v17, %v8129_v54 }
 0x879   :  { %v14862_v53 = vadd.f32 %v8581_v34, %v8130_v0 }
 0x87a   :  { %v8594_v55 = vpop.f32.mrb[32].mxu1 }
 0x87b   :  { %v8596_v60 = vpop.f32.mrb[33].mxu1 }
 0x87c   :  { %v8104_v22 = vpop.f32.mrb[44].mxu0  ;;  %v8597_v28 = vpop.f32.mrb[34].mxu1 }
 0x87d   :  { %v8131_v23 = vadd.f32 %v8104_v22, %v14804_v24  ;;  %v8106_v8 = vpop.f32.mrb[45].mxu0  ;;  %v8599_v12 = vpop.f32.mrb[35].mxu1 }
 0x87e   :  { %v8107_v27 = vpop.f32.mrb[46].mxu0 }
 0x87f   :  { %v8132_v19 = vadd.f32 %v8107_v27, %v14807_v18  ;;  %v8109_v4 = vpop.f32.mrb[47].mxu0  ;;  %v14866_v13 = vadd.f32 %v8586_v58, %v8131_v23 }
 0x881   :  { %v14868_v26 = vadd.f32 %v8589_v42, %v8132_v19 }
 0x884   :  { %v8112_v51 = vpop.f32.mrb[48].mxu0 }
 0x885   :  { %v8133_v29 = vadd.f32 %v8112_v51, %v14814_v41  ;;  %v8114_v14 = vpop.f32.mrb[49].mxu0 }
 0x886   :  { %v8115_v59 = vpop.f32.mrb[50].mxu0 }
 0x887   :  { %v8134_v50 = vadd.f32 %v8115_v59, %v14817_v1  ;;  %v14872_v43 = vadd.f32 %v8594_v55, %v8133_v29  ;;  %v8117_v24 = vpop.f32.mrb[51].mxu0 }
 0x889   :  { %v14874_v17 = vadd.f32 %v8597_v28, %v8134_v50 }
 0x88c   :  { %v8892_v52 = vpop.f32.mrb[52].mxu0 }
 0x88d   :  { %v8955_v18 = vadd.f32 %v8892_v52, %v14822_v11  ;;  %v8894_v20 = vpop.f32.mrb[53].mxu0  ;;  %v14884_v11 = vld [vmem:[%s15058_s9] ss:$0 sm:$0xff] }
 0x88e   :  { %v8895_v39 = vpop.f32.mrb[54].mxu0 }
 0x88f   :  { %v8956_v33 = vadd.f32 %v8895_v39, %v14824_v62  ;;  %v8897_v34 = vpop.f32.mrb[55].mxu0  ;;  %v14891_v42 = vadd.f32 %v14884_v11, %v8955_v18 }
 0x891   :  { %v14887_v62 = vadd.f32 %v14884_v11, %v8956_v33  ;;  %v9014_v52 = vmul.f32 %v14891_v42, %v14891_v42 }
 0x893   :  { %v9015_v59 = vmul.f32 %v14887_v62, %v14887_v62 }
 0x894   :  { %v8900_v61 = vpop.f32.mrb[56].mxu0 }
 0x895   :  { %v8957_v41 = vadd.f32 %v8900_v61, %v14828_v7  ;;  %v8902_v15 = vpop.f32.mrb[57].mxu0  ;;  %v9030_v20 = vadd.f32 %v9015_v59, %v9014_v52 }
 0x896   :  { %v8903_v63 = vpop.f32.mrb[58].mxu0 }
 0x897   :  { %v8958_v1 = vadd.f32 %v8903_v63, %v14830_v47  ;;  %v8905_v2 = vpop.f32.mrb[59].mxu0  ;;  %v14894_v47 = vadd.f32 %v14884_v11, %v8957_v41 }
 0x899   :  { %v14900_v0 = vadd.f32 %v14884_v11, %v8958_v1 }
 0x89b   :  { %v9017_v41 = vmul.f32 %v14900_v0, %v14900_v0 }
 0x89c   :  { %v8908_v58 = vpop.f32.mrb[60].mxu0 }
 0x89d   :  { %v8959_v49 = vadd.f32 %v8908_v58, %v14840_v5  ;;  %v8910_v45 = vpop.f32.mrb[61].mxu0  ;;  %v8993_v5 = vadd.f32 %v14887_v62, %v14891_v42 }
 0x89e   :  { %v8911_v54 = vpop.f32.mrb[62].mxu0 }
 0x89f   :  { %v8960_v7 = vadd.f32 %v8911_v54, %v14843_v6  ;;  %v8913_v46 = vpop.f32.mrb[63].mxu0  ;;  %v8994_v48 = vadd.f32 %v8993_v5, %v14894_v47  ;;  %v14904_v22 = vadd.f32 %v14884_v11, %v8959_v49 }
 0x8a1   :  { %v8995_v8 = vadd.f32 %v8994_v48, %v14900_v0  ;;  %v14910_v27 = vadd.f32 %v14884_v11, %v8960_v7  ;;  %v9018_v49 = vmul.f32 %v14904_v22, %v14904_v22 }
 0x8a3   :  { %v8996_v28 = vadd.f32 %v8995_v8, %v14904_v22  ;;  %v9019_v5 = vmul.f32 %v14910_v27, %v14910_v27 }
 0x8a4   :  { %v8916_v3 = vpop.f32.mrb[64].mxu0 }
 0x8a5   :  { %v8961_v38 = vadd.f32 %v8916_v3, %v14848_v31  ;;  %v8918_v55 = vpop.f32.mrb[65].mxu0  ;;  %v8997_v29 = vadd.f32 %v8996_v28, %v14910_v27 }
 0x8a6   :  { %v8919_v6 = vpop.f32.mrb[66].mxu0 }
 0x8a7   :  { %v8962_v60 = vadd.f32 %v8919_v6, %v14850_v25  ;;  %v8921_v23 = vpop.f32.mrb[67].mxu0  ;;  %v14913_v19 = vadd.f32 %v14884_v11, %v8961_v38 }
 0x8a9   :  { %v8998_v50 = vadd.f32 %v8997_v29, %v14913_v19  ;;  %v14922_v24 = vadd.f32 %v14884_v11, %v8962_v60  ;;  %v9020_v6 = vmul.f32 %v14913_v19, %v14913_v19 }
 0x8ab   :  { %v8999_v39 = vadd.f32 %v8998_v50, %v14922_v24 }
 0x8ac   :  { %v8924_v12 = vpop.f32.mrb[68].mxu0 }
 0x8ad   :  { %v8963_v31 = vadd.f32 %v8924_v12, %v14854_v57  ;;  %v8926_v4 = vpop.f32.mrb[69].mxu0  ;;  %v9016_v57 = vmul.f32 %v14894_v47, %v14894_v47 }
 0x8ae   :  { %v8927_v51 = vpop.f32.mrb[70].mxu0  ;;  %v9021_v4 = vmul.f32 %v14922_v24, %v14922_v24 }
 0x8af   :  { %v8964_v25 = vadd.f32 %v8927_v51, %v14856_v37  ;;  %v8929_v14 = vpop.f32.mrb[71].mxu0  ;;  %v14929_v18 = vadd.f32 %v14884_v11, %v8963_v31  ;;  %v9031_v61 = vadd.f32 %v9030_v20, %v9016_v57 }
 0x8b1   :  { %v9000_v63 = vadd.f32 %v8999_v39, %v14929_v18  ;;  %v14937_v1 = vadd.f32 %v14884_v11, %v8964_v25  ;;  %v9022_v25 = vmul.f32 %v14929_v18, %v14929_v18 }
 0x8b3   :  { %v9001_v54 = vadd.f32 %v9000_v63, %v14937_v1 }
 0x8b4   :  { %v8932_v37 = vpop.f32.mrb[72].mxu0 }
 0x8b5   :  { %v8965_v33 = vadd.f32 %v8932_v37, %v14860_v40  ;;  %v8934_v34 = vpop.f32.mrb[73].mxu0  ;;  %v9032_v40 = vadd.f32 %v9031_v61, %v9017_v41 }
 0x8b6   :  { %v8935_v15 = vpop.f32.mrb[74].mxu0 }
 0x8b7   :  { %v8966_v2 = vadd.f32 %v8935_v15, %v14862_v53  ;;  %v8937_v58 = vpop.f32.mrb[75].mxu0  ;;  %v14943_v45 = vadd.f32 %v14884_v11, %v8965_v33  ;;  %v9033_v7 = vadd.f32 %v9032_v40, %v9018_v49  ;;  %v9023_v33 = vmul.f32 %v14937_v1, %v14937_v1 }
 0x8b9   :  { %v9002_v3 = vadd.f32 %v9001_v54, %v14943_v45  ;;  %v14950_v48 = vadd.f32 %v14884_v11, %v8966_v2  ;;  %v9034_v28 = vadd.f32 %v9033_v7, %v9019_v5 }
 0x8bb   :  { %v9003_v12 = vadd.f32 %v9002_v3, %v14950_v48  ;;  %v9035_v31 = vadd.f32 %v9034_v28, %v9020_v6 }
 0x8bc   :  { %v8940_v46 = vpop.f32.mrb[76].mxu0 }
 0x8bd   :  { %v8967_v53 = vadd.f32 %v8940_v46, %v14866_v13  ;;  %v8942_v38 = vpop.f32.mrb[77].mxu0  ;;  %v9036_v50 = vadd.f32 %v9035_v31, %v9021_v4 }
 0x8be   :  { %v8943_v55 = vpop.f32.mrb[78].mxu0 }
 0x8bf   :  { %v14956_v60 = vadd.f32 %v14884_v11, %v8967_v53  ;;  %v8968_v23 = vadd.f32 %v8943_v55, %v14868_v26  ;;  %v8945_v8 = vpop.f32.mrb[79].mxu0  ;;  %v9037_v39 = vadd.f32 %v9036_v50, %v9022_v25 }
 0x8c1   :  { %v9004_v13 = vadd.f32 %v9003_v12, %v14956_v60  ;;  %v14964_v51 = vadd.f32 %v14884_v11, %v8968_v23  ;;  %v9038_v15 = vadd.f32 %v9037_v39, %v9023_v33  ;;  %v9026_v49 = vmul.f32 %v14956_v60, %v14956_v60 }
 0x8c3   :  { %v9005_v52 = vadd.f32 %v9004_v13, %v14964_v51  ;;  %v9027_v46 = vmul.f32 %v14964_v51, %v14964_v51 }
 0x8c4   :  { %v8948_v29 = vpop.f32.mrb[80].mxu0 }
 0x8c5   :  { %v8969_v14 = vadd.f32 %v8948_v29, %v14872_v43  ;;  %v8950_v26 = vpop.f32.mrb[81].mxu0  ;;  %v9024_v43 = vmul.f32 %v14943_v45, %v14943_v45 }
 0x8c6   :  { %v8951_v59 = vpop.f32.mrb[82].mxu0 }
 0x8c7   :  { %v14971_v57 = vadd.f32 %v14884_v11, %v8969_v14  ;;  %v8970_v20 = vadd.f32 %v8951_v59, %v14874_v17  ;;  %v8953_v37 = vpop.f32.mrb[83].mxu0  ;;  %v9039_v2 = vadd.f32 %v9038_v15, %v9024_v43  ;;  %v9025_v17 = vmul.f32 %v14950_v48, %v14950_v48  ;;  %v15311_v59 = vld [vmem:[#allocation17_spill] sm:$0xff] }
 0x8c9   :  { %v9006_v34 = vadd.f32 %v9005_v52, %v14971_v57  ;;  %v14978_v61 = vadd.f32 %v14884_v11, %v8970_v20  ;;  %v9040_v54 = vadd.f32 %v9039_v2, %v9025_v17  ;;  %v9028_v3 = vmul.f32 %v14971_v57, %v14971_v57 }
 0x8cb   :  { %v9007_v41 = vadd.f32 %v9006_v34, %v14978_v61  ;;  %v9041_v11 = vadd.f32 %v9040_v54, %v9026_v49  ;;  %v9029_v6 = vmul.f32 %v14978_v61, %v14978_v61 }
 0x8cd   :  { %v9008_v63 = vrot.slane %v9007_v41, 4  ;;  %v9042_v38 = vadd.f32 %v9041_v11, %v9027_v46 }
 0x8cf   :  { %v9009_v58 = vadd.f32 %v9008_v63, %v9007_v41  ;;  %v9043_v55 = vadd.f32 %v9042_v38, %v9028_v3 }
 0x8d1   :  { %v9010_v40 = vrot.slane %v9009_v58, 2  ;;  %v9044_v23 = vadd.f32 %v9043_v55, %v9029_v6 }
 0x8d3   :  { %v9011_v7 = vadd.f32 %v9010_v40, %v9009_v58  ;;  %v9045_v8 = vrot.slane %v9044_v23, 4 }
 0x8d5   :  { %v9012_v5 = vrot.slane %v9011_v7, 1 }
 0x8d7   :  { %v9013_v53 = vadd.f32 %v9012_v5, %v9011_v7 }
 0x8d9   :  { %10405 = vmatmul.mubr.f32.vlgmr.msra.gmra.mrb[162].mxu1 %v9013_v53 }
 0x8da   :  { %10580 = vmatpush3.bf16.msra.mxu1 %v14761_v56  ;;  %10439 = vmatprep.mubr.msk.f32.mxu1 %vm15285_vm8, %v15188_v21  ;;  %v9046_v56 = vadd.f32 %v9045_v8, %v9044_v23 }
 0x8db   :  { %10581 = vmatprep.subr.bf16.mxu1 %v15260_v10 }
 0x8dc   :  { %v9047_v21 = vrot.slane %v9046_v56, 2 }
 0x8de   :  { %10583 = vmatpush3.bf16.msra.mxu1 %v14771_v16  ;;  %v9048_v16 = vadd.f32 %v9047_v21, %v9046_v56 }
 0x8df   :  { %10584 = vmatprep.subr.bf16.mxu1 %v15260_v10 }
 0x8e2   :  { %10586 = vmatpush3.bf16.msra.mxu1 %v14781_v32  ;;  %v9049_v32 = vrot.slane %v9048_v16, 1 }
 0x8e3   :  { %10587 = vmatprep.subr.bf16.mxu1 %v15260_v10 }
 0x8e6   :  { %10589 = vmatpush3.bf16.msra.mxu1 %v14791_v35  ;;  %v9050_v35 = vadd.f32 %v9049_v32, %v9048_v16 }
 0x8e7   :  { %10590 = vmatprep.subr.bf16.mxu1 %v15260_v10 }
 0x8ea   :  { %10592 = vmatpush3.bf16.msra.mxu1 %v14801_v30 }
 0x8eb   :  { %10593 = vmatprep.subr.bf16.mxu1 %v15260_v10 }
 0x8ee   :  { %10595 = vmatpush3.bf16.msra.mxu1 %v14811_v36 }
 0x8ef   :  { %10596 = vmatprep.subr.bf16.mxu1 %v15260_v10 }
 0x8f2   :  { %10598 = vmatpush3.bf16.msra.mxu1 %v14832_v9  ;;  %v9211_v9 = vld [vmem:[%s15059_s10] sm:$0x1]  ;;  %s11118_s10 = smov [#allocation12]  }
 0x8f3   :  { %10599 = vmatprep.subr.bf16.mxu1 %v15260_v10 }
 0x8f6   :  { %10601 = vmatpush3.bf16.msra.mxu1 %v14835_v44  ;;  %v9215_v44 = vld [vmem:[%s15060_s11] sm:$0x1]  ;;  %s9299_s11 = sshll.u32 %s11118_s10, 4  ;;  %s9300_s11 = int_to_ptr.vmem [resolvable:$true] %s9299_s11 }
 0x8f7   :  { %s11072_s24 = scalar_lea.vmem %s9300_s11, 2048  ;;  %p11077_p13 = scmp.lt.s32.totalorder %s9300_s11, %s9300_s11 }
 0x8f8   :  { %p11073_p12 = scmp.ne.s32.totalorder %s9300_s11, %s11072_s24  ;;  %p11078_p0 = scmp.lt.s32.totalorder %s11072_s24, %s11072_s24 }
 0x8f9   :  { %10440 = vmatmul.mubr.f32.vlgmr.msra.gmra.mrb[36].mxu1 %v9050_v35 }
 0x8fa   :  { %p11079_p1 = por %p11078_p0, %p11077_p13 }
 0x8fc   :  { %p11080_p2 = pnand %p11079_p1, %p11073_p12 }
 0x9ac   :  { %v9133_v28 = vpop.f32.mrb[162].mxu1 }
 0x9ad   :  { %v10406_v12 = vpop.f32.mrb[163].mxu1  ;;  %v9137_v30 = vmul.f32 0.00048828125, %v9133_v28 }
 0x9af   :  { %v9209_v4 = vmul.f32 %v9137_v30, %v9137_v30 }
 0x9cc   :  { %v9204_v31 = vpop.f32.mrb[36].mxu1 }
 0x9cd   :  { %v9208_v13 = vmul.f32 0.00048828125, %v9204_v31  ;;  %v10441_v29 = vpop.f32.mrb[37].mxu1 }
 0x9cf   :  { %v9210_v36 = vsub.f32 %v9208_v13, %v9209_v4 }
 0x9d1   :  { %v9212_v25 = vadd.f32 1e-05, %v9210_v36 }
 0x9d3   :  { %10945 = vrsqrt.f32 %v9212_v25 }
 0x9dd   :  { %v10946_v14 = vpop.eup %10945 }
 0x9de   :  { %v9214_v10 = vmul.f32 %v10946_v14, %v9211_v9 }
 0x9e0   :  { %v9216_v26 = vmul.f32 %v9214_v10, %v9137_v30  ;;  %v9222_v50 = vrot.slane %v9214_v10, %v15311_v59 }
 0x9e2   :  { %v9217_v52 = vsub.f32 %v9215_v44, %v9216_v26  ;;  %v9224_v20 = vmul.f32 %v9222_v50, %v14891_v42  ;;  %v9225_v37 = vmul.f32 %v9222_v50, %v14887_v62  ;;  %v9226_v39 = vmul.f32 %v9222_v50, %v14894_v47 }
 0x9e3   :  { %v9227_v33 = vmul.f32 %v9222_v50, %v14900_v0  ;;  %v9228_v34 = vmul.f32 %v9222_v50, %v14904_v22  ;;  %v9229_v43 = vmul.f32 %v9222_v50, %v14910_v27  ;;  %v9230_v41 = vmul.f32 %v9222_v50, %v14913_v19 }
 0x9e4   :  { %v9244_v15 = vrot.slane %v9217_v52, %v15311_v59  ;;  %v9231_v63 = vmul.f32 %v9222_v50, %v14922_v24  ;;  %v9232_v2 = vmul.f32 %v9222_v50, %v14929_v18  ;;  %v9233_v42 = vmul.f32 %v9222_v50, %v14937_v1 }
 0x9e5   :  { %v9234_v62 = vmul.f32 %v9222_v50, %v14943_v45  ;;  %v9235_v47 = vmul.f32 %v9222_v50, %v14950_v48  ;;  %v9236_v0 = vmul.f32 %v9222_v50, %v14956_v60  ;;  %v9237_v22 = vmul.f32 %v9222_v50, %v14964_v51 }
 0x9e6   :  { %v9238_v27 = vmul.f32 %v9222_v50, %v14971_v57  ;;  %v9239_v19 = vmul.f32 %v9222_v50, %v14978_v61  ;;  %v9246_v17 = vadd.f32 %v9244_v15, %v9224_v20  ;;  %v9247_v58 = vadd.f32 %v9244_v15, %v9225_v37 }
 0x9e7   :  { %v9248_v49 = vadd.f32 %v9244_v15, %v9226_v39  ;;  %v9249_v24 = vadd.f32 %v9244_v15, %v9227_v33  ;;  %v9250_v40 = vadd.f32 %v9244_v15, %v9228_v34  ;;  %v9251_v18 = vadd.f32 %v9244_v15, %v9229_v43 }
 0x9e8   :  { %v9252_v54 = vadd.f32 %v9244_v15, %v9230_v41  ;;  %v9253_v1 = vadd.f32 %v9244_v15, %v9231_v63  ;;  %v9254_v7 = vadd.f32 %v9244_v15, %v9232_v2  ;;  %v9255_v45 = vadd.f32 %v9244_v15, %v9233_v42 }
 0x9e9   :  { %v9256_v11 = vadd.f32 %v9244_v15, %v9234_v62  ;;  %v9257_v48 = vadd.f32 %v9244_v15, %v9235_v47  ;;  %v9258_v46 = vadd.f32 %v9244_v15, %v9236_v0  ;;  %v9259_v60 = vadd.f32 %v9244_v15, %v9237_v22 }
 0x9ea   :  { %v9260_v5 = vadd.f32 %v9244_v15, %v9238_v27  ;;  %v9261_v51 = vadd.f32 %v9244_v15, %v9239_v19  ;;  %v9262_v3 = vmax.f32 %v9246_v17, 0.0  ;;  %v9263_v57 = vmax.f32 %v9247_v58, 0.0 }
 0x9eb   :  { %v9264_v53 = vmax.f32 %v9248_v49, 0.0  ;;  %v9265_v61 = vmax.f32 %v9249_v24, 0.0  ;;  %v9266_v38 = vmax.f32 %v9250_v40, 0.0  ;;  %v9267_v55 = vmax.f32 %v9251_v18, 0.0 }
 0x9ec   :  { %v9268_v6 = vmax.f32 %v9252_v54, 0.0  ;;  %v9269_v23 = vmax.f32 %v9253_v1, 0.0  ;;  %v9270_v8 = vmax.f32 %v9254_v7, 0.0  ;;  %v9271_v56 = vmax.f32 %v9255_v45, 0.0  ;;  %9278 = vst [vmem:[#allocation12] sm:$0xff] %v9262_v3  ;;  %9279 = vst [vmem:[#allocation12 + $0x8] sm:$0xff] %v9263_v57 }
 0x9ed   :  { %v9272_v21 = vmax.f32 %v9256_v11, 0.0  ;;  %v9273_v16 = vmax.f32 %v9257_v48, 0.0  ;;  %v9274_v32 = vmax.f32 %v9258_v46, 0.0  ;;  %v9275_v35 = vmax.f32 %v9259_v60, 0.0  ;;  %9280 = vst [vmem:[#allocation12 + $0x10] sm:$0xff] %v9264_v53  ;;  %9281 = vst [vmem:[#allocation12 + $0x18] sm:$0xff] %v9265_v61 }
 0x9ee   :  { %9282 = vst [vmem:[#allocation12 + $0x20] sm:$0xff] %v9266_v38  ;;  %9283 = vst [vmem:[#allocation12 + $0x28] sm:$0xff] %v9267_v55  ;;  %v9276_v28 = vmax.f32 %v9260_v5, 0.0  ;;  %v9277_v12 = vmax.f32 %v9261_v51, 0.0 }
 0x9ef   :  { %9284 = vst [vmem:[#allocation12 + $0x30] sm:$0xff] %v9268_v6  ;;  %9285 = vst [vmem:[#allocation12 + $0x38] sm:$0xff] %v9269_v23 }
 0x9f0   :  { %9286 = vst [vmem:[#allocation12 + $0x40] sm:$0xff] %v9270_v8  ;;  %9287 = vst [vmem:[#allocation12 + $0x48] sm:$0xff] %v9271_v56 }
 0x9f1   :  { %9288 = vst [vmem:[#allocation12 + $0x50] sm:$0xff] %v9272_v21  ;;  %9289 = vst [vmem:[#allocation12 + $0x58] sm:$0xff] %v9273_v16 }
 0x9f2   :  { %9290 = vst [vmem:[#allocation12 + $0x60] sm:$0xff] %v9274_v32  ;;  %9291 = vst [vmem:[#allocation12 + $0x68] sm:$0xff] %v9275_v35 }
 0x9f3   :  { %9292 = vst [vmem:[#allocation12 + $0x70] sm:$0xff] %v9276_v28  ;;  %9293 = vst [vmem:[#allocation12 + $0x78] sm:$0xff] %v9277_v12 }
 0x9f4   :  { %11083 = shalt.err (!%p11080_p2)
}
 0x9f5   :  { %s11084_s2 = scalar_lea.hbm %s15062_s13, 2048 }
 0x9f6   :  { %p11085_p3 = scmp.ne.s32.totalorder %s15062_s13, %s11084_s2  ;;  %p11088_p4 = scmp.lt.u32.totalorder %s11084_s2, %s15062_s13 }
 0x9f8   :  { %p11090_p5 = pnand %p11088_p4, %p11085_p3 }
 0x9fa   :  { %11093 = shalt.err (!%p11090_p5)
}
 0x9fb   :  { %9305 = dma.vmem_to_hbm [thread:$0]  %s9300_s11, 2048, %s15062_s13, [#allocation5], %s11104_s20, %s11104_s20, %s11105_s21  }
 0x9fc   :  { %11100 = dma.done.wait [#allocation5], 2048  }
 0x9fd   :  { %11101 = vsyncadd [#allocation5], 4294965248 }
 0x9fe   :  { %9309 = vsyncpa [#allocation4], 1 }
 0x9ff   :  { %9310 = vsyncpa [#allocation7], 1 }
 0xa00   :  { %9311 = vsyncpa [#allocation10], 1 }
 0xa01   :  { %9312 = vsyncpa [#allocation5], 1 }

</bundles_post_ra>
